<compile_context>
chip_gen: v7x
topology: tpu7x:2x2x1
jax: 0.10.0
libtpu: 0.0.40
codegen_flags: <defaults>
</compile_context>

<pallas_src>
import functools

import jax
import jax.numpy as jnp
from jax.experimental import pallas as pl
from jax.experimental.pallas import tpu as pltpu


# ----------------------------- Pallas kernels ----------------------------- #

def _matmul_bias_act_kernel(a_ref, b_ref, bias_ref, o_ref, *, activation):
    """o = act(a @ b + bias) for one (tm, N) output tile.

    a, b are bf16 (MXU), accumulation and bias/activation epilogue are f32.
    """
    acc = jnp.dot(a_ref[...], b_ref[...], preferred_element_type=jnp.float32)
    acc = acc + bias_ref[...]                     # bias (1, N) broadcasts over rows
    if activation == "relu":
        acc = jnp.maximum(acc, 0.0)
    elif activation == "sigmoid":
        acc = jax.nn.sigmoid(acc)
    o_ref[...] = acc.astype(o_ref.dtype)


_ROW_TILE = 256  # fixed M tile; cdiv grid handles the partial last block.


def matmul_bias_act(a, b, bias, activation="none", out_dtype=jnp.float32):
    """a: (M, K) bf16, b: (K, N) bf16, bias: (1, N) f32.

    K and N are lane-dense (multiples of 128) at every call site, so loads and
    stores are unmasked full-lane; M is tiled with cdiv so partial last blocks
    are handled by Pallas (padding rows are simply not stored).
    """
    M, K = a.shape
    K2, N = b.shape
    assert K == K2 and bias.shape == (1, N)
    assert K % 128 == 0 and N % 128 == 0, "contraction/output dims must be lane-dense"
    if M <= _ROW_TILE:
        tm, grid = M, (1,)                       # block == full dim (always legal)
    else:
        tm, grid = _ROW_TILE, (pl.cdiv(M, _ROW_TILE),)
    kernel = functools.partial(_matmul_bias_act_kernel, activation=activation)
    return pl.pallas_call(
        kernel,
        out_shape=jax.ShapeDtypeStruct((M, N), out_dtype),
        grid=grid,
        in_specs=[
            pl.BlockSpec((tm, K), lambda i: (i, 0)),
            pl.BlockSpec((K, N), lambda i: (0, 0)),
            pl.BlockSpec((1, N), lambda i: (0, 0)),
        ],
        out_specs=pl.BlockSpec((tm, N), lambda i: (i, 0)),
        compiler_params=pltpu.CompilerParams(
            dimension_semantics=("parallel",)),
    )(a, b, bias)


def _conv3_fc_fused_kernel(x_ref, w3_ref, b3_ref, w1a_ref, w1b_ref, b1_ref,
                           w2_ref, b2_ref, o_ref):
    """Fused tail:  emb_{a,b} = relu(x_{a,b} @ W3 + b3)           (conv3, 1x1 out)
                    h         = relu(emb_a @ W1a + emb_b @ W1b + b1)   (== concat @ W1)
                    o         = sigmoid(h @ W2 + b2)

    All padded to 128 lanes; the (B,384) embeddings and the (B,128) hidden
    activation never leave VMEM/vregs, and the branch concat is a split-K
    matmul (no row gather, no HBM round trip).
    """
    w3 = w3_ref[...]
    b3 = b3_ref[...]
    emb_a = jnp.maximum(
        jnp.dot(x_ref[0], w3, preferred_element_type=jnp.float32) + b3, 0.0)
    emb_b = jnp.maximum(
        jnp.dot(x_ref[1], w3, preferred_element_type=jnp.float32) + b3, 0.0)
    h = (jnp.dot(emb_a.astype(w1a_ref.dtype), w1a_ref[...],
                 preferred_element_type=jnp.float32)
         + jnp.dot(emb_b.astype(w1b_ref.dtype), w1b_ref[...],
                   preferred_element_type=jnp.float32))
    h = jnp.maximum(h + b1_ref[...], 0.0)
    out = jnp.dot(h.astype(w2_ref.dtype), w2_ref[...],
                  preferred_element_type=jnp.float32)
    o_ref[...] = jax.nn.sigmoid(out + b2_ref[...])


def conv3_fc_fused(x3, w3, b3, w1a, w1b, b1, w2, b2):
    """x3: (2, B, 2304) bf16 — the two Siamese branches' conv3 inputs."""
    # TODO(synk): for large B, give this kernel an M-tiled grid over the B axis
    # ("parallel") instead of one whole-array VMEM block.
    B = x3.shape[1]
    Np = w2.shape[1]
    return pl.pallas_call(
        _conv3_fc_fused_kernel,
        out_shape=jax.ShapeDtypeStruct((B, Np), jnp.float32),
        in_specs=[pl.BlockSpec(memory_space=pltpu.MemorySpace.VMEM)
                  for _ in range(8)],
        out_specs=pl.BlockSpec(memory_space=pltpu.MemorySpace.VMEM),
    )(x3, w3, b3, w1a, w1b, b1, w2, b2)


# ------------------------------ layer wrappers ----------------------------- #

def _strided_taps(x, k, stride):
    """x: (B,H,W,C) NHWC -> list of k*k strided views, each (B,Ho,Wo,C)."""
    B, H, W, C = x.shape
    Ho = (H - k) // stride + 1
    Wo = (W - k) // stride + 1
    taps = []
    for di in range(k):
        for dj in range(k):
            taps.append(
                x[:, di:di + (Ho - 1) * stride + 1:stride,
                     dj:dj + (Wo - 1) * stride + 1:stride, :]
            )
    return taps, Ho, Wo


def conv2d_relu(x, w2col, bias, k, stride):
    """x: (B,H,W,Cin) bf16 NHWC; w2col: (Kpad, Cout) bf16 where Kpad = k*k*Cin
    rounded up to a multiple of 128 (extra rows are zero); bias: (1,Cout) f32."""
    # TODO(synk): for large batches, move im2col inside the matmul kernel
    # (loop over the k*k taps with pl.ds reads into an f32 VMEM accumulator)
    # instead of materializing the patches tensor in XLA.
    B, H, W, Cin = x.shape
    Cout = w2col.shape[1]
    Kdim = k * k * Cin
    Kpad = w2col.shape[0]
    taps, Ho, Wo = _strided_taps(x, k, stride)
    # im2col, tap order (di, dj, cin) matches the (K,K,Cin,Cout) weight reshape.
    patches = jnp.stack(taps, axis=3).reshape(B * Ho * Wo, Kdim)
    if Kpad != Kdim:   # pad contraction dim to a lane-dense multiple of 128
        patches = jnp.pad(patches, ((0, 0), (0, Kpad - Kdim)))
    out = matmul_bias_act(patches, w2col, bias, activation="relu",
                          out_dtype=jnp.bfloat16)
    return out.reshape(B, Ho, Wo, Cout)


def maxpool2d(x, k, stride):
    """Chained elementwise max over strided views; XLA fuses the slices + max
    into a single pass (no k*k stacked tensor, no extra kernel launch)."""
    taps, _, _ = _strided_taps(x, k, stride)
    out = taps[0]
    for t in taps[1:]:
        out = jnp.maximum(out, t)
    return out


# ------------------------------- ConvNet model ----------------------------- #

def init_params(key):
    ks = jax.random.split(key, 5)

    def norm(k, shape, scale):
        return jax.random.normal(k, shape, jnp.float32) * scale

    return {
        "conv1_w": norm(ks[0], (96, 1, 11, 11), 0.02),
        "conv1_b": jnp.zeros((96,), jnp.float32),
        "conv2_w": norm(ks[1], (256, 96, 5, 5), 0.02),
        "conv2_b": jnp.zeros((256,), jnp.float32),
        "conv3_w": norm(ks[2], (384, 256, 3, 3), 0.02),
        "conv3_b": jnp.zeros((384,), jnp.float32),
        "fc1_w": norm(ks[3], (32, 768), 0.02),   # PyTorch Linear: (out, in)
        "fc1_b": jnp.zeros((32,), jnp.float32),
        "fc2_w": norm(ks[4], (1, 32), 0.02),
        "fc2_b": jnp.zeros((1,), jnp.float32),
    }


def prepare_params(p):
    """One-time weight prep: transpose to matmul layout, zero-pad channels AND
    contraction dims to lane-dense multiples of 128 (numerically exact), bf16."""
    def conv_w2col(w, cin_pad, cout_pad):
        cout, cin, k, _ = w.shape
        w = jnp.transpose(w, (2, 3, 1, 0))                     # (K, K, Cin, Cout)
        w = jnp.pad(w, ((0, 0), (0, 0),
                        (0, cin_pad - cin), (0, cout_pad - cout)))
        w = w.reshape(k * k * cin_pad, cout_pad)
        kdim = k * k * cin_pad
        kdim_pad = ((kdim + 127) // 128) * 128                 # lane-dense contraction
        w = jnp.pad(w, ((0, kdim_pad - kdim), (0, 0)))
        return w.astype(jnp.bfloat16)

    def pad_bias(b, n_pad):
        return jnp.pad(b, (0, n_pad - b.shape[0])).reshape(1, n_pad).astype(jnp.float32)

    c1_out = 128   # conv1 Cout 96 -> 128 (conv2 Cin padded to match)
    fc_pad = 128   # fc widths 32 / 1 -> 128
    # fc1: torch (32, 768) -> (768, 128), zero-padded output columns; split into
    # the rows multiplying the branch-a / branch-b embeddings so the kernel can
    # express concat(emb_a, emb_b) @ W1 as emb_a @ W1a + emb_b @ W1b.
    fc1_w = jnp.pad(p["fc1_w"].T, ((0, 0), (0, fc_pad - 32))).astype(jnp.bfloat16)
    return {
        "conv1_w2col": conv_w2col(p["conv1_w"], 1, c1_out),      # (128, 128), K 121->128
        "conv1_b": pad_bias(p["conv1_b"], c1_out),
        "conv2_w2col": conv_w2col(p["conv2_w"], c1_out, 256),    # (3200, 256)
        "conv2_b": pad_bias(p["conv2_b"], 256),
        "conv3_w2col": conv_w2col(p["conv3_w"], 256, 384),       # (2304, 384)
        "conv3_b": pad_bias(p["conv3_b"], 384),
        "fc1_wa": fc1_w[:384],                                   # (384, 128)
        "fc1_wb": fc1_w[384:],                                   # (384, 128)
        "fc1_b": pad_bias(p["fc1_b"], fc_pad),
        # fc2: torch (1, 32) -> (128, 128), zero-padded rows (hidden) & cols (out).
        "fc2_w": jnp.pad(p["fc2_w"].T, ((0, fc_pad - 32), (0, fc_pad - 1))).astype(jnp.bfloat16),
        "fc2_b": pad_bias(p["fc2_b"], fc_pad),
    }


def convnet_forward(prepared, x1, x2):
    B = x1.shape[0]
    # Siamese branches batched into one pass; NCHW -> NHWC; bf16 activations.
    x = jnp.concatenate([x1, x2], axis=0)                              # (2B,1,100,100)
    x = jnp.transpose(x, (0, 2, 3, 1)).astype(jnp.bfloat16)            # (2B,100,100,1)
    x = conv2d_relu(x, prepared["conv1_w2col"], prepared["conv1_b"], 11, 4)  # (2B,23,23,128)
    x = maxpool2d(x, 3, 2)                                                   # (2B,11,11,128)
    x = conv2d_relu(x, prepared["conv2_w2col"], prepared["conv2_b"], 5, 1)   # (2B,7,7,256)
    x = maxpool2d(x, 2, 2)                                                   # (2B,3,3,256)
    # conv3's 3x3 kernel covers the whole pooled 3x3 map (Ho=Wo=1), so its
    # im2col is exactly the NHWC flatten — no taps/stack needed.  Since spatial
    # is 1x1, the NHWC flatten also equals PyTorch's NCHW output.view(B, -1).
    x3 = x.reshape(2, B, 3 * 3 * 256)                                        # (2,B,2304)
    sim_padded = conv3_fc_fused(
        x3, prepared["conv3_w2col"], prepared["conv3_b"],
        prepared["fc1_wa"], prepared["fc1_wb"], prepared["fc1_b"],
        prepared["fc2_w"], prepared["fc2_b"])                                # (B,128)
    return sim_padded[:, :1]                                                 # (B,1)


# ----------------------------------- main ----------------------------------- #

if __name__ == "__main__":
    key = jax.random.PRNGKey(0)
    k_params, k_x1, k_x2 = jax.random.split(key, 3)

    params = init_params(k_params)
    prepared = prepare_params(params)   # one-time weight prep (outside jit)

    # 100x100 single-channel input is what makes Linear(768, 32) consistent.
    batch = 2
    x1 = jax.random.normal(k_x1, (batch, 1, 100, 100), jnp.float32)
    x2 = jax.random.normal(k_x2, (batch, 1, 100, 100), jnp.float32)

    fwd = jax.jit(convnet_forward)
    similarity = fwd(prepared, x1, x2)
    jax.block_until_ready(similarity)

    assert similarity.shape == (batch, 1)
    assert bool(jnp.all((similarity >= 0.0) & (similarity <= 1.0)))
    print("KERNEL_OK")
</pallas_src>

<mosaic_0001>
module attributes {stable_mosaic.version = 11 : i64} {
  func.func @_matmul_bias_act_kernel(%arg0: i32, %arg1: memref<256x128xbf16, #tpu.memory_space<vmem>>, %arg2: memref<128x128xbf16, #tpu.memory_space<vmem>>, %arg3: memref<1x128xf32, #tpu.memory_space<vmem>>, %arg4: memref<256x128xbf16, #tpu.memory_space<vmem>>) attributes {dimension_semantics = [#tpu.dimension_semantics<parallel>], iteration_bounds = array<i64: 9>, scalar_prefetch = 0 : i64, scratch_operands = 0 : i64, tpu.core_type = #tpu.core_type<tc>, window_params = [{transform_indices = @transform_0, window_bounds = array<i64: 256, 128>}, {pipeline_mode = #tpu.pipeline_mode<synchronous>, transform_indices = @transform_1, window_bounds = array<i64: 128, 128>}, {pipeline_mode = #tpu.pipeline_mode<synchronous>, transform_indices = @transform_2, window_bounds = array<i64: 1, 128>}, {transform_indices = @transform_3, window_bounds = array<i64: 256, 128>}]} {
    %c0 = arith.constant 0 : index
    %c0_0 = arith.constant 0 : index
    %0 = vector.load %arg1[%c0, %c0_0] : memref<256x128xbf16, #tpu.memory_space<vmem>>, vector<256x128xbf16>
    %c0_1 = arith.constant 0 : index
    %c0_2 = arith.constant 0 : index
    %1 = vector.load %arg2[%c0_1, %c0_2] : memref<128x128xbf16, #tpu.memory_space<vmem>>, vector<128x128xbf16>
    %cst = arith.constant dense<0.000000e+00> : vector<256x128xf32>
    %2 = tpu.matmul %0, %1, %cst {dimension_numbers = #tpu.dot_dimension_numbers<[1], [0], [0], [1], [0, 0, 1, 1], [], []>} : vector<256x128xbf16>, vector<128x128xbf16>, vector<256x128xf32> -> vector<256x128xf32>
    %c0_3 = arith.constant 0 : index
    %c0_4 = arith.constant 0 : index
    %3 = vector.load %arg3[%c0_3, %c0_4] : memref<1x128xf32, #tpu.memory_space<vmem>>, vector<1x128xf32>
    %4 = vector.broadcast %3 : vector<1x128xf32> to vector<256x128xf32>
    %5 = arith.addf %2, %4 : vector<256x128xf32>
    %cst_5 = arith.constant 0.000000e+00 : f32
    %6 = vector.broadcast %cst_5 : f32 to vector<256x128xf32>
    %7 = arith.maximumf %5, %6 : vector<256x128xf32>
    %8 = arith.truncf %7 : vector<256x128xf32> to vector<256x128xbf16>
    %c0_6 = arith.constant 0 : index
    %c0_7 = arith.constant 0 : index
    %9 = vector.load %arg4[%c0_6, %c0_7] : memref<256x128xbf16, #tpu.memory_space<vmem>>, vector<256x128xbf16>
    tpu.vector_store %arg4[%c0_6, %c0_7], %8 {strides = array<i32>} : memref<256x128xbf16, #tpu.memory_space<vmem>>, vector<256x128xbf16>,
    return
  }
  func.func @transform_0(%arg0: i32) -> (i32, i32) {
    %c0_i32 = arith.constant 0 : i32
    %c0_i32_0 = arith.constant 0 : i32
    return %arg0, %c0_i32 : i32, i32
  }
  func.func @transform_1(%arg0: i32) -> (i32, i32) {
    %c0_i32 = arith.constant 0 : i32
    %c0_i32_0 = arith.constant 0 : i32
    %c0_i32_1 = arith.constant 0 : i32
    return %c0_i32, %c0_i32_0 : i32, i32
  }
  func.func @transform_2(%arg0: i32) -> (i32, i32) {
    %c0_i32 = arith.constant 0 : i32
    %c0_i32_0 = arith.constant 0 : i32
    %c0_i32_1 = arith.constant 0 : i32
    return %c0_i32, %c0_i32_0 : i32, i32
  }
  func.func @transform_3(%arg0: i32) -> (i32, i32) {
    %c0_i32 = arith.constant 0 : i32
    %c0_i32_0 = arith.constant 0 : i32
    return %arg0, %c0_i32 : i32, i32
  }
}

module attributes {stable_mosaic.version = 11 : i64} {
  func.func @_matmul_bias_act_kernel(%arg0: i32, %arg1: memref<196x3200xbf16, #tpu.memory_space<vmem>>, %arg2: memref<3200x256xbf16, #tpu.memory_space<vmem>>, %arg3: memref<1x256xf32, #tpu.memory_space<vmem>>, %arg4: memref<196x256xbf16, #tpu.memory_space<vmem>>) attributes {dimension_semantics = [#tpu.dimension_semantics<parallel>], iteration_bounds = array<i64: 1>, scalar_prefetch = 0 : i64, scratch_operands = 0 : i64, tpu.core_type = #tpu.core_type<tc>, window_params = [{transform_indices = @transform_0, window_bounds = array<i64: 196, 3200>}, {pipeline_mode = #tpu.pipeline_mode<synchronous>, transform_indices = @transform_1, window_bounds = array<i64: 3200, 256>}, {pipeline_mode = #tpu.pipeline_mode<synchronous>, transform_indices = @transform_2, window_bounds = array<i64: 1, 256>}, {transform_indices = @transform_3, window_bounds = array<i64: 196, 256>}]} {
    %c0 = arith.constant 0 : index
    %c0_0 = arith.constant 0 : index
    %0 = vector.load %arg1[%c0, %c0_0] : memref<196x3200xbf16, #tpu.memory_space<vmem>>, vector<196x3200xbf16>
    %c0_1 = arith.constant 0 : index
    %c0_2 = arith.constant 0 : index
    %1 = vector.load %arg2[%c0_1, %c0_2] : memref<3200x256xbf16, #tpu.memory_space<vmem>>, vector<3200x256xbf16>
    %cst = arith.constant dense<0.000000e+00> : vector<196x256xf32>
    %2 = tpu.matmul %0, %1, %cst {dimension_numbers = #tpu.dot_dimension_numbers<[1], [0], [0], [1], [0, 0, 1, 1], [], []>} : vector<196x3200xbf16>, vector<3200x256xbf16>, vector<196x256xf32> -> vector<196x256xf32>
    %c0_3 = arith.constant 0 : index
    %c0_4 = arith.constant 0 : index
    %3 = vector.load %arg3[%c0_3, %c0_4] : memref<1x256xf32, #tpu.memory_space<vmem>>, vector<1x256xf32>
    %4 = vector.broadcast %3 : vector<1x256xf32> to vector<196x256xf32>
    %5 = arith.addf %2, %4 : vector<196x256xf32>
    %cst_5 = arith.constant 0.000000e+00 : f32
    %6 = vector.broadcast %cst_5 : f32 to vector<196x256xf32>
    %7 = arith.maximumf %5, %6 : vector<196x256xf32>
    %8 = arith.truncf %7 : vector<196x256xf32> to vector<196x256xbf16>
    %c0_6 = arith.constant 0 : index
    %c0_7 = arith.constant 0 : index
    %9 = vector.load %arg4[%c0_6, %c0_7] : memref<196x256xbf16, #tpu.memory_space<vmem>>, vector<196x256xbf16>
    tpu.vector_store %arg4[%c0_6, %c0_7], %8 {strides = array<i32>} : memref<196x256xbf16, #tpu.memory_space<vmem>>, vector<196x256xbf16>,
    return
  }
  func.func @transform_0(%arg0: i32) -> (i32, i32) {
    %c0_i32 = arith.constant 0 : i32
    %c0_i32_0 = arith.constant 0 : i32
    return %arg0, %c0_i32 : i32, i32
  }
  func.func @transform_1(%arg0: i32) -> (i32, i32) {
    %c0_i32 = arith.constant 0 : i32
    %c0_i32_0 = arith.constant 0 : i32
    %c0_i32_1 = arith.constant 0 : i32
    return %c0_i32, %c0_i32_0 : i32, i32
  }
  func.func @transform_2(%arg0: i32) -> (i32, i32) {
    %c0_i32 = arith.constant 0 : i32
    %c0_i32_0 = arith.constant 0 : i32
    %c0_i32_1 = arith.constant 0 : i32
    return %c0_i32, %c0_i32_0 : i32, i32
  }
  func.func @transform_3(%arg0: i32) -> (i32, i32) {
    %c0_i32 = arith.constant 0 : i32
    %c0_i32_0 = arith.constant 0 : i32
    return %arg0, %c0_i32 : i32, i32
  }
}

module attributes {stable_mosaic.version = 11 : i64} {
  func.func @_conv3_fc_fused_kernel(%arg0: memref<2x2x2304xbf16, #tpu.memory_space<vmem>>, %arg1: memref<2304x384xbf16, #tpu.memory_space<vmem>>, %arg2: memref<1x384xf32, #tpu.memory_space<vmem>>, %arg3: memref<384x128xbf16, #tpu.memory_space<vmem>>, %arg4: memref<384x128xbf16, #tpu.memory_space<vmem>>, %arg5: memref<1x128xf32, #tpu.memory_space<vmem>>, %arg6: memref<128x128xbf16, #tpu.memory_space<vmem>>, %arg7: memref<1x128xf32, #tpu.memory_space<vmem>>, %arg8: memref<2x128xf32, #tpu.memory_space<vmem>>) attributes {dimension_semantics = [], scalar_prefetch = 0 : i64, scratch_operands = 0 : i64, tpu.core_type = #tpu.core_type<tc>} {
    %c0 = arith.constant 0 : index
    %c0_0 = arith.constant 0 : index
    %0 = vector.load %arg1[%c0, %c0_0] : memref<2304x384xbf16, #tpu.memory_space<vmem>>, vector<2304x384xbf16>
    %c0_1 = arith.constant 0 : index
    %c0_2 = arith.constant 0 : index
    %1 = vector.load %arg2[%c0_1, %c0_2] : memref<1x384xf32, #tpu.memory_space<vmem>>, vector<1x384xf32>
    %c0_3 = arith.constant 0 : index
    %c0_4 = arith.constant 0 : index
    %c0_5 = arith.constant 0 : index
    %2 = vector.load %arg0[%c0_3, %c0_4, %c0_5] : memref<2x2x2304xbf16, #tpu.memory_space<vmem>>, vector<1x2x2304xbf16>
    %3 = vector.shape_cast %2 : vector<1x2x2304xbf16> to vector<2x2304xbf16>
    %cst = arith.constant dense<0.000000e+00> : vector<2x384xf32>
    %4 = tpu.matmul %3, %0, %cst {dimension_numbers = #tpu.dot_dimension_numbers<[1], [0], [0], [1], [0, 0, 1, 1], [], []>} : vector<2x2304xbf16>, vector<2304x384xbf16>, vector<2x384xf32> -> vector<2x384xf32>
    %5 = vector.broadcast %1 : vector<1x384xf32> to vector<2x384xf32>
    %6 = arith.addf %4, %5 : vector<2x384xf32>
    %cst_6 = arith.constant 0.000000e+00 : f32
    %7 = vector.broadcast %cst_6 : f32 to vector<2x384xf32>
    %8 = arith.maximumf %6, %7 : vector<2x384xf32>
    %c1 = arith.constant 1 : index
    %c0_7 = arith.constant 0 : index
    %c0_8 = arith.constant 0 : index
    %9 = vector.load %arg0[%c1, %c0_7, %c0_8] : memref<2x2x2304xbf16, #tpu.memory_space<vmem>>, vector<1x2x2304xbf16>
    %10 = vector.shape_cast %9 : vector<1x2x2304xbf16> to vector<2x2304xbf16>
    %cst_9 = arith.constant dense<0.000000e+00> : vector<2x384xf32>
    %11 = tpu.matmul %10, %0, %cst_9 {dimension_numbers = #tpu.dot_dimension_numbers<[1], [0], [0], [1], [0, 0, 1, 1], [], []>} : vector<2x2304xbf16>, vector<2304x384xbf16>, vector<2x384xf32> -> vector<2x384xf32>
    %12 = vector.broadcast %1 : vector<1x384xf32> to vector<2x384xf32>
    %13 = arith.addf %11, %12 : vector<2x384xf32>
    %cst_10 = arith.constant 0.000000e+00 : f32
    %14 = vector.broadcast %cst_10 : f32 to vector<2x384xf32>
    %15 = arith.maximumf %13, %14 : vector<2x384xf32>
    %16 = arith.truncf %8 : vector<2x384xf32> to vector<2x384xbf16>
    %c0_11 = arith.constant 0 : index
    %c0_12 = arith.constant 0 : index
    %17 = vector.load %arg3[%c0_11, %c0_12] : memref<384x128xbf16, #tpu.memory_space<vmem>>, vector<384x128xbf16>
    %cst_13 = arith.constant dense<0.000000e+00> : vector<2x128xf32>
    %18 = tpu.matmul %16, %17, %cst_13 {dimension_numbers = #tpu.dot_dimension_numbers<[1], [0], [0], [1], [0, 0, 1, 1], [], []>} : vector<2x384xbf16>, vector<384x128xbf16>, vector<2x128xf32> -> vector<2x128xf32>
    %19 = arith.truncf %15 : vector<2x384xf32> to vector<2x384xbf16>
    %c0_14 = arith.constant 0 : index
    %c0_15 = arith.constant 0 : index
    %20 = vector.load %arg4[%c0_14, %c0_15] : memref<384x128xbf16, #tpu.memory_space<vmem>>, vector<384x128xbf16>
    %cst_16 = arith.constant dense<0.000000e+00> : vector<2x128xf32>
    %21 = tpu.matmul %19, %20, %cst_16 {dimension_numbers = #tpu.dot_dimension_numbers<[1], [0], [0], [1], [0, 0, 1, 1], [], []>} : vector<2x384xbf16>, vector<384x128xbf16>, vector<2x128xf32> -> vector<2x128xf32>
    %22 = arith.addf %18, %21 : vector<2x128xf32>
    %c0_17 = arith.constant 0 : index
    %c0_18 = arith.constant 0 : index
    %23 = vector.load %arg5[%c0_17, %c0_18] : memref<1x128xf32, #tpu.memory_space<vmem>>, vector<1x128xf32>
    %24 = vector.broadcast %23 : vector<1x128xf32> to vector<2x128xf32>
    %25 = arith.addf %22, %24 : vector<2x128xf32>
    %cst_19 = arith.constant 0.000000e+00 : f32
    %26 = vector.broadcast %cst_19 : f32 to vector<2x128xf32>
    %27 = arith.maximumf %25, %26 : vector<2x128xf32>
    %28 = arith.truncf %27 : vector<2x128xf32> to vector<2x128xbf16>
    %c0_20 = arith.constant 0 : index
    %c0_21 = arith.constant 0 : index
    %29 = vector.load %arg6[%c0_20, %c0_21] : memref<128x128xbf16, #tpu.memory_space<vmem>>, vector<128x128xbf16>
    %cst_22 = arith.constant dense<0.000000e+00> : vector<2x128xf32>
    %30 = tpu.matmul %28, %29, %cst_22 {dimension_numbers = #tpu.dot_dimension_numbers<[1], [0], [0], [1], [0, 0, 1, 1], [], []>} : vector<2x128xbf16>, vector<128x128xbf16>, vector<2x128xf32> -> vector<2x128xf32>
    %c0_23 = arith.constant 0 : index
    %c0_24 = arith.constant 0 : index
    %31 = vector.load %arg7[%c0_23, %c0_24] : memref<1x128xf32, #tpu.memory_space<vmem>>, vector<1x128xf32>
    %32 = vector.broadcast %31 : vector<1x128xf32> to vector<2x128xf32>
    %33 = arith.addf %30, %32 : vector<2x128xf32>
    %34 = arith.negf %33 : vector<2x128xf32>
    %35 = math.exp %34 : vector<2x128xf32>
    %cst_25 = arith.constant 1.000000e+00 : f32
    %36 = vector.broadcast %cst_25 : f32 to vector<2x128xf32>
    %37 = arith.addf %36, %35 : vector<2x128xf32>
    %38 = arith.divf %36, %37 : vector<2x128xf32>
    %c0_26 = arith.constant 0 : index
    %c0_27 = arith.constant 0 : index
    %39 = vector.load %arg8[%c0_26, %c0_27] : memref<2x128xf32, #tpu.memory_space<vmem>>, vector<2x128xf32>
    tpu.vector_store %arg8[%c0_26, %c0_27], %38 {strides = array<i32>} : memref<2x128xf32, #tpu.memory_space<vmem>>, vector<2x128xf32>,
    return
  }
}

</mosaic_0001>

<bundles_post_ra>
// kernel: convnet_forward.3
= control target key start
LH: loop header
LB: loop body
LE: loop exit
PB: predicated region body
PF: predicated region fallthrough
CT: control target
= control target key end

     0   :  { %s1602_s12 = smov 0   ;;  %s1604_s13 = smov 0   ;;  %s1872_s0 = inlined_call_operand.vmem [shape: bf16[2116,128], index: 0, kind: input, shape index: {}]   ;;  %s1873_s1 = inlined_call_operand.vmem [shape: bf16[128,128], index: 1, kind: input, shape index: {}]   ;;  %s1874_s2 = inlined_call_operand.vmem [shape: f32[1,128], index: 2, kind: input, shape index: {}]   ;;  %s1875_s3 = inlined_call_operand.vmem [shape: bf16[2116,128], index: 3, kind: output, shape index: {}]  }
   0x1   :  { %s1606_s14 = smov 0  }
   0x2 LB: > { %s1615_s15 = sadd.s32 4294967295, %s1548_s14   ;;  %s1617_s16 = sadd.s32 1, %s1548_s14   ;;  %s1548_s14 = sphi %s1606_s14, %s1882_s14   ;;  %s1544_s13 = sphi %s1604_s13, %s1881_s13   ;;  %s1540_s12 = sphi %s1602_s12, %s1880_s12  }
   0x3   : > { %s85_s17 = ssub.s32 %s1548_s14, %s1617_s16  ;;  %s88_s18 = sadd.s32 1, %s1544_s13 }
   0x4   : > { %p86_p0 = scmp.eq.s32.totalorder %s85_s17, 0  ;;  %p98_p1 = scmp.ne.s32.totalorder %s1544_s13, %s1540_s12 }
   0x5   : > { %p99_p2 = scmp.eq.s32.totalorder %s1615_s15, 8  ;;  %p1086_p3 = scmp.ge.s32.totalorder %s1548_s14, 1 }
   0x6   : > { %s1625_s19 = scalar_select %p86_p0, %s1544_s13, %s88_s18  }
   0x7   : > { %p1627_p4 = por %p99_p2, %p98_p1  ;;  %p146_p5 = scmp.lt.s32.totalorder %s1548_s14, 10 }
   0x9   : > { %p147_p6 = pnand %p1086_p3, %p146_p5 }
   0xa   : > { %v1470_v0 = vld [vmem:[%s1873_s1] sm:$0xff] (!%p147_p6)   ;;  %s1635_s23 = sshll.u32 (!%p147_p6), %s1615_s15, 5  ;;  %v1471_v1 = vld [vmem:[%s1873_s1 + $0x8] sm:$0xff] (!%p147_p6)   ;;  %v1472_v2 = vld [vmem:[%s1873_s1 + $0x10] sm:$0xff] (!%p147_p6)   ;;  %s170_s25 = sand.u32 (!%p147_p6), 1, %s1540_s12  }
   0xb   : > { %150 = sbr.rel (%p147_p6) target bundleno = 360 (0x168), region = 32  ;;  %p178_p7 = scmp.lt.s32.totalorder (!%p147_p6), %s1635_s23, 264  ;;  %1318 = vmatprep.subr.bf16.mxu0 (!%p147_p6), %v1470_v0  ;;  %1366 = vmatprep.subr.bf16.mxu1 (!%p147_p6), %v1470_v0  ;;  %v1473_v3 = vld [vmem:[%s1873_s1 + $0x18] sm:$0xff] (!%p147_p6)   ;;  %v1474_v6 = vld [vmem:[%s1873_s1 + $0x20] sm:$0xff] (!%p147_p6)   ;;  %v1475_v7 = vld [vmem:[%s1873_s1 + $0x28] sm:$0xff] (!%p147_p6)  }
   0xc   : > { %1319 = vmatpush3.bf16.msra.mxu0 (!%p147_p6), %v1470_v0  ;;  %1374 = vmatpush3.bf16.msra.mxu1 (!%p147_p6), %v1470_v0  ;;  %v1476_v8 = vld [vmem:[%s1873_s1 + $0x30] sm:$0xff] (!%p147_p6)   ;;  %v1477_v9 = vld [vmem:[%s1873_s1 + $0x38] sm:$0xff] (!%p147_p6)   ;;  %v1684_v24 = vld [vmem:[%s1874_s2] ss:$0 sm:$0xff] (!%p147_p6) }
   0xd   : > { %1320 = vmatprep.subr.bf16.mxu0 (!%p147_p6), %v1471_v1  ;;  %1367 = vmatprep.subr.bf16.mxu1 (!%p147_p6), %v1471_v1 }
  0x10   : > { %1321 = vmatpush3.bf16.msra.mxu0 (!%p147_p6), %v1471_v1  ;;  %1375 = vmatpush3.bf16.msra.mxu1 (!%p147_p6), %v1471_v1 }
  0x11   : > { %1322 = vmatprep.subr.bf16.mxu0 (!%p147_p6), %v1472_v2  ;;  %1368 = vmatprep.subr.bf16.mxu1 (!%p147_p6), %v1472_v2 }
  0x12   : > { %s179_s26 = scalar_select %p178_p7, %s1635_s23, 264 }
  0x13   : > { %s753_s27 = ssub.s32 (%p1627_p4), 265, %s1635_s23  ;;  %s1196_s28 = sshll.u32 (%p1627_p4), %s1615_s15, 7 }
  0x14   : > { %s1089_s29 = sshll.u32 %s179_s26, 2  ;;  %1323 = vmatpush3.bf16.msra.mxu0 %v1472_v2  ;;  %1376 = vmatpush3.bf16.msra.mxu1 %v1472_v2  ;;  %s1087_s26 = sshll.u32 %s170_s25, 7 }
  0x15   : > { %s1648_s5 = scalar_lea.vmem %s1872_s0, %s1089_s29  ;;  %1324 = vmatprep.subr.bf16.mxu0 %v1473_v3  ;;  %1369 = vmatprep.subr.bf16.mxu1 %v1473_v3  ;;  %s1695_s12 = scalar_lea.vmem [#allocation2], %s1087_s26  }
  0x16   : > { %v1478_v4 = vld [vmem:[%s1648_s5] sm:$0xff]   ;;  %v1480_v10 = vld [vmem:[%s1648_s5 + $0x8] sm:$0xff]   ;;  %v1482_v12 = vld [vmem:[%s1648_s5 + $0x10] sm:$0xff]   ;;  %p754_p8 = scmp.lt.s32.totalorder (%p1627_p4), %s753_s27, 32  ;;  %s1744_s4 = scalar_lea.vmem (%p1627_p4), %s1875_s3, %s1196_s28  }
  0x17   : > { %v1479_v5 = vld [vmem:[%s1648_s5 + $0x40] sm:$0xff]   ;;  %1334 = vmatprep.mubr.bf16.mxu0 %v1478_v4  ;;  %v1481_v11 = vld [vmem:[%s1648_s5 + $0x48] sm:$0xff]   ;;  %v1483_v13 = vld [vmem:[%s1648_s5 + $0x50] sm:$0xff]  }
  0x18   : > { %1350 = vmatprep.mubr.bf16.mxu1 %v1479_v5  ;;  %1325 = vmatpush3.bf16.msra.mxu0 %v1473_v3  ;;  %v1484_v14 = vld [vmem:[%s1648_s5 + $0x18] sm:$0xff]   ;;  %v1486_v16 = vld [vmem:[%s1648_s5 + $0x20] sm:$0xff]   ;;  %v1488_v18 = vld [vmem:[%s1648_s5 + $0x28] sm:$0xff]  }
  0x19   : > { %1377 = vmatpush3.bf16.msra.mxu1 %v1473_v3  ;;  %1326 = vmatprep.subr.bf16.mxu0 %v1474_v6  ;;  %v1485_v15 = vld [vmem:[%s1648_s5 + $0x58] sm:$0xff]   ;;  %v1487_v17 = vld [vmem:[%s1648_s5 + $0x60] sm:$0xff]   ;;  %v1489_v19 = vld [vmem:[%s1648_s5 + $0x68] sm:$0xff]  }
  0x1a   : > { %1370 = vmatprep.subr.bf16.mxu1 %v1474_v6  ;;  %v1490_v20 = vld [vmem:[%s1648_s5 + $0x30] sm:$0xff]   ;;  %v1492_v22 = vld [vmem:[%s1648_s5 + $0x38] sm:$0xff]  }
  0x1b   : > { %v1491_v21 = vld [vmem:[%s1648_s5 + $0x70] sm:$0xff]   ;;  %v1493_v23 = vld [vmem:[%s1648_s5 + $0x78] sm:$0xff]  }
  0x1c   : > { %1327 = vmatpush3.bf16.msra.mxu0 %v1474_v6 }
  0x1d   : > { %1378 = vmatpush3.bf16.msra.mxu1 %v1474_v6  ;;  %1328 = vmatprep.subr.bf16.mxu0 %v1475_v7 }
  0x1e   : > { %1371 = vmatprep.subr.bf16.mxu1 %v1475_v7 }
  0x20   : > { %1329 = vmatpush3.bf16.msra.mxu0 %v1475_v7 }
  0x21   : > { %1379 = vmatpush3.bf16.msra.mxu1 %v1475_v7  ;;  %1330 = vmatprep.subr.bf16.mxu0 %v1476_v8 }
  0x22   : > { %1372 = vmatprep.subr.bf16.mxu1 %v1476_v8 }
  0x24   : > { %1331 = vmatpush3.bf16.msra.mxu0 %v1476_v8 }
  0x25   : > { %1380 = vmatpush3.bf16.msra.mxu1 %v1476_v8  ;;  %1332 = vmatprep.subr.bf16.mxu0 %v1477_v9 }
  0x26   : > { %1373 = vmatprep.subr.bf16.mxu1 %v1477_v9 }
  0x28   : > { %1333 = vmatpush3.bf16.msra.mxu0 %v1477_v9 }
  0x29   : > { %1381 = vmatpush3.bf16.msra.mxu1 %v1477_v9 }
  0x2b   : > { %1335 = vmatmul.mubr.bf16.vlgmr.msra.gmra.mrb[0].mxu0 %v1480_v10 }
  0x2c   : > { %1351 = vmatmul.mubr.bf16.vlgmr.msra.gmra.mrb[0].mxu1 %v1481_v11  ;;  %1338 = vmatprep.mubr.bf16.mxu0 %v1482_v12 }
  0x2d   : > { %1354 = vmatprep.mubr.bf16.mxu1 %v1483_v13 }
  0x33   : > { %1339 = vmatmul.mubr.bf16.gmra.mrb[4].mxu0 %v1484_v14 }
  0x34   : > { %1355 = vmatmul.mubr.bf16.gmra.mrb[4].mxu1 %v1485_v15  ;;  %1342 = vmatprep.mubr.bf16.mxu0 %v1486_v16 }
  0x35   : > { %1358 = vmatprep.mubr.bf16.mxu1 %v1487_v17 }
  0x3b   : > { %1343 = vmatmul.mubr.bf16.gmra.mrb[8].mxu0 %v1488_v18 }
  0x3c   : > { %1359 = vmatmul.mubr.bf16.gmra.mrb[8].mxu1 %v1489_v19  ;;  %1346 = vmatprep.mubr.bf16.mxu0 %v1490_v20 }
  0x3d   : > { %1362 = vmatprep.mubr.bf16.mxu1 %v1491_v21 }
  0x43   : > { %1347 = vmatmul.mubr.bf16.gmra.mrb[12].mxu0 %v1492_v22 }
  0x44   : > { %1363 = vmatmul.mubr.bf16.gmra.mrb[12].mxu1 %v1493_v23 }
  0xfe   : > { %v1336_v25 = vpop.f32.mrb[0].mxu0 }
  0xff   : > { %v1352_v26 = vpop.f32.mrb[0].mxu1  ;;  %v435_v27 = vadd.f32 %v1336_v25, %v1684_v24  ;;  %v426_v29 = vpop.f32.mrb[1].mxu0 }
 0x100   : > { %v499_v28 = vadd.f32 %v1352_v26, %v1684_v24  ;;  %v490_v30 = vpop.f32.mrb[1].mxu1  ;;  %v427_v31 = vadd.f32 %v1684_v24, %v426_v29  ;;  %v1337_v33 = vpop.f32.mrb[2].mxu0 }
 0x101   : > { %v491_v32 = vadd.f32 %v1684_v24, %v490_v30  ;;  %v1353_v34 = vpop.f32.mrb[2].mxu1  ;;  %v438_v35 = vadd.f32 %v1337_v33, %v1684_v24  ;;  %v429_v37 = vpop.f32.mrb[3].mxu0  ;;  %v555_v41 = vmax.f32 %v435_v27, 0.0 }
 0x102   : > { %v502_v36 = vadd.f32 %v1353_v34, %v1684_v24  ;;  %v493_v38 = vpop.f32.mrb[3].mxu1  ;;  %v430_v39 = vadd.f32 %v1684_v24, %v429_v37  ;;  %v571_v42 = vmax.f32 %v499_v28, 0.0  ;;  %v553_v45 = vmax.f32 %v427_v31, 0.0 }
 0x103   : > { %v494_v40 = vadd.f32 %v1684_v24, %v493_v38  ;;  %v556_v43 = vmax.f32 %v438_v35, 0.0  ;;  %v569_v46 = vmax.f32 %v491_v32, 0.0 }
 0x104   : > { %v572_v44 = vmax.f32 %v502_v36, 0.0  ;;  %v554_v47 = vmax.f32 %v430_v39, 0.0 }
 0x105   : > { %v570_v48 = vmax.f32 %v494_v40, 0.0  ;;  %v1207_v49 = vpack.c.bf16 %v556_v43, %v555_v41 }
 0x106   : > { %v1247_v50 = vpack.c.bf16 %v572_v44, %v571_v42  ;;  %v1202_v51 = vpack.c.bf16 %v554_v47, %v553_v45  ;;  %v1340_v53 = vpop.f32.mrb[4].mxu0 }
 0x107   : > { %v1242_v52 = vpack.c.bf16 %v570_v48, %v569_v46  ;;  %v1356_v54 = vpop.f32.mrb[4].mxu1  ;;  %1279 = vst [vmem:[%s1695_s12 + $0x8] sm:$0xff] %v1207_v49   ;;  %v451_v55 = vadd.f32 %v1340_v53, %v1684_v24  ;;  %v442_v57 = vpop.f32.mrb[5].mxu0 }
 0x108   : > { %1287 = vst [vmem:[%s1695_s12 + $0x48] sm:$0xff] %v1247_v50   ;;  %v515_v56 = vadd.f32 %v1356_v54, %v1684_v24  ;;  %v506_v58 = vpop.f32.mrb[5].mxu1  ;;  %1203 = vst [vmem:[%s1695_s12] sm:$0xff] %v1202_v51   ;;  %v443_v59 = vadd.f32 %v1684_v24, %v442_v57  ;;  %v1341_v61 = vpop.f32.mrb[6].mxu0 }
 0x109   : > { %1286 = vst [vmem:[%s1695_s12 + $0x40] sm:$0xff] %v1242_v52   ;;  %v507_v60 = vadd.f32 %v1684_v24, %v506_v58  ;;  %v1357_v62 = vpop.f32.mrb[6].mxu1  ;;  %v454_v63 = vadd.f32 %v1341_v61, %v1684_v24  ;;  %v445_v1 = vpop.f32.mrb[7].mxu0  ;;  %v559_v5 = vmax.f32 %v451_v55, 0.0 }
 0x10a   : > { %v518_v0 = vadd.f32 %v1357_v62, %v1684_v24  ;;  %v509_v2 = vpop.f32.mrb[7].mxu1  ;;  %v446_v3 = vadd.f32 %v1684_v24, %v445_v1  ;;  %v575_v6 = vmax.f32 %v515_v56, 0.0  ;;  %v557_v9 = vmax.f32 %v443_v59, 0.0 }
 0x10b   : > { %v510_v4 = vadd.f32 %v1684_v24, %v509_v2  ;;  %v560_v7 = vmax.f32 %v454_v63, 0.0  ;;  %v573_v10 = vmax.f32 %v507_v60, 0.0 }
 0x10c   : > { %v576_v8 = vmax.f32 %v518_v0, 0.0  ;;  %v558_v11 = vmax.f32 %v446_v3, 0.0 }
 0x10d   : > { %v574_v12 = vmax.f32 %v510_v4, 0.0  ;;  %v1217_v13 = vpack.c.bf16 %v560_v7, %v559_v5 }
 0x10e   : > { %v1257_v14 = vpack.c.bf16 %v576_v8, %v575_v6  ;;  %v1212_v15 = vpack.c.bf16 %v558_v11, %v557_v9  ;;  %v1344_v17 = vpop.f32.mrb[8].mxu0 }
 0x10f   : > { %v1252_v16 = vpack.c.bf16 %v574_v12, %v573_v10  ;;  %v1360_v18 = vpop.f32.mrb[8].mxu1  ;;  %1281 = vst [vmem:[%s1695_s12 + $0x18] sm:$0xff] %v1217_v13   ;;  %v467_v19 = vadd.f32 %v1344_v17, %v1684_v24  ;;  %v458_v21 = vpop.f32.mrb[9].mxu0 }
 0x110   : > { %1289 = vst [vmem:[%s1695_s12 + $0x58] sm:$0xff] %v1257_v14   ;;  %v531_v20 = vadd.f32 %v1360_v18, %v1684_v24  ;;  %v522_v22 = vpop.f32.mrb[9].mxu1  ;;  %1280 = vst [vmem:[%s1695_s12 + $0x10] sm:$0xff] %v1212_v15   ;;  %v459_v23 = vadd.f32 %v1684_v24, %v458_v21  ;;  %v1345_v26 = vpop.f32.mrb[10].mxu0 }
 0x111   : > { %1288 = vst [vmem:[%s1695_s12 + $0x50] sm:$0xff] %v1252_v16   ;;  %v523_v25 = vadd.f32 %v1684_v24, %v522_v22  ;;  %v1361_v27 = vpop.f32.mrb[10].mxu1  ;;  %v470_v28 = vadd.f32 %v1345_v26, %v1684_v24  ;;  %v461_v30 = vpop.f32.mrb[11].mxu0  ;;  %v563_v34 = vmax.f32 %v467_v19, 0.0 }
 0x112   : > { %v534_v29 = vadd.f32 %v1361_v27, %v1684_v24  ;;  %v525_v31 = vpop.f32.mrb[11].mxu1  ;;  %v462_v32 = vadd.f32 %v1684_v24, %v461_v30  ;;  %v579_v35 = vmax.f32 %v531_v20, 0.0  ;;  %v561_v38 = vmax.f32 %v459_v23, 0.0 }
 0x113   : > { %v526_v33 = vadd.f32 %v1684_v24, %v525_v31  ;;  %v564_v36 = vmax.f32 %v470_v28, 0.0  ;;  %v577_v39 = vmax.f32 %v523_v25, 0.0 }
 0x114   : > { %v580_v37 = vmax.f32 %v534_v29, 0.0  ;;  %v562_v40 = vmax.f32 %v462_v32, 0.0 }
 0x115   : > { %v578_v41 = vmax.f32 %v526_v33, 0.0  ;;  %v1227_v42 = vpack.c.bf16 %v564_v36, %v563_v34 }
 0x116   : > { %v1267_v43 = vpack.c.bf16 %v580_v37, %v579_v35  ;;  %v1222_v44 = vpack.c.bf16 %v562_v40, %v561_v38  ;;  %v1348_v46 = vpop.f32.mrb[12].mxu0 }
 0x117   : > { %v1262_v45 = vpack.c.bf16 %v578_v41, %v577_v39  ;;  %v1364_v47 = vpop.f32.mrb[12].mxu1  ;;  %1283 = vst [vmem:[%s1695_s12 + $0x28] sm:$0xff] %v1227_v42   ;;  %v483_v48 = vadd.f32 %v1348_v46, %v1684_v24  ;;  %v474_v50 = vpop.f32.mrb[13].mxu0 }
 0x118   : > { %1291 = vst [vmem:[%s1695_s12 + $0x68] sm:$0xff] %v1267_v43   ;;  %v547_v49 = vadd.f32 %v1364_v47, %v1684_v24  ;;  %v538_v51 = vpop.f32.mrb[13].mxu1  ;;  %1282 = vst [vmem:[%s1695_s12 + $0x20] sm:$0xff] %v1222_v44   ;;  %v475_v52 = vadd.f32 %v1684_v24, %v474_v50  ;;  %v1349_v54 = vpop.f32.mrb[14].mxu0 }
 0x119   : > { %1290 = vst [vmem:[%s1695_s12 + $0x60] sm:$0xff] %v1262_v45   ;;  %v539_v53 = vadd.f32 %v1684_v24, %v538_v51  ;;  %v1365_v55 = vpop.f32.mrb[14].mxu1  ;;  %v486_v56 = vadd.f32 %v1349_v54, %v1684_v24  ;;  %v477_v58 = vpop.f32.mrb[15].mxu0  ;;  %v567_v62 = vmax.f32 %v483_v48, 0.0 }
 0x11a   : > { %v550_v57 = vadd.f32 %v1365_v55, %v1684_v24  ;;  %v541_v59 = vpop.f32.mrb[15].mxu1  ;;  %v478_v60 = vadd.f32 %v1684_v24, %v477_v58  ;;  %v583_v63 = vmax.f32 %v547_v49, 0.0  ;;  %v565_v2 = vmax.f32 %v475_v52, 0.0 }
 0x11b   : > { %v542_v61 = vadd.f32 %v1684_v24, %v541_v59  ;;  %v568_v0 = vmax.f32 %v486_v56, 0.0  ;;  %v581_v3 = vmax.f32 %v539_v53, 0.0  ;;  %751 = sbr.rel (!%p1627_p4) target bundleno = 360 (0x168), region = 36 }
 0x11c   : > { %v584_v1 = vmax.f32 %v550_v57, 0.0  ;;  %v566_v4 = vmax.f32 %v478_v60, 0.0 }
 0x11d   : > { %v582_v5 = vmax.f32 %v542_v61, 0.0  ;;  %v1237_v6 = vpack.c.bf16 %v568_v0, %v567_v62 }
 0x11e   : > { %v1277_v7 = vpack.c.bf16 %v584_v1, %v583_v63  ;;  %v1232_v8 = vpack.c.bf16 %v566_v4, %v565_v2 }
 0x11f   : > { %v1272_v9 = vpack.c.bf16 %v582_v5, %v581_v3  ;;  %1285 = vst [vmem:[%s1695_s12 + $0x38] sm:$0xff] %v1237_v6  }
 0x120   : > { %1293 = vst [vmem:[%s1695_s12 + $0x78] sm:$0xff] %v1277_v7   ;;  %1284 = vst [vmem:[%s1695_s12 + $0x30] sm:$0xff] %v1232_v8  }
 0x121   : > { %1292 = vst [vmem:[%s1695_s12 + $0x70] sm:$0xff] %v1272_v9  }
 0x122   : > { %s1884_s27 = smov (!%p754_p8, %s753_s27), 32 }
 0x123   : > { %s1149_s5 = sshll.u32 %s1884_s27, 6 }
 0x124   : > { %p1152_p9 = scmp.eq.s32.totalorder %s1149_s5, 0 }
 0x125   : > { %s1750_s6 = sshrl.u32 (!%p1152_p9), %s1884_s27, 5 }
 0x126   : > { %762 = sbr.rel (%p1152_p9) target bundleno = 360 (0x168), region = 40  ;;  %p1153_p10 = scmp.le.s32.totalorder (!%p1152_p9), %s1750_s6, 0 }
 0x12d   : > { %1039 = sbr.rel (%p1153_p10) target bundleno = 339 (0x153), region = 112  ;;  %s1877_s15 = smov (!%p1153_p10), %s1744_s4 }
 0x12e   : > { %s1878_s20 = smov (!%p1153_p10), %s1695_s12  ;;  %s1759_s23 = smov (!%p1153_p10), 0  }
 0x12f   : > { %s1761_s7 = smov (!%p1153_p10), 0  }
 0x134 LB: >> { %v778_v24 = vld [vmem:[%s1556_s20] sm:$0xf]  ;;  %v780_v10 = vld [vmem:[%s1556_s20 + $0x4] sm:$0xf]  ;;  %v782_v11 = vld [vmem:[%s1556_s20 + $0x8] sm:$0xf]  ;;  %s1564_s7 = sphi %s1761_s7, %s772_s7   ;;  %s1560_s23 = sphi %s1759_s23, %s1879_s23   ;;  %s1556_s20 = sphi %s1878_s20, %s847_s20   ;;  %s1552_s15 = sphi %s1877_s15, %s848_s15  }
 0x135   : >> { %779 = vst [vmem:[%s1552_s15] sm:$0xf] %v778_v24  ;;  %781 = vst [vmem:[%s1552_s15 + $0x4] sm:$0xf] %v780_v10  ;;  %v784_v12 = vld [vmem:[%s1556_s20 + $0xc] sm:$0xf]  ;;  %s842_s8 = sadd.s32 1, %s1560_s23 }
 0x136   : >> { %783 = vst [vmem:[%s1552_s15 + $0x8] sm:$0xf] %v782_v11  ;;  %v786_v13 = vld [vmem:[%s1556_s20 + $0x10] sm:$0xf]  ;;  %v788_v14 = vld [vmem:[%s1556_s20 + $0x14] sm:$0xf]  ;;  %p843_p11 = scmp.ge.s32.totalorder %s842_s8, %s1750_s6 }
 0x137   : >> { %785 = vst [vmem:[%s1552_s15 + $0xc] sm:$0xf] %v784_v12  ;;  %787 = vst [vmem:[%s1552_s15 + $0x10] sm:$0xf] %v786_v13  ;;  %v790_v15 = vld [vmem:[%s1556_s20 + $0x18] sm:$0xf] }
 0x138   : >> { %789 = vst [vmem:[%s1552_s15 + $0x14] sm:$0xf] %v788_v14  ;;  %v792_v16 = vld [vmem:[%s1556_s20 + $0x1c] sm:$0xf]  ;;  %v794_v17 = vld [vmem:[%s1556_s20 + $0x20] sm:$0xf] }
 0x139   : >> { %791 = vst [vmem:[%s1552_s15 + $0x18] sm:$0xf] %v790_v15  ;;  %793 = vst [vmem:[%s1552_s15 + $0x1c] sm:$0xf] %v792_v16  ;;  %v796_v18 = vld [vmem:[%s1556_s20 + $0x24] sm:$0xf] }
 0x13a   : >> { %795 = vst [vmem:[%s1552_s15 + $0x20] sm:$0xf] %v794_v17  ;;  %v798_v19 = vld [vmem:[%s1556_s20 + $0x28] sm:$0xf]  ;;  %v800_v20 = vld [vmem:[%s1556_s20 + $0x2c] sm:$0xf] }
 0x13b   : >> { %797 = vst [vmem:[%s1552_s15 + $0x24] sm:$0xf] %v796_v18  ;;  %799 = vst [vmem:[%s1552_s15 + $0x28] sm:$0xf] %v798_v19  ;;  %v802_v21 = vld [vmem:[%s1556_s20 + $0x30] sm:$0xf] }
 0x13c   : >> { %801 = vst [vmem:[%s1552_s15 + $0x2c] sm:$0xf] %v800_v20  ;;  %v804_v22 = vld [vmem:[%s1556_s20 + $0x34] sm:$0xf]  ;;  %v806_v23 = vld [vmem:[%s1556_s20 + $0x38] sm:$0xf] }
 0x13d   : >> { %803 = vst [vmem:[%s1552_s15 + $0x30] sm:$0xf] %v802_v21  ;;  %805 = vst [vmem:[%s1552_s15 + $0x34] sm:$0xf] %v804_v22  ;;  %v808_v25 = vld [vmem:[%s1556_s20 + $0x3c] sm:$0xf] }
 0x13e   : >> { %807 = vst [vmem:[%s1552_s15 + $0x38] sm:$0xf] %v806_v23  ;;  %v810_v26 = vld [vmem:[%s1556_s20 + $0x40] sm:$0xf]  ;;  %v812_v27 = vld [vmem:[%s1556_s20 + $0x44] sm:$0xf] }
 0x13f   : >> { %809 = vst [vmem:[%s1552_s15 + $0x3c] sm:$0xf] %v808_v25  ;;  %811 = vst [vmem:[%s1552_s15 + $0x40] sm:$0xf] %v810_v26  ;;  %v814_v28 = vld [vmem:[%s1556_s20 + $0x48] sm:$0xf] }
 0x140   : >> { %813 = vst [vmem:[%s1552_s15 + $0x44] sm:$0xf] %v812_v27  ;;  %v816_v29 = vld [vmem:[%s1556_s20 + $0x4c] sm:$0xf]  ;;  %v818_v30 = vld [vmem:[%s1556_s20 + $0x50] sm:$0xf] }
 0x141   : >> { %815 = vst [vmem:[%s1552_s15 + $0x48] sm:$0xf] %v814_v28  ;;  %817 = vst [vmem:[%s1552_s15 + $0x4c] sm:$0xf] %v816_v29  ;;  %v820_v31 = vld [vmem:[%s1556_s20 + $0x54] sm:$0xf] }
 0x142   : >> { %819 = vst [vmem:[%s1552_s15 + $0x50] sm:$0xf] %v818_v30  ;;  %v822_v32 = vld [vmem:[%s1556_s20 + $0x58] sm:$0xf]  ;;  %v824_v33 = vld [vmem:[%s1556_s20 + $0x5c] sm:$0xf] }
 0x143   : >> { %821 = vst [vmem:[%s1552_s15 + $0x54] sm:$0xf] %v820_v31  ;;  %823 = vst [vmem:[%s1552_s15 + $0x58] sm:$0xf] %v822_v32  ;;  %v826_v34 = vld [vmem:[%s1556_s20 + $0x60] sm:$0xf] }
 0x144   : >> { %825 = vst [vmem:[%s1552_s15 + $0x5c] sm:$0xf] %v824_v33  ;;  %v828_v35 = vld [vmem:[%s1556_s20 + $0x64] sm:$0xf]  ;;  %v830_v36 = vld [vmem:[%s1556_s20 + $0x68] sm:$0xf] }
 0x145   : >> { %827 = vst [vmem:[%s1552_s15 + $0x60] sm:$0xf] %v826_v34  ;;  %829 = vst [vmem:[%s1552_s15 + $0x64] sm:$0xf] %v828_v35  ;;  %v832_v37 = vld [vmem:[%s1556_s20 + $0x6c] sm:$0xf] }
 0x146   : >> { %831 = vst [vmem:[%s1552_s15 + $0x68] sm:$0xf] %v830_v36  ;;  %v834_v38 = vld [vmem:[%s1556_s20 + $0x70] sm:$0xf]  ;;  %v836_v39 = vld [vmem:[%s1556_s20 + $0x74] sm:$0xf] }
 0x147   : >> { %833 = vst [vmem:[%s1552_s15 + $0x6c] sm:$0xf] %v832_v37  ;;  %835 = vst [vmem:[%s1552_s15 + $0x70] sm:$0xf] %v834_v38  ;;  %v838_v40 = vld [vmem:[%s1556_s20 + $0x78] sm:$0xf] }
 0x148   : >> { %837 = vst [vmem:[%s1552_s15 + $0x74] sm:$0xf] %v836_v39  ;;  %v840_v41 = vld [vmem:[%s1556_s20 + $0x7c] sm:$0xf]  ;;  %839 = vst [vmem:[%s1552_s15 + $0x78] sm:$0xf] %v838_v40 }
 0x149   : >> { %841 = vst [vmem:[%s1552_s15 + $0x7c] sm:$0xf] %v840_v41  ;;  %s1886_s8 = smov (%p843_p11, %s842_s8), 0  ;;  %s772_s7 = sadd.s32 1, %s1564_s7  }
 0x14a   : >> { %s1154_s9 = sshll.u32 %s1886_s8, 7  ;;  %p771_p12 = scmp.ge.s32.totalorder %s772_s7, %s1750_s6 }
 0x14b   : >> { %s847_s20 = scalar_lea.vmem %s1695_s12, %s1154_s9 [#allocation2]   ;;  %s848_s15 = scalar_lea.vmem %s1744_s4, %s1154_s9  }
 0x14c   : >> { %s1879_s23 = smov %s1886_s8  ;;  %774 = sbr.rel (!%p771_p12) target bundleno = 308 (0x134), region = 118 }
 0x153 PF: > { %s1854_s10 = sand.u32 31, %s1884_s27   ;;  %s1197_s11 = sshll.u32 %s1750_s6, 7 }
 0x154   : > { %s853_s14 = scalar_lea.vmem %s1695_s12, %s1197_s11 [#allocation2]   ;;  %s855_s17 = scalar_lea.vmem %s1744_s4, %s1197_s11  }
 0x155   : > { %p1159_p13 = scmp.le.s32.totalorder %s1854_s10, 0 }
 0x156   : > { %s1566_s18 = smov (!%p1159_p13), %s855_s17   ;;  %s1570_s21 = smov (!%p1159_p13), %s853_s14  }
 0x157   : > { %1053 = sbr.rel (%p1159_p13) target bundleno = 360 (0x168), region = 123  ;;  %s1574_s22 = smov (!%p1159_p13), 0  }
 0x158   : > { %s1578_s24 = smov (!%p1159_p13), 0  }
 0x15e LB: >> { %v865_v42 = vld [vmem:[%s1572_s21] sm:$0xf]  ;;  %s867_s25 = sadd.s32 1, %s1576_s22  ;;  %s859_s24 = sadd.s32 1, %s1580_s24   ;;  %s1580_s24 = sphi %s1578_s24, %s859_s24   ;;  %s1576_s22 = sphi %s1574_s22, %s1575_s22   ;;  %s1572_s21 = sphi %s1570_s21, %s872_s21   ;;  %s1568_s18 = sphi %s1566_s18, %s873_s18  }
 0x15f   : >> { %866 = vst [vmem:[%s1568_s18] sm:$0xf] %v865_v42  ;;  %p868_p0 = scmp.ge.s32.totalorder %s867_s25, %s1854_s10  ;;  %p858_p1 = scmp.ge.s32.totalorder %s859_s24, %s1854_s10 }
 0x161   : >> { %s1888_s25 = smov (%p868_p0, %s867_s25), 0  ;;  %861 = sbr.rel (!%p858_p1) target bundleno = 350 (0x15e), region = 129 }
 0x162   : >> { %s1160_s26 = sshll.u32 %s1888_s25, 2  ;;  %s1575_s22 = smov %s1888_s25  }
 0x163   : >> { %s872_s21 = scalar_lea.vmem %s853_s14, %s1160_s26 [#allocation2]   ;;  %s873_s18 = scalar_lea.vmem %s855_s17, %s1160_s26  }
 0x168 PF: > { %p10_p2 = scmp.ge.s32.totalorder %s1617_s16, 11   ;;  %s1880_s12 = smov %s1544_s13 }
 0x169   : > { %s1881_s13 = smov %s1625_s19  ;;  %s1882_s14 = smov %s1617_s16 }
 0x16a   :  { %12 = sbr.rel (!%p10_p2) target bundleno = 2 (0x2), region = 140 }

// kernel: convnet_forward.4
= control target key start
LH: loop header
LB: loop body
LE: loop exit
PB: predicated region body
PF: predicated region fallthrough
CT: control target
= control target key end

     0   :  { %s11852_s1 = inlined_call_operand.vmem [shape: bf16[3200,256], index: 1, kind: input, shape index: {}]   ;;  %s11853_s0 = inlined_call_operand.vmem [shape: bf16[196,3200], index: 0, kind: input, shape index: {}]   ;;  %s11854_s2 = inlined_call_operand.vmem [shape: f32[1,256], index: 2, kind: input, shape index: {}]   ;;  %s11855_s3 = inlined_call_operand.vmem [shape: bf16[196,256], index: 3, kind: output, shape index: {}]  }
   0x1   :  { %v8152_v0 = vld [vmem:[%s11852_s1 + $0x4] ss:$8 sps:$4 sm:$0xff]   ;;  %v8156_v2 = vld [vmem:[%s11852_s1] ss:$8 sps:$4 sm:$0xff]   ;;  %v8158_v4 = vld [vmem:[%s11852_s1 + $0x14] ss:$8 sps:$4 sm:$0xff]  }
   0x2   :  { %v8154_v1 = vld [vmem:[%s11852_s1 + $0x604] ss:$8 sps:$4 sm:$0xff]   ;;  %4352 = vmatprep.subr.bf16.mxu1 %v8152_v0  ;;  %v8157_v3 = vld [vmem:[%s11852_s1 + $0x600] ss:$8 sps:$4 sm:$0xff]   ;;  %v8160_v5 = vld [vmem:[%s11852_s1 + $0x614] ss:$8 sps:$4 sm:$0xff]  }
   0x3   :  { %5318 = vmatprep.subr.bf16.mxu0 %v8154_v1  ;;  %4353 = vmatpush1.bf16.msra.mxu1 %v8156_v2  ;;  %v8162_v6 = vld [vmem:[%s11852_s1 + $0x10] ss:$8 sps:$4 sm:$0xff]   ;;  %v8164_v8 = vld [vmem:[%s11852_s1 + $0x24] ss:$8 sps:$4 sm:$0xff]   ;;  %v8168_v10 = vld [vmem:[%s11852_s1 + $0x20] ss:$8 sps:$4 sm:$0xff]  }
   0x4   :  { %5319 = vmatpush1.bf16.msra.mxu0 %v8157_v3  ;;  %4354 = vmatprep.subr.bf16.mxu1 %v8158_v4  ;;  %v8163_v7 = vld [vmem:[%s11852_s1 + $0x610] ss:$8 sps:$4 sm:$0xff]   ;;  %v8166_v9 = vld [vmem:[%s11852_s1 + $0x624] ss:$8 sps:$4 sm:$0xff]   ;;  %v8169_v11 = vld [vmem:[%s11852_s1 + $0x620] ss:$8 sps:$4 sm:$0xff]  }
   0x5   :  { %5320 = vmatprep.subr.bf16.mxu0 %v8160_v5  ;;  %v8170_v12 = vld [vmem:[%s11852_s1 + $0x34] ss:$8 sps:$4 sm:$0xff]   ;;  %v8174_v14 = vld [vmem:[%s11852_s1 + $0x30] ss:$8 sps:$4 sm:$0xff]   ;;  %v8176_v16 = vld [vmem:[%s11852_s1 + $0x44] ss:$8 sps:$4 sm:$0xff]  }
   0x6   :  { %v8172_v13 = vld [vmem:[%s11852_s1 + $0x634] ss:$8 sps:$4 sm:$0xff]   ;;  %v8175_v15 = vld [vmem:[%s11852_s1 + $0x630] ss:$8 sps:$4 sm:$0xff]   ;;  %v8178_v17 = vld [vmem:[%s11852_s1 + $0x644] ss:$8 sps:$4 sm:$0xff]  }
   0x7   :  { %4355 = vmatpush1.bf16.msra.mxu1 %v8162_v6  ;;  %v8180_v18 = vld [vmem:[%s11852_s1 + $0x40] ss:$8 sps:$4 sm:$0xff]   ;;  %v8182_v20 = vld [vmem:[%s11852_s1 + $0x54] ss:$8 sps:$4 sm:$0xff]   ;;  %v8186_v22 = vld [vmem:[%s11852_s1 + $0x50] ss:$8 sps:$4 sm:$0xff]  }
   0x8   :  { %5321 = vmatpush1.bf16.msra.mxu0 %v8163_v7  ;;  %4356 = vmatprep.subr.bf16.mxu1 %v8164_v8  ;;  %v8181_v19 = vld [vmem:[%s11852_s1 + $0x640] ss:$8 sps:$4 sm:$0xff]   ;;  %v8184_v21 = vld [vmem:[%s11852_s1 + $0x654] ss:$8 sps:$4 sm:$0xff]   ;;  %v8187_v23 = vld [vmem:[%s11852_s1 + $0x650] ss:$8 sps:$4 sm:$0xff]  }
   0x9   :  { %5322 = vmatprep.subr.bf16.mxu0 %v8166_v9  ;;  %v8188_v24 = vld [vmem:[%s11852_s1 + $0x64] ss:$8 sps:$4 sm:$0xff]   ;;  %v8192_v26 = vld [vmem:[%s11852_s1 + $0x60] ss:$8 sps:$4 sm:$0xff]   ;;  %v8194_v28 = vld [vmem:[%s11852_s1 + $0x74] ss:$8 sps:$4 sm:$0xff]  }
   0xa   :  { %v8190_v25 = vld [vmem:[%s11852_s1 + $0x664] ss:$8 sps:$4 sm:$0xff]   ;;  %v8193_v27 = vld [vmem:[%s11852_s1 + $0x660] ss:$8 sps:$4 sm:$0xff]   ;;  %v8196_v29 = vld [vmem:[%s11852_s1 + $0x674] ss:$8 sps:$4 sm:$0xff]  }
   0xb   :  { %4357 = vmatpush1.bf16.msra.mxu1 %v8168_v10  ;;  %v8198_v30 = vld [vmem:[%s11852_s1 + $0x70] ss:$8 sps:$4 sm:$0xff]   ;;  %v8200_v32 = vld [vmem:[%s11852_s1 + $0x84] ss:$8 sps:$4 sm:$0xff]   ;;  %v8204_v34 = vld [vmem:[%s11852_s1 + $0x80] ss:$8 sps:$4 sm:$0xff]  }
   0xc   :  { %5323 = vmatpush1.bf16.msra.mxu0 %v8169_v11  ;;  %4358 = vmatprep.subr.bf16.mxu1 %v8170_v12  ;;  %v8199_v31 = vld [vmem:[%s11852_s1 + $0x670] ss:$8 sps:$4 sm:$0xff]   ;;  %v8202_v33 = vld [vmem:[%s11852_s1 + $0x684] ss:$8 sps:$4 sm:$0xff]   ;;  %v8205_v35 = vld [vmem:[%s11852_s1 + $0x680] ss:$8 sps:$4 sm:$0xff]  }
   0xd   :  { %5324 = vmatprep.subr.bf16.mxu0 %v8172_v13  ;;  %v8206_v36 = vld [vmem:[%s11852_s1 + $0x94] ss:$8 sps:$4 sm:$0xff]   ;;  %v8210_v38 = vld [vmem:[%s11852_s1 + $0x90] ss:$8 sps:$4 sm:$0xff]   ;;  %v8212_v40 = vld [vmem:[%s11852_s1 + $0xa4] ss:$8 sps:$4 sm:$0xff]  }
   0xe   :  { %v8208_v37 = vld [vmem:[%s11852_s1 + $0x694] ss:$8 sps:$4 sm:$0xff]   ;;  %v8211_v39 = vld [vmem:[%s11852_s1 + $0x690] ss:$8 sps:$4 sm:$0xff]   ;;  %v8214_v41 = vld [vmem:[%s11852_s1 + $0x6a4] ss:$8 sps:$4 sm:$0xff]  }
   0xf   :  { %4359 = vmatpush1.bf16.msra.mxu1 %v8174_v14  ;;  %v8216_v42 = vld [vmem:[%s11852_s1 + $0xa0] ss:$8 sps:$4 sm:$0xff]   ;;  %v8218_v44 = vld [vmem:[%s11852_s1 + $0xb4] ss:$8 sps:$4 sm:$0xff]   ;;  %v8222_v46 = vld [vmem:[%s11852_s1 + $0xb0] ss:$8 sps:$4 sm:$0xff]  }
  0x10   :  { %5325 = vmatpush1.bf16.msra.mxu0 %v8175_v15  ;;  %4360 = vmatprep.subr.bf16.mxu1 %v8176_v16  ;;  %v8217_v43 = vld [vmem:[%s11852_s1 + $0x6a0] ss:$8 sps:$4 sm:$0xff]   ;;  %v8220_v45 = vld [vmem:[%s11852_s1 + $0x6b4] ss:$8 sps:$4 sm:$0xff]   ;;  %v8223_v47 = vld [vmem:[%s11852_s1 + $0x6b0] ss:$8 sps:$4 sm:$0xff]  }
  0x11   :  { %5326 = vmatprep.subr.bf16.mxu0 %v8178_v17  ;;  %v8224_v48 = vld [vmem:[%s11852_s1 + $0xc4] ss:$8 sps:$4 sm:$0xff]   ;;  %v8253_v51 = vld [vmem:[%s11853_s0 + $0x34] ss:$100 sps:$4 sm:$0xff]   ;;  %v8228_v52 = vld [vmem:[%s11852_s1 + $0xc0] ss:$8 sps:$4 sm:$0xff]  }
  0x12   :  { %v8250_v49 = vld [vmem:[%s11853_s0 + $0x4] ss:$100 sps:$4 sm:$0xff]   ;;  %5350 = vmatprep.mubr.bf16.mxu0 %v8253_v51  ;;  %v8230_v54 = vld [vmem:[%s11852_s1 + $0xd4] ss:$8 sps:$4 sm:$0xff]   ;;  %v8234_v56 = vld [vmem:[%s11852_s1 + $0xd0] ss:$8 sps:$4 sm:$0xff]  }
  0x13   :  { %4361 = vmatpush1.bf16.msra.mxu1 %v8180_v18  ;;  %v8226_v50 = vld [vmem:[%s11852_s1 + $0x6c4] ss:$8 sps:$4 sm:$0xff]   ;;  %4384 = vmatprep.mubr.bf16.mxu1 %v8250_v49  ;;  %v8229_v53 = vld [vmem:[%s11852_s1 + $0x6c0] ss:$8 sps:$4 sm:$0xff]   ;;  %v8232_v55 = vld [vmem:[%s11852_s1 + $0x6d4] ss:$8 sps:$4 sm:$0xff]  }
  0x14   :  { %5327 = vmatpush1.bf16.msra.mxu0 %v8181_v19  ;;  %4362 = vmatprep.subr.bf16.mxu1 %v8182_v20  ;;  %v8235_v57 = vld [vmem:[%s11852_s1 + $0x6d0] ss:$8 sps:$4 sm:$0xff]   ;;  %v8236_v58 = vld [vmem:[%s11852_s1 + $0xe4] ss:$8 sps:$4 sm:$0xff]   ;;  %v8240_v60 = vld [vmem:[%s11852_s1 + $0xe0] ss:$8 sps:$4 sm:$0xff]  }
  0x15   :  { %5328 = vmatprep.subr.bf16.mxu0 %v8184_v21  ;;  %v8238_v59 = vld [vmem:[%s11852_s1 + $0x6e4] ss:$8 sps:$4 sm:$0xff]   ;;  %v8241_v61 = vld [vmem:[%s11852_s1 + $0x6e0] ss:$8 sps:$4 sm:$0xff]   ;;  %v8242_v62 = vld [vmem:[%s11852_s1 + $0xf4] ss:$8 sps:$4 sm:$0xff]  }
  0x16   :  { %v8244_v63 = vld [vmem:[%s11852_s1 + $0x6f4] ss:$8 sps:$4 sm:$0xff]   ;;  %v8246_v0 = vld [vmem:[%s11852_s1 + $0xf0] ss:$8 sps:$4 sm:$0xff]   ;;  %v8256_v2 = vld [vmem:[%s11852_s1 + $0x704] ss:$8 sps:$4 sm:$0xff]  }
  0x17   :  { %4363 = vmatpush1.bf16.msra.mxu1 %v8186_v22  ;;  %v8247_v1 = vld [vmem:[%s11852_s1 + $0x6f0] ss:$8 sps:$4 sm:$0xff]   ;;  %v8248_v3 = vld [vmem:[%s11853_s0] ss:$100 sps:$4 sm:$0xff]   ;;  %v8266_v10 = vld [vmem:[%s11852_s1 + $0x714] ss:$8 sps:$4 sm:$0xff]  }
  0x18   :  { %5329 = vmatpush1.bf16.msra.mxu0 %v8187_v23  ;;  %4364 = vmatprep.subr.bf16.mxu1 %v8188_v24  ;;  %v8259_v4 = vld [vmem:[%s11852_s1 + $0x104] ss:$8 sps:$4 sm:$0xff]   ;;  %v8251_v5 = vld [vmem:[%s11853_s0 + $0x30] ss:$100 sps:$4 sm:$0xff]   ;;  %v8254_v6 = vld [vmem:[%s11852_s1 + $0x700] ss:$8 sps:$4 sm:$0xff]  }
  0x19   :  { %5330 = vmatprep.subr.bf16.mxu0 %v8190_v25  ;;  %v8257_v7 = vld [vmem:[%s11852_s1 + $0x100] ss:$8 sps:$4 sm:$0xff]   ;;  %v8260_v8 = vld [vmem:[%s11853_s0 + $0xcc] ss:$100 sps:$4 sm:$0xff]   ;;  %v8271_v11 = vld [vmem:[%s11852_s1 + $0x114] ss:$8 sps:$4 sm:$0xff]  }
  0x1a   :  { %v8262_v9 = vld [vmem:[%s11853_s0 + $0xfc] ss:$100 sps:$4 sm:$0xff]   ;;  %v8264_v12 = vld [vmem:[%s11852_s1 + $0x710] ss:$8 sps:$4 sm:$0xff]   ;;  %v8267_v14 = vld [vmem:[%s11853_s0 + $0xc8] ss:$100 sps:$4 sm:$0xff]  }
  0x1b   :  { %4365 = vmatpush1.bf16.msra.mxu1 %v8192_v26  ;;  %v8269_v13 = vld [vmem:[%s11852_s1 + $0x110] ss:$8 sps:$4 sm:$0xff]   ;;  %v8274_v16 = vld [vmem:[%s11852_s1 + $0x724] ss:$8 sps:$4 sm:$0xff]   ;;  %v8272_v17 = vld [vmem:[%s11852_s1 + $0x720] ss:$8 sps:$4 sm:$0xff]  }
  0x1c   :  { %5331 = vmatpush1.bf16.msra.mxu0 %v8193_v27  ;;  %4366 = vmatprep.subr.bf16.mxu1 %v8194_v28  ;;  %v8268_v15 = vld [vmem:[%s11853_s0 + $0xf8] ss:$100 sps:$4 sm:$0xff]   ;;  %v8283_v18 = vld [vmem:[%s11852_s1 + $0x124] ss:$8 sps:$4 sm:$0xff]   ;;  %v8281_v21 = vld [vmem:[%s11852_s1 + $0x120] ss:$8 sps:$4 sm:$0xff]  }
  0x1d   :  { %5332 = vmatprep.subr.bf16.mxu0 %v8196_v29  ;;  %v8275_v19 = vld [vmem:[%s11853_s0 + $0x194] ss:$100 sps:$4 sm:$0xff]   ;;  %v8277_v20 = vld [vmem:[%s11853_s0 + $0x1c4] ss:$100 sps:$4 sm:$0xff]  }
  0x1e   :  { %v8286_v22 = vld [vmem:[%s11852_s1 + $0x734] ss:$8 sps:$4 sm:$0xff]   ;;  %v8284_v24 = vld [vmem:[%s11852_s1 + $0x730] ss:$8 sps:$4 sm:$0xff]   ;;  %v8298_v27 = vld [vmem:[%s11852_s1 + $0x744] ss:$8 sps:$4 sm:$0xff]  }
  0x1f   :  { %4367 = vmatpush1.bf16.msra.mxu1 %v8198_v30  ;;  %v8295_v23 = vld [vmem:[%s11852_s1 + $0x134] ss:$8 sps:$4 sm:$0xff]   ;;  %v8293_v25 = vld [vmem:[%s11852_s1 + $0x130] ss:$8 sps:$4 sm:$0xff]   ;;  %v8280_v28 = vld [vmem:[%s11853_s0 + $0x1c0] ss:$100 sps:$4 sm:$0xff]  }
  0x20   :  { %5333 = vmatpush1.bf16.msra.mxu0 %v8199_v31  ;;  %4368 = vmatprep.subr.bf16.mxu1 %v8200_v32  ;;  %v8279_v26 = vld [vmem:[%s11853_s0 + $0x190] ss:$100 sps:$4 sm:$0xff]   ;;  %v8306_v29 = vld [vmem:[%s11852_s1 + $0x144] ss:$8 sps:$4 sm:$0xff]   ;;  %v8287_v30 = vld [vmem:[%s11853_s0 + $0x25c] ss:$100 sps:$4 sm:$0xff]  }
  0x21   :  { %5334 = vmatprep.subr.bf16.mxu0 %v8202_v33  ;;  %v8289_v31 = vld [vmem:[%s11853_s0 + $0x28c] ss:$100 sps:$4 sm:$0xff]   ;;  %v8296_v32 = vld [vmem:[%s11852_s1 + $0x740] ss:$8 sps:$4 sm:$0xff]  }
  0x22   :  { %v8304_v33 = vld [vmem:[%s11852_s1 + $0x140] ss:$8 sps:$4 sm:$0xff]   ;;  %v8335_v51 = vld [vmem:[%s11852_s1 + $0x170] ss:$8 sps:$4 sm:$0xff]  }
  0x23   :  { %4369 = vmatpush1.bf16.msra.mxu1 %v8204_v34  ;;  %v8310_v34 = vld [vmem:[%s11852_s1 + $0x754] ss:$8 sps:$4 sm:$0xff]   ;;  %v8303_v49 = vld [vmem:[%s11853_s0 + $0x320] ss:$100 sps:$4 sm:$0xff]  }
  0x24   :  { %5335 = vmatpush1.bf16.msra.mxu0 %v8205_v35  ;;  %4370 = vmatprep.subr.bf16.mxu1 %v8206_v36  ;;  %v8315_v35 = vld [vmem:[%s11852_s1 + $0x154] ss:$8 sps:$4 sm:$0xff]   ;;  %v8308_v36 = vld [vmem:[%s11852_s1 + $0x750] ss:$8 sps:$4 sm:$0xff]  }
  0x25   :  { %5336 = vmatprep.subr.bf16.mxu0 %v8208_v37  ;;  %v8291_v37 = vld [vmem:[%s11853_s0 + $0x258] ss:$100 sps:$4 sm:$0xff]  }
  0x27   :  { %4371 = vmatpush1.bf16.msra.mxu1 %v8210_v38  ;;  %v8292_v38 = vld [vmem:[%s11853_s0 + $0x288] ss:$100 sps:$4 sm:$0xff]  }
  0x28   :  { %5337 = vmatpush1.bf16.msra.mxu0 %v8211_v39  ;;  %4372 = vmatprep.subr.bf16.mxu1 %v8212_v40  ;;  %v8313_v39 = vld [vmem:[%s11852_s1 + $0x150] ss:$8 sps:$4 sm:$0xff]   ;;  %v8299_v40 = vld [vmem:[%s11853_s0 + $0x324] ss:$100 sps:$4 sm:$0xff]  }
  0x29   :  { %5338 = vmatprep.subr.bf16.mxu0 %v8214_v41  ;;  %v8320_v41 = vld [vmem:[%s11852_s1 + $0x764] ss:$8 sps:$4 sm:$0xff]  }
  0x2b   :  { %4373 = vmatpush1.bf16.msra.mxu1 %v8216_v42  ;;  %v8325_v42 = vld [vmem:[%s11852_s1 + $0x164] ss:$8 sps:$4 sm:$0xff]  }
  0x2c   :  { %5339 = vmatpush1.bf16.msra.mxu0 %v8217_v43  ;;  %4374 = vmatprep.subr.bf16.mxu1 %v8218_v44  ;;  %v8301_v43 = vld [vmem:[%s11853_s0 + $0x354] ss:$100 sps:$4 sm:$0xff]   ;;  %v8318_v44 = vld [vmem:[%s11852_s1 + $0x760] ss:$8 sps:$4 sm:$0xff]  }
  0x2d   :  { %5340 = vmatprep.subr.bf16.mxu0 %v8220_v45  ;;  %v8323_v45 = vld [vmem:[%s11852_s1 + $0x160] ss:$8 sps:$4 sm:$0xff]  }
  0x2f   :  { %4375 = vmatpush1.bf16.msra.mxu1 %v8222_v46  ;;  %v8328_v46 = vld [vmem:[%s11852_s1 + $0x774] ss:$8 sps:$4 sm:$0xff]  }
  0x30   :  { %5341 = vmatpush1.bf16.msra.mxu0 %v8223_v47  ;;  %4376 = vmatprep.subr.bf16.mxu1 %v8224_v48  ;;  %v8337_v47 = vld [vmem:[%s11852_s1 + $0x174] ss:$8 sps:$4 sm:$0xff]   ;;  %v8326_v48 = vld [vmem:[%s11852_s1 + $0x770] ss:$8 sps:$4 sm:$0xff]  }
  0x31   :  { %5342 = vmatprep.subr.bf16.mxu0 %v8226_v50  ;;  %v8307_v50 = vld [vmem:[%s11853_s0 + $0x350] ss:$100 sps:$4 sm:$0xff]  }
  0x33   :  { %4377 = vmatpush1.bf16.msra.mxu1 %v8228_v52  ;;  %v8340_v52 = vld [vmem:[%s11852_s1 + $0x784] ss:$8 sps:$4 sm:$0xff]  }
  0x34   :  { %5343 = vmatpush1.bf16.msra.mxu0 %v8229_v53  ;;  %4378 = vmatprep.subr.bf16.mxu1 %v8230_v54  ;;  %v8349_v53 = vld [vmem:[%s11852_s1 + $0x184] ss:$8 sps:$4 sm:$0xff]  }
  0x35   :  { %5344 = vmatprep.subr.bf16.mxu0 %v8232_v55  ;;  %v8311_v54 = vld [vmem:[%s11853_s0 + $0x3ec] ss:$100 sps:$4 sm:$0xff]   ;;  %v8316_v55 = vld [vmem:[%s11853_s0 + $0x41c] ss:$100 sps:$4 sm:$0xff]  }
  0x37   :  { %4379 = vmatpush1.bf16.msra.mxu1 %v8234_v56  ;;  %v8338_v56 = vld [vmem:[%s11852_s1 + $0x780] ss:$8 sps:$4 sm:$0xff]  }
  0x38   :  { %5345 = vmatpush1.bf16.msra.mxu0 %v8235_v57  ;;  %4380 = vmatprep.subr.bf16.mxu1 %v8236_v58  ;;  %v8347_v57 = vld [vmem:[%s11852_s1 + $0x180] ss:$8 sps:$4 sm:$0xff]   ;;  %v8352_v58 = vld [vmem:[%s11852_s1 + $0x794] ss:$8 sps:$4 sm:$0xff]  }
  0x39   :  { %5346 = vmatprep.subr.bf16.mxu0 %v8238_v59  ;;  %v8361_v59 = vld [vmem:[%s11852_s1 + $0x194] ss:$8 sps:$4 sm:$0xff]  }
  0x3b   :  { %4381 = vmatpush1.bf16.msra.mxu1 %v8240_v60  ;;  %v8350_v60 = vld [vmem:[%s11852_s1 + $0x790] ss:$8 sps:$4 sm:$0xff]  }
  0x3c   :  { %5347 = vmatpush1.bf16.msra.mxu0 %v8241_v61  ;;  %4382 = vmatprep.subr.bf16.mxu1 %v8242_v62  ;;  %v8321_v61 = vld [vmem:[%s11853_s0 + $0x3e8] ss:$100 sps:$4 sm:$0xff]   ;;  %v8322_v62 = vld [vmem:[%s11853_s0 + $0x418] ss:$100 sps:$4 sm:$0xff]  }
  0x3d   :  { %5348 = vmatprep.subr.bf16.mxu0 %v8244_v63  ;;  %v8359_v63 = vld [vmem:[%s11852_s1 + $0x190] ss:$8 sps:$4 sm:$0xff]  }
  0x3f   :  { %4383 = vmatpush1.bf16.msra.mxu1 %v8246_v0  ;;  %v8364_v0 = vld [vmem:[%s11852_s1 + $0x7a4] ss:$8 sps:$4 sm:$0xff]  }
  0x40   :  { %5349 = vmatpush1.bf16.msra.mxu0 %v8247_v1  ;;  %4513 = vmatprep.subr.bf16.mxu1 %v8259_v4  ;;  %v8369_v1 = vld [vmem:[%s11852_s1 + $0x1a4] ss:$8 sps:$4 sm:$0xff]   ;;  %v8362_v4 = vld [vmem:[%s11852_s1 + $0x7a0] ss:$8 sps:$4 sm:$0xff]  }
  0x41   :  { %5479 = vmatprep.subr.bf16.mxu0 %v8256_v2  ;;  %v8329_v2 = vld [vmem:[%s11853_s0 + $0x4b4] ss:$100 sps:$4 sm:$0xff]  }
  0x42   :  { %4385 = vmatmul.mubr.bf16.vlgmr.msra.gmra.mrb[0].mxu1 %v8248_v3  ;;  %v8331_v3 = vld [vmem:[%s11853_s0 + $0x4e4] ss:$100 sps:$4 sm:$0xff]  }
  0x43   :  { %5351 = vmatmul.mubr.bf16.vlgmr.msra.gmra.mrb[0].mxu0 %v8251_v5  ;;  %4394 = vmatprep.mubr.bf16.mxu1 %v8260_v8  ;;  %v8367_v5 = vld [vmem:[%s11852_s1 + $0x1a0] ss:$8 sps:$4 sm:$0xff]   ;;  %v8374_v8 = vld [vmem:[%s11852_s1 + $0x7b0] ss:$8 sps:$4 sm:$0xff]  }
  0x44   :  { %5480 = vmatpush1.bf16.msra.mxu0 %v8254_v6  ;;  %4514 = vmatpush1.bf16.msra.mxu1 %v8257_v7  ;;  %v8376_v6 = vld [vmem:[%s11852_s1 + $0x7b4] ss:$8 sps:$4 sm:$0xff]  }
  0x45   :  { %5360 = vmatprep.mubr.bf16.mxu0 %v8262_v9  ;;  %5481 = vmatprep.subr.bf16.mxu0 %v8266_v10  ;;  %v8379_v7 = vld [vmem:[%s11852_s1 + $0x1b4] ss:$8 sps:$4 sm:$0xff]   ;;  %v8377_v10 = vld [vmem:[%s11852_s1 + $0x1b0] ss:$8 sps:$4 sm:$0xff]  }
  0x46   :  { %4515 = vmatprep.subr.bf16.mxu1 %v8271_v11  ;;  %v8333_v9 = vld [vmem:[%s11853_s0 + $0x4b0] ss:$100 sps:$4 sm:$0xff]   ;;  %v8382_v11 = vld [vmem:[%s11852_s1 + $0x7c4] ss:$8 sps:$4 sm:$0xff]  }
  0x48   :  { %5482 = vmatpush1.bf16.msra.mxu0 %v8264_v12  ;;  %4516 = vmatpush1.bf16.msra.mxu1 %v8269_v13  ;;  %v8391_v12 = vld [vmem:[%s11852_s1 + $0x1c4] ss:$8 sps:$4 sm:$0xff]  }
  0x49   :  { %5483 = vmatprep.subr.bf16.mxu0 %v8274_v16  ;;  %4517 = vmatprep.subr.bf16.mxu1 %v8283_v18  ;;  %v8334_v13 = vld [vmem:[%s11853_s0 + $0x4e0] ss:$100 sps:$4 sm:$0xff]   ;;  %v8394_v18 = vld [vmem:[%s11852_s1 + $0x7d4] ss:$8 sps:$4 sm:$0xff]  }
  0x4a   :  { %4395 = vmatmul.mubr.bf16.gmra.mrb[4].mxu1 %v8267_v14  ;;  %v8341_v14 = vld [vmem:[%s11853_s0 + $0x57c] ss:$100 sps:$4 sm:$0xff]  }
  0x4b   :  { %5361 = vmatmul.mubr.bf16.gmra.mrb[4].mxu0 %v8268_v15  ;;  %4404 = vmatprep.mubr.bf16.mxu1 %v8275_v19  ;;  %v8343_v15 = vld [vmem:[%s11853_s0 + $0x5ac] ss:$100 sps:$4 sm:$0xff]   ;;  %v8380_v16 = vld [vmem:[%s11852_s1 + $0x7c0] ss:$8 sps:$4 sm:$0xff]   ;;  %v8403_v19 = vld [vmem:[%s11852_s1 + $0x1d4] ss:$8 sps:$4 sm:$0xff]  }
  0x4c   :  { %5484 = vmatpush1.bf16.msra.mxu0 %v8272_v17  ;;  %5370 = vmatprep.mubr.bf16.mxu0 %v8277_v20  ;;  %v8389_v17 = vld [vmem:[%s11852_s1 + $0x1c0] ss:$8 sps:$4 sm:$0xff]   ;;  %v8392_v20 = vld [vmem:[%s11852_s1 + $0x7d0] ss:$8 sps:$4 sm:$0xff]  }
  0x4d   :  { %4518 = vmatpush1.bf16.msra.mxu1 %v8281_v21  ;;  %5485 = vmatprep.subr.bf16.mxu0 %v8286_v22  ;;  %v8345_v21 = vld [vmem:[%s11853_s0 + $0x578] ss:$100 sps:$4 sm:$0xff]   ;;  %v8346_v22 = vld [vmem:[%s11853_s0 + $0x5a8] ss:$100 sps:$4 sm:$0xff]  }
  0x4e   :  { %4519 = vmatprep.subr.bf16.mxu1 %v8295_v23  ;;  %v8401_v23 = vld [vmem:[%s11852_s1 + $0x1d0] ss:$8 sps:$4 sm:$0xff]  }
  0x50   :  { %5486 = vmatpush1.bf16.msra.mxu0 %v8284_v24  ;;  %v8406_v24 = vld [vmem:[%s11852_s1 + $0x7e4] ss:$8 sps:$4 sm:$0xff]  }
  0x51   :  { %5487 = vmatprep.subr.bf16.mxu0 %v8298_v27  ;;  %4520 = vmatpush1.bf16.msra.mxu1 %v8293_v25  ;;  %v8412_v25 = vld [vmem:[%s11852_s1 + $0x1e4] ss:$8 sps:$4 sm:$0xff]   ;;  %v8355_v27 = vld [vmem:[%s11853_s0 + $0x674] ss:$100 sps:$4 sm:$0xff]  }
  0x52   :  { %4521 = vmatprep.subr.bf16.mxu1 %v8306_v29  ;;  %4405 = vmatmul.mubr.bf16.gmra.mrb[8].mxu1 %v8279_v26  ;;  %v8353_v26 = vld [vmem:[%s11853_s0 + $0x644] ss:$100 sps:$4 sm:$0xff]  }
  0x53   :  { %5371 = vmatmul.mubr.bf16.gmra.mrb[8].mxu0 %v8280_v28  ;;  %4414 = vmatprep.mubr.bf16.mxu1 %v8287_v30  ;;  %v8404_v28 = vld [vmem:[%s11852_s1 + $0x7e0] ss:$8 sps:$4 sm:$0xff]   ;;  %v8416_v30 = vld [vmem:[%s11852_s1 + $0x7f4] ss:$8 sps:$4 sm:$0xff]  }
  0x54   :  { %5380 = vmatprep.mubr.bf16.mxu0 %v8289_v31  ;;  %5488 = vmatpush1.bf16.msra.mxu0 %v8296_v32  ;;  %v8410_v29 = vld [vmem:[%s11852_s1 + $0x1e0] ss:$8 sps:$4 sm:$0xff]   ;;  %v8419_v31 = vld [vmem:[%s11852_s1 + $0x1f4] ss:$8 sps:$4 sm:$0xff]   ;;  %v8414_v32 = vld [vmem:[%s11852_s1 + $0x7f0] ss:$8 sps:$4 sm:$0xff]  }
  0x55   :  { %4522 = vmatpush1.bf16.msra.mxu1 %v8304_v33  ;;  %5489 = vmatprep.subr.bf16.mxu0 %v8310_v34  ;;  %v8417_v33 = vld [vmem:[%s11852_s1 + $0x1f0] ss:$8 sps:$4 sm:$0xff]   ;;  %v8357_v34 = vld [vmem:[%s11853_s0 + $0x640] ss:$100 sps:$4 sm:$0xff]  }
  0x56   :  { %4523 = vmatprep.subr.bf16.mxu1 %v8315_v35  ;;  %v8428_v35 = vld [vmem:[%s11852_s1 + $0x804] ss:$8 sps:$4 sm:$0xff]  }
  0x58   :  { %5490 = vmatpush1.bf16.msra.mxu0 %v8308_v36  ;;  %v8431_v36 = vld [vmem:[%s11852_s1 + $0x204] ss:$8 sps:$4 sm:$0xff]  }
  0x59   :  { %4524 = vmatpush1.bf16.msra.mxu1 %v8313_v39  ;;  %5491 = vmatprep.subr.bf16.mxu0 %v8320_v41  ;;  %v8370_v39 = vld [vmem:[%s11853_s0 + $0x73c] ss:$100 sps:$4 sm:$0xff]  }
  0x5a   :  { %4525 = vmatprep.subr.bf16.mxu1 %v8325_v42  ;;  %4415 = vmatmul.mubr.bf16.gmra.mrb[12].mxu1 %v8291_v37  ;;  %v8358_v37 = vld [vmem:[%s11853_s0 + $0x670] ss:$100 sps:$4 sm:$0xff]   ;;  %v8373_v41 = vld [vmem:[%s11853_s0 + $0x738] ss:$100 sps:$4 sm:$0xff]  }
  0x5b   :  { %5381 = vmatmul.mubr.bf16.gmra.mrb[12].mxu0 %v8292_v38  ;;  %4424 = vmatprep.mubr.bf16.mxu1 %v8299_v40  ;;  %v8365_v38 = vld [vmem:[%s11853_s0 + $0x70c] ss:$100 sps:$4 sm:$0xff]   ;;  %v8383_v42 = vld [vmem:[%s11853_s0 + $0x7d4] ss:$100 sps:$4 sm:$0xff]  }
  0x5c   :  { %5390 = vmatprep.mubr.bf16.mxu0 %v8301_v43  ;;  %5492 = vmatpush1.bf16.msra.mxu0 %v8318_v44  ;;  %v8372_v40 = vld [vmem:[%s11853_s0 + $0x708] ss:$100 sps:$4 sm:$0xff]   ;;  %v8387_v44 = vld [vmem:[%s11853_s0 + $0x7d0] ss:$100 sps:$4 sm:$0xff]  }
  0x5d   :  { %4526 = vmatpush1.bf16.msra.mxu1 %v8323_v45  ;;  %5493 = vmatprep.subr.bf16.mxu0 %v8328_v46  ;;  %v8385_v43 = vld [vmem:[%s11853_s0 + $0x804] ss:$100 sps:$4 sm:$0xff]   ;;  %v8395_v46 = vld [vmem:[%s11853_s0 + $0x89c] ss:$100 sps:$4 sm:$0xff]  }
  0x5e   :  { %4527 = vmatprep.subr.bf16.mxu1 %v8337_v47  ;;  %v8388_v45 = vld [vmem:[%s11853_s0 + $0x800] ss:$100 sps:$4 sm:$0xff]   ;;  %v8397_v47 = vld [vmem:[%s11853_s0 + $0x8cc] ss:$100 sps:$4 sm:$0xff]  }
  0x60   :  { %5494 = vmatpush1.bf16.msra.mxu0 %v8326_v48  ;;  %v327_v48 = vld [vmem:[%s11853_s0 + $0x960] sm:$0x33] }
  0x61   :  { %4528 = vmatpush1.bf16.msra.mxu1 %v8335_v51  ;;  %5495 = vmatprep.subr.bf16.mxu0 %v8340_v52  ;;  %v8400_v51 = vld [vmem:[%s11853_s0 + $0x8c8] ss:$100 sps:$4 sm:$0xff]   ;;  %v6977_v52 = vcombine.high %v327_v48, %v327_v48 }
  0x62   :  { %4529 = vmatprep.subr.bf16.mxu1 %v8349_v53  ;;  %4425 = vmatmul.mubr.bf16.gmra.mrb[16].mxu1 %v8303_v49  ;;  %v333_v49 = vld [vmem:[%s11853_s0 + $0x990] sm:$0x33] }
  0x63   :  { %5391 = vmatmul.mubr.bf16.gmra.mrb[16].mxu0 %v8307_v50  ;;  %4434 = vmatprep.mubr.bf16.mxu1 %v8311_v54  ;;  %v8399_v50 = vld [vmem:[%s11853_s0 + $0x898] ss:$100 sps:$4 sm:$0xff]   ;;  %v6989_v53 = vcombine.high %v333_v49, %v333_v49  ;;  %v6976_v54 = vcombine.low %v327_v48, %v327_v48 }
  0x64   :  { %5400 = vmatprep.mubr.bf16.mxu0 %v8316_v55  ;;  %5496 = vmatpush1.bf16.msra.mxu0 %v8338_v56  ;;  %v6988_v55 = vcombine.low %v333_v49, %v333_v49  ;;  %v8422_v56 = vld [vmem:[%s11853_s0 + $0xc] ss:$100 sps:$4 sm:$0xff]   ;;  %v8524_v48 = vld [vmem:[%s11852_s1 + $0x894] ss:$8 sps:$4 sm:$0xff]  }
  0x65   :  { %4530 = vmatpush1.bf16.msra.mxu1 %v8347_v57  ;;  %5497 = vmatprep.subr.bf16.mxu0 %v8352_v58  ;;  %v8425_v57 = vld [vmem:[%s11853_s0 + $0x3c] ss:$100 sps:$4 sm:$0xff]   ;;  %v8420_v58 = vld [vmem:[%s11853_s0 + $0x8] ss:$100 sps:$4 sm:$0xff]  }
  0x66   :  { %4531 = vmatprep.subr.bf16.mxu1 %v8361_v59  ;;  %v8423_v59 = vld [vmem:[%s11853_s0 + $0x38] ss:$100 sps:$4 sm:$0xff]  }
  0x67   :  { %v8533_v49 = vld [vmem:[%s11852_s1 + $0x294] ss:$8 sps:$4 sm:$0xff]  }
  0x68   :  { %5498 = vmatpush1.bf16.msra.mxu0 %v8350_v60  ;;  %v8426_v60 = vld [vmem:[%s11852_s1 + $0x800] ss:$8 sps:$4 sm:$0xff]  }
  0x69   :  { %4532 = vmatpush1.bf16.msra.mxu1 %v8359_v63  ;;  %5499 = vmatprep.subr.bf16.mxu0 %v8364_v0  ;;  %v8434_v63 = vld [vmem:[%s11853_s0 + $0x104] ss:$100 sps:$4 sm:$0xff]   ;;  %v8438_v0 = vld [vmem:[%s11852_s1 + $0x814] ss:$8 sps:$4 sm:$0xff]  }
  0x6a   :  { %4533 = vmatprep.subr.bf16.mxu1 %v8369_v1  ;;  %4435 = vmatmul.mubr.bf16.gmra.mrb[20].mxu1 %v8321_v61  ;;  %v8429_v61 = vld [vmem:[%s11852_s1 + $0x200] ss:$8 sps:$4 sm:$0xff]   ;;  %v8443_v1 = vld [vmem:[%s11852_s1 + $0x214] ss:$8 sps:$4 sm:$0xff]  }
  0x6b   :  { %5401 = vmatmul.mubr.bf16.gmra.mrb[20].mxu0 %v8322_v62  ;;  %4444 = vmatprep.mubr.bf16.mxu1 %v8329_v2  ;;  %v8432_v62 = vld [vmem:[%s11853_s0 + $0xd4] ss:$100 sps:$4 sm:$0xff]  }
  0x6c   :  { %5410 = vmatprep.mubr.bf16.mxu0 %v8331_v3  ;;  %5500 = vmatpush1.bf16.msra.mxu0 %v8362_v4  ;;  %v8436_v2 = vld [vmem:[%s11852_s1 + $0x810] ss:$8 sps:$4 sm:$0xff]   ;;  %v8440_v4 = vld [vmem:[%s11853_s0 + $0x100] ss:$100 sps:$4 sm:$0xff]  }
  0x6d   :  { %4534 = vmatpush1.bf16.msra.mxu1 %v8367_v5  ;;  %5501 = vmatprep.subr.bf16.mxu0 %v8376_v6  ;;  %v8439_v3 = vld [vmem:[%s11853_s0 + $0xd0] ss:$100 sps:$4 sm:$0xff]   ;;  %v8446_v6 = vld [vmem:[%s11852_s1 + $0x824] ss:$8 sps:$4 sm:$0xff]  }
  0x6e   :  { %4535 = vmatprep.subr.bf16.mxu1 %v8379_v7  ;;  %v8441_v5 = vld [vmem:[%s11852_s1 + $0x210] ss:$8 sps:$4 sm:$0xff]   ;;  %v8455_v7 = vld [vmem:[%s11852_s1 + $0x224] ss:$8 sps:$4 sm:$0xff]  }
  0x70   :  { %5502 = vmatpush1.bf16.msra.mxu0 %v8374_v8  ;;  %v8444_v8 = vld [vmem:[%s11852_s1 + $0x820] ss:$8 sps:$4 sm:$0xff]  }
  0x71   :  { %4536 = vmatpush1.bf16.msra.mxu1 %v8377_v10  ;;  %5503 = vmatprep.subr.bf16.mxu0 %v8382_v11  ;;  %v8449_v10 = vld [vmem:[%s11853_s0 + $0x1cc] ss:$100 sps:$4 sm:$0xff]   ;;  %v8453_v11 = vld [vmem:[%s11852_s1 + $0x220] ss:$8 sps:$4 sm:$0xff]  }
  0x72   :  { %4537 = vmatprep.subr.bf16.mxu1 %v8391_v12  ;;  %4445 = vmatmul.mubr.bf16.gmra.mrb[24].mxu1 %v8333_v9  ;;  %v8447_v9 = vld [vmem:[%s11853_s0 + $0x19c] ss:$100 sps:$4 sm:$0xff]  }
  0x73   :  { %5411 = vmatmul.mubr.bf16.gmra.mrb[24].mxu0 %v8334_v13  ;;  %4454 = vmatprep.mubr.bf16.mxu1 %v8341_v14  ;;  %v8458_v12 = vld [vmem:[%s11852_s1 + $0x834] ss:$8 sps:$4 sm:$0xff]   ;;  %v8456_v14 = vld [vmem:[%s11852_s1 + $0x830] ss:$8 sps:$4 sm:$0xff]  }
  0x74   :  { %5420 = vmatprep.mubr.bf16.mxu0 %v8343_v15  ;;  %5504 = vmatpush1.bf16.msra.mxu0 %v8380_v16  ;;  %v8467_v13 = vld [vmem:[%s11852_s1 + $0x234] ss:$8 sps:$4 sm:$0xff]   ;;  %v8452_v16 = vld [vmem:[%s11853_s0 + $0x1c8] ss:$100 sps:$4 sm:$0xff]  }
  0x75   :  { %4538 = vmatpush1.bf16.msra.mxu1 %v8389_v17  ;;  %5505 = vmatprep.subr.bf16.mxu0 %v8394_v18  ;;  %v8451_v15 = vld [vmem:[%s11853_s0 + $0x198] ss:$100 sps:$4 sm:$0xff]   ;;  %v8470_v18 = vld [vmem:[%s11852_s1 + $0x844] ss:$8 sps:$4 sm:$0xff]  }
  0x76   :  { %4539 = vmatprep.subr.bf16.mxu1 %v8403_v19  ;;  %v8465_v17 = vld [vmem:[%s11852_s1 + $0x230] ss:$8 sps:$4 sm:$0xff]   ;;  %v8478_v19 = vld [vmem:[%s11852_s1 + $0x244] ss:$8 sps:$4 sm:$0xff]  }
  0x78   :  { %5506 = vmatpush1.bf16.msra.mxu0 %v8392_v20  ;;  %v8459_v20 = vld [vmem:[%s11853_s0 + $0x264] ss:$100 sps:$4 sm:$0xff]  }
  0x79   :  { %4540 = vmatpush1.bf16.msra.mxu1 %v8401_v23  ;;  %5507 = vmatprep.subr.bf16.mxu0 %v8406_v24  ;;  %v8476_v23 = vld [vmem:[%s11852_s1 + $0x240] ss:$8 sps:$4 sm:$0xff]   ;;  %v8482_v24 = vld [vmem:[%s11852_s1 + $0x854] ss:$8 sps:$4 sm:$0xff]  }
  0x7a   :  { %4541 = vmatprep.subr.bf16.mxu1 %v8412_v25  ;;  %4455 = vmatmul.mubr.bf16.gmra.mrb[28].mxu1 %v8345_v21  ;;  %v8461_v21 = vld [vmem:[%s11853_s0 + $0x294] ss:$100 sps:$4 sm:$0xff]  }
  0x7b   :  { %5421 = vmatmul.mubr.bf16.gmra.mrb[28].mxu0 %v8346_v22  ;;  %4464 = vmatprep.mubr.bf16.mxu1 %v8353_v26  ;;  %v8468_v22 = vld [vmem:[%s11852_s1 + $0x840] ss:$8 sps:$4 sm:$0xff]   ;;  %v8487_v25 = vld [vmem:[%s11852_s1 + $0x254] ss:$8 sps:$4 sm:$0xff]   ;;  %v8480_v26 = vld [vmem:[%s11852_s1 + $0x850] ss:$8 sps:$4 sm:$0xff]  }
  0x7c   :  { %5430 = vmatprep.mubr.bf16.mxu0 %v8355_v27  ;;  %5508 = vmatpush1.bf16.msra.mxu0 %v8404_v28  ;;  %v8463_v27 = vld [vmem:[%s11853_s0 + $0x260] ss:$100 sps:$4 sm:$0xff]   ;;  %v8464_v28 = vld [vmem:[%s11853_s0 + $0x290] ss:$100 sps:$4 sm:$0xff]  }
  0x7d   :  { %4542 = vmatpush1.bf16.msra.mxu1 %v8410_v29  ;;  %5509 = vmatprep.subr.bf16.mxu0 %v8416_v30  ;;  %v8485_v29 = vld [vmem:[%s11852_s1 + $0x250] ss:$8 sps:$4 sm:$0xff]   ;;  %v8492_v30 = vld [vmem:[%s11852_s1 + $0x864] ss:$8 sps:$4 sm:$0xff]  }
  0x7e   :  { %4543 = vmatprep.subr.bf16.mxu1 %v8419_v31  ;;  %v8497_v31 = vld [vmem:[%s11852_s1 + $0x264] ss:$8 sps:$4 sm:$0xff]  }
  0x80   :  { %5510 = vmatpush1.bf16.msra.mxu0 %v8414_v32  ;;  %v8471_v32 = vld [vmem:[%s11853_s0 + $0x32c] ss:$100 sps:$4 sm:$0xff]  }
  0x81   :  { %4544 = vmatpush1.bf16.msra.mxu1 %v8417_v33  ;;  %5640 = vmatprep.subr.bf16.mxu0 %v8428_v35  ;;  %v8473_v33 = vld [vmem:[%s11853_s0 + $0x35c] ss:$100 sps:$4 sm:$0xff]  }
  0x82   :  { %4674 = vmatprep.subr.bf16.mxu1 %v8431_v36  ;;  %4465 = vmatmul.mubr.bf16.gmra.mrb[32].mxu1 %v8357_v34  ;;  %v8490_v34 = vld [vmem:[%s11852_s1 + $0x860] ss:$8 sps:$4 sm:$0xff]   ;;  %v8500_v36 = vld [vmem:[%s11852_s1 + $0x874] ss:$8 sps:$4 sm:$0xff]  }
  0x83   :  { %5431 = vmatmul.mubr.bf16.gmra.mrb[32].mxu0 %v8358_v37  ;;  %4474 = vmatprep.mubr.bf16.mxu1 %v8365_v38  ;;  %v8495_v35 = vld [vmem:[%s11852_s1 + $0x260] ss:$8 sps:$4 sm:$0xff]   ;;  %v8509_v37 = vld [vmem:[%s11852_s1 + $0x274] ss:$8 sps:$4 sm:$0xff]   ;;  %v8498_v38 = vld [vmem:[%s11852_s1 + $0x870] ss:$8 sps:$4 sm:$0xff]  }
  0x84   :  { %5440 = vmatprep.mubr.bf16.mxu0 %v8370_v39  ;;  %v8475_v39 = vld [vmem:[%s11853_s0 + $0x328] ss:$100 sps:$4 sm:$0xff]  }
  0x8a   :  { %4475 = vmatmul.mubr.bf16.gmra.mrb[36].mxu1 %v8372_v40  ;;  %v8479_v40 = vld [vmem:[%s11853_s0 + $0x358] ss:$100 sps:$4 sm:$0xff]  }
  0x8b   :  { %5441 = vmatmul.mubr.bf16.gmra.mrb[36].mxu0 %v8373_v41  ;;  %4484 = vmatprep.mubr.bf16.mxu1 %v8383_v42  ;;  %v8507_v41 = vld [vmem:[%s11852_s1 + $0x270] ss:$8 sps:$4 sm:$0xff]   ;;  %v8512_v42 = vld [vmem:[%s11852_s1 + $0x884] ss:$8 sps:$4 sm:$0xff]  }
  0x8c   :  { %5450 = vmatprep.mubr.bf16.mxu0 %v8385_v43  ;;  %v8521_v43 = vld [vmem:[%s11852_s1 + $0x284] ss:$8 sps:$4 sm:$0xff]  }
  0x92   :  { %4485 = vmatmul.mubr.bf16.gmra.mrb[40].mxu1 %v8387_v44  ;;  %v8483_v44 = vld [vmem:[%s11853_s0 + $0x3f4] ss:$100 sps:$4 sm:$0xff]  }
  0x93   :  { %5451 = vmatmul.mubr.bf16.gmra.mrb[40].mxu0 %v8388_v45  ;;  %4494 = vmatprep.mubr.bf16.mxu1 %v8395_v46  ;;  %v8488_v45 = vld [vmem:[%s11853_s0 + $0x424] ss:$100 sps:$4 sm:$0xff]  }
  0x94   :  { %5460 = vmatprep.mubr.bf16.mxu0 %v8397_v47  ;;  %v8510_v46 = vld [vmem:[%s11852_s1 + $0x880] ss:$8 sps:$4 sm:$0xff]  }
  0x95   :  { %v8519_v47 = vld [vmem:[%s11852_s1 + $0x280] ss:$8 sps:$4 sm:$0xff]  }
  0x9a   :  { %4495 = vmatmul.mubr.bf16.gmra.mrb[44].mxu1 %v8399_v50  ;;  %v8522_v50 = vld [vmem:[%s11852_s1 + $0x890] ss:$8 sps:$4 sm:$0xff]  }
  0x9b   :  { %5461 = vmatmul.mubr.bf16.gmra.mrb[44].mxu0 %v8400_v51  ;;  %4504 = vmatprep.mubr.bf16.mxu1 %v6977_v52  ;;  %v8531_v51 = vld [vmem:[%s11852_s1 + $0x290] ss:$8 sps:$4 sm:$0xff]  }
  0x9c   :  { %5470 = vmatprep.mubr.bf16.mxu0 %v6989_v53  ;;  %v8493_v52 = vld [vmem:[%s11853_s0 + $0x3f0] ss:$100 sps:$4 sm:$0xff]   ;;  %v8536_v53 = vld [vmem:[%s11852_s1 + $0x8a4] ss:$8 sps:$4 sm:$0xff]  }
  0xa2   :  { %4505 = vmatmul.mubr.bf16.gmra.mrb[48].mxu1 %v6976_v54  ;;  %v8541_v54 = vld [vmem:[%s11852_s1 + $0x2a4] ss:$8 sps:$4 sm:$0xff]  }
  0xa3   :  { %5471 = vmatmul.mubr.bf16.gmra.mrb[48].mxu0 %v6988_v55  ;;  %4545 = vmatprep.mubr.bf16.mxu1 %v8422_v56  ;;  %v8494_v55 = vld [vmem:[%s11853_s0 + $0x420] ss:$100 sps:$4 sm:$0xff]  }
  0xa4   :  { %5511 = vmatprep.mubr.bf16.mxu0 %v8425_v57  ;;  %v8501_v56 = vld [vmem:[%s11853_s0 + $0x4bc] ss:$100 sps:$4 sm:$0xff]   ;;  %v8503_v57 = vld [vmem:[%s11853_s0 + $0x4ec] ss:$100 sps:$4 sm:$0xff]  }
  0xaa   :  { %4546 = vmatmul.mubr.bf16.vlgmr.msra.gmra.mrb[0].mxu1 %v8420_v58  ;;  %v8534_v58 = vld [vmem:[%s11852_s1 + $0x8a0] ss:$8 sps:$4 sm:$0xff]  }
  0xab   :  { %5512 = vmatmul.mubr.bf16.vlgmr.msra.gmra.mrb[0].mxu0 %v8423_v59  ;;  %4555 = vmatprep.mubr.bf16.mxu1 %v8432_v62  ;;  %v8539_v59 = vld [vmem:[%s11852_s1 + $0x2a0] ss:$8 sps:$4 sm:$0xff]   ;;  %v8546_v62 = vld [vmem:[%s11852_s1 + $0x8b0] ss:$8 sps:$4 sm:$0xff]  }
  0xac   :  { %5641 = vmatpush1.bf16.msra.mxu0 %v8426_v60  ;;  %4675 = vmatpush1.bf16.msra.mxu1 %v8429_v61  ;;  %v8548_v60 = vld [vmem:[%s11852_s1 + $0x8b4] ss:$8 sps:$4 sm:$0xff]  }
  0xad   :  { %5521 = vmatprep.mubr.bf16.mxu0 %v8434_v63  ;;  %5642 = vmatprep.subr.bf16.mxu0 %v8438_v0  ;;  %v8551_v61 = vld [vmem:[%s11852_s1 + $0x2b4] ss:$8 sps:$4 sm:$0xff]   ;;  %v8506_v0 = vld [vmem:[%s11853_s0 + $0x4e8] ss:$100 sps:$4 sm:$0xff]  }
  0xae   :  { %4676 = vmatprep.subr.bf16.mxu1 %v8443_v1  ;;  %v8505_v63 = vld [vmem:[%s11853_s0 + $0x4b8] ss:$100 sps:$4 sm:$0xff]  }
  0xaf   :  { %v8549_v1 = vld [vmem:[%s11852_s1 + $0x2b0] ss:$8 sps:$4 sm:$0xff]  }
  0xb0   :  { %5643 = vmatpush1.bf16.msra.mxu0 %v8436_v2  ;;  %4677 = vmatpush1.bf16.msra.mxu1 %v8441_v5  ;;  %v8513_v2 = vld [vmem:[%s11853_s0 + $0x584] ss:$100 sps:$4 sm:$0xff]   ;;  %v8515_v5 = vld [vmem:[%s11853_s0 + $0x5b4] ss:$100 sps:$4 sm:$0xff]  }
  0xb1   :  { %5644 = vmatprep.subr.bf16.mxu0 %v8446_v6  ;;  %4678 = vmatprep.subr.bf16.mxu1 %v8455_v7  ;;  %v8552_v6 = vld [vmem:[%s11852_s1 + $0x8c0] ss:$8 sps:$4 sm:$0xff]  }
  0xb2   :  { %4556 = vmatmul.mubr.bf16.gmra.mrb[4].mxu1 %v8439_v3  ;;  %v8554_v3 = vld [vmem:[%s11852_s1 + $0x8c4] ss:$8 sps:$4 sm:$0xff]   ;;  %v8561_v7 = vld [vmem:[%s11852_s1 + $0x2c0] ss:$8 sps:$4 sm:$0xff]  }
  0xb3   :  { %5522 = vmatmul.mubr.bf16.gmra.mrb[4].mxu0 %v8440_v4  ;;  %4565 = vmatprep.mubr.bf16.mxu1 %v8447_v9  ;;  %v8563_v4 = vld [vmem:[%s11852_s1 + $0x2c4] ss:$8 sps:$4 sm:$0xff]   ;;  %v8575_v9 = vld [vmem:[%s11852_s1 + $0x2d4] ss:$8 sps:$4 sm:$0xff]  }
  0xb4   :  { %5645 = vmatpush1.bf16.msra.mxu0 %v8444_v8  ;;  %5531 = vmatprep.mubr.bf16.mxu0 %v8449_v10  ;;  %v8566_v8 = vld [vmem:[%s11852_s1 + $0x8d4] ss:$8 sps:$4 sm:$0xff]   ;;  %v8564_v10 = vld [vmem:[%s11852_s1 + $0x8d0] ss:$8 sps:$4 sm:$0xff]  }
  0xb5   :  { %4679 = vmatpush1.bf16.msra.mxu1 %v8453_v11  ;;  %5646 = vmatprep.subr.bf16.mxu0 %v8458_v12  ;;  %v8573_v11 = vld [vmem:[%s11852_s1 + $0x2d0] ss:$8 sps:$4 sm:$0xff]   ;;  %v8517_v12 = vld [vmem:[%s11853_s0 + $0x580] ss:$100 sps:$4 sm:$0xff]  }
  0xb6   :  { %4680 = vmatprep.subr.bf16.mxu1 %v8467_v13  ;;  %v8578_v13 = vld [vmem:[%s11852_s1 + $0x8e4] ss:$8 sps:$4 sm:$0xff]  }
  0xb8   :  { %5647 = vmatpush1.bf16.msra.mxu0 %v8456_v14  ;;  %v8584_v14 = vld [vmem:[%s11852_s1 + $0x2e4] ss:$8 sps:$4 sm:$0xff]  }
  0xb9   :  { %5648 = vmatprep.subr.bf16.mxu0 %v8470_v18  ;;  %4681 = vmatpush1.bf16.msra.mxu1 %v8465_v17  ;;  %v8527_v17 = vld [vmem:[%s11853_s0 + $0x67c] ss:$100 sps:$4 sm:$0xff]  }
  0xba   :  { %4682 = vmatprep.subr.bf16.mxu1 %v8478_v19  ;;  %4566 = vmatmul.mubr.bf16.gmra.mrb[8].mxu1 %v8451_v15  ;;  %v8518_v15 = vld [vmem:[%s11853_s0 + $0x5b0] ss:$100 sps:$4 sm:$0xff]   ;;  %v8576_v18 = vld [vmem:[%s11852_s1 + $0x8e0] ss:$8 sps:$4 sm:$0xff]  }
  0xbb   :  { %5532 = vmatmul.mubr.bf16.gmra.mrb[8].mxu0 %v8452_v16  ;;  %4575 = vmatprep.mubr.bf16.mxu1 %v8459_v20  ;;  %v8525_v16 = vld [vmem:[%s11853_s0 + $0x64c] ss:$100 sps:$4 sm:$0xff]   ;;  %v8582_v19 = vld [vmem:[%s11852_s1 + $0x2e0] ss:$8 sps:$4 sm:$0xff]   ;;  %v8588_v20 = vld [vmem:[%s11852_s1 + $0x8f4] ss:$8 sps:$4 sm:$0xff]  }
  0xbc   :  { %5541 = vmatprep.mubr.bf16.mxu0 %v8461_v21  ;;  %5649 = vmatpush1.bf16.msra.mxu0 %v8468_v22  ;;  %v8591_v21 = vld [vmem:[%s11852_s1 + $0x2f4] ss:$8 sps:$4 sm:$0xff]   ;;  %v8586_v22 = vld [vmem:[%s11852_s1 + $0x8f0] ss:$8 sps:$4 sm:$0xff]  }
  0xbd   :  { %4683 = vmatpush1.bf16.msra.mxu1 %v8476_v23  ;;  %5650 = vmatprep.subr.bf16.mxu0 %v8482_v24  ;;  %v8589_v23 = vld [vmem:[%s11852_s1 + $0x2f0] ss:$8 sps:$4 sm:$0xff]   ;;  %v8600_v24 = vld [vmem:[%s11852_s1 + $0x904] ss:$8 sps:$4 sm:$0xff]  }
  0xbe   :  { %4684 = vmatprep.subr.bf16.mxu1 %v8487_v25  ;;  %v8603_v25 = vld [vmem:[%s11852_s1 + $0x304] ss:$8 sps:$4 sm:$0xff]  }
  0xc0   :  { %5651 = vmatpush1.bf16.msra.mxu0 %v8480_v26  ;;  %v8529_v26 = vld [vmem:[%s11853_s0 + $0x648] ss:$100 sps:$4 sm:$0xff]  }
  0xc1   :  { %4685 = vmatpush1.bf16.msra.mxu1 %v8485_v29  ;;  %5652 = vmatprep.subr.bf16.mxu0 %v8492_v30  ;;  %v8542_v29 = vld [vmem:[%s11853_s0 + $0x744] ss:$100 sps:$4 sm:$0xff]   ;;  %v8544_v30 = vld [vmem:[%s11853_s0 + $0x710] ss:$100 sps:$4 sm:$0xff]  }
  0xc2   :  { %4686 = vmatprep.subr.bf16.mxu1 %v8497_v31  ;;  %4576 = vmatmul.mubr.bf16.gmra.mrb[12].mxu1 %v8463_v27  ;;  %v8530_v27 = vld [vmem:[%s11853_s0 + $0x678] ss:$100 sps:$4 sm:$0xff]   ;;  %v8545_v31 = vld [vmem:[%s11853_s0 + $0x740] ss:$100 sps:$4 sm:$0xff]  }
  0xc3   :  { %5542 = vmatmul.mubr.bf16.gmra.mrb[12].mxu0 %v8464_v28  ;;  %4585 = vmatprep.mubr.bf16.mxu1 %v8471_v32  ;;  %v8537_v28 = vld [vmem:[%s11853_s0 + $0x714] ss:$100 sps:$4 sm:$0xff]   ;;  %v8555_v32 = vld [vmem:[%s11853_s0 + $0x7dc] ss:$100 sps:$4 sm:$0xff]  }
  0xc4   :  { %5551 = vmatprep.mubr.bf16.mxu0 %v8473_v33  ;;  %5653 = vmatpush1.bf16.msra.mxu0 %v8490_v34  ;;  %v8557_v33 = vld [vmem:[%s11853_s0 + $0x80c] ss:$100 sps:$4 sm:$0xff]   ;;  %v8559_v34 = vld [vmem:[%s11853_s0 + $0x7d8] ss:$100 sps:$4 sm:$0xff]  }
  0xc5   :  { %4687 = vmatpush1.bf16.msra.mxu1 %v8495_v35  ;;  %5654 = vmatprep.subr.bf16.mxu0 %v8500_v36  ;;  %v8560_v35 = vld [vmem:[%s11853_s0 + $0x808] ss:$100 sps:$4 sm:$0xff]  }
  0xc6   :  { %4688 = vmatprep.subr.bf16.mxu1 %v8509_v37  ;;  %v8567_v36 = vld [vmem:[%s11853_s0 + $0x8a4] ss:$100 sps:$4 sm:$0xff]   ;;  %v8569_v37 = vld [vmem:[%s11853_s0 + $0x8d4] ss:$100 sps:$4 sm:$0xff]  }
  0xc8   :  { %5655 = vmatpush1.bf16.msra.mxu0 %v8498_v38  ;;  %v328_v38 = vld [vmem:[%s11853_s0 + $0x968] sm:$0x33] }
  0xc9   :  { %4689 = vmatpush1.bf16.msra.mxu1 %v8507_v41  ;;  %5656 = vmatprep.subr.bf16.mxu0 %v8512_v42  ;;  %v8572_v41 = vld [vmem:[%s11853_s0 + $0x8d0] ss:$100 sps:$4 sm:$0xff]   ;;  %v6979_v42 = vcombine.high %v328_v38, %v328_v38 }
  0xca   :  { %4690 = vmatprep.subr.bf16.mxu1 %v8521_v43  ;;  %4586 = vmatmul.mubr.bf16.gmra.mrb[16].mxu1 %v8475_v39  ;;  %v334_v39 = vld [vmem:[%s11853_s0 + $0x998] sm:$0x33] }
  0xcb   :  { %5552 = vmatmul.mubr.bf16.gmra.mrb[16].mxu0 %v8479_v40  ;;  %4595 = vmatprep.mubr.bf16.mxu1 %v8483_v44  ;;  %v8571_v40 = vld [vmem:[%s11853_s0 + $0x8a0] ss:$100 sps:$4 sm:$0xff]   ;;  %v6991_v43 = vcombine.high %v334_v39, %v334_v39  ;;  %v6978_v44 = vcombine.low %v328_v38, %v328_v38  ;;  %v8696_v38 = vld [vmem:[%s11852_s1 + $0x994] ss:$8 sps:$4 sm:$0xff]  }
  0xcc   :  { %5561 = vmatprep.mubr.bf16.mxu0 %v8488_v45  ;;  %5657 = vmatpush1.bf16.msra.mxu0 %v8510_v46  ;;  %v6990_v45 = vcombine.low %v334_v39, %v334_v39  ;;  %v8594_v46 = vld [vmem:[%s11853_s0 + $0x14] ss:$100 sps:$4 sm:$0xff]  }
  0xcd   :  { %4691 = vmatpush1.bf16.msra.mxu1 %v8519_v47  ;;  %5658 = vmatprep.subr.bf16.mxu0 %v8524_v48  ;;  %v8597_v47 = vld [vmem:[%s11853_s0 + $0x44] ss:$100 sps:$4 sm:$0xff]   ;;  %v8592_v48 = vld [vmem:[%s11853_s0 + $0x10] ss:$100 sps:$4 sm:$0xff]  }
  0xce   :  { %4692 = vmatprep.subr.bf16.mxu1 %v8533_v49  ;;  %v8595_v49 = vld [vmem:[%s11853_s0 + $0x40] ss:$100 sps:$4 sm:$0xff]   ;;  %v8705_v39 = vld [vmem:[%s11852_s1 + $0x394] ss:$8 sps:$4 sm:$0xff]  }
  0xd0   :  { %5659 = vmatpush1.bf16.msra.mxu0 %v8522_v50  ;;  %v8598_v50 = vld [vmem:[%s11852_s1 + $0x900] ss:$8 sps:$4 sm:$0xff]  }
  0xd1   :  { %4693 = vmatpush1.bf16.msra.mxu1 %v8531_v51  ;;  %5660 = vmatprep.subr.bf16.mxu0 %v8536_v53  ;;  %v8601_v51 = vld [vmem:[%s11852_s1 + $0x300] ss:$8 sps:$4 sm:$0xff]   ;;  %v8606_v53 = vld [vmem:[%s11853_s0 + $0x10c] ss:$100 sps:$4 sm:$0xff]  }
  0xd2   :  { %4694 = vmatprep.subr.bf16.mxu1 %v8541_v54  ;;  %4596 = vmatmul.mubr.bf16.gmra.mrb[20].mxu1 %v8493_v52  ;;  %v8604_v52 = vld [vmem:[%s11853_s0 + $0xdc] ss:$100 sps:$4 sm:$0xff]  }
  0xd3   :  { %5562 = vmatmul.mubr.bf16.gmra.mrb[20].mxu0 %v8494_v55  ;;  %4605 = vmatprep.mubr.bf16.mxu1 %v8501_v56  ;;  %v8610_v54 = vld [vmem:[%s11852_s1 + $0x914] ss:$8 sps:$4 sm:$0xff]   ;;  %v8608_v56 = vld [vmem:[%s11852_s1 + $0x910] ss:$8 sps:$4 sm:$0xff]  }
  0xd4   :  { %5571 = vmatprep.mubr.bf16.mxu0 %v8503_v57  ;;  %5661 = vmatpush1.bf16.msra.mxu0 %v8534_v58  ;;  %v8615_v55 = vld [vmem:[%s11852_s1 + $0x314] ss:$8 sps:$4 sm:$0xff]   ;;  %v8612_v58 = vld [vmem:[%s11853_s0 + $0x108] ss:$100 sps:$4 sm:$0xff]  }
  0xd5   :  { %4695 = vmatpush1.bf16.msra.mxu1 %v8539_v59  ;;  %5662 = vmatprep.subr.bf16.mxu0 %v8548_v60  ;;  %v8611_v57 = vld [vmem:[%s11853_s0 + $0xd8] ss:$100 sps:$4 sm:$0xff]   ;;  %v8618_v60 = vld [vmem:[%s11852_s1 + $0x924] ss:$8 sps:$4 sm:$0xff]  }
  0xd6   :  { %4696 = vmatprep.subr.bf16.mxu1 %v8551_v61  ;;  %v8613_v59 = vld [vmem:[%s11852_s1 + $0x310] ss:$8 sps:$4 sm:$0xff]   ;;  %v8627_v61 = vld [vmem:[%s11852_s1 + $0x324] ss:$8 sps:$4 sm:$0xff]  }
  0xd8   :  { %5663 = vmatpush1.bf16.msra.mxu0 %v8546_v62  ;;  %v8616_v62 = vld [vmem:[%s11852_s1 + $0x920] ss:$8 sps:$4 sm:$0xff]  }
  0xd9   :  { %4697 = vmatpush1.bf16.msra.mxu1 %v8549_v1  ;;  %5664 = vmatprep.subr.bf16.mxu0 %v8554_v3  ;;  %v8625_v1 = vld [vmem:[%s11852_s1 + $0x320] ss:$8 sps:$4 sm:$0xff]   ;;  %v8639_v3 = vld [vmem:[%s11852_s1 + $0x334] ss:$8 sps:$4 sm:$0xff]  }
  0xda   :  { %4698 = vmatprep.subr.bf16.mxu1 %v8563_v4  ;;  %4606 = vmatmul.mubr.bf16.gmra.mrb[24].mxu1 %v8505_v63  ;;  %v8619_v63 = vld [vmem:[%s11853_s0 + $0x1a4] ss:$100 sps:$4 sm:$0xff]   ;;  %v8628_v4 = vld [vmem:[%s11852_s1 + $0x930] ss:$8 sps:$4 sm:$0xff]  }
  0xdb   :  { %5572 = vmatmul.mubr.bf16.gmra.mrb[24].mxu0 %v8506_v0  ;;  %4615 = vmatprep.mubr.bf16.mxu1 %v8513_v2  ;;  %v8621_v0 = vld [vmem:[%s11853_s0 + $0x1d4] ss:$100 sps:$4 sm:$0xff]  }
  0xdc   :  { %5581 = vmatprep.mubr.bf16.mxu0 %v8515_v5  ;;  %5665 = vmatpush1.bf16.msra.mxu0 %v8552_v6  ;;  %v8630_v2 = vld [vmem:[%s11852_s1 + $0x934] ss:$8 sps:$4 sm:$0xff]   ;;  %v8623_v5 = vld [vmem:[%s11853_s0 + $0x1a0] ss:$100 sps:$4 sm:$0xff]  }
  0xdd   :  { %4699 = vmatpush1.bf16.msra.mxu1 %v8561_v7  ;;  %5666 = vmatprep.subr.bf16.mxu0 %v8566_v8  ;;  %v8624_v6 = vld [vmem:[%s11853_s0 + $0x1d0] ss:$100 sps:$4 sm:$0xff]   ;;  %v8642_v8 = vld [vmem:[%s11852_s1 + $0x944] ss:$8 sps:$4 sm:$0xff]  }
  0xde   :  { %4700 = vmatprep.subr.bf16.mxu1 %v8575_v9  ;;  %v8637_v7 = vld [vmem:[%s11852_s1 + $0x330] ss:$8 sps:$4 sm:$0xff]   ;;  %v8650_v9 = vld [vmem:[%s11852_s1 + $0x344] ss:$8 sps:$4 sm:$0xff]  }
  0xe0   :  { %5667 = vmatpush1.bf16.msra.mxu0 %v8564_v10  ;;  %v8631_v10 = vld [vmem:[%s11853_s0 + $0x26c] ss:$100 sps:$4 sm:$0xff]  }
  0xe1   :  { %4701 = vmatpush1.bf16.msra.mxu1 %v8573_v11  ;;  %5668 = vmatprep.subr.bf16.mxu0 %v8578_v13  ;;  %v8633_v11 = vld [vmem:[%s11853_s0 + $0x29c] ss:$100 sps:$4 sm:$0xff]  }
  0xe2   :  { %4702 = vmatprep.subr.bf16.mxu1 %v8584_v14  ;;  %4616 = vmatmul.mubr.bf16.gmra.mrb[28].mxu1 %v8517_v12  ;;  %v8640_v12 = vld [vmem:[%s11852_s1 + $0x940] ss:$8 sps:$4 sm:$0xff]   ;;  %v8654_v14 = vld [vmem:[%s11852_s1 + $0x954] ss:$8 sps:$4 sm:$0xff]  }
  0xe3   :  { %5582 = vmatmul.mubr.bf16.gmra.mrb[28].mxu0 %v8518_v15  ;;  %4625 = vmatprep.mubr.bf16.mxu1 %v8525_v16  ;;  %v8648_v13 = vld [vmem:[%s11852_s1 + $0x340] ss:$8 sps:$4 sm:$0xff]   ;;  %v8659_v15 = vld [vmem:[%s11852_s1 + $0x354] ss:$8 sps:$4 sm:$0xff]  }
  0xe4   :  { %5591 = vmatprep.mubr.bf16.mxu0 %v8527_v17  ;;  %5669 = vmatpush1.bf16.msra.mxu0 %v8576_v18  ;;  %v8635_v16 = vld [vmem:[%s11853_s0 + $0x268] ss:$100 sps:$4 sm:$0xff]   ;;  %v8636_v17 = vld [vmem:[%s11853_s0 + $0x298] ss:$100 sps:$4 sm:$0xff]  }
  0xe5   :  { %4703 = vmatpush1.bf16.msra.mxu1 %v8582_v19  ;;  %5670 = vmatprep.subr.bf16.mxu0 %v8588_v20  ;;  %v8652_v18 = vld [vmem:[%s11852_s1 + $0x950] ss:$8 sps:$4 sm:$0xff]   ;;  %v8664_v20 = vld [vmem:[%s11852_s1 + $0x964] ss:$8 sps:$4 sm:$0xff]  }
  0xe6   :  { %4704 = vmatprep.subr.bf16.mxu1 %v8591_v21  ;;  %v8657_v19 = vld [vmem:[%s11852_s1 + $0x350] ss:$8 sps:$4 sm:$0xff]   ;;  %v8669_v21 = vld [vmem:[%s11852_s1 + $0x364] ss:$8 sps:$4 sm:$0xff]  }
  0xe8   :  { %5671 = vmatpush1.bf16.msra.mxu0 %v8586_v22  ;;  %v8643_v22 = vld [vmem:[%s11853_s0 + $0x334] ss:$100 sps:$4 sm:$0xff]  }
  0xe9   :  { %4705 = vmatpush1.bf16.msra.mxu1 %v8589_v23  ;;  %5801 = vmatprep.subr.bf16.mxu0 %v8600_v24  ;;  %v8645_v23 = vld [vmem:[%s11853_s0 + $0x364] ss:$100 sps:$4 sm:$0xff]  }
  0xea   :  { %4835 = vmatprep.subr.bf16.mxu1 %v8603_v25  ;;  %4626 = vmatmul.mubr.bf16.gmra.mrb[32].mxu1 %v8529_v26  ;;  %v8662_v24 = vld [vmem:[%s11852_s1 + $0x960] ss:$8 sps:$4 sm:$0xff]   ;;  %v8672_v26 = vld [vmem:[%s11852_s1 + $0x974] ss:$8 sps:$4 sm:$0xff]  }
  0xeb   :  { %5592 = vmatmul.mubr.bf16.gmra.mrb[32].mxu0 %v8530_v27  ;;  %4635 = vmatprep.mubr.bf16.mxu1 %v8537_v28  ;;  %v8667_v25 = vld [vmem:[%s11852_s1 + $0x360] ss:$8 sps:$4 sm:$0xff]   ;;  %v8681_v27 = vld [vmem:[%s11852_s1 + $0x374] ss:$8 sps:$4 sm:$0xff]  }
  0xec   :  { %5601 = vmatprep.mubr.bf16.mxu0 %v8542_v29  ;;  %v8647_v28 = vld [vmem:[%s11853_s0 + $0x330] ss:$100 sps:$4 sm:$0xff]   ;;  %v8651_v29 = vld [vmem:[%s11853_s0 + $0x360] ss:$100 sps:$4 sm:$0xff]  }
  0xf2   :  { %4636 = vmatmul.mubr.bf16.gmra.mrb[36].mxu1 %v8544_v30  ;;  %v8670_v30 = vld [vmem:[%s11852_s1 + $0x970] ss:$8 sps:$4 sm:$0xff]  }
  0xf3   :  { %5602 = vmatmul.mubr.bf16.gmra.mrb[36].mxu0 %v8545_v31  ;;  %4645 = vmatprep.mubr.bf16.mxu1 %v8555_v32  ;;  %v8679_v31 = vld [vmem:[%s11852_s1 + $0x370] ss:$8 sps:$4 sm:$0xff]   ;;  %v8684_v32 = vld [vmem:[%s11852_s1 + $0x984] ss:$8 sps:$4 sm:$0xff]  }
  0xf4   :  { %5611 = vmatprep.mubr.bf16.mxu0 %v8557_v33  ;;  %v8693_v33 = vld [vmem:[%s11852_s1 + $0x384] ss:$8 sps:$4 sm:$0xff]  }
  0xfa   :  { %4646 = vmatmul.mubr.bf16.gmra.mrb[40].mxu1 %v8559_v34  ;;  %v8655_v34 = vld [vmem:[%s11853_s0 + $0x3fc] ss:$100 sps:$4 sm:$0xff]  }
  0xfb   :  { %5612 = vmatmul.mubr.bf16.gmra.mrb[40].mxu0 %v8560_v35  ;;  %4655 = vmatprep.mubr.bf16.mxu1 %v8567_v36  ;;  %v8660_v35 = vld [vmem:[%s11853_s0 + $0x42c] ss:$100 sps:$4 sm:$0xff]   ;;  %v8682_v36 = vld [vmem:[%s11852_s1 + $0x980] ss:$8 sps:$4 sm:$0xff]  }
  0xfc   :  { %5621 = vmatprep.mubr.bf16.mxu0 %v8569_v37  ;;  %v8691_v37 = vld [vmem:[%s11852_s1 + $0x380] ss:$8 sps:$4 sm:$0xff]  }
 0x102   :  { %4656 = vmatmul.mubr.bf16.gmra.mrb[44].mxu1 %v8571_v40  ;;  %v8694_v40 = vld [vmem:[%s11852_s1 + $0x990] ss:$8 sps:$4 sm:$0xff]  }
 0x103   :  { %5622 = vmatmul.mubr.bf16.gmra.mrb[44].mxu0 %v8572_v41  ;;  %4665 = vmatprep.mubr.bf16.mxu1 %v6979_v42  ;;  %v8665_v41 = vld [vmem:[%s11853_s0 + $0x3f8] ss:$100 sps:$4 sm:$0xff]   ;;  %v8666_v42 = vld [vmem:[%s11853_s0 + $0x428] ss:$100 sps:$4 sm:$0xff]  }
 0x104   :  { %5631 = vmatprep.mubr.bf16.mxu0 %v6991_v43  ;;  %v8703_v43 = vld [vmem:[%s11852_s1 + $0x390] ss:$8 sps:$4 sm:$0xff]  }
 0x10a   :  { %4666 = vmatmul.mubr.bf16.gmra.mrb[48].mxu1 %v6978_v44  ;;  %v8708_v44 = vld [vmem:[%s11852_s1 + $0x9a4] ss:$8 sps:$4 sm:$0xff]  }
 0x10b   :  { %5632 = vmatmul.mubr.bf16.gmra.mrb[48].mxu0 %v6990_v45  ;;  %4706 = vmatprep.mubr.bf16.mxu1 %v8594_v46  ;;  %v8713_v45 = vld [vmem:[%s11852_s1 + $0x3a4] ss:$8 sps:$4 sm:$0xff]  }
 0x10c   :  { %5672 = vmatprep.mubr.bf16.mxu0 %v8597_v47  ;;  %v8673_v46 = vld [vmem:[%s11853_s0 + $0x4c4] ss:$100 sps:$4 sm:$0xff]   ;;  %v8675_v47 = vld [vmem:[%s11853_s0 + $0x4f4] ss:$100 sps:$4 sm:$0xff]  }
 0x112   :  { %4707 = vmatmul.mubr.bf16.vlgmr.msra.gmra.mrb[0].mxu1 %v8592_v48  ;;  %v8706_v48 = vld [vmem:[%s11852_s1 + $0x9a0] ss:$8 sps:$4 sm:$0xff]  }
 0x113   :  { %5673 = vmatmul.mubr.bf16.vlgmr.msra.gmra.mrb[0].mxu0 %v8595_v49  ;;  %4716 = vmatprep.mubr.bf16.mxu1 %v8604_v52  ;;  %v8711_v49 = vld [vmem:[%s11852_s1 + $0x3a0] ss:$8 sps:$4 sm:$0xff]  }
 0x114   :  { %5802 = vmatpush1.bf16.msra.mxu0 %v8598_v50  ;;  %4836 = vmatpush1.bf16.msra.mxu1 %v8601_v51  ;;  %v8720_v50 = vld [vmem:[%s11852_s1 + $0x9b4] ss:$8 sps:$4 sm:$0xff]   ;;  %v8677_v52 = vld [vmem:[%s11853_s0 + $0x4c0] ss:$100 sps:$4 sm:$0xff]  }
 0x115   :  { %5682 = vmatprep.mubr.bf16.mxu0 %v8606_v53  ;;  %5803 = vmatprep.subr.bf16.mxu0 %v8610_v54  ;;  %v8723_v51 = vld [vmem:[%s11852_s1 + $0x3b4] ss:$8 sps:$4 sm:$0xff]   ;;  %v8718_v54 = vld [vmem:[%s11852_s1 + $0x9b0] ss:$8 sps:$4 sm:$0xff]  }
 0x116   :  { %4837 = vmatprep.subr.bf16.mxu1 %v8615_v55  ;;  %v8678_v53 = vld [vmem:[%s11853_s0 + $0x4f0] ss:$100 sps:$4 sm:$0xff]  }
 0x117   :  { %v8721_v55 = vld [vmem:[%s11852_s1 + $0x3b0] ss:$8 sps:$4 sm:$0xff]  }
 0x118   :  { %5804 = vmatpush1.bf16.msra.mxu0 %v8608_v56  ;;  %4838 = vmatpush1.bf16.msra.mxu1 %v8613_v59  ;;  %v8726_v56 = vld [vmem:[%s11852_s1 + $0x9c4] ss:$8 sps:$4 sm:$0xff]   ;;  %v8687_v59 = vld [vmem:[%s11853_s0 + $0x5bc] ss:$100 sps:$4 sm:$0xff]  }
 0x119   :  { %5805 = vmatprep.subr.bf16.mxu0 %v8618_v60  ;;  %4839 = vmatprep.subr.bf16.mxu1 %v8627_v61  ;;  %v8724_v60 = vld [vmem:[%s11852_s1 + $0x9c0] ss:$8 sps:$4 sm:$0xff]  }
 0x11a   :  { %4717 = vmatmul.mubr.bf16.gmra.mrb[4].mxu1 %v8611_v57  ;;  %v8735_v57 = vld [vmem:[%s11852_s1 + $0x3c4] ss:$8 sps:$4 sm:$0xff]   ;;  %v8733_v61 = vld [vmem:[%s11852_s1 + $0x3c0] ss:$8 sps:$4 sm:$0xff]  }
 0x11b   :  { %5683 = vmatmul.mubr.bf16.gmra.mrb[4].mxu0 %v8612_v58  ;;  %4726 = vmatprep.mubr.bf16.mxu1 %v8619_v63  ;;  %v8685_v58 = vld [vmem:[%s11853_s0 + $0x58c] ss:$100 sps:$4 sm:$0xff]   ;;  %v8747_v63 = vld [vmem:[%s11852_s1 + $0x3d4] ss:$8 sps:$4 sm:$0xff]  }
 0x11c   :  { %5806 = vmatpush1.bf16.msra.mxu0 %v8616_v62  ;;  %5692 = vmatprep.mubr.bf16.mxu0 %v8621_v0  ;;  %v8738_v62 = vld [vmem:[%s11852_s1 + $0x9d4] ss:$8 sps:$4 sm:$0xff]   ;;  %v8736_v0 = vld [vmem:[%s11852_s1 + $0x9d0] ss:$8 sps:$4 sm:$0xff]  }
 0x11d   :  { %4840 = vmatpush1.bf16.msra.mxu1 %v8625_v1  ;;  %5807 = vmatprep.subr.bf16.mxu0 %v8630_v2  ;;  %v8689_v1 = vld [vmem:[%s11853_s0 + $0x588] ss:$100 sps:$4 sm:$0xff]   ;;  %v8690_v2 = vld [vmem:[%s11853_s0 + $0x5b8] ss:$100 sps:$4 sm:$0xff]  }
 0x11e   :  { %4841 = vmatprep.subr.bf16.mxu1 %v8639_v3  ;;  %v8745_v3 = vld [vmem:[%s11852_s1 + $0x3d0] ss:$8 sps:$4 sm:$0xff]  }
 0x120   :  { %5808 = vmatpush1.bf16.msra.mxu0 %v8628_v4  ;;  %v8750_v4 = vld [vmem:[%s11852_s1 + $0x9e4] ss:$8 sps:$4 sm:$0xff]  }
 0x121   :  { %5809 = vmatprep.subr.bf16.mxu0 %v8642_v8  ;;  %4842 = vmatpush1.bf16.msra.mxu1 %v8637_v7  ;;  %v8699_v7 = vld [vmem:[%s11853_s0 + $0x684] ss:$100 sps:$4 sm:$0xff]  }
 0x122   :  { %4843 = vmatprep.subr.bf16.mxu1 %v8650_v9  ;;  %4727 = vmatmul.mubr.bf16.gmra.mrb[8].mxu1 %v8623_v5  ;;  %v8756_v5 = vld [vmem:[%s11852_s1 + $0x3e4] ss:$8 sps:$4 sm:$0xff]   ;;  %v8748_v8 = vld [vmem:[%s11852_s1 + $0x9e0] ss:$8 sps:$4 sm:$0xff]  }
 0x123   :  { %5693 = vmatmul.mubr.bf16.gmra.mrb[8].mxu0 %v8624_v6  ;;  %4736 = vmatprep.mubr.bf16.mxu1 %v8631_v10  ;;  %v8697_v6 = vld [vmem:[%s11853_s0 + $0x654] ss:$100 sps:$4 sm:$0xff]   ;;  %v8754_v9 = vld [vmem:[%s11852_s1 + $0x3e0] ss:$8 sps:$4 sm:$0xff]  }
 0x124   :  { %5702 = vmatprep.mubr.bf16.mxu0 %v8633_v11  ;;  %5810 = vmatpush1.bf16.msra.mxu0 %v8640_v12  ;;  %v8760_v10 = vld [vmem:[%s11852_s1 + $0x9f4] ss:$8 sps:$4 sm:$0xff]   ;;  %v8758_v12 = vld [vmem:[%s11852_s1 + $0x9f0] ss:$8 sps:$4 sm:$0xff]  }
 0x125   :  { %4844 = vmatpush1.bf16.msra.mxu1 %v8648_v13  ;;  %5811 = vmatprep.subr.bf16.mxu0 %v8654_v14  ;;  %v8763_v11 = vld [vmem:[%s11852_s1 + $0x3f4] ss:$8 sps:$4 sm:$0xff]   ;;  %v8702_v14 = vld [vmem:[%s11853_s0 + $0x680] ss:$100 sps:$4 sm:$0xff]  }
 0x126   :  { %4845 = vmatprep.subr.bf16.mxu1 %v8659_v15  ;;  %v8701_v13 = vld [vmem:[%s11853_s0 + $0x650] ss:$100 sps:$4 sm:$0xff]  }
 0x127   :  { %v8761_v15 = vld [vmem:[%s11852_s1 + $0x3f0] ss:$8 sps:$4 sm:$0xff]  }
 0x128   :  { %5812 = vmatpush1.bf16.msra.mxu0 %v8652_v18  ;;  %v8709_v18 = vld [vmem:[%s11853_s0 + $0x71c] ss:$100 sps:$4 sm:$0xff]  }
 0x129   :  { %4846 = vmatpush1.bf16.msra.mxu1 %v8657_v19  ;;  %5813 = vmatprep.subr.bf16.mxu0 %v8664_v20  ;;  %v8714_v19 = vld [vmem:[%s11853_s0 + $0x74c] ss:$100 sps:$4 sm:$0xff]   ;;  %v8716_v20 = vld [vmem:[%s11853_s0 + $0x718] ss:$100 sps:$4 sm:$0xff]  }
 0x12a   :  { %4847 = vmatprep.subr.bf16.mxu1 %v8669_v21  ;;  %4737 = vmatmul.mubr.bf16.gmra.mrb[12].mxu1 %v8635_v16  ;;  %v8772_v16 = vld [vmem:[%s11852_s1 + $0xa04] ss:$8 sps:$4 sm:$0xff]  }
 0x12b   :  { %5703 = vmatmul.mubr.bf16.gmra.mrb[12].mxu0 %v8636_v17  ;;  %4746 = vmatprep.mubr.bf16.mxu1 %v8643_v22  ;;  %v8775_v17 = vld [vmem:[%s11852_s1 + $0x404] ss:$8 sps:$4 sm:$0xff]  }
 0x12c   :  { %5712 = vmatprep.mubr.bf16.mxu0 %v8645_v23  ;;  %5814 = vmatpush1.bf16.msra.mxu0 %v8662_v24  ;;  %v8717_v21 = vld [vmem:[%s11853_s0 + $0x748] ss:$100 sps:$4 sm:$0xff]   ;;  %v8729_v23 = vld [vmem:[%s11853_s0 + $0x814] ss:$100 sps:$4 sm:$0xff]   ;;  %v8731_v24 = vld [vmem:[%s11853_s0 + $0x7e0] ss:$100 sps:$4 sm:$0xff]  }
 0x12d   :  { %4848 = vmatpush1.bf16.msra.mxu1 %v8667_v25  ;;  %5815 = vmatprep.subr.bf16.mxu0 %v8672_v26  ;;  %v8727_v22 = vld [vmem:[%s11853_s0 + $0x7e4] ss:$100 sps:$4 sm:$0xff]   ;;  %v8732_v25 = vld [vmem:[%s11853_s0 + $0x810] ss:$100 sps:$4 sm:$0xff]  }
 0x12e   :  { %4849 = vmatprep.subr.bf16.mxu1 %v8681_v27  ;;  %v8739_v26 = vld [vmem:[%s11853_s0 + $0x8ac] ss:$100 sps:$4 sm:$0xff]   ;;  %v8741_v27 = vld [vmem:[%s11853_s0 + $0x8dc] ss:$100 sps:$4 sm:$0xff]  }
 0x130   :  { %5816 = vmatpush1.bf16.msra.mxu0 %v8670_v30  ;;  %v335_v30 = vld [vmem:[%s11853_s0 + $0x9a0] sm:$0x33] }
 0x131   :  { %4850 = vmatpush1.bf16.msra.mxu1 %v8679_v31  ;;  %5817 = vmatprep.subr.bf16.mxu0 %v8684_v32  ;;  %v8744_v31 = vld [vmem:[%s11853_s0 + $0x8d8] ss:$100 sps:$4 sm:$0xff]  }
 0x132   :  { %4851 = vmatprep.subr.bf16.mxu1 %v8693_v33  ;;  %4747 = vmatmul.mubr.bf16.gmra.mrb[16].mxu1 %v8647_v28  ;;  %v8743_v28 = vld [vmem:[%s11853_s0 + $0x8a8] ss:$100 sps:$4 sm:$0xff]   ;;  %v6993_v33 = vcombine.high %v335_v30, %v335_v30 }
 0x133   :  { %5713 = vmatmul.mubr.bf16.gmra.mrb[16].mxu0 %v8651_v29  ;;  %4756 = vmatprep.mubr.bf16.mxu1 %v8655_v34  ;;  %v329_v29 = vld [vmem:[%s11853_s0 + $0x970] sm:$0x33]  ;;  %v8766_v34 = vld [vmem:[%s11853_s0 + $0x1c] ss:$100 sps:$4 sm:$0xff]  }
 0x134   :  { %5722 = vmatprep.mubr.bf16.mxu0 %v8660_v35  ;;  %5818 = vmatpush1.bf16.msra.mxu0 %v8682_v36  ;;  %v6981_v32 = vcombine.high %v329_v29, %v329_v29  ;;  %v8769_v35 = vld [vmem:[%s11853_s0 + $0x4c] ss:$100 sps:$4 sm:$0xff]   ;;  %v6980_v36 = vcombine.low %v329_v29, %v329_v29  ;;  %v8877_v29 = vld [vmem:[%s11852_s1 + $0x494] ss:$8 sps:$4 sm:$0xff]  }
 0x135   :  { %4852 = vmatpush1.bf16.msra.mxu1 %v8691_v37  ;;  %5819 = vmatprep.subr.bf16.mxu0 %v8696_v38  ;;  %v6992_v37 = vcombine.low %v335_v30, %v335_v30  ;;  %v8764_v38 = vld [vmem:[%s11853_s0 + $0x18] ss:$100 sps:$4 sm:$0xff]  }
 0x136   :  { %4853 = vmatprep.subr.bf16.mxu1 %v8705_v39  ;;  %v8767_v39 = vld [vmem:[%s11853_s0 + $0x48] ss:$100 sps:$4 sm:$0xff]   ;;  %v8866_v30 = vld [vmem:[%s11852_s1 + $0xa90] ss:$8 sps:$4 sm:$0xff]  }
 0x138   :  { %5820 = vmatpush1.bf16.msra.mxu0 %v8694_v40  ;;  %v8770_v40 = vld [vmem:[%s11852_s1 + $0xa00] ss:$8 sps:$4 sm:$0xff]  }
 0x139   :  { %4854 = vmatpush1.bf16.msra.mxu1 %v8703_v43  ;;  %5821 = vmatprep.subr.bf16.mxu0 %v8708_v44  ;;  %v8778_v43 = vld [vmem:[%s11853_s0 + $0x114] ss:$100 sps:$4 sm:$0xff]  }
 0x13a   :  { %4855 = vmatprep.subr.bf16.mxu1 %v8713_v45  ;;  %4757 = vmatmul.mubr.bf16.gmra.mrb[20].mxu1 %v8665_v41  ;;  %v8776_v41 = vld [vmem:[%s11853_s0 + $0xe4] ss:$100 sps:$4 sm:$0xff]   ;;  %v8782_v44 = vld [vmem:[%s11852_s1 + $0xa14] ss:$8 sps:$4 sm:$0xff]  }
 0x13b   :  { %5723 = vmatmul.mubr.bf16.gmra.mrb[20].mxu0 %v8666_v42  ;;  %4766 = vmatprep.mubr.bf16.mxu1 %v8673_v46  ;;  %v8773_v42 = vld [vmem:[%s11852_s1 + $0x400] ss:$8 sps:$4 sm:$0xff]   ;;  %v8787_v45 = vld [vmem:[%s11852_s1 + $0x414] ss:$8 sps:$4 sm:$0xff]   ;;  %v8780_v46 = vld [vmem:[%s11852_s1 + $0xa10] ss:$8 sps:$4 sm:$0xff]  }
 0x13c   :  { %5732 = vmatprep.mubr.bf16.mxu0 %v8675_v47  ;;  %5822 = vmatpush1.bf16.msra.mxu0 %v8706_v48  ;;  %v8785_v47 = vld [vmem:[%s11852_s1 + $0x410] ss:$8 sps:$4 sm:$0xff]   ;;  %v8790_v48 = vld [vmem:[%s11852_s1 + $0xa24] ss:$8 sps:$4 sm:$0xff]  }
 0x13d   :  { %4856 = vmatpush1.bf16.msra.mxu1 %v8711_v49  ;;  %5823 = vmatprep.subr.bf16.mxu0 %v8720_v50  ;;  %v8783_v49 = vld [vmem:[%s11853_s0 + $0xe0] ss:$100 sps:$4 sm:$0xff]   ;;  %v8784_v50 = vld [vmem:[%s11853_s0 + $0x110] ss:$100 sps:$4 sm:$0xff]  }
 0x13e   :  { %4857 = vmatprep.subr.bf16.mxu1 %v8723_v51  ;;  %v8799_v51 = vld [vmem:[%s11852_s1 + $0x424] ss:$8 sps:$4 sm:$0xff]  }
 0x140   :  { %5824 = vmatpush1.bf16.msra.mxu0 %v8718_v54  ;;  %v8793_v54 = vld [vmem:[%s11853_s0 + $0x1dc] ss:$100 sps:$4 sm:$0xff]  }
 0x141   :  { %4858 = vmatpush1.bf16.msra.mxu1 %v8721_v55  ;;  %5825 = vmatprep.subr.bf16.mxu0 %v8726_v56  ;;  %v8797_v55 = vld [vmem:[%s11852_s1 + $0x420] ss:$8 sps:$4 sm:$0xff]   ;;  %v8802_v56 = vld [vmem:[%s11852_s1 + $0xa34] ss:$8 sps:$4 sm:$0xff]  }
 0x142   :  { %4859 = vmatprep.subr.bf16.mxu1 %v8735_v57  ;;  %4767 = vmatmul.mubr.bf16.gmra.mrb[24].mxu1 %v8677_v52  ;;  %v8788_v52 = vld [vmem:[%s11852_s1 + $0xa20] ss:$8 sps:$4 sm:$0xff]   ;;  %v8811_v57 = vld [vmem:[%s11852_s1 + $0x434] ss:$8 sps:$4 sm:$0xff]  }
 0x143   :  { %5733 = vmatmul.mubr.bf16.gmra.mrb[24].mxu0 %v8678_v53  ;;  %4776 = vmatprep.mubr.bf16.mxu1 %v8685_v58  ;;  %v8791_v53 = vld [vmem:[%s11853_s0 + $0x1ac] ss:$100 sps:$4 sm:$0xff]  }
 0x144   :  { %5742 = vmatprep.mubr.bf16.mxu0 %v8687_v59  ;;  %5826 = vmatpush1.bf16.msra.mxu0 %v8724_v60  ;;  %v8800_v58 = vld [vmem:[%s11852_s1 + $0xa30] ss:$8 sps:$4 sm:$0xff]   ;;  %v8795_v59 = vld [vmem:[%s11853_s0 + $0x1a8] ss:$100 sps:$4 sm:$0xff]  }
 0x145   :  { %4860 = vmatpush1.bf16.msra.mxu1 %v8733_v61  ;;  %5827 = vmatprep.subr.bf16.mxu0 %v8738_v62  ;;  %v8796_v60 = vld [vmem:[%s11853_s0 + $0x1d8] ss:$100 sps:$4 sm:$0xff]   ;;  %v8814_v62 = vld [vmem:[%s11852_s1 + $0xa44] ss:$8 sps:$4 sm:$0xff]  }
 0x146   :  { %4861 = vmatprep.subr.bf16.mxu1 %v8747_v63  ;;  %v8809_v61 = vld [vmem:[%s11852_s1 + $0x430] ss:$8 sps:$4 sm:$0xff]  }
 0x147   :  { %v8803_v63 = vld [vmem:[%s11853_s0 + $0x274] ss:$100 sps:$4 sm:$0xff]  }
 0x148   :  { %5828 = vmatpush1.bf16.msra.mxu0 %v8736_v0  ;;  %v8805_v0 = vld [vmem:[%s11853_s0 + $0x2a4] ss:$100 sps:$4 sm:$0xff]  }
 0x149   :  { %4862 = vmatpush1.bf16.msra.mxu1 %v8745_v3  ;;  %5829 = vmatprep.subr.bf16.mxu0 %v8750_v4  ;;  %v8820_v3 = vld [vmem:[%s11852_s1 + $0x440] ss:$8 sps:$4 sm:$0xff]   ;;  %v8826_v4 = vld [vmem:[%s11852_s1 + $0xa54] ss:$8 sps:$4 sm:$0xff]  }
 0x14a   :  { %4863 = vmatprep.subr.bf16.mxu1 %v8756_v5  ;;  %4777 = vmatmul.mubr.bf16.gmra.mrb[28].mxu1 %v8689_v1  ;;  %v8822_v1 = vld [vmem:[%s11852_s1 + $0x444] ss:$8 sps:$4 sm:$0xff]   ;;  %v8831_v5 = vld [vmem:[%s11852_s1 + $0x454] ss:$8 sps:$4 sm:$0xff]  }
 0x14b   :  { %5743 = vmatmul.mubr.bf16.gmra.mrb[28].mxu0 %v8690_v2  ;;  %4786 = vmatprep.mubr.bf16.mxu1 %v8697_v6  ;;  %v8812_v2 = vld [vmem:[%s11852_s1 + $0xa40] ss:$8 sps:$4 sm:$0xff]   ;;  %v8824_v6 = vld [vmem:[%s11852_s1 + $0xa50] ss:$8 sps:$4 sm:$0xff]  }
 0x14c   :  { %5752 = vmatprep.mubr.bf16.mxu0 %v8699_v7  ;;  %5830 = vmatpush1.bf16.msra.mxu0 %v8748_v8  ;;  %v8829_v7 = vld [vmem:[%s11852_s1 + $0x450] ss:$8 sps:$4 sm:$0xff]   ;;  %v8836_v8 = vld [vmem:[%s11852_s1 + $0xa64] ss:$8 sps:$4 sm:$0xff]  }
 0x14d   :  { %4864 = vmatpush1.bf16.msra.mxu1 %v8754_v9  ;;  %5831 = vmatprep.subr.bf16.mxu0 %v8760_v10  ;;  %v8807_v9 = vld [vmem:[%s11853_s0 + $0x270] ss:$100 sps:$4 sm:$0xff]   ;;  %v8808_v10 = vld [vmem:[%s11853_s0 + $0x2a0] ss:$100 sps:$4 sm:$0xff]  }
 0x14e   :  { %4865 = vmatprep.subr.bf16.mxu1 %v8763_v11  ;;  %v8841_v11 = vld [vmem:[%s11852_s1 + $0x464] ss:$8 sps:$4 sm:$0xff]  }
 0x150   :  { %5832 = vmatpush1.bf16.msra.mxu0 %v8758_v12  ;;  %v8815_v12 = vld [vmem:[%s11853_s0 + $0x33c] ss:$100 sps:$4 sm:$0xff]  }
 0x151   :  { %4866 = vmatpush1.bf16.msra.mxu1 %v8761_v15  ;;  %5962 = vmatprep.subr.bf16.mxu0 %v8772_v16  ;;  %v8839_v15 = vld [vmem:[%s11852_s1 + $0x460] ss:$8 sps:$4 sm:$0xff]   ;;  %v8844_v16 = vld [vmem:[%s11852_s1 + $0xa74] ss:$8 sps:$4 sm:$0xff]  }
 0x152   :  { %4996 = vmatprep.subr.bf16.mxu1 %v8775_v17  ;;  %4787 = vmatmul.mubr.bf16.gmra.mrb[32].mxu1 %v8701_v13  ;;  %v8817_v13 = vld [vmem:[%s11853_s0 + $0x36c] ss:$100 sps:$4 sm:$0xff]   ;;  %v8853_v17 = vld [vmem:[%s11852_s1 + $0x474] ss:$8 sps:$4 sm:$0xff]  }
 0x153   :  { %5753 = vmatmul.mubr.bf16.gmra.mrb[32].mxu0 %v8702_v14  ;;  %4796 = vmatprep.mubr.bf16.mxu1 %v8709_v18  ;;  %v8834_v14 = vld [vmem:[%s11852_s1 + $0xa60] ss:$8 sps:$4 sm:$0xff]   ;;  %v8842_v18 = vld [vmem:[%s11852_s1 + $0xa70] ss:$8 sps:$4 sm:$0xff]  }
 0x154   :  { %5762 = vmatprep.mubr.bf16.mxu0 %v8714_v19  ;;  %v8851_v19 = vld [vmem:[%s11852_s1 + $0x470] ss:$8 sps:$4 sm:$0xff]  }
 0x15a   :  { %4797 = vmatmul.mubr.bf16.gmra.mrb[36].mxu1 %v8716_v20  ;;  %v8856_v20 = vld [vmem:[%s11852_s1 + $0xa84] ss:$8 sps:$4 sm:$0xff]  }
 0x15b   :  { %5763 = vmatmul.mubr.bf16.gmra.mrb[36].mxu0 %v8717_v21  ;;  %4806 = vmatprep.mubr.bf16.mxu1 %v8727_v22  ;;  %v8819_v21 = vld [vmem:[%s11853_s0 + $0x338] ss:$100 sps:$4 sm:$0xff]   ;;  %v8823_v22 = vld [vmem:[%s11853_s0 + $0x368] ss:$100 sps:$4 sm:$0xff]  }
 0x15c   :  { %5772 = vmatprep.mubr.bf16.mxu0 %v8729_v23  ;;  %v8865_v23 = vld [vmem:[%s11852_s1 + $0x484] ss:$8 sps:$4 sm:$0xff]  }
 0x162   :  { %4807 = vmatmul.mubr.bf16.gmra.mrb[40].mxu1 %v8731_v24  ;;  %v8827_v24 = vld [vmem:[%s11853_s0 + $0x404] ss:$100 sps:$4 sm:$0xff]  }
 0x163   :  { %5773 = vmatmul.mubr.bf16.gmra.mrb[40].mxu0 %v8732_v25  ;;  %4816 = vmatprep.mubr.bf16.mxu1 %v8739_v26  ;;  %v8832_v25 = vld [vmem:[%s11853_s0 + $0x434] ss:$100 sps:$4 sm:$0xff]   ;;  %v8854_v26 = vld [vmem:[%s11852_s1 + $0xa80] ss:$8 sps:$4 sm:$0xff]  }
 0x164   :  { %5782 = vmatprep.mubr.bf16.mxu0 %v8741_v27  ;;  %v8863_v27 = vld [vmem:[%s11852_s1 + $0x480] ss:$8 sps:$4 sm:$0xff]  }
 0x16a   :  { %4817 = vmatmul.mubr.bf16.gmra.mrb[44].mxu1 %v8743_v28  ;;  %v8868_v28 = vld [vmem:[%s11852_s1 + $0xa94] ss:$8 sps:$4 sm:$0xff]  }
 0x16b   :  { %5783 = vmatmul.mubr.bf16.gmra.mrb[44].mxu0 %v8744_v31  ;;  %4826 = vmatprep.mubr.bf16.mxu1 %v6981_v32  ;;  %v8875_v31 = vld [vmem:[%s11852_s1 + $0x490] ss:$8 sps:$4 sm:$0xff]   ;;  %v8880_v32 = vld [vmem:[%s11852_s1 + $0xaa4] ss:$8 sps:$4 sm:$0xff]  }
 0x16c   :  { %5792 = vmatprep.mubr.bf16.mxu0 %v6993_v33  ;;  %v8837_v33 = vld [vmem:[%s11853_s0 + $0x400] ss:$100 sps:$4 sm:$0xff]  }
 0x172   :  { %4827 = vmatmul.mubr.bf16.gmra.mrb[48].mxu1 %v6980_v36  ;;  %v8845_v36 = vld [vmem:[%s11853_s0 + $0x4cc] ss:$100 sps:$4 sm:$0xff]  }
 0x173   :  { %5793 = vmatmul.mubr.bf16.gmra.mrb[48].mxu0 %v6992_v37  ;;  %4867 = vmatprep.mubr.bf16.mxu1 %v8766_v34  ;;  %v8838_v34 = vld [vmem:[%s11853_s0 + $0x430] ss:$100 sps:$4 sm:$0xff]   ;;  %v8847_v37 = vld [vmem:[%s11853_s0 + $0x4fc] ss:$100 sps:$4 sm:$0xff]  }
 0x174   :  { %5833 = vmatprep.mubr.bf16.mxu0 %v8769_v35  ;;  %v8885_v35 = vld [vmem:[%s11852_s1 + $0x4a4] ss:$8 sps:$4 sm:$0xff]  }
 0x17a   :  { %4868 = vmatmul.mubr.bf16.vlgmr.msra.gmra.mrb[0].mxu1 %v8764_v38  ;;  %v8878_v38 = vld [vmem:[%s11852_s1 + $0xaa0] ss:$8 sps:$4 sm:$0xff]  }
 0x17b   :  { %5834 = vmatmul.mubr.bf16.vlgmr.msra.gmra.mrb[0].mxu0 %v8767_v39  ;;  %4877 = vmatprep.mubr.bf16.mxu1 %v8776_v41  ;;  %v8883_v39 = vld [vmem:[%s11852_s1 + $0x4a0] ss:$8 sps:$4 sm:$0xff]   ;;  %v8895_v41 = vld [vmem:[%s11852_s1 + $0x4b4] ss:$8 sps:$4 sm:$0xff]  }
 0x17c   :  { %5963 = vmatpush1.bf16.msra.mxu0 %v8770_v40  ;;  %4997 = vmatpush1.bf16.msra.mxu1 %v8773_v42  ;;  %v8892_v40 = vld [vmem:[%s11852_s1 + $0xab4] ss:$8 sps:$4 sm:$0xff]   ;;  %v8890_v42 = vld [vmem:[%s11852_s1 + $0xab0] ss:$8 sps:$4 sm:$0xff]  }
 0x17d   :  { %5843 = vmatprep.mubr.bf16.mxu0 %v8778_v43  ;;  %5964 = vmatprep.subr.bf16.mxu0 %v8782_v44  ;;  %v8849_v43 = vld [vmem:[%s11853_s0 + $0x4c8] ss:$100 sps:$4 sm:$0xff]   ;;  %v8850_v44 = vld [vmem:[%s11853_s0 + $0x4f8] ss:$100 sps:$4 sm:$0xff]  }
 0x17e   :  { %4998 = vmatprep.subr.bf16.mxu1 %v8787_v45  ;;  %v8893_v45 = vld [vmem:[%s11852_s1 + $0x4b0] ss:$8 sps:$4 sm:$0xff]  }
 0x180   :  { %5965 = vmatpush1.bf16.msra.mxu0 %v8780_v46  ;;  %4999 = vmatpush1.bf16.msra.mxu1 %v8785_v47  ;;  %v8898_v46 = vld [vmem:[%s11852_s1 + $0xac4] ss:$8 sps:$4 sm:$0xff]  }
 0x181   :  { %5966 = vmatprep.subr.bf16.mxu0 %v8790_v48  ;;  %5000 = vmatprep.subr.bf16.mxu1 %v8799_v51  ;;  %v8907_v47 = vld [vmem:[%s11852_s1 + $0x4c4] ss:$8 sps:$4 sm:$0xff]   ;;  %v8857_v48 = vld [vmem:[%s11853_s0 + $0x594] ss:$100 sps:$4 sm:$0xff]   ;;  %v8905_v51 = vld [vmem:[%s11852_s1 + $0x4c0] ss:$8 sps:$4 sm:$0xff]  }
 0x182   :  { %4878 = vmatmul.mubr.bf16.gmra.mrb[4].mxu1 %v8783_v49  ;;  %v8859_v49 = vld [vmem:[%s11853_s0 + $0x5c4] ss:$100 sps:$4 sm:$0xff]  }
 0x183   :  { %5844 = vmatmul.mubr.bf16.gmra.mrb[4].mxu0 %v8784_v50  ;;  %4887 = vmatprep.mubr.bf16.mxu1 %v8791_v53  ;;  %v8896_v50 = vld [vmem:[%s11852_s1 + $0xac0] ss:$8 sps:$4 sm:$0xff]   ;;  %v8919_v53 = vld [vmem:[%s11852_s1 + $0x4d4] ss:$8 sps:$4 sm:$0xff]  }
 0x184   :  { %5967 = vmatpush1.bf16.msra.mxu0 %v8788_v52  ;;  %5853 = vmatprep.mubr.bf16.mxu0 %v8793_v54  ;;  %v8910_v52 = vld [vmem:[%s11852_s1 + $0xad4] ss:$8 sps:$4 sm:$0xff]   ;;  %v8908_v54 = vld [vmem:[%s11852_s1 + $0xad0] ss:$8 sps:$4 sm:$0xff]  }
 0x185   :  { %5001 = vmatpush1.bf16.msra.mxu1 %v8797_v55  ;;  %5968 = vmatprep.subr.bf16.mxu0 %v8802_v56  ;;  %v8861_v55 = vld [vmem:[%s11853_s0 + $0x590] ss:$100 sps:$4 sm:$0xff]   ;;  %v8862_v56 = vld [vmem:[%s11853_s0 + $0x5c0] ss:$100 sps:$4 sm:$0xff]  }
 0x186   :  { %5002 = vmatprep.subr.bf16.mxu1 %v8811_v57  ;;  %v8917_v57 = vld [vmem:[%s11852_s1 + $0x4d0] ss:$8 sps:$4 sm:$0xff]  }
 0x188   :  { %5969 = vmatpush1.bf16.msra.mxu0 %v8800_v58  ;;  %v8922_v58 = vld [vmem:[%s11852_s1 + $0xae4] ss:$8 sps:$4 sm:$0xff]  }
 0x189   :  { %5970 = vmatprep.subr.bf16.mxu0 %v8814_v62  ;;  %5003 = vmatpush1.bf16.msra.mxu1 %v8809_v61  ;;  %v8871_v61 = vld [vmem:[%s11853_s0 + $0x68c] ss:$100 sps:$4 sm:$0xff]   ;;  %v8920_v62 = vld [vmem:[%s11852_s1 + $0xae0] ss:$8 sps:$4 sm:$0xff]  }
 0x18a   :  { %5004 = vmatprep.subr.bf16.mxu1 %v8822_v1  ;;  %4888 = vmatmul.mubr.bf16.gmra.mrb[8].mxu1 %v8795_v59  ;;  %v8928_v59 = vld [vmem:[%s11852_s1 + $0x4e4] ss:$8 sps:$4 sm:$0xff]   ;;  %v8935_v1 = vld [vmem:[%s11852_s1 + $0x4f4] ss:$8 sps:$4 sm:$0xff]  }
 0x18b   :  { %5854 = vmatmul.mubr.bf16.gmra.mrb[8].mxu0 %v8796_v60  ;;  %4897 = vmatprep.mubr.bf16.mxu1 %v8803_v63  ;;  %v8869_v60 = vld [vmem:[%s11853_s0 + $0x65c] ss:$100 sps:$4 sm:$0xff]  }
 0x18c   :  { %5863 = vmatprep.mubr.bf16.mxu0 %v8805_v0  ;;  %5971 = vmatpush1.bf16.msra.mxu0 %v8812_v2  ;;  %v8926_v63 = vld [vmem:[%s11852_s1 + $0x4e0] ss:$8 sps:$4 sm:$0xff]   ;;  %v8932_v0 = vld [vmem:[%s11852_s1 + $0xaf4] ss:$8 sps:$4 sm:$0xff]   ;;  %v8930_v2 = vld [vmem:[%s11852_s1 + $0xaf0] ss:$8 sps:$4 sm:$0xff]  }
 0x18d   :  { %5005 = vmatpush1.bf16.msra.mxu1 %v8820_v3  ;;  %5972 = vmatprep.subr.bf16.mxu0 %v8826_v4  ;;  %v8933_v3 = vld [vmem:[%s11852_s1 + $0x4f0] ss:$8 sps:$4 sm:$0xff]   ;;  %v10757_v4 = vld [vmem:[%s11852_s1 + $0xb04] ss:$8 sps:$4 sm:$0xff]  }
 0x18e   :  { %5006 = vmatprep.subr.bf16.mxu1 %v8831_v5  ;;  %v8873_v5 = vld [vmem:[%s11853_s0 + $0x658] ss:$100 sps:$4 sm:$0xff]  }
 0x190   :  { %5973 = vmatpush1.bf16.msra.mxu0 %v8824_v6  ;;  %v8874_v6 = vld [vmem:[%s11853_s0 + $0x688] ss:$100 sps:$4 sm:$0xff]  }
 0x191   :  { %5007 = vmatpush1.bf16.msra.mxu1 %v8829_v7  ;;  %5974 = vmatprep.subr.bf16.mxu0 %v8836_v8  ;;  %v8947_v7 = vld [vmem:[%s11852_s1 + $0x504] ss:$8 sps:$4 sm:$0xff]  }
 0x192   :  { %5008 = vmatprep.subr.bf16.mxu1 %v8841_v11  ;;  %4898 = vmatmul.mubr.bf16.gmra.mrb[12].mxu1 %v8807_v9  ;;  %v8881_v8 = vld [vmem:[%s11853_s0 + $0x724] ss:$100 sps:$4 sm:$0xff]   ;;  %v8886_v9 = vld [vmem:[%s11853_s0 + $0x754] ss:$100 sps:$4 sm:$0xff]  }
 0x193   :  { %5864 = vmatmul.mubr.bf16.gmra.mrb[12].mxu0 %v8808_v10  ;;  %4907 = vmatprep.mubr.bf16.mxu1 %v8815_v12  ;;  %v8888_v10 = vld [vmem:[%s11853_s0 + $0x720] ss:$100 sps:$4 sm:$0xff]   ;;  %v8889_v11 = vld [vmem:[%s11853_s0 + $0x750] ss:$100 sps:$4 sm:$0xff]  }
 0x194   :  { %5873 = vmatprep.mubr.bf16.mxu0 %v8817_v13  ;;  %5975 = vmatpush1.bf16.msra.mxu0 %v8834_v14  ;;  %v8899_v12 = vld [vmem:[%s11853_s0 + $0x7ec] ss:$100 sps:$4 sm:$0xff]   ;;  %v8901_v13 = vld [vmem:[%s11853_s0 + $0x81c] ss:$100 sps:$4 sm:$0xff]  }
 0x195   :  { %5009 = vmatpush1.bf16.msra.mxu1 %v8839_v15  ;;  %5976 = vmatprep.subr.bf16.mxu0 %v8844_v16  ;;  %v8903_v14 = vld [vmem:[%s11853_s0 + $0x7e8] ss:$100 sps:$4 sm:$0xff]   ;;  %v8904_v15 = vld [vmem:[%s11853_s0 + $0x818] ss:$100 sps:$4 sm:$0xff]  }
 0x196   :  { %5010 = vmatprep.subr.bf16.mxu1 %v8853_v17  ;;  %v8911_v16 = vld [vmem:[%s11853_s0 + $0x8b4] ss:$100 sps:$4 sm:$0xff]   ;;  %v8913_v17 = vld [vmem:[%s11853_s0 + $0x8e4] ss:$100 sps:$4 sm:$0xff]  }
 0x198   :  { %5977 = vmatpush1.bf16.msra.mxu0 %v8842_v18  ;;  %v330_v18 = vld [vmem:[%s11853_s0 + $0x978] sm:$0x33] }
 0x199   :  { %5011 = vmatpush1.bf16.msra.mxu1 %v8851_v19  ;;  %5978 = vmatprep.subr.bf16.mxu0 %v8856_v20  ;;  %v336_v19 = vld [vmem:[%s11853_s0 + $0x9a8] sm:$0x33]  ;;  %v8915_v20 = vld [vmem:[%s11853_s0 + $0x8b0] ss:$100 sps:$4 sm:$0xff]  }
 0x19a   :  { %5012 = vmatprep.subr.bf16.mxu1 %v8865_v23  ;;  %4908 = vmatmul.mubr.bf16.gmra.mrb[16].mxu1 %v8819_v21  ;;  %v8916_v21 = vld [vmem:[%s11853_s0 + $0x8e0] ss:$100 sps:$4 sm:$0xff]   ;;  %v6995_v23 = vcombine.high %v336_v19, %v336_v19 }
 0x19b   :  { %5874 = vmatmul.mubr.bf16.gmra.mrb[16].mxu0 %v8823_v22  ;;  %4917 = vmatprep.mubr.bf16.mxu1 %v8827_v24  ;;  %v6983_v22 = vcombine.high %v330_v18, %v330_v18  ;;  %v6982_v24 = vcombine.low %v330_v18, %v330_v18  ;;  %v9035_v18 = vld [vmem:[%s11852_s1 + $0x580] ss:$8 sps:$4 sm:$0xff]  }
 0x19c   :  { %5883 = vmatprep.mubr.bf16.mxu0 %v8832_v25  ;;  %5979 = vmatpush1.bf16.msra.mxu0 %v8854_v26  ;;  %v6994_v25 = vcombine.low %v336_v19, %v336_v19  ;;  %v8938_v26 = vld [vmem:[%s11853_s0 + $0x24] ss:$100 sps:$4 sm:$0xff]   ;;  %v11032_v19 = vld [vmem:[%s11852_s1 + $0xb94] ss:$8 sps:$4 sm:$0xff]  }
 0x19d   :  { %5013 = vmatpush1.bf16.msra.mxu1 %v8863_v27  ;;  %5980 = vmatprep.subr.bf16.mxu0 %v8868_v28  ;;  %v8941_v27 = vld [vmem:[%s11853_s0 + $0x54] ss:$100 sps:$4 sm:$0xff]   ;;  %v8936_v28 = vld [vmem:[%s11853_s0 + $0x20] ss:$100 sps:$4 sm:$0xff]  }
 0x19e   :  { %5014 = vmatprep.subr.bf16.mxu1 %v8877_v29  ;;  %v8939_v29 = vld [vmem:[%s11853_s0 + $0x50] ss:$100 sps:$4 sm:$0xff]  }
 0x1a0   :  { %5981 = vmatpush1.bf16.msra.mxu0 %v8866_v30  ;;  %v10826_v30 = vld [vmem:[%s11852_s1 + $0xb00] ss:$8 sps:$4 sm:$0xff]  }
 0x1a1   :  { %5015 = vmatpush1.bf16.msra.mxu1 %v8875_v31  ;;  %5982 = vmatprep.subr.bf16.mxu0 %v8880_v32  ;;  %v8948_v31 = vld [vmem:[%s11853_s0 + $0xec] ss:$100 sps:$4 sm:$0xff]   ;;  %v8945_v32 = vld [vmem:[%s11852_s1 + $0x500] ss:$8 sps:$4 sm:$0xff]  }
 0x1a2   :  { %5016 = vmatprep.subr.bf16.mxu1 %v8885_v35  ;;  %4918 = vmatmul.mubr.bf16.gmra.mrb[20].mxu1 %v8837_v33  ;;  %v8950_v33 = vld [vmem:[%s11853_s0 + $0x11c] ss:$100 sps:$4 sm:$0xff]  }
 0x1a3   :  { %5884 = vmatmul.mubr.bf16.gmra.mrb[20].mxu0 %v8838_v34  ;;  %4927 = vmatprep.mubr.bf16.mxu1 %v8845_v36  ;;  %v10840_v34 = vld [vmem:[%s11852_s1 + $0xb14] ss:$8 sps:$4 sm:$0xff]   ;;  %v10849_v36 = vld [vmem:[%s11852_s1 + $0xb10] ss:$8 sps:$4 sm:$0xff]  }
 0x1a4   :  { %5893 = vmatprep.mubr.bf16.mxu0 %v8847_v37  ;;  %5983 = vmatpush1.bf16.msra.mxu0 %v8878_v38  ;;  %v8959_v35 = vld [vmem:[%s11852_s1 + $0x514] ss:$8 sps:$4 sm:$0xff]   ;;  %v8957_v37 = vld [vmem:[%s11852_s1 + $0x510] ss:$8 sps:$4 sm:$0xff]   ;;  %v10857_v38 = vld [vmem:[%s11852_s1 + $0xb24] ss:$8 sps:$4 sm:$0xff]  }
 0x1a5   :  { %5017 = vmatpush1.bf16.msra.mxu1 %v8883_v39  ;;  %5984 = vmatprep.subr.bf16.mxu0 %v8892_v40  ;;  %v8971_v39 = vld [vmem:[%s11852_s1 + $0x524] ss:$8 sps:$4 sm:$0xff]  }
 0x1a6   :  { %5018 = vmatprep.subr.bf16.mxu1 %v8895_v41  ;;  %v8955_v40 = vld [vmem:[%s11853_s0 + $0xe8] ss:$100 sps:$4 sm:$0xff]   ;;  %v8956_v41 = vld [vmem:[%s11853_s0 + $0x118] ss:$100 sps:$4 sm:$0xff]  }
 0x1a8   :  { %5985 = vmatpush1.bf16.msra.mxu0 %v8890_v42  ;;  %v10873_v42 = vld [vmem:[%s11852_s1 + $0xb20] ss:$8 sps:$4 sm:$0xff]  }
 0x1a9   :  { %5019 = vmatpush1.bf16.msra.mxu1 %v8893_v45  ;;  %5986 = vmatprep.subr.bf16.mxu0 %v8898_v46  ;;  %v8969_v45 = vld [vmem:[%s11852_s1 + $0x520] ss:$8 sps:$4 sm:$0xff]   ;;  %v10888_v46 = vld [vmem:[%s11852_s1 + $0xb34] ss:$8 sps:$4 sm:$0xff]  }
 0x1aa   :  { %5020 = vmatprep.subr.bf16.mxu1 %v8907_v47  ;;  %4928 = vmatmul.mubr.bf16.gmra.mrb[24].mxu1 %v8849_v43  ;;  %v8963_v43 = vld [vmem:[%s11853_s0 + $0x1b4] ss:$100 sps:$4 sm:$0xff]  }
 0x1ab   :  { %5894 = vmatmul.mubr.bf16.gmra.mrb[24].mxu0 %v8850_v44  ;;  %4937 = vmatprep.mubr.bf16.mxu1 %v8857_v48  ;;  %v8965_v44 = vld [vmem:[%s11853_s0 + $0x1e4] ss:$100 sps:$4 sm:$0xff]   ;;  %v8983_v47 = vld [vmem:[%s11852_s1 + $0x534] ss:$8 sps:$4 sm:$0xff]   ;;  %v10897_v48 = vld [vmem:[%s11852_s1 + $0xb30] ss:$8 sps:$4 sm:$0xff]  }
 0x1ac   :  { %5903 = vmatprep.mubr.bf16.mxu0 %v8859_v49  ;;  %5987 = vmatpush1.bf16.msra.mxu0 %v8896_v50  ;;  %v8981_v49 = vld [vmem:[%s11852_s1 + $0x530] ss:$8 sps:$4 sm:$0xff]   ;;  %v10905_v50 = vld [vmem:[%s11852_s1 + $0xb44] ss:$8 sps:$4 sm:$0xff]  }
 0x1ad   :  { %5021 = vmatpush1.bf16.msra.mxu1 %v8905_v51  ;;  %5988 = vmatprep.subr.bf16.mxu0 %v8910_v52  ;;  %v8994_v51 = vld [vmem:[%s11852_s1 + $0x544] ss:$8 sps:$4 sm:$0xff]   ;;  %v8967_v52 = vld [vmem:[%s11853_s0 + $0x1b0] ss:$100 sps:$4 sm:$0xff]  }
 0x1ae   :  { %5022 = vmatprep.subr.bf16.mxu1 %v8919_v53  ;;  %v8968_v53 = vld [vmem:[%s11853_s0 + $0x1e0] ss:$100 sps:$4 sm:$0xff]  }
 0x1b0   :  { %5989 = vmatpush1.bf16.msra.mxu0 %v8908_v54  ;;  %v8975_v54 = vld [vmem:[%s11853_s0 + $0x27c] ss:$100 sps:$4 sm:$0xff]  }
 0x1b1   :  { %5023 = vmatpush1.bf16.msra.mxu1 %v8917_v57  ;;  %5990 = vmatprep.subr.bf16.mxu0 %v8922_v58  ;;  %v8992_v57 = vld [vmem:[%s11852_s1 + $0x540] ss:$8 sps:$4 sm:$0xff]   ;;  %v10936_v58 = vld [vmem:[%s11852_s1 + $0xb54] ss:$8 sps:$4 sm:$0xff]  }
 0x1b2   :  { %5024 = vmatprep.subr.bf16.mxu1 %v8928_v59  ;;  %4938 = vmatmul.mubr.bf16.gmra.mrb[28].mxu1 %v8861_v55  ;;  %v8977_v55 = vld [vmem:[%s11853_s0 + $0x2ac] ss:$100 sps:$4 sm:$0xff]   ;;  %v9003_v59 = vld [vmem:[%s11852_s1 + $0x554] ss:$8 sps:$4 sm:$0xff]  }
 0x1b3   :  { %5904 = vmatmul.mubr.bf16.gmra.mrb[28].mxu0 %v8862_v56  ;;  %4947 = vmatprep.mubr.bf16.mxu1 %v8869_v60  ;;  %v10927_v56 = vld [vmem:[%s11852_s1 + $0xb40] ss:$8 sps:$4 sm:$0xff]   ;;  %v10945_v60 = vld [vmem:[%s11852_s1 + $0xb50] ss:$8 sps:$4 sm:$0xff]  }
 0x1b4   :  { %5913 = vmatprep.mubr.bf16.mxu0 %v8871_v61  ;;  %5991 = vmatpush1.bf16.msra.mxu0 %v8920_v62  ;;  %v9001_v61 = vld [vmem:[%s11852_s1 + $0x550] ss:$8 sps:$4 sm:$0xff]   ;;  %v10954_v62 = vld [vmem:[%s11852_s1 + $0xb64] ss:$8 sps:$4 sm:$0xff]  }
 0x1b5   :  { %5025 = vmatpush1.bf16.msra.mxu1 %v8926_v63  ;;  %5992 = vmatprep.subr.bf16.mxu0 %v8932_v0  ;;  %v9013_v63 = vld [vmem:[%s11852_s1 + $0x564] ss:$8 sps:$4 sm:$0xff]   ;;  %v8979_v0 = vld [vmem:[%s11853_s0 + $0x278] ss:$100 sps:$4 sm:$0xff]  }
 0x1b6   :  { %5026 = vmatprep.subr.bf16.mxu1 %v8935_v1  ;;  %v8980_v1 = vld [vmem:[%s11853_s0 + $0x2a8] ss:$100 sps:$4 sm:$0xff]  }
 0x1b8   :  { %5993 = vmatpush1.bf16.msra.mxu0 %v8930_v2  ;;  %v8987_v2 = vld [vmem:[%s11853_s0 + $0x344] ss:$100 sps:$4 sm:$0xff]  }
 0x1b9   :  { %5027 = vmatpush1.bf16.msra.mxu1 %v8933_v3  ;;  %6123 = vmatprep.subr.bf16.mxu0 %v10757_v4  ;;  %v8989_v3 = vld [vmem:[%s11853_s0 + $0x374] ss:$100 sps:$4 sm:$0xff]  }
 0x1ba   :  { %5157 = vmatprep.subr.bf16.mxu1 %v8947_v7  ;;  %4948 = vmatmul.mubr.bf16.gmra.mrb[32].mxu1 %v8873_v5  ;;  %v10975_v5 = vld [vmem:[%s11852_s1 + $0xb60] ss:$8 sps:$4 sm:$0xff]   ;;  %v10984_v7 = vld [vmem:[%s11852_s1 + $0xb74] ss:$8 sps:$4 sm:$0xff]  }
 0x1bb   :  { %5914 = vmatmul.mubr.bf16.gmra.mrb[32].mxu0 %v8874_v6  ;;  %4957 = vmatprep.mubr.bf16.mxu1 %v8881_v8  ;;  %v9011_v6 = vld [vmem:[%s11852_s1 + $0x560] ss:$8 sps:$4 sm:$0xff]   ;;  %v9025_v8 = vld [vmem:[%s11852_s1 + $0x574] ss:$8 sps:$4 sm:$0xff]  }
 0x1bc   :  { %5923 = vmatprep.mubr.bf16.mxu0 %v8886_v9  ;;  %v10993_v9 = vld [vmem:[%s11852_s1 + $0xb70] ss:$8 sps:$4 sm:$0xff]  }
 0x1c2   :  { %4958 = vmatmul.mubr.bf16.gmra.mrb[36].mxu1 %v8888_v10  ;;  %v9023_v10 = vld [vmem:[%s11852_s1 + $0x570] ss:$8 sps:$4 sm:$0xff]  }
 0x1c3   :  { %5924 = vmatmul.mubr.bf16.gmra.mrb[36].mxu0 %v8889_v11  ;;  %4967 = vmatprep.mubr.bf16.mxu1 %v8899_v12  ;;  %v11002_v11 = vld [vmem:[%s11852_s1 + $0xb84] ss:$8 sps:$4 sm:$0xff]  }
 0x1c4   :  { %5933 = vmatprep.mubr.bf16.mxu0 %v8901_v13  ;;  %v9037_v12 = vld [vmem:[%s11852_s1 + $0x584] ss:$8 sps:$4 sm:$0xff]  }
 0x1c5   :  { %v8991_v13 = vld [vmem:[%s11853_s0 + $0x340] ss:$100 sps:$4 sm:$0xff]  }
 0x1ca   :  { %4968 = vmatmul.mubr.bf16.gmra.mrb[40].mxu1 %v8903_v14  ;;  %v8995_v14 = vld [vmem:[%s11853_s0 + $0x370] ss:$100 sps:$4 sm:$0xff]  }
 0x1cb   :  { %5934 = vmatmul.mubr.bf16.gmra.mrb[40].mxu0 %v8904_v15  ;;  %4977 = vmatprep.mubr.bf16.mxu1 %v8911_v16  ;;  %v8999_v15 = vld [vmem:[%s11853_s0 + $0x40c] ss:$100 sps:$4 sm:$0xff]   ;;  %v9004_v16 = vld [vmem:[%s11853_s0 + $0x43c] ss:$100 sps:$4 sm:$0xff]  }
 0x1cc   :  { %5943 = vmatprep.mubr.bf16.mxu0 %v8913_v17  ;;  %v11023_v17 = vld [vmem:[%s11852_s1 + $0xb80] ss:$8 sps:$4 sm:$0xff]  }
 0x1d2   :  { %4978 = vmatmul.mubr.bf16.gmra.mrb[44].mxu1 %v8915_v20  ;;  %v9049_v20 = vld [vmem:[%s11852_s1 + $0x594] ss:$8 sps:$4 sm:$0xff]  }
 0x1d3   :  { %5944 = vmatmul.mubr.bf16.gmra.mrb[44].mxu0 %v8916_v21  ;;  %4987 = vmatprep.mubr.bf16.mxu1 %v6983_v22  ;;  %v11041_v21 = vld [vmem:[%s11852_s1 + $0xb90] ss:$8 sps:$4 sm:$0xff]  }
 0x1d4   :  { %5953 = vmatprep.mubr.bf16.mxu0 %v6995_v23  ;;  %v9047_v22 = vld [vmem:[%s11852_s1 + $0x590] ss:$8 sps:$4 sm:$0xff]   ;;  %v11050_v23 = vld [vmem:[%s11852_s1 + $0xba4] ss:$8 sps:$4 sm:$0xff]  }
 0x1da   :  { %4988 = vmatmul.mubr.bf16.gmra.mrb[48].mxu1 %v6982_v24  ;;  %v9057_v24 = vld [vmem:[%s11852_s1 + $0x5a4] ss:$8 sps:$4 sm:$0xff]  }
 0x1db   :  { %5954 = vmatmul.mubr.bf16.gmra.mrb[48].mxu0 %v6994_v25  ;;  %5028 = vmatprep.mubr.bf16.mxu1 %v8938_v26  ;;  %v9009_v25 = vld [vmem:[%s11853_s0 + $0x408] ss:$100 sps:$4 sm:$0xff]   ;;  %v9010_v26 = vld [vmem:[%s11853_s0 + $0x438] ss:$100 sps:$4 sm:$0xff]  }
 0x1dc   :  { %5994 = vmatprep.mubr.bf16.mxu0 %v8941_v27  ;;  %v9017_v27 = vld [vmem:[%s11853_s0 + $0x4d4] ss:$100 sps:$4 sm:$0xff]  }
 0x1e2   :  { %5029 = vmatmul.mubr.bf16.vlgmr.msra.gmra.mrb[0].mxu1 %v8936_v28  ;;  %v9019_v28 = vld [vmem:[%s11853_s0 + $0x504] ss:$100 sps:$4 sm:$0xff]  }
 0x1e3   :  { %5995 = vmatmul.mubr.bf16.vlgmr.msra.gmra.mrb[0].mxu0 %v8939_v29  ;;  %5038 = vmatprep.mubr.bf16.mxu1 %v8948_v31  ;;  %v11071_v29 = vld [vmem:[%s11852_s1 + $0xba0] ss:$8 sps:$4 sm:$0xff]  }
 0x1e4   :  { %6124 = vmatpush1.bf16.msra.mxu0 %v10826_v30  ;;  %5158 = vmatpush1.bf16.msra.mxu1 %v8945_v32  ;;  %v9055_v31 = vld [vmem:[%s11852_s1 + $0x5a0] ss:$8 sps:$4 sm:$0xff]   ;;  %v11080_v32 = vld [vmem:[%s11852_s1 + $0xbb4] ss:$8 sps:$4 sm:$0xff]  }
 0x1e5   :  { %6004 = vmatprep.mubr.bf16.mxu0 %v8950_v33  ;;  %6125 = vmatprep.subr.bf16.mxu0 %v10840_v34  ;;  %v9067_v33 = vld [vmem:[%s11852_s1 + $0x5b4] ss:$8 sps:$4 sm:$0xff]  }
 0x1e6   :  { %5159 = vmatprep.subr.bf16.mxu1 %v8959_v35  ;;  %v11089_v35 = vld [vmem:[%s11852_s1 + $0xbb0] ss:$8 sps:$4 sm:$0xff]  }
 0x1e8   :  { %6126 = vmatpush1.bf16.msra.mxu0 %v10849_v36  ;;  %5160 = vmatpush1.bf16.msra.mxu1 %v8957_v37  ;;  %v9065_v37 = vld [vmem:[%s11852_s1 + $0x5b0] ss:$8 sps:$4 sm:$0xff]  }
 0x1e9   :  { %6127 = vmatprep.subr.bf16.mxu0 %v10857_v38  ;;  %5161 = vmatprep.subr.bf16.mxu1 %v8971_v39  ;;  %v11098_v39 = vld [vmem:[%s11852_s1 + $0xbc4] ss:$8 sps:$4 sm:$0xff]  }
 0x1ea   :  { %5039 = vmatmul.mubr.bf16.gmra.mrb[4].mxu1 %v8955_v40  ;;  %v9079_v40 = vld [vmem:[%s11852_s1 + $0x5c4] ss:$8 sps:$4 sm:$0xff]  }
 0x1eb   :  { %6005 = vmatmul.mubr.bf16.gmra.mrb[4].mxu0 %v8956_v41  ;;  %5048 = vmatprep.mubr.bf16.mxu1 %v8963_v43  ;;  %v9021_v41 = vld [vmem:[%s11853_s0 + $0x4d0] ss:$100 sps:$4 sm:$0xff]   ;;  %v9022_v43 = vld [vmem:[%s11853_s0 + $0x500] ss:$100 sps:$4 sm:$0xff]  }
 0x1ec   :  { %6128 = vmatpush1.bf16.msra.mxu0 %v10873_v42  ;;  %6014 = vmatprep.mubr.bf16.mxu0 %v8965_v44  ;;  %v9029_v44 = vld [vmem:[%s11853_s0 + $0x59c] ss:$100 sps:$4 sm:$0xff]  }
 0x1ed   :  { %5162 = vmatpush1.bf16.msra.mxu1 %v8969_v45  ;;  %6129 = vmatprep.subr.bf16.mxu0 %v10888_v46  ;;  %v9031_v45 = vld [vmem:[%s11853_s0 + $0x5cc] ss:$100 sps:$4 sm:$0xff]  }
 0x1ee   :  { %5163 = vmatprep.subr.bf16.mxu1 %v8983_v47  ;;  %v11119_v47 = vld [vmem:[%s11852_s1 + $0xbc0] ss:$8 sps:$4 sm:$0xff]  }
 0x1f0   :  { %6130 = vmatpush1.bf16.msra.mxu0 %v10897_v48 }
 0x1f1   :  { %6131 = vmatprep.subr.bf16.mxu0 %v10905_v50  ;;  %5164 = vmatpush1.bf16.msra.mxu1 %v8981_v49  ;;  %v9077_v49 = vld [vmem:[%s11852_s1 + $0x5c0] ss:$8 sps:$4 sm:$0xff]  }
 0x1f2   :  { %5165 = vmatprep.subr.bf16.mxu1 %v8994_v51  ;;  %5049 = vmatmul.mubr.bf16.gmra.mrb[8].mxu1 %v8967_v52  ;;  %v11128_v51 = vld [vmem:[%s11852_s1 + $0xbd4] ss:$8 sps:$4 sm:$0xff]  }
 0x1f3   :  { %6015 = vmatmul.mubr.bf16.gmra.mrb[8].mxu0 %v8968_v53  ;;  %5058 = vmatprep.mubr.bf16.mxu1 %v8975_v54  ;;  %v9091_v52 = vld [vmem:[%s11852_s1 + $0x5d4] ss:$8 sps:$4 sm:$0xff]   ;;  %v11137_v53 = vld [vmem:[%s11852_s1 + $0xbd0] ss:$8 sps:$4 sm:$0xff]  }
 0x1f4   :  { %6024 = vmatprep.mubr.bf16.mxu0 %v8977_v55  ;;  %6132 = vmatpush1.bf16.msra.mxu0 %v10927_v56  ;;  %v9089_v54 = vld [vmem:[%s11852_s1 + $0x5d0] ss:$8 sps:$4 sm:$0xff]   ;;  %v11146_v55 = vld [vmem:[%s11852_s1 + $0xbe4] ss:$8 sps:$4 sm:$0xff]  }
 0x1f5   :  { %5166 = vmatpush1.bf16.msra.mxu1 %v8992_v57  ;;  %6133 = vmatprep.subr.bf16.mxu0 %v10936_v58  ;;  %v9100_v57 = vld [vmem:[%s11852_s1 + $0x5e4] ss:$8 sps:$4 sm:$0xff]  }
 0x1f6   :  { %5167 = vmatprep.subr.bf16.mxu1 %v9003_v59  ;;  %v9033_v59 = vld [vmem:[%s11853_s0 + $0x598] ss:$100 sps:$4 sm:$0xff]  }
 0x1f8   :  { %6134 = vmatpush1.bf16.msra.mxu0 %v10945_v60 }
 0x1f9   :  { %5168 = vmatpush1.bf16.msra.mxu1 %v9001_v61  ;;  %6135 = vmatprep.subr.bf16.mxu0 %v10954_v62  ;;  %v9034_v61 = vld [vmem:[%s11853_s0 + $0x5c8] ss:$100 sps:$4 sm:$0xff]  }
 0x1fa   :  { %5169 = vmatprep.subr.bf16.mxu1 %v9013_v63  ;;  %5059 = vmatmul.mubr.bf16.gmra.mrb[12].mxu1 %v8979_v0  ;;  %v9041_v63 = vld [vmem:[%s11853_s0 + $0x664] ss:$100 sps:$4 sm:$0xff]   ;;  %v9043_v0 = vld [vmem:[%s11853_s0 + $0x694] ss:$100 sps:$4 sm:$0xff]  }
 0x1fb   :  { %6025 = vmatmul.mubr.bf16.gmra.mrb[12].mxu0 %v8980_v1  ;;  %5068 = vmatprep.mubr.bf16.mxu1 %v8987_v2  ;;  %v11167_v1 = vld [vmem:[%s11852_s1 + $0xbe0] ss:$8 sps:$4 sm:$0xff]  }
 0x1fc   :  { %6034 = vmatprep.mubr.bf16.mxu0 %v8989_v3  ;;  %6136 = vmatpush1.bf16.msra.mxu0 %v10975_v5  ;;  %v9098_v2 = vld [vmem:[%s11852_s1 + $0x5e0] ss:$8 sps:$4 sm:$0xff]   ;;  %v11176_v3 = vld [vmem:[%s11852_s1 + $0xbf4] ss:$8 sps:$4 sm:$0xff]  }
 0x1fd   :  { %5170 = vmatpush1.bf16.msra.mxu1 %v9011_v6  ;;  %6137 = vmatprep.subr.bf16.mxu0 %v10984_v7  ;;  %v9107_v6 = vld [vmem:[%s11852_s1 + $0x5f4] ss:$8 sps:$4 sm:$0xff]  }
 0x1fe   :  { %5171 = vmatprep.subr.bf16.mxu1 %v9025_v8  ;;  %v11185_v8 = vld [vmem:[%s11852_s1 + $0xbf0] ss:$8 sps:$4 sm:$0xff]  }
 0x200   :  { %6138 = vmatpush1.bf16.msra.mxu0 %v10993_v9 }
 0x201   :  { %5172 = vmatpush1.bf16.msra.mxu1 %v9023_v10  ;;  %6139 = vmatprep.subr.bf16.mxu0 %v11002_v11  ;;  %v9105_v10 = vld [vmem:[%s11852_s1 + $0x5f0] ss:$8 sps:$4 sm:$0xff]  }
 0x202   :  { %5173 = vmatprep.subr.bf16.mxu1 %v9037_v12  ;;  %5069 = vmatmul.mubr.bf16.gmra.mrb[16].mxu1 %v8991_v13  ;;  %v9116_v12 = vld [vmem:[%s11852_s1 + $0xc04] ss:$8 sps:$4 sm:$0xff]  }
 0x203   :  { %6035 = vmatmul.mubr.bf16.gmra.mrb[16].mxu0 %v8995_v14  ;;  %5078 = vmatprep.mubr.bf16.mxu1 %v8999_v15  ;;  %v9045_v13 = vld [vmem:[%s11853_s0 + $0x660] ss:$100 sps:$4 sm:$0xff]   ;;  %v9046_v14 = vld [vmem:[%s11853_s0 + $0x690] ss:$100 sps:$4 sm:$0xff]  }
 0x204   :  { %6044 = vmatprep.mubr.bf16.mxu0 %v9004_v16  ;;  %6140 = vmatpush1.bf16.msra.mxu0 %v11023_v17  ;;  %v9053_v15 = vld [vmem:[%s11853_s0 + $0x72c] ss:$100 sps:$4 sm:$0xff]   ;;  %v9058_v16 = vld [vmem:[%s11853_s0 + $0x75c] ss:$100 sps:$4 sm:$0xff]  }
 0x205   :  { %5174 = vmatpush1.bf16.msra.mxu1 %v9035_v18  ;;  %6141 = vmatprep.subr.bf16.mxu0 %v11032_v19  ;;  %v9060_v18 = vld [vmem:[%s11853_s0 + $0x728] ss:$100 sps:$4 sm:$0xff]  }
 0x206   :  { %5175 = vmatprep.subr.bf16.mxu1 %v9049_v20  ;;  %v9061_v20 = vld [vmem:[%s11853_s0 + $0x758] ss:$100 sps:$4 sm:$0xff]  }
 0x208   :  { %6142 = vmatpush1.bf16.msra.mxu0 %v11041_v21 }
 0x209   :  { %5176 = vmatpush1.bf16.msra.mxu1 %v9047_v22  ;;  %6143 = vmatprep.subr.bf16.mxu0 %v11050_v23  ;;  %v9071_v22 = vld [vmem:[%s11853_s0 + $0x7f4] ss:$100 sps:$4 sm:$0xff]  }
 0x20a   :  { %5177 = vmatprep.subr.bf16.mxu1 %v9057_v24  ;;  %5079 = vmatmul.mubr.bf16.gmra.mrb[20].mxu1 %v9009_v25  ;;  %v9075_v24 = vld [vmem:[%s11853_s0 + $0x7f0] ss:$100 sps:$4 sm:$0xff]   ;;  %v9076_v25 = vld [vmem:[%s11853_s0 + $0x820] ss:$100 sps:$4 sm:$0xff]  }
 0x20b   :  { %6045 = vmatmul.mubr.bf16.gmra.mrb[20].mxu0 %v9010_v26  ;;  %5088 = vmatprep.mubr.bf16.mxu1 %v9017_v27  ;;  %v9083_v26 = vld [vmem:[%s11853_s0 + $0x8bc] ss:$100 sps:$4 sm:$0xff]   ;;  %v9085_v27 = vld [vmem:[%s11853_s0 + $0x8ec] ss:$100 sps:$4 sm:$0xff]  }
 0x20c   :  { %6054 = vmatprep.mubr.bf16.mxu0 %v9019_v28  ;;  %6144 = vmatpush1.bf16.msra.mxu0 %v11071_v29  ;;  %v331_v28 = vld [vmem:[%s11853_s0 + $0x980] sm:$0x33] }
 0x20d   :  { %5178 = vmatpush1.bf16.msra.mxu1 %v9055_v31  ;;  %6145 = vmatprep.subr.bf16.mxu0 %v11080_v32  ;;  %v337_v31 = vld [vmem:[%s11853_s0 + $0x9b0] sm:$0x33] }
 0x20e   :  { %5179 = vmatprep.subr.bf16.mxu1 %v9067_v33  ;;  %v9087_v33 = vld [vmem:[%s11853_s0 + $0x8b8] ss:$100 sps:$4 sm:$0xff]  }
 0x210   :  { %6146 = vmatpush1.bf16.msra.mxu0 %v11089_v35 }
 0x211   :  { %5180 = vmatpush1.bf16.msra.mxu1 %v9065_v37  ;;  %6147 = vmatprep.subr.bf16.mxu0 %v11098_v39  ;;  %v9088_v37 = vld [vmem:[%s11853_s0 + $0x8e8] ss:$100 sps:$4 sm:$0xff]  }
 0x212   :  { %5181 = vmatprep.subr.bf16.mxu1 %v9079_v40  ;;  %5089 = vmatmul.mubr.bf16.gmra.mrb[24].mxu1 %v9021_v41  ;;  %v6985_v40 = vcombine.high %v331_v28, %v331_v28  ;;  %v6997_v41 = vcombine.high %v337_v31, %v337_v31 }
 0x213   :  { %6055 = vmatmul.mubr.bf16.gmra.mrb[24].mxu0 %v9022_v43  ;;  %5098 = vmatprep.mubr.bf16.mxu1 %v9029_v44  ;;  %v6984_v43 = vcombine.low %v331_v28, %v331_v28  ;;  %v6996_v44 = vcombine.low %v337_v31, %v337_v31  ;;  %v9190_v28 = vld [vmem:[%s11853_s0 + $0x8c4] ss:$100 sps:$4 sm:$0xff]  }
 0x214   :  { %6064 = vmatprep.mubr.bf16.mxu0 %v9031_v45  ;;  %6148 = vmatpush1.bf16.msra.mxu0 %v11119_v47  ;;  %v9110_v45 = vld [vmem:[%s11853_s0 + $0x2c] ss:$100 sps:$4 sm:$0xff]  }
 0x215   :  { %5182 = vmatpush1.bf16.msra.mxu1 %v9077_v49  ;;  %6149 = vmatprep.subr.bf16.mxu0 %v11128_v51  ;;  %v9113_v49 = vld [vmem:[%s11853_s0 + $0x5c] ss:$100 sps:$4 sm:$0xff]   ;;  %v332_v31 = vld [vmem:[%s11853_s0 + $0x988] sm:$0x33] }
 0x216   :  { %5183 = vmatprep.subr.bf16.mxu1 %v9091_v52  ;;  %v9108_v52 = vld [vmem:[%s11853_s0 + $0x28] ss:$100 sps:$4 sm:$0xff]  }
 0x218   :  { %6150 = vmatpush1.bf16.msra.mxu0 %v11137_v53 }
 0x219   :  { %5184 = vmatpush1.bf16.msra.mxu1 %v9089_v54  ;;  %6151 = vmatprep.subr.bf16.mxu0 %v11146_v55  ;;  %v9111_v54 = vld [vmem:[%s11853_s0 + $0x58] ss:$100 sps:$4 sm:$0xff]  }
 0x21a   :  { %5185 = vmatprep.subr.bf16.mxu1 %v9100_v57  ;;  %5099 = vmatmul.mubr.bf16.gmra.mrb[28].mxu1 %v9033_v59  ;;  %v9114_v57 = vld [vmem:[%s11852_s1 + $0xc00] ss:$8 sps:$4 sm:$0xff]   ;;  %v9117_v59 = vld [vmem:[%s11853_s0 + $0xf4] ss:$100 sps:$4 sm:$0xff]  }
 0x21b   :  { %6065 = vmatmul.mubr.bf16.gmra.mrb[28].mxu0 %v9034_v61  ;;  %5108 = vmatprep.mubr.bf16.mxu1 %v9041_v63  ;;  %v9119_v61 = vld [vmem:[%s11853_s0 + $0x124] ss:$100 sps:$4 sm:$0xff]   ;;  %v9123_v63 = vld [vmem:[%s11852_s1 + $0xc14] ss:$8 sps:$4 sm:$0xff]  }
 0x21c   :  { %6074 = vmatprep.mubr.bf16.mxu0 %v9043_v0  ;;  %6152 = vmatpush1.bf16.msra.mxu0 %v11167_v1  ;;  %v9121_v0 = vld [vmem:[%s11852_s1 + $0xc10] ss:$8 sps:$4 sm:$0xff]  }
 0x21d   :  { %5186 = vmatpush1.bf16.msra.mxu1 %v9098_v2  ;;  %6153 = vmatprep.subr.bf16.mxu0 %v11176_v3  ;;  %v9128_v2 = vld [vmem:[%s11852_s1 + $0xc24] ss:$8 sps:$4 sm:$0xff]  }
 0x21e   :  { %5187 = vmatprep.subr.bf16.mxu1 %v9107_v6  ;;  %v9124_v6 = vld [vmem:[%s11853_s0 + $0xf0] ss:$100 sps:$4 sm:$0xff]  }
 0x220   :  { %6154 = vmatpush1.bf16.msra.mxu0 %v11185_v8 }
 0x221   :  { %5188 = vmatpush1.bf16.msra.mxu1 %v9105_v10  ;;  %6284 = vmatprep.subr.bf16.mxu0 %v9116_v12  ;;  %v9125_v10 = vld [vmem:[%s11853_s0 + $0x120] ss:$100 sps:$4 sm:$0xff]   ;;  %v9131_v12 = vld [vmem:[%s11853_s0 + $0x1ec] ss:$100 sps:$4 sm:$0xff]  }
 0x222   :  { %7451 = vmatprep.subr.bf16.mxu1 %v10757_v4  ;;  %5109 = vmatmul.mubr.bf16.gmra.mrb[32].mxu1 %v9045_v13  ;;  %v9073_v4 = vld [vmem:[%s11853_s0 + $0x824] ss:$100 sps:$4 sm:$0xff]   ;;  %v9137_v13 = vld [vmem:[%s11852_s1 + $0xc34] ss:$8 sps:$4 sm:$0xff]  }
 0x223   :  { %6075 = vmatmul.mubr.bf16.gmra.mrb[32].mxu0 %v9046_v14  ;;  %5118 = vmatprep.mubr.bf16.mxu1 %v9053_v15  ;;  %v9133_v14 = vld [vmem:[%s11853_s0 + $0x1b8] ss:$100 sps:$4 sm:$0xff]   ;;  %v9134_v15 = vld [vmem:[%s11853_s0 + $0x1e8] ss:$100 sps:$4 sm:$0xff]  }
 0x224   :  { %6084 = vmatprep.mubr.bf16.mxu0 %v9058_v16  ;;  %v9144_v16 = vld [vmem:[%s11852_s1 + $0xc40] ss:$8 sps:$4 sm:$0xff]  }
 0x22a   :  { %5119 = vmatmul.mubr.bf16.gmra.mrb[36].mxu1 %v9060_v18  ;;  %v9155_v18 = vld [vmem:[%s11852_s1 + $0xc54] ss:$8 sps:$4 sm:$0xff]  }
 0x22b   :  { %6085 = vmatmul.mubr.bf16.gmra.mrb[36].mxu0 %v9061_v20  ;;  %5128 = vmatprep.mubr.bf16.mxu1 %v9071_v22  ;;  %v9142_v20 = vld [vmem:[%s11853_s0 + $0x280] ss:$100 sps:$4 sm:$0xff]   ;;  %v9143_v22 = vld [vmem:[%s11853_s0 + $0x2b0] ss:$100 sps:$4 sm:$0xff]  }
 0x22c   :  { %6094 = vmatprep.mubr.bf16.mxu0 %v9073_v4  ;;  %v9162_v4 = vld [vmem:[%s11852_s1 + $0xc60] ss:$8 sps:$4 sm:$0xff]  }
 0x232   :  { %5129 = vmatmul.mubr.bf16.gmra.mrb[40].mxu1 %v9075_v24  ;;  %v9173_v24 = vld [vmem:[%s11852_s1 + $0xc74] ss:$8 sps:$4 sm:$0xff]  }
 0x233   :  { %6095 = vmatmul.mubr.bf16.gmra.mrb[40].mxu0 %v9076_v25  ;;  %5138 = vmatprep.mubr.bf16.mxu1 %v9083_v26  ;;  %v9152_v25 = vld [vmem:[%s11853_s0 + $0x378] ss:$100 sps:$4 sm:$0xff]  }
 0x234   :  { %6104 = vmatprep.mubr.bf16.mxu0 %v9085_v27  ;;  %v9156_v26 = vld [vmem:[%s11853_s0 + $0x414] ss:$100 sps:$4 sm:$0xff]   ;;  %v9161_v27 = vld [vmem:[%s11853_s0 + $0x440] ss:$100 sps:$4 sm:$0xff]  }
 0x23a   :  { %5139 = vmatmul.mubr.bf16.gmra.mrb[44].mxu1 %v9087_v33  ;;  %v9192_v33 = vld [vmem:[%s11853_s0 + $0x8c0] ss:$100 sps:$4 sm:$0xff]  }
 0x23b   :  { %6105 = vmatmul.mubr.bf16.gmra.mrb[44].mxu0 %v9088_v37  ;;  %5148 = vmatprep.mubr.bf16.mxu1 %v6985_v40  ;;  %v9193_v37 = vld [vmem:[%s11853_s0 + $0x380] ss:$100 sps:$4 sm:$0xff]   ;;  %v6987_v40 = vcombine.high %v332_v31, %v332_v31 }
 0x23c   :  { %6114 = vmatprep.mubr.bf16.mxu0 %v6997_v41  ;;  %v6986_v41 = vcombine.low %v332_v31, %v332_v31 }
 0x242   :  { %5149 = vmatmul.mubr.bf16.gmra.mrb[48].mxu1 %v6984_v43  ;;  %v9196_v43 = vld [vmem:[%s11853_s0 + $0x448] ss:$100 sps:$4 sm:$0xff]  }
 0x243   :  { %6115 = vmatmul.mubr.bf16.gmra.mrb[48].mxu0 %v6996_v44  ;;  %5189 = vmatprep.mubr.bf16.mxu1 %v9110_v45  ;;  %v9199_v44 = vld [vmem:[%s11853_s0 + $0x5d4] ss:$100 sps:$4 sm:$0xff]  }
 0x244   :  { %6155 = vmatprep.mubr.bf16.mxu0 %v9113_v49  ;;  %v9197_v45 = vld [vmem:[%s11853_s0 + $0x5d0] ss:$100 sps:$4 sm:$0xff]  }
 0x245   :  { %v9200_v49 = vld [vmem:[%s11853_s0 + $0x510] ss:$100 sps:$4 sm:$0xff]  }
 0x24a   :  { %5190 = vmatmul.mubr.bf16.vlgmr.msra.gmra.mrb[0].mxu1 %v9108_v52  ;;  %v9201_v52 = vld [vmem:[%s11853_s0 + $0x69c] ss:$100 sps:$4 sm:$0xff]  }
 0x24b   :  { %6156 = vmatmul.mubr.bf16.vlgmr.msra.gmra.mrb[0].mxu0 %v9111_v54  ;;  %5199 = vmatprep.mubr.bf16.mxu1 %v9117_v59  ;;  %v9203_v54 = vld [vmem:[%s11853_s0 + $0x698] ss:$100 sps:$4 sm:$0xff]   ;;  %v9205_v59 = vld [vmem:[%s11853_s0 + $0x764] ss:$100 sps:$4 sm:$0xff]  }
 0x24c   :  { %6285 = vmatpush1.bf16.msra.mxu0 %v9114_v57  ;;  %7467 = vmatpush1.bf16.msra.mxu1 %v10826_v30  ;;  %v9129_v30 = vld [vmem:[%s11853_s0 + $0x1bc] ss:$100 sps:$4 sm:$0xff]  }
 0x24d   :  { %6165 = vmatprep.mubr.bf16.mxu0 %v9119_v61  ;;  %6286 = vmatprep.subr.bf16.mxu0 %v9123_v63  ;;  %v9204_v57 = vld [vmem:[%s11853_s0 + $0x5d8] ss:$100 sps:$4 sm:$0xff]   ;;  %v9207_v61 = vld [vmem:[%s11853_s0 + $0x760] ss:$100 sps:$4 sm:$0xff]  }
 0x24e   :  { %7452 = vmatprep.subr.bf16.mxu1 %v10840_v34  ;;  %v9126_v34 = vld [vmem:[%s11852_s1 + $0xc20] ss:$8 sps:$4 sm:$0xff]  }
 0x24f   :  { %v9208_v63 = vld [vmem:[%s11853_s0 + $0x6a0] ss:$100 sps:$4 sm:$0xff]  }
 0x250   :  { %6287 = vmatpush1.bf16.msra.mxu0 %v9121_v0  ;;  %7468 = vmatpush1.bf16.msra.mxu1 %v10849_v36  ;;  %v9135_v36 = vld [vmem:[%s11852_s1 + $0xc30] ss:$8 sps:$4 sm:$0xff]  }
 0x251   :  { %6288 = vmatprep.subr.bf16.mxu0 %v9128_v2  ;;  %7453 = vmatprep.subr.bf16.mxu1 %v10857_v38  ;;  %v9146_v38 = vld [vmem:[%s11852_s1 + $0xc44] ss:$8 sps:$4 sm:$0xff]  }
 0x252   :  { %5200 = vmatmul.mubr.bf16.gmra.mrb[4].mxu1 %v9124_v6  ;;  %v9209_v0 = vld [vmem:[%s11853_s0 + $0x82c] ss:$100 sps:$4 sm:$0xff]  }
 0x253   :  { %6166 = vmatmul.mubr.bf16.gmra.mrb[4].mxu0 %v9125_v10  ;;  %5209 = vmatprep.mubr.bf16.mxu1 %v9129_v30  ;;  %v9211_v2 = vld [vmem:[%s11853_s0 + $0x828] ss:$100 sps:$4 sm:$0xff]   ;;  %v9213_v10 = vld [vmem:[%s11853_s0 + $0x8f4] ss:$100 sps:$4 sm:$0xff]  }
 0x254   :  { %6175 = vmatprep.mubr.bf16.mxu0 %v9131_v12  ;;  %6289 = vmatpush1.bf16.msra.mxu0 %v9126_v34  ;;  %v9212_v6 = vld [vmem:[%s11853_s0 + $0x768] ss:$100 sps:$4 sm:$0xff]   ;;  %v338_v30 = vld [vmem:[%s11853_s0 + $0x9b8] sm:$0x33]  ;;  %v9215_v12 = vld [vmem:[%s11853_s0 + $0x8f0] ss:$100 sps:$4 sm:$0xff]  }
 0x255   :  { %7469 = vmatpush1.bf16.msra.mxu1 %v10873_v42  ;;  %6290 = vmatprep.subr.bf16.mxu0 %v9137_v13  ;;  %v9138_v42 = vld [vmem:[%s11853_s0 + $0x284] ss:$100 sps:$4 sm:$0xff]   ;;  %v9216_v34 = vld [vmem:[%s11853_s0 + $0x830] ss:$100 sps:$4 sm:$0xff]   ;;  %v6999_v13 = vcombine.high %v338_v30, %v338_v30 }
 0x256   :  { %7454 = vmatprep.subr.bf16.mxu1 %v10888_v46  ;;  %v9140_v46 = vld [vmem:[%s11853_s0 + $0x2b4] ss:$100 sps:$4 sm:$0xff]  }
 0x258   :  { %6291 = vmatpush1.bf16.msra.mxu0 %v9135_v36  ;;  %v6998_v36 = vcombine.low %v338_v30, %v338_v30 }
 0x259   :  { %7470 = vmatpush1.bf16.msra.mxu1 %v10897_v48  ;;  %6292 = vmatprep.subr.bf16.mxu0 %v9146_v38  ;;  %v9153_v48 = vld [vmem:[%s11852_s1 + $0xc50] ss:$8 sps:$4 sm:$0xff]  }
 0x25a   :  { %7455 = vmatprep.subr.bf16.mxu1 %v10905_v50  ;;  %5210 = vmatmul.mubr.bf16.gmra.mrb[8].mxu1 %v9133_v14  ;;  %v9164_v50 = vld [vmem:[%s11852_s1 + $0xc64] ss:$8 sps:$4 sm:$0xff]   ;;  %v9219_v38 = vld [vmem:[%s11853_s0 + $0x8f8] ss:$100 sps:$4 sm:$0xff]  }
 0x25b   :  { %6176 = vmatmul.mubr.bf16.gmra.mrb[8].mxu0 %v9134_v15  ;;  %5219 = vmatprep.mubr.bf16.mxu1 %v9138_v42  ;;  %v9220_v14 = vld [vmem:[%s11853_s0 + $0x9c0] ss:$0 sps:$4 sm:$0x33]  }
 0x25c   :  { %6185 = vmatprep.mubr.bf16.mxu0 %v9140_v46  ;;  %6293 = vmatpush1.bf16.msra.mxu0 %v9144_v16 }
 0x25d   :  { %7471 = vmatpush1.bf16.msra.mxu1 %v10927_v56  ;;  %6294 = vmatprep.subr.bf16.mxu0 %v9155_v18  ;;  %v9147_v56 = vld [vmem:[%s11853_s0 + $0x34c] ss:$100 sps:$4 sm:$0xff]  }
 0x25e   :  { %7456 = vmatprep.subr.bf16.mxu1 %v10936_v58  ;;  %v9149_v58 = vld [vmem:[%s11853_s0 + $0x37c] ss:$100 sps:$4 sm:$0xff]  }
 0x260   :  { %6295 = vmatpush1.bf16.msra.mxu0 %v9153_v48 }
 0x261   :  { %7472 = vmatpush1.bf16.msra.mxu1 %v10945_v60  ;;  %6296 = vmatprep.subr.bf16.mxu0 %v9164_v50  ;;  %v9171_v60 = vld [vmem:[%s11852_s1 + $0xc70] ss:$8 sps:$4 sm:$0xff]  }
 0x262   :  { %7457 = vmatprep.subr.bf16.mxu1 %v10954_v62  ;;  %5220 = vmatmul.mubr.bf16.gmra.mrb[12].mxu1 %v9142_v20  ;;  %v9151_v62 = vld [vmem:[%s11853_s0 + $0x348] ss:$100 sps:$4 sm:$0xff]  }
 0x263   :  { %6186 = vmatmul.mubr.bf16.gmra.mrb[12].mxu0 %v9143_v22  ;;  %5229 = vmatprep.mubr.bf16.mxu1 %v9147_v56 }
 0x264   :  { %6195 = vmatprep.mubr.bf16.mxu0 %v9149_v58  ;;  %6297 = vmatpush1.bf16.msra.mxu0 %v9162_v4 }
 0x265   :  { %7473 = vmatpush1.bf16.msra.mxu1 %v10975_v5  ;;  %6298 = vmatprep.subr.bf16.mxu0 %v9173_v24  ;;  %v9158_v5 = vld [vmem:[%s11853_s0 + $0x444] ss:$100 sps:$4 sm:$0xff]  }
 0x266   :  { %7458 = vmatprep.subr.bf16.mxu1 %v10984_v7  ;;  %v9160_v7 = vld [vmem:[%s11853_s0 + $0x410] ss:$100 sps:$4 sm:$0xff]  }
 0x268   :  { %6299 = vmatpush1.bf16.msra.mxu0 %v9171_v60 }
 0x269   :  { %7474 = vmatpush1.bf16.msra.mxu1 %v10993_v9  ;;  %v9165_v9 = vld [vmem:[%s11853_s0 + $0x4dc] ss:$100 sps:$4 sm:$0xff]  }
 0x26a   :  { %7459 = vmatprep.subr.bf16.mxu1 %v11002_v11  ;;  %5230 = vmatmul.mubr.bf16.gmra.mrb[16].mxu1 %v9151_v62  ;;  %v9167_v11 = vld [vmem:[%s11853_s0 + $0x50c] ss:$100 sps:$4 sm:$0xff]  }
 0x26b   :  { %6196 = vmatmul.mubr.bf16.gmra.mrb[16].mxu0 %v9152_v25  ;;  %5239 = vmatprep.mubr.bf16.mxu1 %v9156_v26 }
 0x26c   :  { %6205 = vmatprep.mubr.bf16.mxu0 %v9158_v5 }
 0x26d   :  { %7475 = vmatpush1.bf16.msra.mxu1 %v11023_v17  ;;  %v9169_v17 = vld [vmem:[%s11853_s0 + $0x4d8] ss:$100 sps:$4 sm:$0xff]  }
 0x26e   :  { %7460 = vmatprep.subr.bf16.mxu1 %v11032_v19  ;;  %v9170_v19 = vld [vmem:[%s11853_s0 + $0x508] ss:$100 sps:$4 sm:$0xff]  }
 0x271   :  { %7476 = vmatpush1.bf16.msra.mxu1 %v11041_v21  ;;  %v9174_v21 = vld [vmem:[%s11853_s0 + $0x5a4] ss:$100 sps:$4 sm:$0xff]  }
 0x272   :  { %7461 = vmatprep.subr.bf16.mxu1 %v11050_v23  ;;  %5240 = vmatmul.mubr.bf16.gmra.mrb[20].mxu1 %v9160_v7  ;;  %v9221_v23 = vmov 0  }
 0x273   :  { %6206 = vmatmul.mubr.bf16.gmra.mrb[20].mxu0 %v9161_v27  ;;  %5249 = vmatprep.mubr.bf16.mxu1 %v9165_v9 }
 0x274   :  { %6215 = vmatprep.mubr.bf16.mxu0 %v9167_v11 }
 0x275   :  { %7477 = vmatpush1.bf16.msra.mxu1 %v11071_v29  ;;  %v9176_v29 = vld [vmem:[%s11853_s0 + $0x5a0] ss:$100 sps:$4 sm:$0xff]  }
 0x276   :  { %7462 = vmatprep.subr.bf16.mxu1 %v11080_v32  ;;  %v9177_v32 = vld [vmem:[%s11853_s0 + $0x60] ss:$100 sps:$4 sm:$0xff]  }
 0x279   :  { %7478 = vmatpush1.bf16.msra.mxu1 %v11089_v35  ;;  %v9178_v35 = vld [vmem:[%s11853_s0 + $0x66c] ss:$100 sps:$4 sm:$0xff]  }
 0x27a   :  { %7463 = vmatprep.subr.bf16.mxu1 %v11098_v39  ;;  %5250 = vmatmul.mubr.bf16.gmra.mrb[24].mxu1 %v9169_v17  ;;  %v9180_v39 = vld [vmem:[%s11853_s0 + $0x668] ss:$100 sps:$4 sm:$0xff]  }
 0x27b   :  { %6216 = vmatmul.mubr.bf16.gmra.mrb[24].mxu0 %v9170_v19  ;;  %5259 = vmatprep.mubr.bf16.mxu1 %v9174_v21 }
 0x27c   :  { %6316 = vmatprep.mubr.bf16.mxu0 %v9221_v23 }
 0x27d   :  { %7479 = vmatpush1.bf16.msra.mxu1 %v11119_v47  ;;  %v9181_v47 = vld [vmem:[%s11853_s0 + $0x128] ss:$100 sps:$4 sm:$0xff]  }
 0x27e   :  { %7464 = vmatprep.subr.bf16.mxu1 %v11128_v51  ;;  %v9182_v51 = vld [vmem:[%s11853_s0 + $0x734] ss:$100 sps:$4 sm:$0xff]  }
 0x281   :  { %7480 = vmatpush1.bf16.msra.mxu1 %v11137_v53  ;;  %v9184_v53 = vld [vmem:[%s11853_s0 + $0x730] ss:$100 sps:$4 sm:$0xff]  }
 0x282   :  { %7465 = vmatprep.subr.bf16.mxu1 %v11146_v55  ;;  %5260 = vmatmul.mubr.bf16.gmra.mrb[28].mxu1 %v9176_v29  ;;  %v9185_v55 = vld [vmem:[%s11853_s0 + $0x1f0] ss:$100 sps:$4 sm:$0xff]  }
 0x283   :  { %6317 = vmatmul.mubr.bf16.vlgmr.msra.gmra.mrb[0].mxu0 %v9177_v32  ;;  %5269 = vmatprep.mubr.bf16.mxu1 %v9178_v35 }
 0x284   :  { %6326 = vmatprep.mubr.bf16.mxu0 %v9221_v23 }
 0x285   :  { %7481 = vmatpush1.bf16.msra.mxu1 %v11167_v1  ;;  %v9186_v1 = vld [vmem:[%s11853_s0 + $0x7fc] ss:$100 sps:$4 sm:$0xff]  }
 0x286   :  { %7466 = vmatprep.subr.bf16.mxu1 %v11176_v3  ;;  %v9188_v3 = vld [vmem:[%s11853_s0 + $0x7f8] ss:$100 sps:$4 sm:$0xff]  }
 0x289   :  { %7482 = vmatpush1.bf16.msra.mxu1 %v11185_v8  ;;  %v9189_v8 = vld [vmem:[%s11853_s0 + $0x2b8] ss:$100 sps:$4 sm:$0xff]  }
 0x28a   :  { %5270 = vmatmul.mubr.bf16.gmra.mrb[32].mxu1 %v9180_v39 }
 0x28b   :  { %6327 = vmatmul.mubr.bf16.gmra.mrb[4].mxu0 %v9181_v47  ;;  %5279 = vmatprep.mubr.bf16.mxu1 %v9182_v51 }
 0x28c   :  { %6336 = vmatprep.mubr.bf16.mxu0 %v9221_v23 }
 0x292   :  { %5280 = vmatmul.mubr.bf16.gmra.mrb[36].mxu1 %v9184_v53 }
 0x293   :  { %6337 = vmatmul.mubr.bf16.gmra.mrb[8].mxu0 %v9185_v55  ;;  %5289 = vmatprep.mubr.bf16.mxu1 %v9186_v1 }
 0x294   :  { %6346 = vmatprep.mubr.bf16.mxu0 %v9221_v23 }
 0x29a   :  { %5290 = vmatmul.mubr.bf16.gmra.mrb[40].mxu1 %v9188_v3 }
 0x29b   :  { %6347 = vmatmul.mubr.bf16.gmra.mrb[12].mxu0 %v9189_v8  ;;  %5299 = vmatprep.mubr.bf16.mxu1 %v9190_v28 }
 0x29c   :  { %6356 = vmatprep.mubr.bf16.mxu0 %v9221_v23 }
 0x2a2   :  { %5300 = vmatmul.mubr.bf16.gmra.mrb[44].mxu1 %v9192_v33 }
 0x2a3   :  { %6357 = vmatmul.mubr.bf16.gmra.mrb[16].mxu0 %v9193_v37  ;;  %5309 = vmatprep.mubr.bf16.mxu1 %v6987_v40 }
 0x2a4   :  { %6366 = vmatprep.mubr.bf16.mxu0 %v9221_v23 }
 0x2aa   :  { %5310 = vmatmul.mubr.bf16.gmra.mrb[48].mxu1 %v6986_v41 }
 0x2ab   :  { %6367 = vmatmul.mubr.bf16.gmra.mrb[20].mxu0 %v9196_v43  ;;  %6225 = vmatprep.mubr.bf16.mxu1 %v9199_v44  ;;  %v742_v44 = vlaneseq }
 0x2ac   :  { %6376 = vmatprep.mubr.bf16.mxu0 %v9221_v23 }
 0x2b2   :  { %6226 = vmatmul.mubr.bf16.vlgmr.msra.gmra.mrb[52].mxu1 %v9197_v45 }
 0x2b3   :  { %6377 = vmatmul.mubr.bf16.gmra.mrb[24].mxu0 %v9200_v49  ;;  %6235 = vmatprep.mubr.bf16.mxu1 %v9201_v52 }
 0x2b4   :  { %6386 = vmatprep.mubr.bf16.mxu0 %v9221_v23 }
 0x2ba   :  { %6236 = vmatmul.mubr.bf16.gmra.mrb[56].mxu1 %v9203_v54  ;;  %v743_v54 = vshrl.u32 %v742_v44, 7 }
 0x2bb   :  { %6387 = vmatmul.mubr.bf16.gmra.mrb[52].mxu0 %v9204_v57  ;;  %6245 = vmatprep.mubr.bf16.mxu1 %v9205_v59 }
 0x2bc   :  { %6396 = vmatprep.mubr.bf16.mxu0 %v9221_v23  ;;  %v744_v59 = vsub.s32 0, %v743_v54 }
 0x2c2   :  { %6246 = vmatmul.mubr.bf16.gmra.mrb[60].mxu1 %v9207_v61  ;;  %v740_v61 = vld [vmem:[%s11854_s2] sm:$0x3] }
 0x2c3   :  { %6397 = vmatmul.mubr.bf16.gmra.mrb[56].mxu0 %v9208_v63  ;;  %6255 = vmatprep.mubr.bf16.mxu1 %v9209_v0  ;;  %v748_v63 = vsub.s32 1, %v743_v54 }
 0x2c4   :  { %6406 = vmatprep.mubr.bf16.mxu0 %v9221_v23 }
 0x2ca   :  { %6256 = vmatmul.mubr.bf16.gmra.mrb[64].mxu1 %v9211_v2 }
 0x2cb   :  { %6407 = vmatmul.mubr.bf16.gmra.mrb[60].mxu0 %v9212_v6  ;;  %6265 = vmatprep.mubr.bf16.mxu1 %v9213_v10  ;;  %v11611_v10 = vrot.slane %v740_v61, %v744_v59 }
 0x2cc   :  { %6416 = vmatprep.mubr.bf16.mxu0 %v9221_v23 }
 0x2d2   :  { %6266 = vmatmul.mubr.bf16.gmra.mrb[68].mxu1 %v9215_v12  ;;  %v11615_v12 = vrot.slane %v740_v61, %v748_v63 }
 0x2d3   :  { %6417 = vmatmul.mubr.bf16.gmra.mrb[64].mxu0 %v9216_v34  ;;  %6275 = vmatprep.mubr.bf16.mxu1 %v6999_v13 }
 0x2d4   :  { %6426 = vmatprep.mubr.bf16.mxu0 %v9221_v23 }
 0x2da   :  { %6276 = vmatmul.mubr.bf16.gmra.mrb[72].mxu1 %v6998_v36 }
 0x2db   :  { %6427 = vmatmul.mubr.bf16.gmra.mrb[68].mxu0 %v9219_v38 }
 0x2dc   :  { %6436 = vmatprep.mubr.bf16.mxu0 %v9221_v23 }
 0x2e3   :  { %6437 = vmatmul.mubr.bf16.gmra.mrb[72].mxu0 %v9220_v14 }
 0x2ee   :  { %v11522_v15 = vpop.f32.mrb[28].mxu0 }
 0x2ef   :  { %v11524_v42 = vpop.f32.mrb[29].mxu0 }
 0x2f0   :  { %v11526_v46 = vpop.f32.mrb[30].mxu0 }
 0x2f1   :  { %v11528_v16 = vpop.f32.mrb[31].mxu0 }
 0x2f6   :  { %v11530_v18 = vpop.f32.mrb[32].mxu0 }
 0x2f7   :  { %v11532_v48 = vpop.f32.mrb[33].mxu0 }
 0x2f8   :  { %v11534_v50 = vpop.f32.mrb[34].mxu0 }
 0x2f9   :  { %v11536_v20 = vpop.f32.mrb[35].mxu0 }
 0x2fe   :  { %v11538_v22 = vpop.f32.mrb[36].mxu0 }
 0x2ff   :  { %v11540_v56 = vpop.f32.mrb[37].mxu0 }
 0x300   :  { %v11542_v58 = vpop.f32.mrb[38].mxu0 }
 0x301   :  { %v11544_v4 = vpop.f32.mrb[39].mxu0 }
 0x306   :  { %v11546_v24 = vpop.f32.mrb[40].mxu0 }
 0x307   :  { %v11548_v60 = vpop.f32.mrb[41].mxu0 }
 0x308   :  { %v11550_v62 = vpop.f32.mrb[42].mxu0 }
 0x309   :  { %v11552_v25 = vpop.f32.mrb[43].mxu0 }
 0x30e   :  { %v11554_v26 = vpop.f32.mrb[44].mxu0 }
 0x30f   :  { %v11556_v5 = vpop.f32.mrb[45].mxu0 }
 0x310   :  { %v11558_v7 = vpop.f32.mrb[46].mxu0 }
 0x311   :  { %v11560_v27 = vpop.f32.mrb[47].mxu0 }
 0x316   :  { %v11562_v9 = vpop.f32.mrb[48].mxu0 }
 0x317   :  { %v11564_v11 = vpop.f32.mrb[49].mxu0 }
 0x318   :  { %11856 = vst [vmem:[#allocation2_spill] sm:$0xff] %v11564_v11  ;;  %v6120_v17 = vpop.f32.mrb[50].mxu0 }
 0x319   :  { %v6121_v19 = vpop.f32.mrb[51].mxu0 }
 0x31d   :  { %v5191_v21 = vpop.f32.mrb[0].mxu1 }
 0x31e   :  { %v5193_v23 = vpop.f32.mrb[1].mxu1  ;;  %v7483_v34 = vadd.f32 %v5191_v21, %v11611_v10 }
 0x31f   :  { %v5195_v29 = vpop.f32.mrb[2].mxu1  ;;  %v7485_v13 = vadd.f32 %v5193_v23, %v11615_v12 }
 0x320   :  { %v5197_v32 = vpop.f32.mrb[3].mxu1  ;;  %v7487_v14 = vadd.f32 %v5195_v29, %v11611_v10 }
 0x321   :  { %v7489_v59 = vadd.f32 %v5197_v32, %v11615_v12 }
 0x325   :  { %v5201_v35 = vpop.f32.mrb[4].mxu1 }
 0x326   :  { %v5203_v39 = vpop.f32.mrb[5].mxu1 }
 0x327   :  { %v11566_v47 = vpop.f32.mrb[6].mxu1 }
 0x328   :  { %v11568_v51 = vpop.f32.mrb[7].mxu1 }
 0x32d   :  { %v11570_v53 = vpop.f32.mrb[8].mxu1 }
 0x32e   :  { %v11572_v55 = vpop.f32.mrb[9].mxu1 }
 0x32f   :  { %v11574_v1 = vpop.f32.mrb[10].mxu1 }
 0x330   :  { %v11576_v3 = vpop.f32.mrb[11].mxu1 }
 0x335   :  { %v11578_v8 = vpop.f32.mrb[12].mxu1 }
 0x336   :  { %v11580_v28 = vpop.f32.mrb[13].mxu1 }
 0x337   :  { %v11582_v31 = vpop.f32.mrb[14].mxu1 }
 0x338   :  { %v11584_v33 = vpop.f32.mrb[15].mxu1 }
 0x33d   :  { %v11586_v37 = vpop.f32.mrb[16].mxu1 }
 0x33e   :  { %v11588_v40 = vpop.f32.mrb[17].mxu1 }
 0x33f   :  { %v11590_v41 = vpop.f32.mrb[18].mxu1 }
 0x340   :  { %v11592_v43 = vpop.f32.mrb[19].mxu1 }
 0x345   :  { %v11594_v45 = vpop.f32.mrb[20].mxu1 }
 0x346   :  { %v11596_v49 = vpop.f32.mrb[21].mxu1 }
 0x347   :  { %v11598_v52 = vpop.f32.mrb[22].mxu1 }
 0x348   :  { %v11600_v57 = vpop.f32.mrb[23].mxu1 }
 0x34d   :  { %v11605_v0 = vpop.f32.mrb[24].mxu1 }
 0x34e   :  { %11857 = vst [vmem:[#allocation3_spill] sm:$0xff] %v11605_v0  ;;  %v11607_v2 = vpop.f32.mrb[25].mxu1 }
 0x34f   :  { %11858 = vst [vmem:[#allocation4_spill] sm:$0xff] %v11607_v2  ;;  %v11609_v6 = vpop.f32.mrb[26].mxu1 }
 0x350   :  { %11859 = vst [vmem:[#allocation5_spill] sm:$0xff] %v11609_v6  ;;  %v11613_v30 = vpop.f32.mrb[27].mxu1 }
 0x351   :  { %11860 = vst [vmem:[#allocation6_spill] sm:$0xff] %v11613_v30 }
 0x355   :  { %v5261_v36 = vpop.f32.mrb[28].mxu1 }
 0x356   :  { %v6318_v38 = vpop.f32.mrb[0].mxu0  ;;  %v7539_v17 = vadd.f32 %v5261_v36, %v11611_v10  ;;  %v5263_v44 = vpop.f32.mrb[29].mxu1 }
 0x357   :  { %v7484_v19 = vadd.f32 %v7483_v34, %v6318_v38  ;;  %v6320_v54 = vpop.f32.mrb[1].mxu0  ;;  %v7543_v6 = vadd.f32 %v5263_v44, %v11615_v12  ;;  %v5265_v61 = vpop.f32.mrb[30].mxu1 }
 0x358   :  { %v7486_v30 = vadd.f32 %v7485_v13, %v6320_v54  ;;  %v6322_v63 = vpop.f32.mrb[2].mxu0  ;;  %v7547_v21 = vadd.f32 %v5265_v61, %v11611_v10  ;;  %v5267_v0 = vpop.f32.mrb[31].mxu1  ;;  %v11625_v29 = vadd.f32 %v7539_v17, %v11522_v15  ;;  %v7491_v61 = vadd.f32 %v5201_v35, %v11611_v10 }
 0x359   :  { %v6445_v2 = vmax.f32 %v7484_v19, 0.0  ;;  %v7488_v23 = vadd.f32 %v7487_v14, %v6322_v63  ;;  %v6324_v11 = vpop.f32.mrb[3].mxu0  ;;  %v7551_v34 = vadd.f32 %v5267_v0, %v11615_v12  ;;  %v11629_v32 = vadd.f32 %v7543_v6, %v11524_v42 }
 0x35a   :  { %v6446_v36 = vmax.f32 %v7486_v30, 0.0  ;;  %v7490_v38 = vadd.f32 %v7489_v59, %v6324_v11  ;;  %v11632_v13 = vadd.f32 %v7547_v21, %v11526_v46  ;;  %v7493_v15 = vadd.f32 %v5203_v39, %v11615_v12 }
 0x35b   :  { %v6447_v44 = vmax.f32 %v7488_v23, 0.0  ;;  %v11635_v14 = vadd.f32 %v7551_v34, %v11528_v16  ;;  %v7495_v46 = vadd.f32 %v11566_v47, %v11611_v10  ;;  %v7497_v35 = vadd.f32 %v11568_v51, %v11615_v12 }
 0x35c   :  { %v7426_v19 = vpack.c.bf16 %v6446_v36, %v6445_v2  ;;  %v6448_v54 = vmax.f32 %v7490_v38, 0.0 }
 0x35d   :  { %v5271_v42 = vpop.f32.mrb[32].mxu1 }
 0x35e   :  { %6647 = vst [vmem:[%s11855_s3] sm:$0xff] %v7426_v19  ;;  %v7427_v11 = vpack.c.bf16 %v6448_v54, %v6447_v44  ;;  %v6328_v0 = vpop.f32.mrb[4].mxu0  ;;  %v7555_v2 = vadd.f32 %v5271_v42, %v11611_v10  ;;  %v5273_v30 = vpop.f32.mrb[33].mxu1 }
 0x35f   :  { %v7492_v6 = vadd.f32 %v7491_v61, %v6328_v0  ;;  %v6330_v16 = vpop.f32.mrb[5].mxu0  ;;  %v7559_v39 = vadd.f32 %v5273_v30, %v11615_v12  ;;  %v5275_v59 = vpop.f32.mrb[34].mxu1 }
 0x360   :  { %6648 = vst [vmem:[%s11855_s3 + $0x8] sm:$0xff] %v7427_v11  ;;  %v7494_v17 = vadd.f32 %v7493_v15, %v6330_v16  ;;  %v6332_v63 = vpop.f32.mrb[6].mxu0  ;;  %v7563_v47 = vadd.f32 %v5275_v59, %v11611_v10  ;;  %v5277_v36 = vpop.f32.mrb[35].mxu1  ;;  %v11653_v38 = vadd.f32 %v7555_v2, %v11530_v18  ;;  %v7499_v18 = vadd.f32 %v11570_v53, %v11611_v10 }
 0x361   :  { %v6449_v21 = vmax.f32 %v7492_v6, 0.0  ;;  %v7496_v23 = vadd.f32 %v7495_v46, %v6332_v63  ;;  %v6334_v34 = vpop.f32.mrb[7].mxu0  ;;  %v7567_v51 = vadd.f32 %v5277_v36, %v11615_v12  ;;  %v11657_v54 = vadd.f32 %v7559_v39, %v11532_v48 }
 0x362   :  { %v6450_v44 = vmax.f32 %v7494_v17, 0.0  ;;  %v7498_v19 = vadd.f32 %v7497_v35, %v6334_v34  ;;  %v11660_v15 = vadd.f32 %v7563_v47, %v11534_v50  ;;  %v7501_v46 = vadd.f32 %v11572_v55, %v11615_v12 }
 0x363   :  { %v6451_v61 = vmax.f32 %v7496_v23, 0.0  ;;  %v11663_v0 = vadd.f32 %v7567_v51, %v11536_v20  ;;  %v7503_v50 = vadd.f32 %v11574_v1, %v11611_v10  ;;  %v7505_v53 = vadd.f32 %v11576_v3, %v11615_v12 }
 0x364   :  { %v7428_v11 = vpack.c.bf16 %v6450_v44, %v6449_v21  ;;  %v6452_v42 = vmax.f32 %v7498_v19, 0.0 }
 0x365   :  { %v5281_v2 = vpop.f32.mrb[36].mxu1 }
 0x366   :  { %6649 = vst [vmem:[%s11855_s3 + $0x10] sm:$0xff] %v7428_v11  ;;  %v7429_v48 = vpack.c.bf16 %v6452_v42, %v6451_v61  ;;  %v6338_v6 = vpop.f32.mrb[8].mxu0  ;;  %v7571_v30 = vadd.f32 %v5281_v2, %v11611_v10  ;;  %v5283_v16 = vpop.f32.mrb[37].mxu1 }
 0x367   :  { %v7500_v20 = vadd.f32 %v7499_v18, %v6338_v6  ;;  %v6340_v35 = vpop.f32.mrb[9].mxu0  ;;  %v7575_v55 = vadd.f32 %v5283_v16, %v11615_v12  ;;  %v5285_v17 = vpop.f32.mrb[38].mxu1 }
 0x368   :  { %6650 = vst [vmem:[%s11855_s3 + $0x18] sm:$0xff] %v7429_v48  ;;  %v7502_v39 = vadd.f32 %v7501_v46, %v6340_v35  ;;  %v6342_v59 = vpop.f32.mrb[10].mxu0  ;;  %v7579_v1 = vadd.f32 %v5285_v17, %v11611_v10  ;;  %v5287_v47 = vpop.f32.mrb[39].mxu1  ;;  %v11683_v36 = vadd.f32 %v7571_v30, %v11538_v22  ;;  %v7507_v22 = vadd.f32 %v11578_v8, %v11611_v10 }
 0x369   :  { %v6453_v63 = vmax.f32 %v7500_v20, 0.0  ;;  %v7504_v21 = vadd.f32 %v7503_v50, %v6342_v59  ;;  %v6344_v23 = vpop.f32.mrb[11].mxu0  ;;  %v7583_v3 = vadd.f32 %v5287_v47, %v11615_v12  ;;  %v11687_v51 = vadd.f32 %v7575_v55, %v11540_v56 }
 0x36a   :  { %v6454_v34 = vmax.f32 %v7502_v39, 0.0  ;;  %v7506_v44 = vadd.f32 %v7505_v53, %v6344_v23  ;;  %v11690_v61 = vadd.f32 %v7579_v1, %v11542_v58  ;;  %v7509_v46 = vadd.f32 %v11580_v28, %v11615_v12 }
 0x36b   :  { %v6455_v19 = vmax.f32 %v7504_v21, 0.0  ;;  %v11693_v18 = vadd.f32 %v7583_v3, %v11544_v4  ;;  %v7511_v58 = vadd.f32 %v11582_v31, %v11611_v10  ;;  %v7513_v8 = vadd.f32 %v11584_v33, %v11615_v12 }
 0x36c   :  { %v7430_v11 = vpack.c.bf16 %v6454_v34, %v6453_v63  ;;  %v6456_v42 = vmax.f32 %v7506_v44, 0.0 }
 0x36d   :  { %v5291_v48 = vpop.f32.mrb[40].mxu1 }
 0x36e   :  { %6651 = vst [vmem:[%s11855_s3 + $0x20] sm:$0xff] %v7430_v11  ;;  %v7431_v56 = vpack.c.bf16 %v6456_v42, %v6455_v19  ;;  %v6348_v2 = vpop.f32.mrb[12].mxu0  ;;  %v7587_v6 = vadd.f32 %v5291_v48, %v11611_v10  ;;  %v5293_v50 = vpop.f32.mrb[41].mxu1  ;;  %v7517_v19 = vadd.f32 %v11588_v40, %v11615_v12 }
 0x36f   :  { %v7508_v4 = vadd.f32 %v7507_v22, %v6348_v2  ;;  %v6350_v30 = vpop.f32.mrb[13].mxu0  ;;  %v7591_v28 = vadd.f32 %v5293_v50, %v11615_v12  ;;  %v5295_v16 = vpop.f32.mrb[42].mxu1 }
 0x370   :  { %6652 = vst [vmem:[%s11855_s3 + $0x28] sm:$0xff] %v7431_v56  ;;  %v7510_v20 = vadd.f32 %v7509_v46, %v6350_v30  ;;  %v6352_v35 = vpop.f32.mrb[14].mxu0  ;;  %v7595_v31 = vadd.f32 %v5295_v16, %v11611_v10  ;;  %v5297_v39 = vpop.f32.mrb[43].mxu1  ;;  %v11713_v59 = vadd.f32 %v7587_v6, %v11546_v24  ;;  %v7515_v24 = vadd.f32 %v11586_v37, %v11611_v10 }
 0x371   :  { %v6457_v53 = vmax.f32 %v7508_v4, 0.0  ;;  %v7512_v55 = vadd.f32 %v7511_v58, %v6352_v35  ;;  %v6354_v17 = vpop.f32.mrb[15].mxu0  ;;  %v7599_v33 = vadd.f32 %v5297_v39, %v11615_v12  ;;  %v11717_v21 = vadd.f32 %v7591_v28, %v11548_v60 }
 0x372   :  { %v6458_v63 = vmax.f32 %v7510_v20, 0.0  ;;  %v7514_v1 = vadd.f32 %v7513_v8, %v6354_v17  ;;  %v11720_v23 = vadd.f32 %v7595_v31, %v11550_v62  ;;  %v7519_v62 = vadd.f32 %v11590_v41, %v11611_v10 }
 0x373   :  { %v6459_v47 = vmax.f32 %v7512_v55, 0.0  ;;  %v11723_v44 = vadd.f32 %v7599_v33, %v11552_v25  ;;  %v7521_v37 = vadd.f32 %v11592_v43, %v11615_v12  ;;  %v7525_v17 = vadd.f32 %v11596_v49, %v11615_v12 }
 0x374   :  { %v7432_v34 = vpack.c.bf16 %v6458_v63, %v6457_v53  ;;  %v6460_v3 = vmax.f32 %v7514_v1, 0.0 }
 0x375   :  { %v5301_v11 = vpop.f32.mrb[44].mxu1 }
 0x376   :  { %6653 = vst [vmem:[%s11855_s3 + $0x30] sm:$0xff] %v7432_v34  ;;  %v7433_v60 = vpack.c.bf16 %v6460_v3, %v6459_v47  ;;  %v6358_v42 = vpop.f32.mrb[16].mxu0  ;;  %v7603_v22 = vadd.f32 %v5301_v11, %v11611_v10  ;;  %v5303_v46 = vpop.f32.mrb[45].mxu1 }
 0x377   :  { %v7516_v25 = vadd.f32 %v7515_v24, %v6358_v42  ;;  %v6360_v56 = vpop.f32.mrb[17].mxu0  ;;  %v7607_v40 = vadd.f32 %v5303_v46, %v11615_v12  ;;  %v5305_v2 = vpop.f32.mrb[46].mxu1  ;;  %v11861_v46 = vld [vmem:[#allocation2_spill] sm:$0xff] }
 0x378   :  { %6654 = vst [vmem:[%s11855_s3 + $0x38] sm:$0xff] %v7433_v60  ;;  %v7518_v48 = vadd.f32 %v7517_v19, %v6360_v56  ;;  %v6362_v58 = vpop.f32.mrb[18].mxu0  ;;  %v7611_v41 = vadd.f32 %v5305_v2, %v11611_v10  ;;  %v5307_v50 = vpop.f32.mrb[47].mxu1  ;;  %v11743_v8 = vadd.f32 %v7603_v22, %v11554_v26  ;;  %v7523_v26 = vadd.f32 %v11594_v45, %v11611_v10 }
 0x379   :  { %v6461_v6 = vmax.f32 %v7516_v25, 0.0  ;;  %v7520_v4 = vadd.f32 %v7519_v62, %v6362_v58  ;;  %v6364_v30 = vpop.f32.mrb[19].mxu0  ;;  %v7615_v43 = vadd.f32 %v5307_v50, %v11615_v12  ;;  %v11747_v16 = vadd.f32 %v7607_v40, %v11556_v5  ;;  %v11863_v58 = vld [vmem:[#allocation4_spill] sm:$0xff]  ;;  %v11864_v50 = vld [vmem:[#allocation5_spill] sm:$0xff] }
 0x37a   :  { %v6462_v28 = vmax.f32 %v7518_v48, 0.0  ;;  %v7522_v20 = vadd.f32 %v7521_v37, %v6364_v30  ;;  %v11750_v53 = vadd.f32 %v7611_v41, %v11558_v7  ;;  %v7527_v7 = vadd.f32 %v11598_v52, %v11611_v10  ;;  %v11862_v48 = vld [vmem:[#allocation3_spill] sm:$0xff] }
 0x37b   :  { %v6463_v35 = vmax.f32 %v7520_v4, 0.0  ;;  %v11753_v39 = vadd.f32 %v7615_v43, %v11560_v27  ;;  %v7529_v45 = vadd.f32 %v11600_v57, %v11615_v12  ;;  %v7531_v2 = vadd.f32 %v11862_v48, %v11611_v10 }
 0x37c   :  { %v7434_v31 = vpack.c.bf16 %v6462_v28, %v6461_v6  ;;  %v6464_v55 = vmax.f32 %v7522_v20, 0.0  ;;  %v7533_v6 = vadd.f32 %v11863_v58, %v11615_v12  ;;  %v7535_v30 = vadd.f32 %v11864_v50, %v11611_v10 }
 0x37d   :  { %v5311_v63 = vpop.f32.mrb[48].mxu1 }
 0x37e   :  { %6655 = vst [vmem:[%s11855_s3 + $0x40] sm:$0xff] %v7434_v31  ;;  %v7435_v5 = vpack.c.bf16 %v6464_v55, %v6463_v35  ;;  %v6368_v33 = vpop.f32.mrb[20].mxu0  ;;  %v7619_v1 = vadd.f32 %v5311_v63, %v11611_v10  ;;  %v5313_v47 = vpop.f32.mrb[49].mxu1  ;;  %v11865_v31 = vld [vmem:[#allocation6_spill] sm:$0xff] }
 0x37f   :  { %v7524_v27 = vadd.f32 %v7523_v26, %v6368_v33  ;;  %v6370_v34 = vpop.f32.mrb[21].mxu0  ;;  %v7623_v49 = vadd.f32 %v5313_v47, %v11615_v12  ;;  %v5315_v24 = vpop.f32.mrb[50].mxu1  ;;  %v7537_v55 = vadd.f32 %v11865_v31, %v11615_v12 }
 0x380   :  { %6656 = vst [vmem:[%s11855_s3 + $0x48] sm:$0xff] %v7435_v5  ;;  %v7526_v3 = vadd.f32 %v7525_v17, %v6370_v34  ;;  %v6372_v19 = vpop.f32.mrb[22].mxu0  ;;  %v5316_v52 = vpop.f32.mrb[51].mxu1  ;;  %v11772_v62 = vadd.f32 %v7619_v1, %v11562_v9 }
 0x381   :  { %v6465_v60 = vmax.f32 %v7524_v27, 0.0  ;;  %v7528_v11 = vadd.f32 %v7527_v7, %v6372_v19  ;;  %v6374_v42 = vpop.f32.mrb[23].mxu0  ;;  %v11775_v57 = vadd.f32 %v7623_v49, %v11861_v46 }
 0x382   :  { %v6466_v22 = vmax.f32 %v7526_v3, 0.0  ;;  %v7530_v25 = vadd.f32 %v7529_v45, %v6374_v42 }
 0x383   :  { %v6467_v56 = vmax.f32 %v7528_v11, 0.0 }
 0x384   :  { %v7436_v37 = vpack.c.bf16 %v6466_v22, %v6465_v60  ;;  %v6468_v40 = vmax.f32 %v7530_v25, 0.0 }
 0x385   :  { %v6227_v41 = vpop.f32.mrb[52].mxu1 }
 0x386   :  { %6657 = vst [vmem:[%s11855_s3 + $0x50] sm:$0xff] %v7436_v37  ;;  %v7437_v9 = vpack.c.bf16 %v6468_v40, %v6467_v56  ;;  %v6378_v4 = vpop.f32.mrb[24].mxu0  ;;  %v7541_v28 = vadd.f32 %v11625_v29, %v6227_v41  ;;  %v6229_v20 = vpop.f32.mrb[53].mxu1 }
 0x387   :  { %v7532_v43 = vadd.f32 %v7531_v2, %v6378_v4  ;;  %v6380_v35 = vpop.f32.mrb[25].mxu0  ;;  %v7545_v26 = vadd.f32 %v11629_v32, %v6229_v20  ;;  %v6231_v5 = vpop.f32.mrb[54].mxu1 }
 0x388   :  { %6658 = vst [vmem:[%s11855_s3 + $0x58] sm:$0xff] %v7437_v9  ;;  %v7534_v17 = vadd.f32 %v7533_v6, %v6380_v35  ;;  %v6382_v63 = vpop.f32.mrb[26].mxu0  ;;  %v7549_v10 = vadd.f32 %v11632_v13, %v6231_v5  ;;  %v6233_v29 = vpop.f32.mrb[55].mxu1 }
 0x389   :  { %v6469_v33 = vmax.f32 %v7532_v43, 0.0  ;;  %v7536_v7 = vadd.f32 %v7535_v30, %v6382_v63  ;;  %v6384_v1 = vpop.f32.mrb[27].mxu0  ;;  %v7553_v47 = vadd.f32 %v11635_v14, %v6233_v29 }
 0x38a   :  { %v6470_v27 = vmax.f32 %v7534_v17, 0.0  ;;  %v7538_v34 = vadd.f32 %v7537_v55, %v6384_v1 }
 0x38b   :  { %v6471_v12 = vmax.f32 %v7536_v7, 0.0 }
 0x38c   :  { %v7438_v45 = vpack.c.bf16 %v6470_v27, %v6469_v33  ;;  %v6472_v49 = vmax.f32 %v7538_v34, 0.0 }
 0x38d   :  { %v6237_v3 = vpop.f32.mrb[56].mxu1 }
 0x38e   :  { %6659 = vst [vmem:[%s11855_s3 + $0x60] sm:$0xff] %v7438_v45  ;;  %v7439_v32 = vpack.c.bf16 %v6472_v49, %v6471_v12  ;;  %v6388_v24 = vpop.f32.mrb[52].mxu0  ;;  %v7557_v19 = vadd.f32 %v11653_v38, %v6237_v3  ;;  %v6239_v60 = vpop.f32.mrb[57].mxu1 }
 0x38f   :  { %v7542_v13 = vadd.f32 %v7541_v28, %v6388_v24  ;;  %v6390_v11 = vpop.f32.mrb[53].mxu0  ;;  %v7561_v14 = vadd.f32 %v11657_v54, %v6239_v60  ;;  %v6241_v42 = vpop.f32.mrb[58].mxu1 }
 0x390   :  { %6660 = vst [vmem:[%s11855_s3 + $0x68] sm:$0xff] %v7439_v32  ;;  %v7546_v52 = vadd.f32 %v7545_v26, %v6390_v11  ;;  %v6392_v22 = vpop.f32.mrb[54].mxu0  ;;  %v7565_v46 = vadd.f32 %v11660_v15, %v6241_v42  ;;  %v6243_v37 = vpop.f32.mrb[59].mxu1 }
 0x391   :  { %v6473_v25 = vmax.f32 %v7542_v13, 0.0  ;;  %v7550_v56 = vadd.f32 %v7549_v10, %v6392_v22  ;;  %v6394_v40 = vpop.f32.mrb[55].mxu0  ;;  %v7569_v38 = vadd.f32 %v11663_v0, %v6243_v37 }
 0x392   :  { %v6474_v48 = vmax.f32 %v7546_v52, 0.0  ;;  %v7554_v2 = vadd.f32 %v7553_v47, %v6394_v40 }
 0x393   :  { %v6475_v58 = vmax.f32 %v7550_v56, 0.0 }
 0x394   :  { %v7440_v6 = vpack.c.bf16 %v6474_v48, %v6473_v25  ;;  %v6476_v9 = vmax.f32 %v7554_v2, 0.0 }
 0x395   :  { %v6247_v41 = vpop.f32.mrb[60].mxu1 }
 0x396   :  { %6661 = vst [vmem:[%s11855_s3 + $0x70] sm:$0xff] %v7440_v6  ;;  %v7441_v54 = vpack.c.bf16 %v6476_v9, %v6475_v58  ;;  %v6398_v4 = vpop.f32.mrb[56].mxu0  ;;  %v7573_v50 = vadd.f32 %v11683_v36, %v6247_v41  ;;  %v6249_v30 = vpop.f32.mrb[61].mxu1 }
 0x397   :  { %v7558_v15 = vadd.f32 %v7557_v19, %v6398_v4  ;;  %v6400_v28 = vpop.f32.mrb[57].mxu0  ;;  %v7577_v0 = vadd.f32 %v11687_v51, %v6249_v30  ;;  %v6251_v20 = vpop.f32.mrb[62].mxu1 }
 0x398   :  { %6662 = vst [vmem:[%s11855_s3 + $0x78] sm:$0xff] %v7441_v54  ;;  %v7562_v43 = vadd.f32 %v7561_v14, %v6400_v28  ;;  %v6402_v35 = vpop.f32.mrb[58].mxu0  ;;  %v7581_v55 = vadd.f32 %v11690_v61, %v6251_v20  ;;  %v6253_v17 = vpop.f32.mrb[63].mxu1 }
 0x399   :  { %v6477_v31 = vmax.f32 %v7558_v15, 0.0  ;;  %v7566_v26 = vadd.f32 %v7565_v46, %v6402_v35  ;;  %v6404_v5 = vpop.f32.mrb[59].mxu0  ;;  %v7585_v36 = vadd.f32 %v11693_v18, %v6253_v17 }
 0x39a   :  { %v6478_v63 = vmax.f32 %v7562_v43, 0.0  ;;  %v7570_v33 = vadd.f32 %v7569_v38, %v6404_v5 }
 0x39b   :  { %v6479_v10 = vmax.f32 %v7566_v26, 0.0 }
 0x39c   :  { %v7442_v7 = vpack.c.bf16 %v6478_v63, %v6477_v31  ;;  %v6480_v29 = vmax.f32 %v7570_v33, 0.0 }
 0x39d   :  { %v6257_v1 = vpop.f32.mrb[64].mxu1 }
 0x39e   :  { %6663 = vst [vmem:[%s11855_s3 + $0x80] sm:$0xff] %v7442_v7  ;;  %v7443_v51 = vpack.c.bf16 %v6480_v29, %v6479_v10  ;;  %v6408_v27 = vpop.f32.mrb[60].mxu0  ;;  %v7589_v47 = vadd.f32 %v11713_v59, %v6257_v1  ;;  %v6259_v34 = vpop.f32.mrb[65].mxu1 }
 0x39f   :  { %v7574_v61 = vadd.f32 %v7573_v50, %v6408_v27  ;;  %v6410_v12 = vpop.f32.mrb[61].mxu0  ;;  %v7593_v18 = vadd.f32 %v11717_v21, %v6259_v34  ;;  %v6261_v49 = vpop.f32.mrb[66].mxu1 }
 0x3a0   :  { %6664 = vst [vmem:[%s11855_s3 + $0x88] sm:$0xff] %v7443_v51  ;;  %v7578_v45 = vadd.f32 %v7577_v0, %v6410_v12  ;;  %v6412_v32 = vpop.f32.mrb[62].mxu0  ;;  %v7597_v24 = vadd.f32 %v11720_v23, %v6261_v49  ;;  %v6263_v13 = vpop.f32.mrb[67].mxu1 }
 0x3a1   :  { %v6481_v3 = vmax.f32 %v7574_v61, 0.0  ;;  %v7582_v19 = vadd.f32 %v7581_v55, %v6412_v32  ;;  %v6414_v60 = vpop.f32.mrb[63].mxu0  ;;  %v7601_v59 = vadd.f32 %v11723_v44, %v6263_v13 }
 0x3a2   :  { %v6482_v11 = vmax.f32 %v7578_v45, 0.0  ;;  %v7586_v14 = vadd.f32 %v7585_v36, %v6414_v60 }
 0x3a3   :  { %v6483_v52 = vmax.f32 %v7582_v19, 0.0 }
 0x3a4   :  { %v7444_v42 = vpack.c.bf16 %v6482_v11, %v6481_v3  ;;  %v6484_v22 = vmax.f32 %v7586_v14, 0.0 }
 0x3a5   :  { %v6267_v25 = vpop.f32.mrb[68].mxu1 }
 0x3a6   :  { %6665 = vst [vmem:[%s11855_s3 + $0x90] sm:$0xff] %v7444_v42  ;;  %v7445_v21 = vpack.c.bf16 %v6484_v22, %v6483_v52  ;;  %v6418_v46 = vpop.f32.mrb[64].mxu0  ;;  %v7605_v56 = vadd.f32 %v11743_v8, %v6267_v25  ;;  %v6269_v37 = vpop.f32.mrb[69].mxu1 }
 0x3a7   :  { %v7590_v23 = vadd.f32 %v7589_v47, %v6418_v46  ;;  %v6420_v40 = vpop.f32.mrb[65].mxu0  ;;  %v7609_v44 = vadd.f32 %v11747_v16, %v6269_v37  ;;  %v6271_v38 = vpop.f32.mrb[70].mxu1 }
 0x3a8   :  { %6666 = vst [vmem:[%s11855_s3 + $0x98] sm:$0xff] %v7445_v21  ;;  %v7594_v48 = vadd.f32 %v7593_v18, %v6420_v40  ;;  %v6422_v2 = vpop.f32.mrb[66].mxu0  ;;  %v7613_v6 = vadd.f32 %v11750_v53, %v6271_v38  ;;  %v6273_v54 = vpop.f32.mrb[71].mxu1 }
 0x3a9   :  { %v6485_v58 = vmax.f32 %v7590_v23, 0.0  ;;  %v7598_v9 = vadd.f32 %v7597_v24, %v6422_v2  ;;  %v6424_v41 = vpop.f32.mrb[67].mxu0  ;;  %v7617_v8 = vadd.f32 %v11753_v39, %v6273_v54 }
 0x3aa   :  { %v6486_v4 = vmax.f32 %v7594_v48, 0.0  ;;  %v7602_v50 = vadd.f32 %v7601_v59, %v6424_v41 }
 0x3ab   :  { %v6487_v15 = vmax.f32 %v7598_v9, 0.0 }
 0x3ac   :  { %v7446_v30 = vpack.c.bf16 %v6486_v4, %v6485_v58  ;;  %v6488_v28 = vmax.f32 %v7602_v50, 0.0 }
 0x3ad   :  { %v6277_v0 = vpop.f32.mrb[72].mxu1 }
 0x3ae   :  { %6667 = vst [vmem:[%s11855_s3 + $0xa0] sm:$0xff] %v7446_v30  ;;  %v7447_v16 = vpack.c.bf16 %v6488_v28, %v6487_v15  ;;  %v6428_v43 = vpop.f32.mrb[68].mxu0  ;;  %v7621_v20 = vadd.f32 %v11772_v62, %v6277_v0  ;;  %v6279_v35 = vpop.f32.mrb[73].mxu1 }
 0x3af   :  { %v7606_v53 = vadd.f32 %v7605_v56, %v6428_v43  ;;  %v6430_v31 = vpop.f32.mrb[69].mxu0  ;;  %v7625_v39 = vadd.f32 %v11775_v57, %v6279_v35  ;;  %v6281_v17 = vpop.f32.mrb[74].mxu1 }
 0x3b0   :  { %6668 = vst [vmem:[%s11855_s3 + $0xa8] sm:$0xff] %v7447_v16  ;;  %v7610_v55 = vadd.f32 %v7609_v44, %v6430_v31  ;;  %v6432_v26 = vpop.f32.mrb[70].mxu0  ;;  %v6282_v33 = vpop.f32.mrb[75].mxu1 }
 0x3b1   :  { %v6489_v5 = vmax.f32 %v7606_v53, 0.0  ;;  %v7614_v63 = vadd.f32 %v7613_v6, %v6432_v26  ;;  %v6434_v36 = vpop.f32.mrb[71].mxu0 }
 0x3b2   :  { %v6490_v10 = vmax.f32 %v7610_v55, 0.0  ;;  %v7618_v7 = vadd.f32 %v7617_v8, %v6434_v36 }
 0x3b3   :  { %v6491_v29 = vmax.f32 %v7614_v63, 0.0 }
 0x3b4   :  { %v7448_v62 = vpack.c.bf16 %v6490_v10, %v6489_v5  ;;  %v6492_v51 = vmax.f32 %v7618_v7, 0.0 }
 0x3b6   :  { %6669 = vst [vmem:[%s11855_s3 + $0xb0] sm:$0xff] %v7448_v62  ;;  %v7449_v1 = vpack.c.bf16 %v6492_v51, %v6491_v29  ;;  %v6438_v27 = vpop.f32.mrb[72].mxu0 }
 0x3b7   :  { %v7622_v47 = vadd.f32 %v7621_v20, %v6438_v27  ;;  %v6440_v57 = vpop.f32.mrb[73].mxu0 }
 0x3b8   :  { %6670 = vst [vmem:[%s11855_s3 + $0xb8] sm:$0xff] %v7449_v1  ;;  %v7626_v61 = vadd.f32 %v7625_v39, %v6440_v57  ;;  %v6442_v34 = vpop.f32.mrb[74].mxu0 }
 0x3b9   :  { %v6493_v12 = vmax.f32 %v7622_v47, 0.0  ;;  %v6443_v18 = vpop.f32.mrb[75].mxu0 }
 0x3ba   :  { %v6494_v45 = vmax.f32 %v7626_v61, 0.0 }
 0x3bc   :  { %v7450_v49 = vpack.c.bf16 %v6494_v45, %v6493_v12 }
 0x3be   :  { %6671 = vst [vmem:[%s11855_s3 + $0xc0] sm:$0x33] %v7450_v49 }

// kernel: convnet_forward.5
= control target key start
LH: loop header
LB: loop body
LE: loop exit
PB: predicated region body
PF: predicated region fallthrough
CT: control target
= control target key end

     0   :  { %v611_v17 = vlaneseq  ;;  %v7398_v20 = vmov 1966171168   ;;  %vm7400_vm0 = vmmov 0   ;;  %s10695_s1 = inlined_call_operand.vmem [shape: bf16[2304,384], index: 1, kind: input, shape index: {}]   ;;  %s10696_s0 = inlined_call_operand.vmem [shape: bf16[2,2,2304], index: 0, kind: input, shape index: {}]   ;;  %s10697_s2 = inlined_call_operand.vmem [shape: f32[1,384], index: 2, kind: input, shape index: {}]   ;;  %s10698_s4 = inlined_call_operand.vmem [shape: bf16[384,128], index: 4, kind: input, shape index: {}]   ;;  %s10699_s3 = inlined_call_operand.vmem [shape: bf16[384,128], index: 3, kind: input, shape index: {}]   ;;  %s10700_s6 = inlined_call_operand.vmem [shape: bf16[128,128], index: 6, kind: input, shape index: {}]   ;;  %s10701_s5 = inlined_call_operand.vmem [shape: f32[1,128], index: 5, kind: input, shape index: {}]   ;;  %s10702_s7 = inlined_call_operand.vmem [shape: f32[1,128], index: 7, kind: input, shape index: {}]   ;;  %s10703_s8 = inlined_call_operand.vmem [shape: f32[2,128], index: 8, kind: output, shape index: {}]  }
   0x1   :  { %v6456_v0 = vld [vmem:[%s10695_s1 + $0x4] ss:$12 sps:$4 sm:$0xff]   ;;  %v6458_v1 = vld [vmem:[%s10695_s1 + $0xc8] ss:$12 sps:$4 sm:$0xff]   ;;  %v6459_v2 = vld [vmem:[%s10695_s1] ss:$12 sps:$4 sm:$0xff]   ;;  %v631_v21 = vunpack.c.l.s4 %v7398_v20 }
   0x2   :  { %3071 = vmatprep.subr.bf16.mxu0 %v6456_v0  ;;  %5858 = vmatprep.subr.bf16.mxu1 %v6458_v1  ;;  %v6460_v3 = vld [vmem:[%s10695_s1 + $0x8] ss:$12 sps:$4 sm:$0xff]   ;;  %v6463_v5 = vld [vmem:[%s10695_s1 + $0xe0] ss:$12 sps:$4 sm:$0xff]   ;;  %v6464_v6 = vld [vmem:[%s10695_s1 + $0x18] ss:$12 sps:$4 sm:$0xff]  }
   0x3   :  { %3072 = vmatpush1.bf16.msra.mxu0 %v6459_v2  ;;  %v6461_v4 = vld [vmem:[%s10695_s1 + $0x1c] ss:$12 sps:$4 sm:$0xff]   ;;  %5859 = vmatpush3.bf16.msra.mxu1 %v6460_v3  ;;  %v6465_v7 = vld [vmem:[%s10695_s1 + $0x20] ss:$12 sps:$4 sm:$0xff]   ;;  %v6468_v9 = vld [vmem:[%s10695_s1 + $0xf8] ss:$12 sps:$4 sm:$0xff]   ;;  %v632_v27 = vunpack.c.0.s8 %v631_v21 }
   0x4   :  { %3073 = vmatprep.subr.bf16.mxu0 %v6461_v4  ;;  %5860 = vmatprep.subr.bf16.mxu1 %v6463_v5  ;;  %v6466_v8 = vld [vmem:[%s10695_s1 + $0x34] ss:$12 sps:$4 sm:$0xff]   ;;  %v6469_v10 = vld [vmem:[%s10695_s1 + $0x30] ss:$12 sps:$4 sm:$0xff]   ;;  %v6470_v11 = vld [vmem:[%s10695_s1 + $0x38] ss:$12 sps:$4 sm:$0xff]  }
   0x5   :  { %v6471_v12 = vld [vmem:[%s10695_s1 + $0x4c] ss:$12 sps:$4 sm:$0xff]   ;;  %v6473_v13 = vld [vmem:[%s10695_s1 + $0x110] ss:$12 sps:$4 sm:$0xff]   ;;  %v6474_v14 = vld [vmem:[%s10695_s1 + $0x48] ss:$12 sps:$4 sm:$0xff]  }
   0x6   :  { %v6475_v15 = vld [vmem:[%s10695_s1 + $0x50] ss:$12 sps:$4 sm:$0xff]   ;;  %v6478_v18 = vld [vmem:[%s10695_s1 + $0x128] ss:$12 sps:$4 sm:$0xff]   ;;  %v6479_v19 = vld [vmem:[%s10695_s1 + $0x60] ss:$12 sps:$4 sm:$0xff]  }
   0x7   :  { %3074 = vmatpush1.bf16.msra.mxu0 %v6464_v6  ;;  %5861 = vmatpush3.bf16.msra.mxu1 %v6465_v7  ;;  %v6476_v16 = vld [vmem:[%s10695_s1 + $0x64] ss:$12 sps:$4 sm:$0xff]   ;;  %v6480_v22 = vld [vmem:[%s10695_s1 + $0x68] ss:$12 sps:$4 sm:$0xff]   ;;  %v6483_v24 = vld [vmem:[%s10695_s1 + $0x140] ss:$12 sps:$4 sm:$0xff]  }
   0x8   :  { %3075 = vmatprep.subr.bf16.mxu0 %v6466_v8  ;;  %5862 = vmatprep.subr.bf16.mxu1 %v6468_v9  ;;  %v6481_v23 = vld [vmem:[%s10695_s1 + $0x7c] ss:$12 sps:$4 sm:$0xff]   ;;  %v7512_v25 = vshrl.u32 %v611_v17, 7  ;;  %v6484_v26 = vld [vmem:[%s10695_s1 + $0x78] ss:$12 sps:$4 sm:$0xff]  }
   0x9   :  { %v6485_v28 = vld [vmem:[%s10695_s1 + $0x80] ss:$12 sps:$4 sm:$0xff]   ;;  %v6488_v30 = vld [vmem:[%s10695_s1 + $0x158] ss:$12 sps:$4 sm:$0xff]   ;;  %v6489_v32 = vld [vmem:[%s10695_s1 + $0x90] ss:$12 sps:$4 sm:$0xff]  }
   0xa   :  { %10791 = vst [vmem:[#allocation2_spill] sm:$0xff] %v7512_v25  ;;  %v6486_v29 = vld [vmem:[%s10695_s1 + $0x94] ss:$12 sps:$4 sm:$0xff]   ;;  %v7527_v31 = vsub.s32 %v632_v27, %v7512_v25  ;;  %v6490_v33 = vld [vmem:[%s10695_s1 + $0x98] ss:$12 sps:$4 sm:$0xff]  }
   0xb   :  { %3076 = vmatpush1.bf16.msra.mxu0 %v6469_v10  ;;  %5863 = vmatpush3.bf16.msra.mxu1 %v6470_v11  ;;  %v6491_v34 = vld [vmem:[%s10695_s1 + $0xac] ss:$12 sps:$4 sm:$0xff]   ;;  %v6493_v35 = vld [vmem:[%s10695_s1 + $0x170] ss:$12 sps:$4 sm:$0xff]   ;;  %v7544_v36 = vld [vmem:[%s10696_s0] sm:$0xff] }
   0xc   :  { %3077 = vmatprep.subr.bf16.mxu0 %v6471_v12  ;;  %5864 = vmatprep.subr.bf16.mxu1 %v6473_v13  ;;  %v6494_v37 = vld [vmem:[%s10695_s1 + $0xa8] ss:$12 sps:$4 sm:$0xff]   ;;  %v636_v38 = vrot.slane %v7544_v36, %v7527_v31  ;;  %v6495_v39 = vld [vmem:[%s10695_s1 + $0xb0] ss:$12 sps:$4 sm:$0xff]   ;;  %v6499_v45 = vld [vmem:[%s10695_s1 + $0xc0] ss:$12 sps:$4 sm:$0xff]   ;;  %v629_v6 = vcombine.high %v7544_v36, %v7544_v36 }
   0xd   :  { %v6496_v41 = vld [vmem:[%s10695_s1 + $0xc4] ss:$12 sps:$4 sm:$0xff]   ;;  %v6498_v42 = vld [vmem:[%s10695_s1 + $0x248] ss:$12 sps:$4 sm:$0xff]   ;;  %v6503_v48 = vld [vmem:[%s10695_s1 + $0x260] ss:$12 sps:$4 sm:$0xff]  }
   0xe   :  { %v644_v40 = vcombine.high %v636_v38, %v636_v38  ;;  %v7562_v44 = vrot.slane %v636_v38, %v7527_v31  ;;  %v6500_v46 = vld [vmem:[%s10695_s1 + $0x188] ss:$12 sps:$4 sm:$0xff]   ;;  %v6504_v50 = vld [vmem:[%s10695_s1 + $0xd8] ss:$12 sps:$4 sm:$0xff]   ;;  %v6505_v51 = vld [vmem:[%s10695_s1 + $0x1a0] ss:$12 sps:$4 sm:$0xff]   ;;  %v7655_v11 = vrot.slane %v629_v6, %v7527_v31 }
   0xf   :  { %3078 = vmatpush1.bf16.msra.mxu0 %v6474_v14  ;;  %5865 = vmatpush3.bf16.msra.mxu1 %v6475_v15  ;;  %v6501_v47 = vld [vmem:[%s10695_s1 + $0xdc] ss:$12 sps:$4 sm:$0xff]   ;;  %v6506_v52 = vld [vmem:[%s10695_s1 + $0xf4] ss:$12 sps:$4 sm:$0xff]   ;;  %v6508_v53 = vld [vmem:[%s10695_s1 + $0x278] ss:$12 sps:$4 sm:$0xff]  }
  0x10   :  { %3079 = vmatprep.subr.bf16.mxu0 %v6476_v16  ;;  %5866 = vmatprep.subr.bf16.mxu1 %v6478_v18  ;;  %v666_v43 = vrot.slane %v644_v40, %v7527_v31  ;;  %v6509_v54 = vld [vmem:[%s10695_s1 + $0xf0] ss:$12 sps:$4 sm:$0xff]   ;;  %v6510_v55 = vld [vmem:[%s10695_s1 + $0x1b8] ss:$12 sps:$4 sm:$0xff]   ;;  %v6514_v58 = vld [vmem:[%s10695_s1 + $0x108] ss:$12 sps:$4 sm:$0xff]   ;;  %v645_v16 = vcombine.high %v7655_v11, %v7655_v11  ;;  %v7676_v18 = vcombine.high %v7562_v44, %v7562_v44 }
  0x11   :  { %v6511_v56 = vld [vmem:[%s10695_s1 + $0x10c] ss:$12 sps:$4 sm:$0xff]   ;;  %v6513_v57 = vld [vmem:[%s10695_s1 + $0x290] ss:$12 sps:$4 sm:$0xff]   ;;  %v6518_v61 = vld [vmem:[%s10695_s1 + $0x2a8] ss:$12 sps:$4 sm:$0xff]  }
  0x12   :  { %3472 = vmatprep.mubr.bf16.mxu1 %v666_v43  ;;  %v7576_v49 = vcombine.high %v666_v43, %v666_v43  ;;  %3103 = vmatprep.mubr.bf16.mxu0 %v666_v43  ;;  %v6515_v59 = vld [vmem:[%s10695_s1 + $0x1d0] ss:$12 sps:$4 sm:$0xff]   ;;  %v6519_v62 = vld [vmem:[%s10695_s1 + $0x120] ss:$12 sps:$4 sm:$0xff]   ;;  %v6520_v63 = vld [vmem:[%s10695_s1 + $0x1e8] ss:$12 sps:$4 sm:$0xff]  }
  0x13   :  { %3080 = vmatpush1.bf16.msra.mxu0 %v6479_v19  ;;  %5867 = vmatpush3.bf16.msra.mxu1 %v6480_v22  ;;  %v6516_v60 = vld [vmem:[%s10695_s1 + $0x124] ss:$12 sps:$4 sm:$0xff]   ;;  %v6521_v0 = vld [vmem:[%s10695_s1 + $0x13c] ss:$12 sps:$4 sm:$0xff]   ;;  %v6523_v1 = vld [vmem:[%s10695_s1 + $0x2c0] ss:$12 sps:$4 sm:$0xff]   ;;  %v7688_v22 = vrot.slane %v645_v16, %v7527_v31 }
  0x14   :  { %3081 = vmatprep.subr.bf16.mxu0 %v6481_v23  ;;  %5868 = vmatprep.subr.bf16.mxu1 %v6483_v24  ;;  %v6524_v2 = vld [vmem:[%s10695_s1 + $0x138] ss:$12 sps:$4 sm:$0xff]   ;;  %v6525_v3 = vld [vmem:[%s10695_s1 + $0x200] ss:$12 sps:$4 sm:$0xff]   ;;  %v6529_v7 = vld [vmem:[%s10695_s1 + $0x150] ss:$12 sps:$4 sm:$0xff]  }
  0x15   :  { %v6526_v4 = vld [vmem:[%s10695_s1 + $0x154] ss:$12 sps:$4 sm:$0xff]   ;;  %v6528_v5 = vld [vmem:[%s10695_s1 + $0x2d8] ss:$12 sps:$4 sm:$0xff]   ;;  %v6533_v10 = vld [vmem:[%s10695_s1 + $0x2f0] ss:$12 sps:$4 sm:$0xff]  }
  0x16   :  { %v6530_v8 = vld [vmem:[%s10695_s1 + $0x218] ss:$12 sps:$4 sm:$0xff]   ;;  %v6534_v12 = vld [vmem:[%s10695_s1 + $0x168] ss:$12 sps:$4 sm:$0xff]   ;;  %v6535_v13 = vld [vmem:[%s10695_s1 + $0x230] ss:$12 sps:$4 sm:$0xff]  }
  0x17   :  { %3082 = vmatpush1.bf16.msra.mxu0 %v6484_v26  ;;  %5869 = vmatpush3.bf16.msra.mxu1 %v6485_v28  ;;  %v6531_v9 = vld [vmem:[%s10695_s1 + $0x16c] ss:$12 sps:$4 sm:$0xff]   ;;  %v6538_v14 = vld [vmem:[%s10695_s1 + $0x184] ss:$12 sps:$4 sm:$0xff]   ;;  %v6539_v15 = vld [vmem:[%s10695_s1 + $0x3c8] ss:$12 sps:$4 sm:$0xff]  }
  0x18   :  { %3083 = vmatprep.subr.bf16.mxu0 %v6486_v29  ;;  %5870 = vmatprep.subr.bf16.mxu1 %v6488_v30  ;;  %v6536_v17 = vld [vmem:[%s10695_s1 + $0x180] ss:$12 sps:$4 sm:$0xff]   ;;  %v6540_v19 = vld [vmem:[%s10695_s1 + $0x308] ss:$12 sps:$4 sm:$0xff]   ;;  %v6541_v23 = vld [vmem:[%s10695_s1 + $0x198] ss:$12 sps:$4 sm:$0xff]  }
  0x19   :  { %v6543_v20 = vld [vmem:[%s10695_s1 + $0x19c] ss:$12 sps:$4 sm:$0xff]   ;;  %v6544_v21 = vld [vmem:[%s10695_s1 + $0x3e0] ss:$12 sps:$4 sm:$0xff]   ;;  %v6549_v27 = vld [vmem:[%s10695_s1 + $0x3f8] ss:$12 sps:$4 sm:$0xff]  }
  0x1a   :  { %v6545_v24 = vld [vmem:[%s10695_s1 + $0x320] ss:$12 sps:$4 sm:$0xff]   ;;  %v6546_v28 = vld [vmem:[%s10695_s1 + $0x1b0] ss:$12 sps:$4 sm:$0xff]   ;;  %v6550_v29 = vld [vmem:[%s10695_s1 + $0x338] ss:$12 sps:$4 sm:$0xff]  }
  0x1b   :  { %3084 = vmatpush1.bf16.msra.mxu0 %v6489_v32  ;;  %5871 = vmatpush3.bf16.msra.mxu1 %v6490_v33  ;;  %v6548_v26 = vld [vmem:[%s10695_s1 + $0x1b4] ss:$12 sps:$4 sm:$0xff]   ;;  %v6553_v30 = vld [vmem:[%s10695_s1 + $0x1cc] ss:$12 sps:$4 sm:$0xff]   ;;  %v6554_v32 = vld [vmem:[%s10695_s1 + $0x410] ss:$12 sps:$4 sm:$0xff]  }
  0x1c   :  { %3085 = vmatprep.subr.bf16.mxu0 %v6491_v34  ;;  %5872 = vmatprep.subr.bf16.mxu1 %v6493_v35  ;;  %v6551_v33 = vld [vmem:[%s10695_s1 + $0x1c8] ss:$12 sps:$4 sm:$0xff]   ;;  %v6555_v34 = vld [vmem:[%s10695_s1 + $0x350] ss:$12 sps:$4 sm:$0xff]   ;;  %v6564_v40 = vld [vmem:[%s10695_s1 + $0x440] ss:$12 sps:$4 sm:$0xff]  }
  0x1d   :  { %v6558_v35 = vld [vmem:[%s10695_s1 + $0x1e4] ss:$12 sps:$4 sm:$0xff]   ;;  %v6559_v36 = vld [vmem:[%s10695_s1 + $0x428] ss:$12 sps:$4 sm:$0xff]  }
  0x1e   :  { %v6560_v38 = vld [vmem:[%s10695_s1 + $0x368] ss:$12 sps:$4 sm:$0xff]   ;;  %v6611_v16 = vld [vmem:[%s10695_s1 + $0x518] ss:$12 sps:$4 sm:$0xff]  }
  0x1f   :  { %3086 = vmatpush1.bf16.msra.mxu0 %v6494_v37  ;;  %5873 = vmatpush3.bf16.msra.mxu1 %v6495_v39  ;;  %v6556_v37 = vld [vmem:[%s10695_s1 + $0x1e0] ss:$12 sps:$4 sm:$0xff]   ;;  %v6563_v39 = vld [vmem:[%s10695_s1 + $0x1fc] ss:$12 sps:$4 sm:$0xff]  }
  0x20   :  { %3087 = vmatprep.subr.bf16.mxu0 %v6496_v41  ;;  %5880 = vmatprep.subr.bf16.mxu1 %v6498_v42  ;;  %v6561_v41 = vld [vmem:[%s10695_s1 + $0x1f8] ss:$12 sps:$4 sm:$0xff]   ;;  %v6565_v42 = vld [vmem:[%s10695_s1 + $0x380] ss:$12 sps:$4 sm:$0xff]   ;;  %v6600_v6 = vld [vmem:[%s10695_s1 + $0x5a8] ss:$12 sps:$4 sm:$0xff]  }
  0x21   :  { %v6568_v43 = vld [vmem:[%s10695_s1 + $0x214] ss:$12 sps:$4 sm:$0xff]  }
  0x22   :  { %3473 = vmatmul.mubr.bf16.vlgmr.msra.gmra.mrb[0].mxu1 %v7562_v44 }
  0x23   :  { %3088 = vmatpush1.bf16.msra.mxu0 %v6499_v45  ;;  %5881 = vmatpush3.bf16.msra.mxu1 %v6500_v46  ;;  %v6566_v45 = vld [vmem:[%s10695_s1 + $0x210] ss:$12 sps:$4 sm:$0xff]   ;;  %v6570_v46 = vld [vmem:[%s10695_s1 + $0x398] ss:$12 sps:$4 sm:$0xff]  }
  0x24   :  { %3089 = vmatprep.subr.bf16.mxu0 %v6501_v47  ;;  %5882 = vmatprep.subr.bf16.mxu1 %v6503_v48  ;;  %v6573_v47 = vld [vmem:[%s10695_s1 + $0x22c] ss:$12 sps:$4 sm:$0xff]   ;;  %v6574_v48 = vld [vmem:[%s10695_s1 + $0x470] ss:$12 sps:$4 sm:$0xff]  }
  0x25   :  { %3512 = vmatprep.mubr.bf16.mxu1 %v7576_v49 }
  0x27   :  { %3090 = vmatpush1.bf16.msra.mxu0 %v6504_v50  ;;  %5883 = vmatpush3.bf16.msra.mxu1 %v6505_v51  ;;  %v6575_v50 = vld [vmem:[%s10695_s1 + $0x3b0] ss:$12 sps:$4 sm:$0xff]  }
  0x28   :  { %3091 = vmatprep.subr.bf16.mxu0 %v6506_v52  ;;  %5884 = vmatprep.subr.bf16.mxu1 %v6508_v53  ;;  %v6579_v51 = vld [vmem:[%s10695_s1 + $0x244] ss:$12 sps:$4 sm:$0xff]   ;;  %v6580_v52 = vld [vmem:[%s10695_s1 + $0x548] ss:$12 sps:$4 sm:$0xff]   ;;  %v6577_v53 = vld [vmem:[%s10695_s1 + $0x240] ss:$12 sps:$4 sm:$0xff]  }
  0x2b   :  { %3092 = vmatpush1.bf16.msra.mxu0 %v6509_v54  ;;  %5885 = vmatpush3.bf16.msra.mxu1 %v6510_v55  ;;  %v7783_v54 = vrot.slane %v7655_v11, %v7527_v31  ;;  %v6581_v55 = vld [vmem:[%s10695_s1 + $0x488] ss:$12 sps:$4 sm:$0xff]   ;;  %v6602_v11 = vld [vmem:[%s10695_s1 + $0x2b8] ss:$12 sps:$4 sm:$0xff]  }
  0x2c   :  { %3093 = vmatprep.subr.bf16.mxu0 %v6511_v56  ;;  %5886 = vmatprep.subr.bf16.mxu1 %v6513_v57  ;;  %v6584_v56 = vld [vmem:[%s10695_s1 + $0x25c] ss:$12 sps:$4 sm:$0xff]   ;;  %v6585_v57 = vld [vmem:[%s10695_s1 + $0x560] ss:$12 sps:$4 sm:$0xff]  }
  0x2f   :  { %3094 = vmatpush1.bf16.msra.mxu0 %v6514_v58  ;;  %5887 = vmatpush3.bf16.msra.mxu1 %v6515_v59  ;;  %v7796_v58 = vcombine.high %v7688_v22, %v7688_v22  ;;  %v6582_v59 = vld [vmem:[%s10695_s1 + $0x258] ss:$12 sps:$4 sm:$0xff]  }
  0x30   :  { %3095 = vmatprep.subr.bf16.mxu0 %v6516_v60  ;;  %5888 = vmatprep.subr.bf16.mxu1 %v6518_v61  ;;  %v6586_v60 = vld [vmem:[%s10695_s1 + $0x4a0] ss:$12 sps:$4 sm:$0xff]  }
  0x31   :  { %v6589_v61 = vld [vmem:[%s10695_s1 + $0x274] ss:$12 sps:$4 sm:$0xff]  }
  0x33   :  { %3096 = vmatpush1.bf16.msra.mxu0 %v6519_v62  ;;  %5889 = vmatpush3.bf16.msra.mxu1 %v6520_v63  ;;  %v6590_v62 = vld [vmem:[%s10695_s1 + $0x578] ss:$12 sps:$4 sm:$0xff]   ;;  %v6587_v63 = vld [vmem:[%s10695_s1 + $0x270] ss:$12 sps:$4 sm:$0xff]  }
  0x34   :  { %3097 = vmatprep.subr.bf16.mxu0 %v6521_v0  ;;  %5890 = vmatprep.subr.bf16.mxu1 %v6523_v1  ;;  %v6591_v0 = vld [vmem:[%s10695_s1 + $0x4b8] ss:$12 sps:$4 sm:$0xff]  }
  0x35   :  { %v6594_v1 = vld [vmem:[%s10695_s1 + $0x28c] ss:$12 sps:$4 sm:$0xff]  }
  0x37   :  { %3098 = vmatpush1.bf16.msra.mxu0 %v6524_v2  ;;  %5891 = vmatpush3.bf16.msra.mxu1 %v6525_v3  ;;  %v6595_v2 = vld [vmem:[%s10695_s1 + $0x590] ss:$12 sps:$4 sm:$0xff]   ;;  %v6592_v3 = vld [vmem:[%s10695_s1 + $0x288] ss:$12 sps:$4 sm:$0xff]  }
  0x38   :  { %3099 = vmatprep.subr.bf16.mxu0 %v6526_v4  ;;  %5892 = vmatprep.subr.bf16.mxu1 %v6528_v5  ;;  %v6596_v4 = vld [vmem:[%s10695_s1 + $0x4d0] ss:$12 sps:$4 sm:$0xff]  }
  0x39   :  { %v6599_v5 = vld [vmem:[%s10695_s1 + $0x2a4] ss:$12 sps:$4 sm:$0xff]  }
  0x3b   :  { %3100 = vmatpush1.bf16.msra.mxu0 %v6529_v7  ;;  %5893 = vmatpush3.bf16.msra.mxu1 %v6530_v8  ;;  %v6597_v7 = vld [vmem:[%s10695_s1 + $0x2a0] ss:$12 sps:$4 sm:$0xff]   ;;  %v6601_v8 = vld [vmem:[%s10695_s1 + $0x4e8] ss:$12 sps:$4 sm:$0xff]  }
  0x3c   :  { %3101 = vmatprep.subr.bf16.mxu0 %v6531_v9  ;;  %5894 = vmatprep.subr.bf16.mxu1 %v6533_v10  ;;  %v6604_v9 = vld [vmem:[%s10695_s1 + $0x2bc] ss:$12 sps:$4 sm:$0xff]   ;;  %v6605_v10 = vld [vmem:[%s10695_s1 + $0x5c0] ss:$12 sps:$4 sm:$0xff]  }
  0x3f   :  { %3102 = vmatpush1.bf16.msra.mxu0 %v6534_v12  ;;  %5895 = vmatpush3.bf16.msra.mxu1 %v6535_v13  ;;  %v6606_v12 = vld [vmem:[%s10695_s1 + $0x500] ss:$12 sps:$4 sm:$0xff]  }
  0x40   :  { %3112 = vmatprep.subr.bf16.mxu0 %v6538_v14  ;;  %5902 = vmatprep.subr.bf16.mxu1 %v6539_v15  ;;  %v6609_v13 = vld [vmem:[%s10695_s1 + $0x2d4] ss:$12 sps:$4 sm:$0xff]   ;;  %v6610_v14 = vld [vmem:[%s10695_s1 + $0x5d8] ss:$12 sps:$4 sm:$0xff]   ;;  %v6607_v15 = vld [vmem:[%s10695_s1 + $0x2d0] ss:$12 sps:$4 sm:$0xff]  }
  0x42   :  { %3104 = vmatmul.mubr.bf16.vlgmr.msra.gmra.mrb[0].mxu0 %v7562_v44  ;;  %3513 = vmatmul.mubr.bf16.vlgmr.msra.gmra.mrb[4].mxu1 %v7676_v18  ;;  %v6569_v44 = vld [vmem:[%s10695_s1 + $0x458] ss:$12 sps:$4 sm:$0xff]  }
  0x43   :  { %3113 = vmatpush1.bf16.msra.mxu0 %v6536_v17  ;;  %5903 = vmatpush3.bf16.msra.mxu1 %v6540_v19  ;;  %v6614_v17 = vld [vmem:[%s10695_s1 + $0x2ec] ss:$12 sps:$4 sm:$0xff]   ;;  %v6615_v19 = vld [vmem:[%s10695_s1 + $0x5f0] ss:$12 sps:$4 sm:$0xff]  }
  0x44   :  { %3114 = vmatprep.subr.bf16.mxu0 %v6543_v20  ;;  %5904 = vmatprep.subr.bf16.mxu1 %v6544_v21  ;;  %v6612_v20 = vld [vmem:[%s10695_s1 + $0x2e8] ss:$12 sps:$4 sm:$0xff]   ;;  %v6616_v21 = vld [vmem:[%s10695_s1 + $0x530] ss:$12 sps:$4 sm:$0xff]  }
  0x45   :  { %3552 = vmatprep.mubr.bf16.mxu1 %v7688_v22  ;;  %3144 = vmatprep.mubr.bf16.mxu0 %v7576_v49  ;;  %v6571_v49 = vld [vmem:[%s10695_s1 + $0x228] ss:$12 sps:$4 sm:$0xff]  }
  0x47   :  { %3115 = vmatpush1.bf16.msra.mxu0 %v6541_v23  ;;  %5905 = vmatpush3.bf16.msra.mxu1 %v6545_v24  ;;  %v6619_v23 = vld [vmem:[%s10695_s1 + $0x304] ss:$12 sps:$4 sm:$0xff]   ;;  %v6620_v24 = vld [vmem:[%s10695_s1 + $0x6c8] ss:$12 sps:$4 sm:$0xff]  }
  0x48   :  { %3116 = vmatprep.subr.bf16.mxu0 %v6548_v26  ;;  %5906 = vmatprep.subr.bf16.mxu1 %v6549_v27  ;;  %v6617_v26 = vld [vmem:[%s10695_s1 + $0x300] ss:$12 sps:$4 sm:$0xff]   ;;  %v7889_v27 = vcombine.high %v7783_v54, %v7783_v54 }
  0x4b   :  { %3117 = vmatpush1.bf16.msra.mxu0 %v6546_v28  ;;  %5907 = vmatpush3.bf16.msra.mxu1 %v6550_v29  ;;  %v6621_v28 = vld [vmem:[%s10695_s1 + $0x608] ss:$12 sps:$4 sm:$0xff]  }
  0x4c   :  { %3118 = vmatprep.subr.bf16.mxu0 %v6553_v30  ;;  %5908 = vmatprep.subr.bf16.mxu1 %v6554_v32  ;;  %v6624_v29 = vld [vmem:[%s10695_s1 + $0x31c] ss:$12 sps:$4 sm:$0xff]   ;;  %v6625_v30 = vld [vmem:[%s10695_s1 + $0x6e0] ss:$12 sps:$4 sm:$0xff]   ;;  %v6622_v32 = vld [vmem:[%s10695_s1 + $0x318] ss:$12 sps:$4 sm:$0xff]  }
  0x4f   :  { %3119 = vmatpush1.bf16.msra.mxu0 %v6551_v33  ;;  %5909 = vmatpush3.bf16.msra.mxu1 %v6555_v34  ;;  %v6626_v33 = vld [vmem:[%s10695_s1 + $0x620] ss:$12 sps:$4 sm:$0xff]  }
  0x50   :  { %3120 = vmatprep.subr.bf16.mxu0 %v6558_v35  ;;  %5910 = vmatprep.subr.bf16.mxu1 %v6559_v36  ;;  %v6629_v34 = vld [vmem:[%s10695_s1 + $0x334] ss:$12 sps:$4 sm:$0xff]   ;;  %v6630_v35 = vld [vmem:[%s10695_s1 + $0x6f8] ss:$12 sps:$4 sm:$0xff]  }
  0x53   :  { %3121 = vmatpush1.bf16.msra.mxu0 %v6556_v37  ;;  %5911 = vmatpush3.bf16.msra.mxu1 %v6560_v38  ;;  %v6627_v37 = vld [vmem:[%s10695_s1 + $0x330] ss:$12 sps:$4 sm:$0xff]   ;;  %v6631_v38 = vld [vmem:[%s10695_s1 + $0x638] ss:$12 sps:$4 sm:$0xff]  }
  0x54   :  { %3122 = vmatprep.subr.bf16.mxu0 %v6563_v39  ;;  %5912 = vmatprep.subr.bf16.mxu1 %v6564_v40  ;;  %v6634_v40 = vld [vmem:[%s10695_s1 + $0x34c] ss:$12 sps:$4 sm:$0xff]  }
  0x57   :  { %3123 = vmatpush1.bf16.msra.mxu0 %v6561_v41  ;;  %5913 = vmatpush3.bf16.msra.mxu1 %v6565_v42  ;;  %v6632_v42 = vld [vmem:[%s10695_s1 + $0x348] ss:$12 sps:$4 sm:$0xff]  }
  0x58   :  { %3124 = vmatprep.subr.bf16.mxu0 %v6568_v43  ;;  %5914 = vmatprep.subr.bf16.mxu1 %v6569_v44  ;;  %v6636_v43 = vld [vmem:[%s10695_s1 + $0x650] ss:$12 sps:$4 sm:$0xff]  }
  0x59   :  { %v6639_v44 = vld [vmem:[%s10695_s1 + $0x364] ss:$12 sps:$4 sm:$0xff]  }
  0x5b   :  { %3125 = vmatpush1.bf16.msra.mxu0 %v6566_v45  ;;  %5915 = vmatpush3.bf16.msra.mxu1 %v6570_v46  ;;  %v6640_v45 = vld [vmem:[%s10695_s1 + $0x728] ss:$12 sps:$4 sm:$0xff]   ;;  %v6637_v46 = vld [vmem:[%s10695_s1 + $0x360] ss:$12 sps:$4 sm:$0xff]  }
  0x5c   :  { %3126 = vmatprep.subr.bf16.mxu0 %v6573_v47  ;;  %5916 = vmatprep.subr.bf16.mxu1 %v6574_v48  ;;  %v6641_v47 = vld [vmem:[%s10695_s1 + $0x668] ss:$12 sps:$4 sm:$0xff]  }
  0x5d   :  { %v6644_v48 = vld [vmem:[%s10695_s1 + $0x37c] ss:$12 sps:$4 sm:$0xff]  }
  0x5f   :  { %3127 = vmatpush1.bf16.msra.mxu0 %v6571_v49  ;;  %5917 = vmatpush3.bf16.msra.mxu1 %v6575_v50  ;;  %v6645_v49 = vld [vmem:[%s10695_s1 + $0x740] ss:$12 sps:$4 sm:$0xff]   ;;  %v6642_v50 = vld [vmem:[%s10695_s1 + $0x378] ss:$12 sps:$4 sm:$0xff]  }
  0x60   :  { %3128 = vmatprep.subr.bf16.mxu0 %v6579_v51  ;;  %5924 = vmatprep.subr.bf16.mxu1 %v6580_v52  ;;  %v6646_v51 = vld [vmem:[%s10695_s1 + $0x680] ss:$12 sps:$4 sm:$0xff]  }
  0x61   :  { %v6649_v52 = vld [vmem:[%s10695_s1 + $0x394] ss:$12 sps:$4 sm:$0xff]  }
  0x62   :  { %3553 = vmatmul.mubr.bf16.vlgmr.msra.gmra.mrb[8].mxu1 %v7783_v54 }
  0x63   :  { %3129 = vmatpush1.bf16.msra.mxu0 %v6577_v53  ;;  %5925 = vmatpush3.bf16.msra.mxu1 %v6581_v55  ;;  %v6650_v53 = vld [vmem:[%s10695_s1 + $0x758] ss:$12 sps:$4 sm:$0xff]   ;;  %v6647_v55 = vld [vmem:[%s10695_s1 + $0x390] ss:$12 sps:$4 sm:$0xff]  }
  0x64   :  { %3130 = vmatprep.subr.bf16.mxu0 %v6584_v56  ;;  %5926 = vmatprep.subr.bf16.mxu1 %v6585_v57  ;;  %v6651_v56 = vld [vmem:[%s10695_s1 + $0x698] ss:$12 sps:$4 sm:$0xff]  }
  0x65   :  { %3592 = vmatprep.mubr.bf16.mxu1 %v7796_v58  ;;  %v6654_v57 = vld [vmem:[%s10695_s1 + $0x3ac] ss:$12 sps:$4 sm:$0xff]  }
  0x67   :  { %3131 = vmatpush1.bf16.msra.mxu0 %v6582_v59  ;;  %5927 = vmatpush3.bf16.msra.mxu1 %v6586_v60  ;;  %v6655_v59 = vld [vmem:[%s10695_s1 + $0x770] ss:$12 sps:$4 sm:$0xff]   ;;  %v6652_v60 = vld [vmem:[%s10695_s1 + $0x3a8] ss:$12 sps:$4 sm:$0xff]  }
  0x68   :  { %3132 = vmatprep.subr.bf16.mxu0 %v6589_v61  ;;  %5928 = vmatprep.subr.bf16.mxu1 %v6590_v62  ;;  %v6656_v61 = vld [vmem:[%s10695_s1 + $0x6b0] ss:$12 sps:$4 sm:$0xff]  }
  0x69   :  { %v6659_v62 = vld [vmem:[%s10695_s1 + $0x3c4] ss:$12 sps:$4 sm:$0xff]  }
  0x6b   :  { %3133 = vmatpush1.bf16.msra.mxu0 %v6587_v63  ;;  %5929 = vmatpush3.bf16.msra.mxu1 %v6591_v0  ;;  %v6660_v63 = vld [vmem:[%s10695_s1 + $0x848] ss:$12 sps:$4 sm:$0xff]   ;;  %v6657_v0 = vld [vmem:[%s10695_s1 + $0x3c0] ss:$12 sps:$4 sm:$0xff]  }
  0x6c   :  { %3134 = vmatprep.subr.bf16.mxu0 %v6594_v1  ;;  %5930 = vmatprep.subr.bf16.mxu1 %v6595_v2  ;;  %v6661_v2 = vld [vmem:[%s10695_s1 + $0x788] ss:$12 sps:$4 sm:$0xff]  }
  0x6f   :  { %3135 = vmatpush1.bf16.msra.mxu0 %v6592_v3  ;;  %5931 = vmatpush3.bf16.msra.mxu1 %v6596_v4  ;;  %v6664_v3 = vld [vmem:[%s10695_s1 + $0x3dc] ss:$12 sps:$4 sm:$0xff]   ;;  %v6665_v4 = vld [vmem:[%s10695_s1 + $0x860] ss:$12 sps:$4 sm:$0xff]  }
  0x70   :  { %3136 = vmatprep.subr.bf16.mxu0 %v6599_v5  ;;  %5932 = vmatprep.subr.bf16.mxu1 %v6600_v6  ;;  %v6662_v6 = vld [vmem:[%s10695_s1 + $0x3d8] ss:$12 sps:$4 sm:$0xff]  }
  0x73   :  { %3137 = vmatpush1.bf16.msra.mxu0 %v6597_v7  ;;  %5933 = vmatpush3.bf16.msra.mxu1 %v6601_v8  ;;  %v6666_v7 = vld [vmem:[%s10695_s1 + $0x7a0] ss:$12 sps:$4 sm:$0xff]  }
  0x74   :  { %3138 = vmatprep.subr.bf16.mxu0 %v6604_v9  ;;  %5934 = vmatprep.subr.bf16.mxu1 %v6605_v10  ;;  %v6669_v8 = vld [vmem:[%s10695_s1 + $0x3f4] ss:$12 sps:$4 sm:$0xff]   ;;  %v6670_v9 = vld [vmem:[%s10695_s1 + $0x878] ss:$12 sps:$4 sm:$0xff]   ;;  %v6667_v10 = vld [vmem:[%s10695_s1 + $0x3f0] ss:$12 sps:$4 sm:$0xff]  }
  0x77   :  { %3139 = vmatpush1.bf16.msra.mxu0 %v6602_v11  ;;  %5935 = vmatpush3.bf16.msra.mxu1 %v6606_v12  ;;  %v6671_v11 = vld [vmem:[%s10695_s1 + $0x7b8] ss:$12 sps:$4 sm:$0xff]  }
  0x78   :  { %3140 = vmatprep.subr.bf16.mxu0 %v6609_v13  ;;  %5936 = vmatprep.subr.bf16.mxu1 %v6610_v14  ;;  %v6674_v12 = vld [vmem:[%s10695_s1 + $0x40c] ss:$12 sps:$4 sm:$0xff]   ;;  %v6675_v13 = vld [vmem:[%s10695_s1 + $0x890] ss:$12 sps:$4 sm:$0xff]   ;;  %v6672_v14 = vld [vmem:[%s10695_s1 + $0x408] ss:$12 sps:$4 sm:$0xff]  }
  0x7b   :  { %3141 = vmatpush1.bf16.msra.mxu0 %v6607_v15  ;;  %5937 = vmatpush3.bf16.msra.mxu1 %v6611_v16  ;;  %v6676_v15 = vld [vmem:[%s10695_s1 + $0x7d0] ss:$12 sps:$4 sm:$0xff]  }
  0x7c   :  { %3142 = vmatprep.subr.bf16.mxu0 %v6614_v17  ;;  %5938 = vmatprep.subr.bf16.mxu1 %v6615_v19  ;;  %v6679_v16 = vld [vmem:[%s10695_s1 + $0x424] ss:$12 sps:$4 sm:$0xff]   ;;  %v6680_v17 = vld [vmem:[%s10695_s1 + $0x8a8] ss:$12 sps:$4 sm:$0xff]   ;;  %v6677_v19 = vld [vmem:[%s10695_s1 + $0x420] ss:$12 sps:$4 sm:$0xff]  }
  0x7f   :  { %3143 = vmatpush1.bf16.msra.mxu0 %v6612_v20  ;;  %5939 = vmatpush3.bf16.msra.mxu1 %v6616_v21  ;;  %v6681_v20 = vld [vmem:[%s10695_s1 + $0x7e8] ss:$12 sps:$4 sm:$0xff]  }
  0x80   :  { %3153 = vmatprep.subr.bf16.mxu0 %v6619_v23  ;;  %5946 = vmatprep.subr.bf16.mxu1 %v6620_v24  ;;  %v6684_v21 = vld [vmem:[%s10695_s1 + $0x43c] ss:$12 sps:$4 sm:$0xff]   ;;  %v6685_v23 = vld [vmem:[%s10695_s1 + $0x8c0] ss:$12 sps:$4 sm:$0xff]   ;;  %v6682_v24 = vld [vmem:[%s10695_s1 + $0x438] ss:$12 sps:$4 sm:$0xff]  }
  0x82   :  { %3145 = vmatmul.mubr.bf16.vlgmr.msra.gmra.mrb[0].mxu0 %v7676_v18  ;;  %3593 = vmatmul.mubr.bf16.vlgmr.msra.gmra.mrb[12].mxu1 %v7889_v27  ;;  %v7914_v18 = vld [vmem:[%s10696_s0 + $0x8] sm:$0xff] }
  0x83   :  { %3154 = vmatpush1.bf16.msra.mxu0 %v6617_v26  ;;  %5947 = vmatpush3.bf16.msra.mxu1 %v6621_v28  ;;  %v685_v36 = vrot.slane %v7914_v18, %v7527_v31  ;;  %v6686_v26 = vld [vmem:[%s10695_s1 + $0x800] ss:$12 sps:$4 sm:$0xff]  }
  0x84   :  { %3155 = vmatprep.subr.bf16.mxu0 %v6624_v29  ;;  %5948 = vmatprep.subr.bf16.mxu1 %v6625_v30  ;;  %v6689_v28 = vld [vmem:[%s10695_s1 + $0x454] ss:$12 sps:$4 sm:$0xff]   ;;  %v6690_v29 = vld [vmem:[%s10695_s1 + $0x8d8] ss:$12 sps:$4 sm:$0xff]   ;;  %v678_v30 = vcombine.high %v7914_v18, %v7914_v18  ;;  %v6695_v18 = vld [vmem:[%s10695_s1 + $0x8f0] ss:$12 sps:$4 sm:$0xff]  }
  0x85   :  { %3185 = vmatprep.mubr.bf16.mxu0 %v7688_v22  ;;  %v693_v39 = vcombine.high %v685_v36, %v685_v36  ;;  %v6635_v22 = vld [vmem:[%s10695_s1 + $0x710] ss:$12 sps:$4 sm:$0xff]   ;;  %v8002_v1 = vrot.slane %v685_v36, %v7527_v31  ;;  %v6692_v36 = vld [vmem:[%s10695_s1 + $0x468] ss:$12 sps:$4 sm:$0xff]  }
  0x87   :  { %3156 = vmatpush1.bf16.msra.mxu0 %v6622_v32  ;;  %5949 = vmatpush3.bf16.msra.mxu1 %v6626_v33  ;;  %v7935_v41 = vrot.slane %v693_v39, %v7527_v31  ;;  %v6687_v32 = vld [vmem:[%s10695_s1 + $0x450] ss:$12 sps:$4 sm:$0xff]   ;;  %v6691_v33 = vld [vmem:[%s10695_s1 + $0x818] ss:$12 sps:$4 sm:$0xff]   ;;  %v6700_v39 = vld [vmem:[%s10695_s1 + $0x9c8] ss:$12 sps:$4 sm:$0xff]  }
  0x88   :  { %3157 = vmatprep.subr.bf16.mxu0 %v6629_v34  ;;  %5950 = vmatprep.subr.bf16.mxu1 %v6630_v35  ;;  %v6694_v34 = vld [vmem:[%s10695_s1 + $0x46c] ss:$12 sps:$4 sm:$0xff]   ;;  %v8094_v35 = vrot.slane %v678_v30, %v7527_v31  ;;  %v6756_v30 = vld [vmem:[%s10695_s1 + $0xb90] ss:$12 sps:$4 sm:$0xff]  }
  0x89   :  { %3632 = vmatprep.mubr.bf16.mxu1 %v7935_v41  ;;  %v8015_v5 = vcombine.high %v7935_v41, %v7935_v41 }
  0x8b   :  { %3158 = vmatpush1.bf16.msra.mxu0 %v6627_v37  ;;  %5951 = vmatpush3.bf16.msra.mxu1 %v6631_v38  ;;  %v6696_v37 = vld [vmem:[%s10695_s1 + $0x830] ss:$12 sps:$4 sm:$0xff]  }
  0x8c   :  { %3159 = vmatprep.subr.bf16.mxu0 %v6634_v40  ;;  %5952 = vmatprep.subr.bf16.mxu1 %v6635_v22  ;;  %v6699_v38 = vld [vmem:[%s10695_s1 + $0x484] ss:$12 sps:$4 sm:$0xff]   ;;  %v694_v40 = vcombine.high %v8094_v35, %v8094_v35  ;;  %v6697_v22 = vld [vmem:[%s10695_s1 + $0x480] ss:$12 sps:$4 sm:$0xff]  }
  0x8f   :  { %3160 = vmatpush1.bf16.msra.mxu0 %v6632_v42  ;;  %5953 = vmatpush3.bf16.msra.mxu1 %v6636_v43  ;;  %v8115_v42 = vcombine.high %v8002_v1, %v8002_v1  ;;  %v6701_v43 = vld [vmem:[%s10695_s1 + $0x908] ss:$12 sps:$4 sm:$0xff]  }
  0x90   :  { %3161 = vmatprep.subr.bf16.mxu0 %v6639_v44  ;;  %5954 = vmatprep.subr.bf16.mxu1 %v6640_v45  ;;  %v6704_v44 = vld [vmem:[%s10695_s1 + $0x49c] ss:$12 sps:$4 sm:$0xff]   ;;  %v6705_v45 = vld [vmem:[%s10695_s1 + $0x9e0] ss:$12 sps:$4 sm:$0xff]  }
  0x93   :  { %3162 = vmatpush1.bf16.msra.mxu0 %v6637_v46  ;;  %5955 = vmatpush3.bf16.msra.mxu1 %v6641_v47  ;;  %v8127_v46 = vrot.slane %v694_v40, %v7527_v31  ;;  %v6702_v47 = vld [vmem:[%s10695_s1 + $0x498] ss:$12 sps:$4 sm:$0xff]   ;;  %v6767_v40 = vld [vmem:[%s10695_s1 + $0xb00] ss:$12 sps:$4 sm:$0xff]  }
  0x94   :  { %3163 = vmatprep.subr.bf16.mxu0 %v6644_v48  ;;  %5956 = vmatprep.subr.bf16.mxu1 %v6645_v49  ;;  %v6706_v48 = vld [vmem:[%s10695_s1 + $0x920] ss:$12 sps:$4 sm:$0xff]  }
  0x95   :  { %v6709_v49 = vld [vmem:[%s10695_s1 + $0x4b4] ss:$12 sps:$4 sm:$0xff]  }
  0x97   :  { %3164 = vmatpush1.bf16.msra.mxu0 %v6642_v50  ;;  %5957 = vmatpush3.bf16.msra.mxu1 %v6646_v51  ;;  %v6707_v50 = vld [vmem:[%s10695_s1 + $0x4b0] ss:$12 sps:$4 sm:$0xff]   ;;  %v6711_v51 = vld [vmem:[%s10695_s1 + $0x938] ss:$12 sps:$4 sm:$0xff]  }
  0x98   :  { %3165 = vmatprep.subr.bf16.mxu0 %v6649_v52  ;;  %5958 = vmatprep.subr.bf16.mxu1 %v6650_v53  ;;  %v6714_v52 = vld [vmem:[%s10695_s1 + $0x4cc] ss:$12 sps:$4 sm:$0xff]   ;;  %v6712_v53 = vld [vmem:[%s10695_s1 + $0x4c8] ss:$12 sps:$4 sm:$0xff]  }
  0x9b   :  { %3166 = vmatpush1.bf16.msra.mxu0 %v6647_v55  ;;  %5959 = vmatpush3.bf16.msra.mxu1 %v6651_v56  ;;  %v6716_v55 = vld [vmem:[%s10695_s1 + $0x950] ss:$12 sps:$4 sm:$0xff]  }
  0x9c   :  { %3167 = vmatprep.subr.bf16.mxu0 %v6654_v57  ;;  %5960 = vmatprep.subr.bf16.mxu1 %v6655_v59  ;;  %v6719_v56 = vld [vmem:[%s10695_s1 + $0x4e4] ss:$12 sps:$4 sm:$0xff]   ;;  %v6720_v57 = vld [vmem:[%s10695_s1 + $0xa28] ss:$12 sps:$4 sm:$0xff]   ;;  %v6717_v59 = vld [vmem:[%s10695_s1 + $0x4e0] ss:$12 sps:$4 sm:$0xff]  }
  0x9f   :  { %3168 = vmatpush1.bf16.msra.mxu0 %v6652_v60  ;;  %5961 = vmatpush3.bf16.msra.mxu1 %v6656_v61  ;;  %v6721_v60 = vld [vmem:[%s10695_s1 + $0x968] ss:$12 sps:$4 sm:$0xff]  }
  0xa0   :  { %3169 = vmatprep.subr.bf16.mxu0 %v6659_v62  ;;  %5968 = vmatprep.subr.bf16.mxu1 %v6660_v63  ;;  %v6724_v61 = vld [vmem:[%s10695_s1 + $0x4fc] ss:$12 sps:$4 sm:$0xff]   ;;  %v6725_v62 = vld [vmem:[%s10695_s1 + $0xa40] ss:$12 sps:$4 sm:$0xff]   ;;  %v6722_v63 = vld [vmem:[%s10695_s1 + $0x4f8] ss:$12 sps:$4 sm:$0xff]  }
  0xa2   :  { %3633 = vmatmul.mubr.bf16.vlgmr.msra.gmra.mrb[16].mxu1 %v8002_v1 }
  0xa3   :  { %3170 = vmatpush1.bf16.msra.mxu0 %v6657_v0  ;;  %5969 = vmatpush3.bf16.msra.mxu1 %v6661_v2  ;;  %v6726_v0 = vld [vmem:[%s10695_s1 + $0x980] ss:$12 sps:$4 sm:$0xff]  }
  0xa4   :  { %3171 = vmatprep.subr.bf16.mxu0 %v6664_v3  ;;  %5970 = vmatprep.subr.bf16.mxu1 %v6665_v4  ;;  %v6729_v2 = vld [vmem:[%s10695_s1 + $0x514] ss:$12 sps:$4 sm:$0xff]   ;;  %v6730_v3 = vld [vmem:[%s10695_s1 + $0xa58] ss:$12 sps:$4 sm:$0xff]   ;;  %v6727_v4 = vld [vmem:[%s10695_s1 + $0x510] ss:$12 sps:$4 sm:$0xff]  }
  0xa5   :  { %3672 = vmatprep.mubr.bf16.mxu1 %v8015_v5 }
  0xa7   :  { %3172 = vmatpush1.bf16.msra.mxu0 %v6662_v6  ;;  %5971 = vmatpush3.bf16.msra.mxu1 %v6666_v7  ;;  %v6731_v6 = vld [vmem:[%s10695_s1 + $0x998] ss:$12 sps:$4 sm:$0xff]  }
  0xa8   :  { %3173 = vmatprep.subr.bf16.mxu0 %v6669_v8  ;;  %5972 = vmatprep.subr.bf16.mxu1 %v6670_v9  ;;  %v6734_v7 = vld [vmem:[%s10695_s1 + $0x52c] ss:$12 sps:$4 sm:$0xff]   ;;  %v6735_v8 = vld [vmem:[%s10695_s1 + $0xa70] ss:$12 sps:$4 sm:$0xff]   ;;  %v6732_v9 = vld [vmem:[%s10695_s1 + $0x528] ss:$12 sps:$4 sm:$0xff]  }
  0xab   :  { %3174 = vmatpush1.bf16.msra.mxu0 %v6667_v10  ;;  %5973 = vmatpush3.bf16.msra.mxu1 %v6671_v11  ;;  %v6736_v10 = vld [vmem:[%s10695_s1 + $0x9b0] ss:$12 sps:$4 sm:$0xff]  }
  0xac   :  { %3175 = vmatprep.subr.bf16.mxu0 %v6674_v12  ;;  %5974 = vmatprep.subr.bf16.mxu1 %v6675_v13  ;;  %v6740_v11 = vld [vmem:[%s10695_s1 + $0x544] ss:$12 sps:$4 sm:$0xff]   ;;  %v6741_v12 = vld [vmem:[%s10695_s1 + $0xb48] ss:$12 sps:$4 sm:$0xff]   ;;  %v6738_v13 = vld [vmem:[%s10695_s1 + $0x540] ss:$12 sps:$4 sm:$0xff]  }
  0xaf   :  { %3176 = vmatpush1.bf16.msra.mxu0 %v6672_v14  ;;  %5975 = vmatpush3.bf16.msra.mxu1 %v6676_v15  ;;  %v8222_v14 = vrot.slane %v8094_v35, %v7527_v31  ;;  %v6742_v15 = vld [vmem:[%s10695_s1 + $0xa88] ss:$12 sps:$4 sm:$0xff]   ;;  %v6758_v35 = vld [vmem:[%s10695_s1 + $0x5a0] ss:$12 sps:$4 sm:$0xff]  }
  0xb0   :  { %3177 = vmatprep.subr.bf16.mxu0 %v6679_v16  ;;  %5976 = vmatprep.subr.bf16.mxu1 %v6680_v17  ;;  %v6745_v16 = vld [vmem:[%s10695_s1 + $0x55c] ss:$12 sps:$4 sm:$0xff]   ;;  %v6746_v17 = vld [vmem:[%s10695_s1 + $0xb60] ss:$12 sps:$4 sm:$0xff]  }
  0xb3   :  { %3178 = vmatpush1.bf16.msra.mxu0 %v6677_v19  ;;  %5977 = vmatpush3.bf16.msra.mxu1 %v6681_v20  ;;  %v8235_v19 = vcombine.high %v8127_v46, %v8127_v46  ;;  %v6743_v20 = vld [vmem:[%s10695_s1 + $0x558] ss:$12 sps:$4 sm:$0xff]  }
  0xb4   :  { %3179 = vmatprep.subr.bf16.mxu0 %v6684_v21  ;;  %5978 = vmatprep.subr.bf16.mxu1 %v6685_v23  ;;  %v6747_v21 = vld [vmem:[%s10695_s1 + $0xaa0] ss:$12 sps:$4 sm:$0xff]  }
  0xb5   :  { %v6750_v23 = vld [vmem:[%s10695_s1 + $0x574] ss:$12 sps:$4 sm:$0xff]  }
  0xb7   :  { %3180 = vmatpush1.bf16.msra.mxu0 %v6682_v24  ;;  %5979 = vmatpush3.bf16.msra.mxu1 %v6686_v26  ;;  %v6751_v24 = vld [vmem:[%s10695_s1 + $0xb78] ss:$12 sps:$4 sm:$0xff]   ;;  %v6748_v26 = vld [vmem:[%s10695_s1 + $0x570] ss:$12 sps:$4 sm:$0xff]  }
  0xb8   :  { %3181 = vmatprep.subr.bf16.mxu0 %v6689_v28  ;;  %5980 = vmatprep.subr.bf16.mxu1 %v6690_v29  ;;  %v6752_v28 = vld [vmem:[%s10695_s1 + $0xab8] ss:$12 sps:$4 sm:$0xff]  }
  0xb9   :  { %v6755_v29 = vld [vmem:[%s10695_s1 + $0x58c] ss:$12 sps:$4 sm:$0xff]  }
  0xbb   :  { %3182 = vmatpush1.bf16.msra.mxu0 %v6687_v32  ;;  %5981 = vmatpush3.bf16.msra.mxu1 %v6691_v33  ;;  %v6753_v32 = vld [vmem:[%s10695_s1 + $0x588] ss:$12 sps:$4 sm:$0xff]   ;;  %v6757_v33 = vld [vmem:[%s10695_s1 + $0xad0] ss:$12 sps:$4 sm:$0xff]  }
  0xbc   :  { %3183 = vmatprep.subr.bf16.mxu0 %v6694_v34  ;;  %5982 = vmatprep.subr.bf16.mxu1 %v6695_v18  ;;  %v6760_v34 = vld [vmem:[%s10695_s1 + $0x5a4] ss:$12 sps:$4 sm:$0xff]   ;;  %v6761_v18 = vld [vmem:[%s10695_s1 + $0xba8] ss:$12 sps:$4 sm:$0xff]  }
  0xbf   :  { %3184 = vmatpush1.bf16.msra.mxu0 %v6692_v36  ;;  %5983 = vmatpush3.bf16.msra.mxu1 %v6696_v37  ;;  %v6762_v36 = vld [vmem:[%s10695_s1 + $0xae8] ss:$12 sps:$4 sm:$0xff]  }
  0xc0   :  { %3194 = vmatprep.subr.bf16.mxu0 %v6699_v38  ;;  %5990 = vmatprep.subr.bf16.mxu1 %v6700_v39  ;;  %v6765_v37 = vld [vmem:[%s10695_s1 + $0x5bc] ss:$12 sps:$4 sm:$0xff]   ;;  %v6766_v38 = vld [vmem:[%s10695_s1 + $0xbc0] ss:$12 sps:$4 sm:$0xff]   ;;  %v6763_v39 = vld [vmem:[%s10695_s1 + $0x5b8] ss:$12 sps:$4 sm:$0xff]  }
  0xc2   :  { %3186 = vmatmul.mubr.bf16.vlgmr.msra.gmra.mrb[0].mxu0 %v7783_v54  ;;  %3673 = vmatmul.mubr.bf16.vlgmr.msra.gmra.mrb[20].mxu1 %v8115_v42  ;;  %v6710_v54 = vld [vmem:[%s10695_s1 + $0x9f8] ss:$12 sps:$4 sm:$0xff]  }
  0xc3   :  { %3195 = vmatpush1.bf16.msra.mxu0 %v6697_v22  ;;  %5991 = vmatpush3.bf16.msra.mxu1 %v6701_v43  ;;  %v6770_v22 = vld [vmem:[%s10695_s1 + $0x5d4] ss:$12 sps:$4 sm:$0xff]   ;;  %v6771_v43 = vld [vmem:[%s10695_s1 + $0xbd8] ss:$12 sps:$4 sm:$0xff]  }
  0xc4   :  { %3196 = vmatprep.subr.bf16.mxu0 %v6704_v44  ;;  %5992 = vmatprep.subr.bf16.mxu1 %v6705_v45  ;;  %v6768_v45 = vld [vmem:[%s10695_s1 + $0x5d0] ss:$12 sps:$4 sm:$0xff]  }
  0xc5   :  { %3712 = vmatprep.mubr.bf16.mxu1 %v8127_v46  ;;  %3226 = vmatprep.mubr.bf16.mxu0 %v7796_v58  ;;  %v6715_v58 = vld [vmem:[%s10695_s1 + $0xa10] ss:$12 sps:$4 sm:$0xff]  }
  0xc7   :  { %3197 = vmatpush1.bf16.msra.mxu0 %v6702_v47  ;;  %5993 = vmatpush3.bf16.msra.mxu1 %v6706_v48  ;;  %v6772_v48 = vld [vmem:[%s10695_s1 + $0xb18] ss:$12 sps:$4 sm:$0xff]  }
  0xc8   :  { %3198 = vmatprep.subr.bf16.mxu0 %v6709_v49  ;;  %5994 = vmatprep.subr.bf16.mxu1 %v6710_v54 }
  0xcb   :  { %3199 = vmatpush1.bf16.msra.mxu0 %v6707_v50  ;;  %5995 = vmatpush3.bf16.msra.mxu1 %v6711_v51  ;;  %v6775_v50 = vld [vmem:[%s10695_s1 + $0x5ec] ss:$12 sps:$4 sm:$0xff]  }
  0xcc   :  { %3200 = vmatprep.subr.bf16.mxu0 %v6714_v52  ;;  %5996 = vmatprep.subr.bf16.mxu1 %v6715_v58  ;;  %v6773_v52 = vld [vmem:[%s10695_s1 + $0x5e8] ss:$12 sps:$4 sm:$0xff]   ;;  %v6776_v58 = vld [vmem:[%s10695_s1 + $0xbf0] ss:$12 sps:$4 sm:$0xff]  }
  0xcf   :  { %3201 = vmatpush1.bf16.msra.mxu0 %v6712_v53  ;;  %5997 = vmatpush3.bf16.msra.mxu1 %v6716_v55  ;;  %v8319_v53 = vld.sshfl [vmem:[%s10696_s0 + $0x10] sm:$0x11 pattern:$0x75316420] }
  0xd0   :  { %3202 = vmatprep.subr.bf16.mxu0 %v6719_v56  ;;  %5998 = vmatprep.subr.bf16.mxu1 %v6720_v57  ;;  %v6777_v55 = vld [vmem:[%s10695_s1 + $0xb30] ss:$12 sps:$4 sm:$0xff]   ;;  %v6781_v57 = vld [vmem:[%s10695_s1 + $0xcc8] ss:$12 sps:$4 sm:$0xff]  }
  0xd1   :  { %v6780_v56 = vld [vmem:[%s10695_s1 + $0x604] ss:$12 sps:$4 sm:$0xff]  }
  0xd3   :  { %3203 = vmatpush1.bf16.msra.mxu0 %v6717_v59  ;;  %5999 = vmatpush3.bf16.msra.mxu1 %v6721_v60  ;;  %v734_v59 = vcombine.high %v8319_v53, %v8319_v53  ;;  %v6778_v60 = vld [vmem:[%s10695_s1 + $0x600] ss:$12 sps:$4 sm:$0xff]  }
  0xd4   :  { %3204 = vmatprep.subr.bf16.mxu0 %v6724_v61  ;;  %6000 = vmatprep.subr.bf16.mxu1 %v6725_v62  ;;  %v8337_v61 = vcombine.high %v8222_v14, %v8222_v14  ;;  %v6782_v62 = vld [vmem:[%s10695_s1 + $0xc08] ss:$12 sps:$4 sm:$0xff]  }
  0xd7   :  { %3205 = vmatpush1.bf16.msra.mxu0 %v6722_v63  ;;  %6001 = vmatpush3.bf16.msra.mxu1 %v6726_v0  ;;  %v6785_v63 = vld [vmem:[%s10695_s1 + $0x61c] ss:$12 sps:$4 sm:$0xff]   ;;  %v6786_v0 = vld [vmem:[%s10695_s1 + $0xce0] ss:$12 sps:$4 sm:$0xff]  }
  0xd8   :  { %3206 = vmatprep.subr.bf16.mxu0 %v6729_v2  ;;  %6002 = vmatprep.subr.bf16.mxu1 %v6730_v3  ;;  %v8349_v2 = vrot.slane %v734_v59, %v7527_v31  ;;  %v6783_v3 = vld [vmem:[%s10695_s1 + $0x618] ss:$12 sps:$4 sm:$0xff]   ;;  %v6824_v59 = vld [vmem:[%s10695_s1 + $0x6f0] ss:$12 sps:$4 sm:$0xff]  }
  0xdb   :  { %3207 = vmatpush1.bf16.msra.mxu0 %v6727_v4  ;;  %6003 = vmatpush3.bf16.msra.mxu1 %v6731_v6  ;;  %v6787_v4 = vld [vmem:[%s10695_s1 + $0xc20] ss:$12 sps:$4 sm:$0xff]  }
  0xdc   :  { %3208 = vmatprep.subr.bf16.mxu0 %v6734_v7  ;;  %6004 = vmatprep.subr.bf16.mxu1 %v6735_v8  ;;  %v6790_v6 = vld [vmem:[%s10695_s1 + $0x634] ss:$12 sps:$4 sm:$0xff]   ;;  %v6788_v7 = vld [vmem:[%s10695_s1 + $0x630] ss:$12 sps:$4 sm:$0xff]   ;;  %v6792_v8 = vld [vmem:[%s10695_s1 + $0xc38] ss:$12 sps:$4 sm:$0xff]  }
  0xdf   :  { %3209 = vmatpush1.bf16.msra.mxu0 %v6732_v9  ;;  %6005 = vmatpush3.bf16.msra.mxu1 %v6736_v10  ;;  %v6795_v9 = vld [vmem:[%s10695_s1 + $0x64c] ss:$12 sps:$4 sm:$0xff]   ;;  %v6793_v10 = vld [vmem:[%s10695_s1 + $0x648] ss:$12 sps:$4 sm:$0xff]  }
  0xe0   :  { %3210 = vmatprep.subr.bf16.mxu0 %v6740_v11  ;;  %6012 = vmatprep.subr.bf16.mxu1 %v6741_v12  ;;  %v6797_v11 = vld [vmem:[%s10695_s1 + $0xc50] ss:$12 sps:$4 sm:$0xff]  }
  0xe1   :  { %v6800_v12 = vld [vmem:[%s10695_s1 + $0x664] ss:$12 sps:$4 sm:$0xff]  }
  0xe2   :  { %3713 = vmatmul.mubr.bf16.vlgmr.msra.gmra.mrb[24].mxu1 %v8222_v14 }
  0xe3   :  { %3211 = vmatpush1.bf16.msra.mxu0 %v6738_v13  ;;  %6013 = vmatpush3.bf16.msra.mxu1 %v6742_v15  ;;  %v6801_v13 = vld [vmem:[%s10695_s1 + $0xd28] ss:$12 sps:$4 sm:$0xff]   ;;  %v6798_v15 = vld [vmem:[%s10695_s1 + $0x660] ss:$12 sps:$4 sm:$0xff]  }
  0xe4   :  { %3212 = vmatprep.subr.bf16.mxu0 %v6745_v16  ;;  %6014 = vmatprep.subr.bf16.mxu1 %v6746_v17  ;;  %v621_v16 = vsub.s32 2, %v7512_v25  ;;  %v6802_v17 = vld [vmem:[%s10695_s1 + $0xc68] ss:$12 sps:$4 sm:$0xff]  }
  0xe5   :  { %3752 = vmatprep.mubr.bf16.mxu1 %v8235_v19 }
  0xe7   :  { %3213 = vmatpush1.bf16.msra.mxu0 %v6743_v20  ;;  %6015 = vmatpush3.bf16.msra.mxu1 %v6747_v21  ;;  %v6805_v20 = vld [vmem:[%s10695_s1 + $0x67c] ss:$12 sps:$4 sm:$0xff]   ;;  %v606_v21 = vld [vmem:[%s10697_s2] sm:$0x7] }
  0xe8   :  { %3214 = vmatprep.subr.bf16.mxu0 %v6750_v23  ;;  %6016 = vmatprep.subr.bf16.mxu1 %v6751_v24  ;;  %v6806_v23 = vld [vmem:[%s10695_s1 + $0xd40] ss:$12 sps:$4 sm:$0xff]   ;;  %v6803_v24 = vld [vmem:[%s10695_s1 + $0x678] ss:$12 sps:$4 sm:$0xff]  }
  0xeb   :  { %3215 = vmatpush1.bf16.msra.mxu0 %v6748_v26  ;;  %6017 = vmatpush3.bf16.msra.mxu1 %v6752_v28  ;;  %v8410_v26 = vrot.slane %v606_v21, %v621_v16  ;;  %v6807_v28 = vld [vmem:[%s10695_s1 + $0xc80] ss:$12 sps:$4 sm:$0xff]  }
  0xec   :  { %3216 = vmatprep.subr.bf16.mxu0 %v6755_v29  ;;  %6018 = vmatprep.subr.bf16.mxu1 %v6756_v30  ;;  %v6810_v29 = vld [vmem:[%s10695_s1 + $0x694] ss:$12 sps:$4 sm:$0xff]   ;;  %v6811_v30 = vld [vmem:[%s10695_s1 + $0xd58] ss:$12 sps:$4 sm:$0xff]  }
  0xed   :  { %10792 = vst [vmem:[#allocation3_spill] sm:$0xff] %v8410_v26  ;;  %v8543_v16 = vld [vmem:[%s10695_s1 + $0x76c] ss:$12 sps:$4 sm:$0xff]  }
  0xef   :  { %3217 = vmatpush1.bf16.msra.mxu0 %v6753_v32  ;;  %6019 = vmatpush3.bf16.msra.mxu1 %v6757_v33  ;;  %v8424_v33 = vld [vmem:[%s10696_s0 + $0x12] sm:$0xff] }
  0xf0   :  { %3218 = vmatprep.subr.bf16.mxu0 %v6760_v34  ;;  %6020 = vmatprep.subr.bf16.mxu1 %v6761_v18  ;;  %v6808_v18 = vld [vmem:[%s10695_s1 + $0x690] ss:$12 sps:$4 sm:$0xff]  }
  0xf3   :  { %3219 = vmatpush1.bf16.msra.mxu0 %v6758_v35  ;;  %6021 = vmatpush3.bf16.msra.mxu1 %v6762_v36 }
  0xf4   :  { %3220 = vmatprep.subr.bf16.mxu0 %v6765_v37  ;;  %6022 = vmatprep.subr.bf16.mxu1 %v6766_v38  ;;  %v6812_v38 = vld [vmem:[%s10695_s1 + $0xc98] ss:$12 sps:$4 sm:$0xff]  }
  0xf5   :  { %v5874_v44 = vpop.f32.mrb[0].mxu1 }
  0xf6   :  { %v5875_v47 = vpop.f32.mrb[1].mxu1 }
  0xf7   :  { %3221 = vmatpush1.bf16.msra.mxu0 %v6763_v39  ;;  %v8305_v49 = vadd.f32 %v5875_v47, %v5874_v44  ;;  %v5877_v54 = vpop.f32.mrb[2].mxu1  ;;  %6023 = vmatpush3.bf16.msra.mxu1 %v6767_v40  ;;  %v6815_v39 = vld [vmem:[%s10695_s1 + $0x6ac] ss:$12 sps:$4 sm:$0xff]   ;;  %v6817_v47 = vld [vmem:[%s10695_s1 + $0xcb0] ss:$12 sps:$4 sm:$0xff]  }
  0xf8   :  { %3222 = vmatprep.subr.bf16.mxu0 %v6770_v22  ;;  %v5878_v51 = vpop.f32.mrb[3].mxu1  ;;  %6024 = vmatprep.subr.bf16.mxu1 %v6771_v43  ;;  %v6816_v22 = vld [vmem:[%s10695_s1 + $0xd70] ss:$12 sps:$4 sm:$0xff]   ;;  %v8442_v43 = vrot.slane %v8424_v33, %v7527_v31 }
  0xf9   :  { %v3475_v35 = vadd.f32 %v8305_v49, %v8410_v26  ;;  %v6818_v49 = vld [vmem:[%s10695_s1 + $0x6c0] ss:$12 sps:$4 sm:$0xff]   ;;  %v6823_v51 = vld [vmem:[%s10695_s1 + $0x6dc] ss:$12 sps:$4 sm:$0xff]  }
  0xfa   :  { %v3825_v54 = vcombine.high %v8442_v43, %v8442_v43 }
  0xfb   :  { %3223 = vmatpush1.bf16.msra.mxu0 %v6768_v45  ;;  %6025 = vmatpush3.bf16.msra.mxu1 %v6772_v48  ;;  %v6813_v45 = vld [vmem:[%s10695_s1 + $0x6a8] ss:$12 sps:$4 sm:$0xff]   ;;  %v6820_v48 = vld [vmem:[%s10695_s1 + $0x6c4] ss:$12 sps:$4 sm:$0xff]  }
  0xfc   :  { %3224 = vmatprep.subr.bf16.mxu0 %v6775_v50  ;;  %6026 = vmatprep.subr.bf16.mxu1 %v6776_v58  ;;  %v8462_v50 = vrot.slane %v8319_v53, %v7527_v31  ;;  %v6821_v58 = vld [vmem:[%s10695_s1 + $0x6d8] ss:$12 sps:$4 sm:$0xff]   ;;  %v7097_v53 = vld [vmem:[%s10695_s1] ss:$12 sps:$4 sm:$0xff]  }
  0xff   :  { %3225 = vmatpush1.bf16.msra.mxu0 %v6773_v52  ;;  %6027 = vmatpush3.bf16.msra.mxu1 %v6777_v55  ;;  %v7096_v52 = vld [vmem:[%s10695_s1 + $0x4] ss:$12 sps:$4 sm:$0xff]   ;;  %v8474_v55 = vrot.slane %v3825_v54, %v7527_v31 }
 0x100   :  { %3235 = vmatprep.subr.bf16.mxu0 %v6780_v56  ;;  %6034 = vmatprep.subr.bf16.mxu1 %v6781_v57  ;;  %v6826_v56 = vld [vmem:[%s10695_s1 + $0x6f4] ss:$12 sps:$4 sm:$0xff]   ;;  %v7098_v57 = vld [vmem:[%s10695_s1 + $0x1c] ss:$12 sps:$4 sm:$0xff]   ;;  %v8641_v54 = vld [vmem:[%s10695_s1 + $0x7e4] ss:$12 sps:$4 sm:$0xff]  }
 0x102   :  { %3227 = vmatmul.mubr.bf16.vlgmr.msra.gmra.mrb[0].mxu0 %v7889_v27  ;;  %3753 = vmatmul.mubr.bf16.vlgmr.msra.gmra.mrb[28].mxu1 %v8337_v61  ;;  %v6791_v27 = vld [vmem:[%s10695_s1 + $0xcf8] ss:$12 sps:$4 sm:$0xff]  }
 0x103   :  { %3236 = vmatpush1.bf16.msra.mxu0 %v6778_v60  ;;  %6035 = vmatpush3.bf16.msra.mxu1 %v6782_v62  ;;  %v7099_v60 = vld [vmem:[%s10695_s1 + $0x18] ss:$12 sps:$4 sm:$0xff]  }
 0x104   :  { %3237 = vmatprep.subr.bf16.mxu0 %v6785_v63  ;;  %6036 = vmatprep.subr.bf16.mxu1 %v6786_v0  ;;  %v6829_v62 = vld [vmem:[%s10695_s1 + $0x70c] ss:$12 sps:$4 sm:$0xff]   ;;  %v7100_v63 = vld [vmem:[%s10695_s1 + $0x34] ss:$12 sps:$4 sm:$0xff]  }
 0x105   :  { %3792 = vmatprep.mubr.bf16.mxu1 %v8349_v2  ;;  %3267 = vmatprep.mubr.bf16.mxu0 %v7935_v41  ;;  %v6796_v41 = vld [vmem:[%s10695_s1 + $0xd10] ss:$12 sps:$4 sm:$0xff]   ;;  %v6827_v0 = vld [vmem:[%s10695_s1 + $0x708] ss:$12 sps:$4 sm:$0xff]  }
 0x107   :  { %3238 = vmatpush1.bf16.msra.mxu0 %v6783_v3  ;;  %6037 = vmatpush3.bf16.msra.mxu1 %v6787_v4  ;;  %v7101_v3 = vld [vmem:[%s10695_s1 + $0x30] ss:$12 sps:$4 sm:$0xff]  }
 0x108   :  { %3239 = vmatprep.subr.bf16.mxu0 %v6790_v6  ;;  %6038 = vmatprep.subr.bf16.mxu1 %v6791_v27  ;;  %v6832_v4 = vld [vmem:[%s10695_s1 + $0x724] ss:$12 sps:$4 sm:$0xff]   ;;  %v7102_v6 = vld [vmem:[%s10695_s1 + $0x4c] ss:$12 sps:$4 sm:$0xff]  }
 0x109   :  { %v6830_v27 = vld [vmem:[%s10695_s1 + $0x720] ss:$12 sps:$4 sm:$0xff]  }
 0x10b   :  { %3240 = vmatpush1.bf16.msra.mxu0 %v6788_v7  ;;  %6039 = vmatpush3.bf16.msra.mxu1 %v6792_v8  ;;  %v7103_v7 = vld [vmem:[%s10695_s1 + $0x48] ss:$12 sps:$4 sm:$0xff]  }
 0x10c   :  { %3241 = vmatprep.subr.bf16.mxu0 %v6795_v9  ;;  %6040 = vmatprep.subr.bf16.mxu1 %v6796_v41  ;;  %v6835_v8 = vld [vmem:[%s10695_s1 + $0x73c] ss:$12 sps:$4 sm:$0xff]   ;;  %v7104_v9 = vld [vmem:[%s10695_s1 + $0x64] ss:$12 sps:$4 sm:$0xff]  }
 0x10d   :  { %v6833_v41 = vld [vmem:[%s10695_s1 + $0x738] ss:$12 sps:$4 sm:$0xff]  }
 0x10f   :  { %3242 = vmatpush1.bf16.msra.mxu0 %v6793_v10  ;;  %6041 = vmatpush3.bf16.msra.mxu1 %v6797_v11  ;;  %v6838_v10 = vld [vmem:[%s10695_s1 + $0x754] ss:$12 sps:$4 sm:$0xff]  }
 0x110   :  { %3243 = vmatprep.subr.bf16.mxu0 %v6800_v12  ;;  %6042 = vmatprep.subr.bf16.mxu1 %v6801_v13  ;;  %v7105_v11 = vld [vmem:[%s10695_s1 + $0x60] ss:$12 sps:$4 sm:$0xff]   ;;  %v7106_v12 = vld [vmem:[%s10695_s1 + $0x7c] ss:$12 sps:$4 sm:$0xff]  }
 0x111   :  { %v8538_v13 = vld [vmem:[%s10695_s1 + $0x750] ss:$12 sps:$4 sm:$0xff]  }
 0x113   :  { %3244 = vmatpush1.bf16.msra.mxu0 %v6798_v15  ;;  %6043 = vmatpush3.bf16.msra.mxu1 %v6802_v17 }
 0x114   :  { %3245 = vmatprep.subr.bf16.mxu0 %v6805_v20  ;;  %6044 = vmatprep.subr.bf16.mxu1 %v6806_v23  ;;  %v7107_v23 = vld [vmem:[%s10695_s1 + $0x78] ss:$12 sps:$4 sm:$0xff]  }
 0x115   :  { %v5896_v32 = vpop.f32.mrb[4].mxu1 }
 0x116   :  { %v5897_v34 = vpop.f32.mrb[5].mxu1 }
 0x117   :  { %3246 = vmatpush1.bf16.msra.mxu0 %v6803_v24  ;;  %v5898_v36 = vadd.f32 %v5897_v34, %v5896_v32  ;;  %v5899_v37 = vpop.f32.mrb[6].mxu1  ;;  %6045 = vmatpush3.bf16.msra.mxu1 %v6807_v28  ;;  %v7108_v28 = vld [vmem:[%s10695_s1 + $0x94] ss:$12 sps:$4 sm:$0xff]   ;;  %v7109_v32 = vld [vmem:[%s10695_s1 + $0x90] ss:$12 sps:$4 sm:$0xff]  }
 0x118   :  { %3247 = vmatprep.subr.bf16.mxu0 %v6810_v29  ;;  %v5900_v40 = vpop.f32.mrb[7].mxu1  ;;  %6046 = vmatprep.subr.bf16.mxu1 %v6811_v30  ;;  %v8558_v30 = vld [vmem:[%s10695_s1 + $0x768] ss:$12 sps:$4 sm:$0xff]   ;;  %v8567_v34 = vld [vmem:[%s10695_s1 + $0x784] ss:$12 sps:$4 sm:$0xff]  }
 0x119   :  { %v8444_v44 = vadd.f32 %v5898_v36, %v3475_v35  ;;  %v8576_v35 = vld [vmem:[%s10695_s1 + $0x780] ss:$12 sps:$4 sm:$0xff]   ;;  %v7111_v36 = vld [vmem:[%s10695_s1 + $0xa8] ss:$12 sps:$4 sm:$0xff]  }
 0x11a   :  { %v8585_v37 = vld [vmem:[%s10695_s1 + $0x79c] ss:$12 sps:$4 sm:$0xff]   ;;  %v7113_v40 = vld [vmem:[%s10695_s1 + $0xc0] ss:$12 sps:$4 sm:$0xff]  }
 0x11b   :  { %3248 = vmatpush1.bf16.msra.mxu0 %v6808_v18  ;;  %6047 = vmatpush3.bf16.msra.mxu1 %v6812_v38  ;;  %v7110_v18 = vld [vmem:[%s10695_s1 + $0xac] ss:$12 sps:$4 sm:$0xff]   ;;  %v7112_v38 = vld [vmem:[%s10695_s1 + $0xc4] ss:$12 sps:$4 sm:$0xff]  }
 0x11c   :  { %3249 = vmatprep.subr.bf16.mxu0 %v6815_v39  ;;  %6048 = vmatprep.subr.bf16.mxu1 %v6816_v22  ;;  %v8595_v39 = vld [vmem:[%s10695_s1 + $0x798] ss:$12 sps:$4 sm:$0xff]   ;;  %v7114_v22 = vld [vmem:[%s10695_s1 + $0xdc] ss:$12 sps:$4 sm:$0xff]  }
 0x11f   :  { %3250 = vmatpush1.bf16.msra.mxu0 %v6813_v45  ;;  %6049 = vmatpush3.bf16.msra.mxu1 %v6817_v47  ;;  %v8623_v45 = vld [vmem:[%s10695_s1 + $0x7cc] ss:$12 sps:$4 sm:$0xff]   ;;  %v7116_v47 = vld [vmem:[%s10695_s1 + $0xf4] ss:$12 sps:$4 sm:$0xff]  }
 0x120   :  { %3251 = vmatprep.subr.bf16.mxu0 %v6820_v48  ;;  %3948 = vmatprep.subr.bf16.mxu1 %v7096_v52  ;;  %v8632_v48 = vld [vmem:[%s10695_s1 + $0x7c8] ss:$12 sps:$4 sm:$0xff]   ;;  %v8650_v52 = vld [vmem:[%s10695_s1 + $0x7e0] ss:$12 sps:$4 sm:$0xff]  }
 0x122   :  { %3793 = vmatmul.mubr.bf16.vlgmr.msra.gmra.mrb[32].mxu1 %v8462_v50 }
 0x123   :  { %3252 = vmatpush1.bf16.msra.mxu0 %v6818_v49  ;;  %3949 = vmatpush1.bf16.msra.mxu1 %v7097_v53  ;;  %v7117_v49 = vld [vmem:[%s10695_s1 + $0xf0] ss:$12 sps:$4 sm:$0xff]  }
 0x124   :  { %3253 = vmatprep.subr.bf16.mxu0 %v6823_v51  ;;  %3950 = vmatprep.subr.bf16.mxu1 %v7098_v57  ;;  %v7118_v51 = vld [vmem:[%s10695_s1 + $0x10c] ss:$12 sps:$4 sm:$0xff]   ;;  %v8659_v53 = vld [vmem:[%s10695_s1 + $0x7fc] ss:$12 sps:$4 sm:$0xff]  }
 0x125   :  { %3980 = vmatprep.mubr.bf16.mxu1 %v8474_v55  ;;  %v8668_v57 = vld [vmem:[%s10695_s1 + $0x7f8] ss:$12 sps:$4 sm:$0xff]  }
 0x127   :  { %3254 = vmatpush1.bf16.msra.mxu0 %v6821_v58  ;;  %3951 = vmatpush1.bf16.msra.mxu1 %v7099_v60  ;;  %v7119_v58 = vld [vmem:[%s10695_s1 + $0x108] ss:$12 sps:$4 sm:$0xff]  }
 0x128   :  { %3255 = vmatprep.subr.bf16.mxu0 %v6826_v56  ;;  %3952 = vmatprep.subr.bf16.mxu1 %v7100_v63  ;;  %v7120_v56 = vld [vmem:[%s10695_s1 + $0x124] ss:$12 sps:$4 sm:$0xff]   ;;  %v8677_v60 = vld [vmem:[%s10695_s1 + $0x814] ss:$12 sps:$4 sm:$0xff]  }
 0x12b   :  { %3256 = vmatpush1.bf16.msra.mxu0 %v6824_v59  ;;  %3953 = vmatpush1.bf16.msra.mxu1 %v7101_v3  ;;  %v7121_v59 = vld [vmem:[%s10695_s1 + $0x120] ss:$12 sps:$4 sm:$0xff]   ;;  %v8686_v3 = vld [vmem:[%s10695_s1 + $0x810] ss:$12 sps:$4 sm:$0xff]  }
 0x12c   :  { %3257 = vmatprep.subr.bf16.mxu0 %v6829_v62  ;;  %3954 = vmatprep.subr.bf16.mxu1 %v7102_v6  ;;  %v7122_v62 = vld [vmem:[%s10695_s1 + $0x13c] ss:$12 sps:$4 sm:$0xff]  }
 0x12f   :  { %3258 = vmatpush1.bf16.msra.mxu0 %v6827_v0  ;;  %3955 = vmatpush1.bf16.msra.mxu1 %v7103_v7  ;;  %v8695_v7 = vld [vmem:[%s10695_s1 + $0x82c] ss:$12 sps:$4 sm:$0xff]  }
 0x130   :  { %3259 = vmatprep.subr.bf16.mxu0 %v6832_v4  ;;  %3956 = vmatprep.subr.bf16.mxu1 %v7104_v9  ;;  %v7124_v9 = vld [vmem:[%s10695_s1 + $0x154] ss:$12 sps:$4 sm:$0xff]  }
 0x133   :  { %3260 = vmatpush1.bf16.msra.mxu0 %v6830_v27  ;;  %3957 = vmatpush1.bf16.msra.mxu1 %v7105_v11  ;;  %v7123_v27 = vld [vmem:[%s10695_s1 + $0x138] ss:$12 sps:$4 sm:$0xff]   ;;  %v7125_v11 = vld [vmem:[%s10695_s1 + $0x150] ss:$12 sps:$4 sm:$0xff]  }
 0x134   :  { %3261 = vmatprep.subr.bf16.mxu0 %v6835_v8  ;;  %3958 = vmatprep.subr.bf16.mxu1 %v7106_v12  ;;  %v8716_v12 = vld [vmem:[%s10695_s1 + $0x844] ss:$12 sps:$4 sm:$0xff]  }
 0x135   :  { %v5918_v15 = vpop.f32.mrb[8].mxu1 }
 0x136   :  { %v5919_v17 = vpop.f32.mrb[9].mxu1 }
 0x137   :  { %3262 = vmatpush1.bf16.msra.mxu0 %v6833_v41  ;;  %v5920_v20 = vadd.f32 %v5919_v17, %v5918_v15  ;;  %v5921_v21 = vpop.f32.mrb[10].mxu1  ;;  %3959 = vmatpush1.bf16.msra.mxu1 %v7107_v23  ;;  %v7126_v15 = vld [vmem:[%s10695_s1 + $0x16c] ss:$12 sps:$4 sm:$0xff]   ;;  %v8738_v23 = vld [vmem:[%s10695_s1 + $0x85c] ss:$12 sps:$4 sm:$0xff]  }
 0x138   :  { %3263 = vmatprep.subr.bf16.mxu0 %v6838_v10  ;;  %v5922_v24 = vpop.f32.mrb[11].mxu1  ;;  %3960 = vmatprep.subr.bf16.mxu1 %v7108_v28  ;;  %v8707_v10 = vld [vmem:[%s10695_s1 + $0x828] ss:$12 sps:$4 sm:$0xff]   ;;  %v8725_v17 = vld [vmem:[%s10695_s1 + $0x840] ss:$12 sps:$4 sm:$0xff]  }
 0x139   :  { %v8552_v29 = vadd.f32 %v5920_v20, %v8444_v44  ;;  %v7115_v44 = vld [vmem:[%s10695_s1 + $0xd8] ss:$12 sps:$4 sm:$0xff]   ;;  %v8729_v20 = vrot.slane %v8442_v43, %v7527_v31  ;;  %v7127_v21 = vld [vmem:[%s10695_s1 + $0x168] ss:$12 sps:$4 sm:$0xff]   ;;  %v8745_v43 = vcombine.high %v8474_v55, %v8474_v55 }
 0x13a   :  { %v7128_v24 = vld [vmem:[%s10695_s1 + $0x184] ss:$12 sps:$4 sm:$0xff]  }
 0x13b   :  { %3264 = vmatpush1.bf16.msra.mxu0 %v8538_v13  ;;  %3961 = vmatpush1.bf16.msra.mxu1 %v7109_v32  ;;  %v8752_v28 = vld [vmem:[%s10695_s1 + $0x858] ss:$12 sps:$4 sm:$0xff]   ;;  %v8761_v32 = vld [vmem:[%s10695_s1 + $0x874] ss:$12 sps:$4 sm:$0xff]  }
 0x13c   :  { %3265 = vmatprep.subr.bf16.mxu0 %v8543_v16  ;;  %3962 = vmatprep.subr.bf16.mxu1 %v7110_v18  ;;  %v7130_v18 = vld [vmem:[%s10695_s1 + $0x19c] ss:$12 sps:$4 sm:$0xff]  }
 0x13f   :  { %3266 = vmatpush1.bf16.msra.mxu0 %v8558_v30  ;;  %3963 = vmatpush1.bf16.msra.mxu1 %v7111_v36  ;;  %v8771_v36 = vld [vmem:[%s10695_s1 + $0x870] ss:$12 sps:$4 sm:$0xff]  }
 0x140   :  { %3276 = vmatprep.subr.bf16.mxu0 %v8567_v34  ;;  %3964 = vmatprep.subr.bf16.mxu1 %v7112_v38  ;;  %v7131_v38 = vld [vmem:[%s10695_s1 + $0x198] ss:$12 sps:$4 sm:$0xff]  }
 0x142   :  { %3268 = vmatmul.mubr.bf16.vlgmr.msra.gmra.mrb[0].mxu0 %v8002_v1  ;;  %v8605_v1 = vld [vmem:[%s10695_s1 + $0x7b4] ss:$12 sps:$4 sm:$0xff]  }
 0x143   :  { %3277 = vmatpush1.bf16.msra.mxu0 %v8576_v35  ;;  %3308 = vmatprep.mubr.bf16.mxu0 %v8015_v5  ;;  %v8614_v5 = vld [vmem:[%s10695_s1 + $0x7b0] ss:$12 sps:$4 sm:$0xff]  }
 0x144   :  { %3965 = vmatpush1.bf16.msra.mxu1 %v7113_v40  ;;  %3278 = vmatprep.subr.bf16.mxu0 %v8585_v37  ;;  %v8780_v40 = vld [vmem:[%s10695_s1 + $0x88c] ss:$12 sps:$4 sm:$0xff]  }
 0x145   :  { %3966 = vmatprep.subr.bf16.mxu1 %v7114_v22  ;;  %v7132_v22 = vld [vmem:[%s10695_s1 + $0x1b4] ss:$12 sps:$4 sm:$0xff]  }
 0x147   :  { %3279 = vmatpush1.bf16.msra.mxu0 %v8595_v39 }
 0x148   :  { %3967 = vmatpush1.bf16.msra.mxu1 %v7115_v44  ;;  %3280 = vmatprep.subr.bf16.mxu0 %v8605_v1  ;;  %v8789_v44 = vld [vmem:[%s10695_s1 + $0x888] ss:$12 sps:$4 sm:$0xff]  }
 0x149   :  { %3968 = vmatprep.subr.bf16.mxu1 %v7116_v47  ;;  %v7133_v47 = vld [vmem:[%s10695_s1 + $0x1b0] ss:$12 sps:$4 sm:$0xff]  }
 0x14b   :  { %3281 = vmatpush1.bf16.msra.mxu0 %v8614_v5 }
 0x14c   :  { %3969 = vmatpush1.bf16.msra.mxu1 %v7117_v49  ;;  %3282 = vmatprep.subr.bf16.mxu0 %v8623_v45  ;;  %v8798_v49 = vld [vmem:[%s10695_s1 + $0x8a4] ss:$12 sps:$4 sm:$0xff]  }
 0x14d   :  { %3970 = vmatprep.subr.bf16.mxu1 %v7118_v51  ;;  %v7134_v51 = vld [vmem:[%s10695_s1 + $0x1cc] ss:$12 sps:$4 sm:$0xff]  }
 0x14f   :  { %3283 = vmatpush1.bf16.msra.mxu0 %v8632_v48 }
 0x150   :  { %3971 = vmatpush1.bf16.msra.mxu1 %v7119_v58  ;;  %3284 = vmatprep.subr.bf16.mxu0 %v8641_v54  ;;  %v8807_v58 = vld [vmem:[%s10695_s1 + $0x8a0] ss:$12 sps:$4 sm:$0xff]  }
 0x151   :  { %3972 = vmatprep.subr.bf16.mxu1 %v7120_v56  ;;  %v7135_v56 = vld [vmem:[%s10695_s1 + $0x1c8] ss:$12 sps:$4 sm:$0xff]  }
 0x153   :  { %3285 = vmatpush1.bf16.msra.mxu0 %v8650_v52 }
 0x154   :  { %3973 = vmatpush1.bf16.msra.mxu1 %v7121_v59  ;;  %3286 = vmatprep.subr.bf16.mxu0 %v8659_v53  ;;  %v8816_v59 = vld [vmem:[%s10695_s1 + $0x8bc] ss:$12 sps:$4 sm:$0xff]  }
 0x155   :  { %3974 = vmatprep.subr.bf16.mxu1 %v7122_v62  ;;  %v5940_v63 = vpop.f32.mrb[12].mxu1  ;;  %v7136_v62 = vld [vmem:[%s10695_s1 + $0x1e4] ss:$12 sps:$4 sm:$0xff]  }
 0x156   :  { %v5941_v0 = vpop.f32.mrb[13].mxu1 }
 0x157   :  { %3287 = vmatpush1.bf16.msra.mxu0 %v8668_v57  ;;  %v5942_v4 = vadd.f32 %v5941_v0, %v5940_v63  ;;  %v5943_v6 = vpop.f32.mrb[14].mxu1  ;;  %v8825_v63 = vld [vmem:[%s10695_s1 + $0x8b8] ss:$12 sps:$4 sm:$0xff]   ;;  %v7137_v0 = vld [vmem:[%s10695_s1 + $0x1e0] ss:$12 sps:$4 sm:$0xff]  }
 0x158   :  { %3975 = vmatpush1.bf16.msra.mxu1 %v7123_v27  ;;  %3288 = vmatprep.subr.bf16.mxu0 %v8677_v60  ;;  %v5944_v8 = vpop.f32.mrb[15].mxu1  ;;  %v7138_v6 = vld [vmem:[%s10695_s1 + $0x1fc] ss:$12 sps:$4 sm:$0xff]  }
 0x159   :  { %3976 = vmatprep.subr.bf16.mxu1 %v7124_v9  ;;  %v8701_v41 = vadd.f32 %v5942_v4, %v8552_v29  ;;  %v7129_v29 = vld [vmem:[%s10695_s1 + $0x180] ss:$12 sps:$4 sm:$0xff]   ;;  %v8843_v9 = vld [vmem:[%s10695_s1 + $0x8d0] ss:$12 sps:$4 sm:$0xff]  }
 0x15a   :  { %v8834_v4 = vld [vmem:[%s10695_s1 + $0x8d4] ss:$12 sps:$4 sm:$0xff]  }
 0x15b   :  { %3289 = vmatpush1.bf16.msra.mxu0 %v8686_v3 }
 0x15c   :  { %3977 = vmatpush1.bf16.msra.mxu1 %v7125_v11  ;;  %3290 = vmatprep.subr.bf16.mxu0 %v8695_v7 }
 0x15d   :  { %3978 = vmatprep.subr.bf16.mxu1 %v7126_v15 }
 0x15f   :  { %3291 = vmatpush1.bf16.msra.mxu0 %v8707_v10 }
 0x160   :  { %3979 = vmatpush1.bf16.msra.mxu1 %v7127_v21  ;;  %3292 = vmatprep.subr.bf16.mxu0 %v8716_v12  ;;  %v7139_v21 = vld [vmem:[%s10695_s1 + $0x1f8] ss:$12 sps:$4 sm:$0xff]  }
 0x161   :  { %3989 = vmatprep.subr.bf16.mxu1 %v7128_v24  ;;  %v8852_v24 = vld [vmem:[%s10695_s1 + $0x8ec] ss:$12 sps:$4 sm:$0xff]  }
 0x163   :  { %3293 = vmatpush1.bf16.msra.mxu0 %v8725_v17  ;;  %3981 = vmatmul.mubr.bf16.vlgmr.msra.gmra.mrb[36].mxu1 %v8729_v20 }
 0x164   :  { %3990 = vmatpush1.bf16.msra.mxu1 %v7129_v29  ;;  %3294 = vmatprep.subr.bf16.mxu0 %v8738_v23 }
 0x165   :  { %3991 = vmatprep.subr.bf16.mxu1 %v7130_v18  ;;  %4021 = vmatprep.mubr.bf16.mxu1 %v8745_v43  ;;  %v7140_v18 = vld [vmem:[%s10695_s1 + $0x214] ss:$12 sps:$4 sm:$0xff]  }
 0x167   :  { %3295 = vmatpush1.bf16.msra.mxu0 %v8752_v28 }
 0x168   :  { %3992 = vmatpush1.bf16.msra.mxu1 %v7131_v38  ;;  %3296 = vmatprep.subr.bf16.mxu0 %v8761_v32 }
 0x169   :  { %3993 = vmatprep.subr.bf16.mxu1 %v7132_v22  ;;  %v8864_v22 = vld [vmem:[%s10695_s1 + $0x8e8] ss:$12 sps:$4 sm:$0xff]  }
 0x16b   :  { %3297 = vmatpush1.bf16.msra.mxu0 %v8771_v36 }
 0x16c   :  { %3994 = vmatpush1.bf16.msra.mxu1 %v7133_v47  ;;  %3298 = vmatprep.subr.bf16.mxu0 %v8780_v40  ;;  %v7141_v47 = vld [vmem:[%s10695_s1 + $0x210] ss:$12 sps:$4 sm:$0xff]  }
 0x16d   :  { %3995 = vmatprep.subr.bf16.mxu1 %v7134_v51  ;;  %v8873_v51 = vld [vmem:[%s10695_s1 + $0x904] ss:$12 sps:$4 sm:$0xff]  }
 0x16f   :  { %3299 = vmatpush1.bf16.msra.mxu0 %v8789_v44 }
 0x170   :  { %3996 = vmatpush1.bf16.msra.mxu1 %v7135_v56  ;;  %3300 = vmatprep.subr.bf16.mxu0 %v8798_v49  ;;  %v8882_v56 = vld [vmem:[%s10695_s1 + $0x900] ss:$12 sps:$4 sm:$0xff]  }
 0x171   :  { %3997 = vmatprep.subr.bf16.mxu1 %v7136_v62  ;;  %v7143_v62 = vld [vmem:[%s10695_s1 + $0x228] ss:$12 sps:$4 sm:$0xff]  }
 0x173   :  { %3301 = vmatpush1.bf16.msra.mxu0 %v8807_v58 }
 0x174   :  { %3998 = vmatpush1.bf16.msra.mxu1 %v7137_v0  ;;  %3302 = vmatprep.subr.bf16.mxu0 %v8816_v59  ;;  %v8891_v0 = vld [vmem:[%s10695_s1 + $0x91c] ss:$12 sps:$4 sm:$0xff]  }
 0x175   :  { %3999 = vmatprep.subr.bf16.mxu1 %v7138_v6  ;;  %v5962_v27 = vpop.f32.mrb[16].mxu1  ;;  %v7144_v6 = vld [vmem:[%s10695_s1 + $0x244] ss:$12 sps:$4 sm:$0xff]  }
 0x176   :  { %v5963_v8 = vpop.f32.mrb[17].mxu1 }
 0x177   :  { %3303 = vmatpush1.bf16.msra.mxu0 %v8825_v63  ;;  %v5964_v11 = vadd.f32 %v5963_v8, %v5962_v27  ;;  %v5965_v15 = vpop.f32.mrb[18].mxu1  ;;  %v8901_v27 = vld [vmem:[%s10695_s1 + $0x918] ss:$12 sps:$4 sm:$0xff]   ;;  %v7145_v8 = vld [vmem:[%s10695_s1 + $0x240] ss:$12 sps:$4 sm:$0xff]  }
 0x178   :  { %4000 = vmatpush1.bf16.msra.mxu1 %v7139_v21  ;;  %3304 = vmatprep.subr.bf16.mxu0 %v8834_v4  ;;  %v5966_v29 = vpop.f32.mrb[19].mxu1  ;;  %v7147_v15 = vld [vmem:[%s10695_s1 + $0x258] ss:$12 sps:$4 sm:$0xff]  }
 0x179   :  { %4001 = vmatprep.subr.bf16.mxu1 %v7140_v18  ;;  %v8858_v38 = vadd.f32 %v5964_v11, %v8701_v41  ;;  %v7142_v41 = vld [vmem:[%s10695_s1 + $0x22c] ss:$12 sps:$4 sm:$0xff]   ;;  %v7146_v11 = vld [vmem:[%s10695_s1 + $0x25c] ss:$12 sps:$4 sm:$0xff]   ;;  %v7148_v29 = vld [vmem:[%s10695_s1 + $0x274] ss:$12 sps:$4 sm:$0xff]  }
 0x17a   :  { %v8929_v21 = vld [vmem:[%s10695_s1 + $0x94c] ss:$12 sps:$4 sm:$0xff]   ;;  %v8938_v18 = vld [vmem:[%s10695_s1 + $0x948] ss:$12 sps:$4 sm:$0xff]  }
 0x17b   :  { %3305 = vmatpush1.bf16.msra.mxu0 %v8843_v9  ;;  %10793 = vst [vmem:[#allocation4_spill] sm:$0xff] %v8929_v21  ;;  %10794 = vst [vmem:[#allocation5_spill] sm:$0xff] %v8938_v18 }
 0x17c   :  { %4002 = vmatpush1.bf16.msra.mxu1 %v7141_v47  ;;  %3306 = vmatprep.subr.bf16.mxu0 %v8852_v24  ;;  %v7149_v47 = vld [vmem:[%s10695_s1 + $0x270] ss:$12 sps:$4 sm:$0xff]  }
 0x17d   :  { %4003 = vmatprep.subr.bf16.mxu1 %v7142_v41  ;;  %v8947_v41 = vld [vmem:[%s10695_s1 + $0x964] ss:$12 sps:$4 sm:$0xff]  }
 0x17e   :  { %10795 = vst [vmem:[#allocation6_spill] sm:$0xff] %v8947_v41 }
 0x17f   :  { %3307 = vmatpush1.bf16.msra.mxu0 %v8864_v22 }
 0x180   :  { %4004 = vmatpush1.bf16.msra.mxu1 %v7143_v62  ;;  %3317 = vmatprep.subr.bf16.mxu0 %v8873_v51  ;;  %v7150_v62 = vld [vmem:[%s10695_s1 + $0x28c] ss:$12 sps:$4 sm:$0xff]  }
 0x181   :  { %4005 = vmatprep.subr.bf16.mxu1 %v7144_v6  ;;  %v8956_v6 = vld [vmem:[%s10695_s1 + $0x960] ss:$12 sps:$4 sm:$0xff]  }
 0x182   :  { %3309 = vmatmul.mubr.bf16.vlgmr.msra.gmra.mrb[0].mxu0 %v8115_v42  ;;  %v8911_v42 = vld [vmem:[%s10695_s1 + $0x934] ss:$12 sps:$4 sm:$0xff]   ;;  %10796 = vst [vmem:[#allocation7_spill] sm:$0xff] %v8956_v6 }
 0x183   :  { %3318 = vmatpush1.bf16.msra.mxu0 %v8882_v56  ;;  %3349 = vmatprep.mubr.bf16.mxu0 %v8127_v46  ;;  %v8920_v46 = vld [vmem:[%s10695_s1 + $0x930] ss:$12 sps:$4 sm:$0xff]  }
 0x184   :  { %4006 = vmatpush1.bf16.msra.mxu1 %v7145_v8  ;;  %3319 = vmatprep.subr.bf16.mxu0 %v8891_v0  ;;  %v7151_v8 = vld [vmem:[%s10695_s1 + $0x288] ss:$12 sps:$4 sm:$0xff]  }
 0x185   :  { %4007 = vmatprep.subr.bf16.mxu1 %v7146_v11  ;;  %v8965_v11 = vld [vmem:[%s10695_s1 + $0x97c] ss:$12 sps:$4 sm:$0xff]  }
 0x186   :  { %10797 = vst [vmem:[#allocation8_spill] sm:$0xff] %v8965_v11 }
 0x187   :  { %3320 = vmatpush1.bf16.msra.mxu0 %v8901_v27 }
 0x188   :  { %4008 = vmatpush1.bf16.msra.mxu1 %v7147_v15  ;;  %3321 = vmatprep.subr.bf16.mxu0 %v8911_v42  ;;  %v7152_v15 = vld [vmem:[%s10695_s1 + $0x2a4] ss:$12 sps:$4 sm:$0xff]  }
 0x189   :  { %4009 = vmatprep.subr.bf16.mxu1 %v7148_v29  ;;  %v8974_v29 = vld [vmem:[%s10695_s1 + $0x978] ss:$12 sps:$4 sm:$0xff]  }
 0x18a   :  { %10798 = vst [vmem:[#allocation9_spill] sm:$0xff] %v8974_v29 }
 0x18b   :  { %3322 = vmatpush1.bf16.msra.mxu0 %v8920_v46 }
 0x18c   :  { %4010 = vmatpush1.bf16.msra.mxu1 %v7149_v47  ;;  %3323 = vmatprep.subr.bf16.mxu0 %v8929_v21  ;;  %v7153_v47 = vld [vmem:[%s10695_s1 + $0x2a0] ss:$12 sps:$4 sm:$0xff]  }
 0x18d   :  { %4011 = vmatprep.subr.bf16.mxu1 %v7150_v62  ;;  %v8983_v62 = vld [vmem:[%s10695_s1 + $0x994] ss:$12 sps:$4 sm:$0xff]  }
 0x18e   :  { %10799 = vst [vmem:[#allocation10_spill] sm:$0xff] %v8983_v62  ;;  %v7172_v21 = vld [vmem:[%s10695_s1 + $0x394] ss:$12 sps:$4 sm:$0xff]  }
 0x18f   :  { %3324 = vmatpush1.bf16.msra.mxu0 %v8938_v18  ;;  %v7171_v18 = vld [vmem:[%s10695_s1 + $0x378] ss:$12 sps:$4 sm:$0xff]  }
 0x190   :  { %4012 = vmatpush1.bf16.msra.mxu1 %v7151_v8  ;;  %3325 = vmatprep.subr.bf16.mxu0 %v8947_v41  ;;  %v7154_v8 = vld [vmem:[%s10695_s1 + $0x2bc] ss:$12 sps:$4 sm:$0xff]   ;;  %v7155_v41 = vld [vmem:[%s10695_s1 + $0x2b8] ss:$12 sps:$4 sm:$0xff]  }
 0x191   :  { %4013 = vmatprep.subr.bf16.mxu1 %v7152_v15  ;;  %v3810_v15 = vcombine.high %v8424_v33, %v8424_v33  ;;  %v9003_v33 = vld [vmem:[%s10695_s1 + $0x9ac] ss:$12 sps:$4 sm:$0xff]  }
 0x192   :  { %10801 = vst [vmem:[#allocation12_spill] sm:$0xff] %v9003_v33 }
 0x193   :  { %3326 = vmatpush1.bf16.msra.mxu0 %v8956_v6 }
 0x194   :  { %4014 = vmatpush1.bf16.msra.mxu1 %v7153_v47  ;;  %3327 = vmatprep.subr.bf16.mxu0 %v8965_v11  ;;  %v8994_v47 = vld [vmem:[%s10695_s1 + $0x990] ss:$12 sps:$4 sm:$0xff]  }
 0x195   :  { %4015 = vmatprep.subr.bf16.mxu1 %v7154_v8  ;;  %v5984_v25 = vpop.f32.mrb[20].mxu1  ;;  %10800 = vst [vmem:[#allocation11_spill] sm:$0xff] %v8994_v47 }
 0x196   :  { %v5985_v26 = vpop.f32.mrb[21].mxu1 }
 0x197   :  { %3328 = vmatpush1.bf16.msra.mxu0 %v8974_v29  ;;  %v5986_v11 = vadd.f32 %v5985_v26, %v5984_v25  ;;  %v5987_v6 = vpop.f32.mrb[22].mxu1  ;;  %v7156_v29 = vld [vmem:[%s10695_s1 + $0x2d4] ss:$12 sps:$4 sm:$0xff]   ;;  %v9009_v25 = vrot.slane %v3810_v15, %v7527_v31 }
 0x198   :  { %4016 = vmatpush1.bf16.msra.mxu1 %v7155_v41  ;;  %3329 = vmatprep.subr.bf16.mxu0 %v8983_v62  ;;  %v5988_v8 = vpop.f32.mrb[23].mxu1  ;;  %v9018_v41 = vld [vmem:[%s10695_s1 + $0x9a8] ss:$12 sps:$4 sm:$0xff]   ;;  %v7157_v6 = vld [vmem:[%s10695_s1 + $0x2d0] ss:$12 sps:$4 sm:$0xff]  }
 0x199   :  { %4017 = vmatprep.subr.bf16.mxu1 %v7156_v29  ;;  %v9012_v26 = vadd.f32 %v5986_v11, %v8858_v38  ;;  %10802 = vst [vmem:[#allocation13_spill] sm:$0xff] %v9018_v41  ;;  %v9027_v29 = vld [vmem:[%s10695_s1 + $0x9c4] ss:$12 sps:$4 sm:$0xff]   ;;  %v7158_v38 = vld [vmem:[%s10695_s1 + $0x2ec] ss:$12 sps:$4 sm:$0xff]   ;;  %v3826_v11 = vcombine.high %v9009_v25, %v9009_v25  ;;  %v9042_v8 = vcombine.high %v8729_v20, %v8729_v20 }
 0x19a   :  { %10803 = vst [vmem:[#allocation14_spill] sm:$0xff] %v9027_v29  ;;  %v9038_v15 = vld [vmem:[%s10695_s1 + $0x9c0] ss:$12 sps:$4 sm:$0xff]  }
 0x19b   :  { %3330 = vmatpush1.bf16.msra.mxu0 %v8994_v47  ;;  %10804 = vst [vmem:[#allocation15_spill] sm:$0xff] %v9038_v15 }
 0x19c   :  { %4018 = vmatpush1.bf16.msra.mxu1 %v7157_v6  ;;  %3331 = vmatprep.subr.bf16.mxu0 %v9003_v33  ;;  %v7159_v6 = vld [vmem:[%s10695_s1 + $0x2e8] ss:$12 sps:$4 sm:$0xff]   ;;  %v9057_v33 = vrot.slane %v3826_v11, %v7527_v31 }
 0x19d   :  { %4019 = vmatprep.subr.bf16.mxu1 %v7158_v38  ;;  %v9051_v38 = vld [vmem:[%s10695_s1 + $0x9dc] ss:$12 sps:$4 sm:$0xff]  }
 0x19e   :  { %10805 = vst [vmem:[#allocation16_spill] sm:$0xff] %v9051_v38  ;;  %v7162_v11 = vld [vmem:[%s10695_s1 + $0x31c] ss:$12 sps:$4 sm:$0xff]  }
 0x19f   :  { %3332 = vmatpush1.bf16.msra.mxu0 %v9018_v41  ;;  %v7160_v41 = vld [vmem:[%s10695_s1 + $0x304] ss:$12 sps:$4 sm:$0xff]  }
 0x1a0   :  { %4020 = vmatpush1.bf16.msra.mxu1 %v7159_v6  ;;  %3333 = vmatprep.subr.bf16.mxu0 %v9027_v29  ;;  %v9064_v6 = vld [vmem:[%s10695_s1 + $0x9d8] ss:$12 sps:$4 sm:$0xff]   ;;  %v7161_v29 = vld [vmem:[%s10695_s1 + $0x300] ss:$12 sps:$4 sm:$0xff]  }
 0x1a1   :  { %4030 = vmatprep.subr.bf16.mxu1 %v7160_v41  ;;  %10806 = vst [vmem:[#allocation17_spill] sm:$0xff] %v9064_v6  ;;  %v9073_v41 = vld [vmem:[%s10695_s1 + $0x9f4] ss:$12 sps:$4 sm:$0xff]  }
 0x1a2   :  { %10807 = vst [vmem:[#allocation18_spill] sm:$0xff] %v9073_v41 }
 0x1a3   :  { %3334 = vmatpush1.bf16.msra.mxu0 %v9038_v15  ;;  %4022 = vmatmul.mubr.bf16.vlgmr.msra.gmra.mrb[36].mxu1 %v9042_v8  ;;  %v9101_v15 = vld [vmem:[%s10695_s1 + $0xa08] ss:$12 sps:$4 sm:$0xff]  }
 0x1a4   :  { %4031 = vmatpush1.bf16.msra.mxu1 %v7161_v29  ;;  %3335 = vmatprep.subr.bf16.mxu0 %v9051_v38  ;;  %v9083_v29 = vld [vmem:[%s10695_s1 + $0x9f0] ss:$12 sps:$4 sm:$0xff]   ;;  %v7163_v38 = vld [vmem:[%s10695_s1 + $0x318] ss:$12 sps:$4 sm:$0xff]   ;;  %10810 = vst [vmem:[#allocation21_spill] sm:$0xff] %v9101_v15 }
 0x1a5   :  { %4032 = vmatprep.subr.bf16.mxu1 %v7162_v11  ;;  %4062 = vmatprep.mubr.bf16.mxu1 %v9057_v33  ;;  %10808 = vst [vmem:[#allocation19_spill] sm:$0xff] %v9083_v29  ;;  %v9092_v11 = vld [vmem:[%s10695_s1 + $0xa0c] ss:$12 sps:$4 sm:$0xff]  }
 0x1a6   :  { %10809 = vst [vmem:[#allocation20_spill] sm:$0xff] %v9092_v11 }
 0x1a7   :  { %3336 = vmatpush1.bf16.msra.mxu0 %v9064_v6  ;;  %v7164_v6 = vld [vmem:[%s10695_s1 + $0x334] ss:$12 sps:$4 sm:$0xff]  }
 0x1a8   :  { %4033 = vmatpush1.bf16.msra.mxu1 %v7163_v38  ;;  %3337 = vmatprep.subr.bf16.mxu0 %v9073_v41  ;;  %v7165_v38 = vld [vmem:[%s10695_s1 + $0x330] ss:$12 sps:$4 sm:$0xff]  }
 0x1a9   :  { %4034 = vmatprep.subr.bf16.mxu1 %v7164_v6  ;;  %v9110_v41 = vld [vmem:[%s10695_s1 + $0xa24] ss:$12 sps:$4 sm:$0xff]   ;;  %v7166_v6 = vld [vmem:[%s10695_s1 + $0x34c] ss:$12 sps:$4 sm:$0xff]  }
 0x1aa   :  { %10811 = vst [vmem:[#allocation22_spill] sm:$0xff] %v9110_v41 }
 0x1ab   :  { %3338 = vmatpush1.bf16.msra.mxu0 %v9083_v29  ;;  %v9119_v29 = vld [vmem:[%s10695_s1 + $0xa20] ss:$12 sps:$4 sm:$0xff]  }
 0x1ac   :  { %4035 = vmatpush1.bf16.msra.mxu1 %v7165_v38  ;;  %3339 = vmatprep.subr.bf16.mxu0 %v9092_v11  ;;  %10812 = vst [vmem:[#allocation23_spill] sm:$0xff] %v9119_v29  ;;  %v7167_v38 = vld [vmem:[%s10695_s1 + $0x348] ss:$12 sps:$4 sm:$0xff]  }
 0x1ad   :  { %4036 = vmatprep.subr.bf16.mxu1 %v7166_v6  ;;  %v9128_v11 = vld [vmem:[%s10695_s1 + $0xa3c] ss:$12 sps:$4 sm:$0xff]   ;;  %v7168_v6 = vld [vmem:[%s10695_s1 + $0x364] ss:$12 sps:$4 sm:$0xff]  }
 0x1ae   :  { %10813 = vst [vmem:[#allocation24_spill] sm:$0xff] %v9128_v11 }
 0x1af   :  { %3340 = vmatpush1.bf16.msra.mxu0 %v9101_v15  ;;  %v9137_v15 = vld [vmem:[%s10695_s1 + $0xa38] ss:$12 sps:$4 sm:$0xff]  }
 0x1b0   :  { %4037 = vmatpush1.bf16.msra.mxu1 %v7167_v38  ;;  %3341 = vmatprep.subr.bf16.mxu0 %v9110_v41  ;;  %10814 = vst [vmem:[#allocation25_spill] sm:$0xff] %v9137_v15  ;;  %v7169_v38 = vld [vmem:[%s10695_s1 + $0x360] ss:$12 sps:$4 sm:$0xff]  }
 0x1b1   :  { %4038 = vmatprep.subr.bf16.mxu1 %v7168_v6  ;;  %v9146_v41 = vld [vmem:[%s10695_s1 + $0xa54] ss:$12 sps:$4 sm:$0xff]   ;;  %v7170_v6 = vld [vmem:[%s10695_s1 + $0x37c] ss:$12 sps:$4 sm:$0xff]  }
 0x1b3   :  { %3342 = vmatpush1.bf16.msra.mxu0 %v9119_v29 }
 0x1b4   :  { %4039 = vmatpush1.bf16.msra.mxu1 %v7169_v38  ;;  %3343 = vmatprep.subr.bf16.mxu0 %v9128_v11  ;;  %v9155_v38 = vld [vmem:[%s10695_s1 + $0xa50] ss:$12 sps:$4 sm:$0xff]  }
 0x1b5   :  { %4040 = vmatprep.subr.bf16.mxu1 %v7170_v6  ;;  %v6006_v29 = vpop.f32.mrb[24].mxu1  ;;  %10815 = vst [vmem:[#allocation26_spill] sm:$0xff] %v9155_v38  ;;  %v9164_v6 = vld [vmem:[%s10695_s1 + $0xa6c] ss:$12 sps:$4 sm:$0xff]  }
 0x1b6   :  { %v6007_v47 = vpop.f32.mrb[25].mxu1  ;;  %10816 = vst [vmem:[#allocation27_spill] sm:$0xff] %v9164_v6 }
 0x1b7   :  { %3344 = vmatpush1.bf16.msra.mxu0 %v9137_v15  ;;  %v6008_v11 = vadd.f32 %v6007_v47, %v6006_v29  ;;  %v6009_v62 = vpop.f32.mrb[26].mxu1  ;;  %v7173_v47 = vld [vmem:[%s10695_s1 + $0x390] ss:$12 sps:$4 sm:$0xff]   ;;  %v7175_v29 = vld [vmem:[%s10695_s1 + $0x3a8] ss:$12 sps:$4 sm:$0xff]  }
 0x1b8   :  { %4041 = vmatpush1.bf16.msra.mxu1 %v7171_v18  ;;  %3345 = vmatprep.subr.bf16.mxu0 %v9146_v41  ;;  %v6010_v15 = vpop.f32.mrb[27].mxu1  ;;  %v9176_v18 = vld [vmem:[%s10695_s1 + $0xa68] ss:$12 sps:$4 sm:$0xff]  }
 0x1b9   :  { %4042 = vmatprep.subr.bf16.mxu1 %v7172_v21  ;;  %v9170_v62 = vadd.f32 %v6008_v11, %v9012_v26  ;;  %10817 = vst [vmem:[#allocation28_spill] sm:$0xff] %v9176_v18  ;;  %v9185_v21 = vld [vmem:[%s10695_s1 + $0xa84] ss:$12 sps:$4 sm:$0xff]   ;;  %v7174_v26 = vld [vmem:[%s10695_s1 + $0x3ac] ss:$12 sps:$4 sm:$0xff]  }
 0x1ba   :  { %10818 = vst [vmem:[#allocation29_spill] sm:$0xff] %v9185_v21  ;;  %v9194_v15 = vld [vmem:[%s10695_s1 + $0xa80] ss:$12 sps:$4 sm:$0xff]   ;;  %v9203_v11 = vld [vmem:[%s10695_s1 + $0xa9c] ss:$12 sps:$4 sm:$0xff]  }
 0x1bb   :  { %3346 = vmatpush1.bf16.msra.mxu0 %v9155_v38  ;;  %10819 = vst [vmem:[#allocation30_spill] sm:$0xff] %v9194_v15  ;;  %10820 = vst [vmem:[#allocation31_spill] sm:$0xff] %v9203_v11  ;;  %v7204_v38 = vld [vmem:[%s10695_s1 + $0x514] ss:$12 sps:$4 sm:$0xff]  }
 0x1bc   :  { %4043 = vmatpush1.bf16.msra.mxu1 %v7173_v47  ;;  %3347 = vmatprep.subr.bf16.mxu0 %v9164_v6  ;;  %v7176_v47 = vld [vmem:[%s10695_s1 + $0x3c4] ss:$12 sps:$4 sm:$0xff]   ;;  %v7188_v6 = vld [vmem:[%s10695_s1 + $0x454] ss:$12 sps:$4 sm:$0xff]  }
 0x1bd   :  { %4044 = vmatprep.subr.bf16.mxu1 %v7174_v26  ;;  %v9213_v26 = vld [vmem:[%s10695_s1 + $0xa98] ss:$12 sps:$4 sm:$0xff]  }
 0x1be   :  { %10821 = vst [vmem:[#allocation32_spill] sm:$0xff] %v9213_v26 }
 0x1bf   :  { %3348 = vmatpush1.bf16.msra.mxu0 %v9176_v18  ;;  %v7187_v18 = vld [vmem:[%s10695_s1 + $0x438] ss:$12 sps:$4 sm:$0xff]  }
 0x1c0   :  { %4045 = vmatpush1.bf16.msra.mxu1 %v7175_v29  ;;  %3358 = vmatprep.subr.bf16.mxu0 %v9185_v21  ;;  %v7177_v29 = vld [vmem:[%s10695_s1 + $0x3c0] ss:$12 sps:$4 sm:$0xff]  }
 0x1c1   :  { %4046 = vmatprep.subr.bf16.mxu1 %v7176_v47  ;;  %v7178_v47 = vld [vmem:[%s10695_s1 + $0x3dc] ss:$12 sps:$4 sm:$0xff]  }
 0x1c2   :  { %3350 = vmatmul.mubr.bf16.vlgmr.msra.gmra.mrb[0].mxu0 %v8222_v14  ;;  %v9223_v14 = vld [vmem:[%s10695_s1 + $0xab4] ss:$12 sps:$4 sm:$0xff]  }
 0x1c3   :  { %3359 = vmatpush1.bf16.msra.mxu0 %v9194_v15  ;;  %3390 = vmatprep.mubr.bf16.mxu0 %v8235_v19  ;;  %10822 = vst [vmem:[#allocation33_spill] sm:$0xff] %v9223_v14  ;;  %v9232_v19 = vld [vmem:[%s10695_s1 + $0xab0] ss:$12 sps:$4 sm:$0xff]  }
 0x1c4   :  { %4047 = vmatpush1.bf16.msra.mxu1 %v7177_v29  ;;  %3360 = vmatprep.subr.bf16.mxu0 %v9203_v11  ;;  %10823 = vst [vmem:[#allocation34_spill] sm:$0xff] %v9232_v19  ;;  %v7179_v29 = vld [vmem:[%s10695_s1 + $0x3d8] ss:$12 sps:$4 sm:$0xff]  }
 0x1c5   :  { %4048 = vmatprep.subr.bf16.mxu1 %v7178_v47  ;;  %v9241_v11 = vld [vmem:[%s10695_s1 + $0xacc] ss:$12 sps:$4 sm:$0xff]   ;;  %v7180_v47 = vld [vmem:[%s10695_s1 + $0x3f4] ss:$12 sps:$4 sm:$0xff]  }
 0x1c6   :  { %10824 = vst [vmem:[#allocation35_spill] sm:$0xff] %v9241_v11 }
 0x1c7   :  { %3361 = vmatpush1.bf16.msra.mxu0 %v9213_v26  ;;  %v9250_v26 = vld [vmem:[%s10695_s1 + $0xac8] ss:$12 sps:$4 sm:$0xff]  }
 0x1c8   :  { %4049 = vmatpush1.bf16.msra.mxu1 %v7179_v29  ;;  %3362 = vmatprep.subr.bf16.mxu0 %v9223_v14  ;;  %10825 = vst [vmem:[#allocation36_spill] sm:$0xff] %v9250_v26  ;;  %v7181_v29 = vld [vmem:[%s10695_s1 + $0x3f0] ss:$12 sps:$4 sm:$0xff]  }
 0x1c9   :  { %4050 = vmatprep.subr.bf16.mxu1 %v7180_v47  ;;  %v9259_v14 = vld [vmem:[%s10695_s1 + $0xae4] ss:$12 sps:$4 sm:$0xff]   ;;  %v7182_v47 = vld [vmem:[%s10695_s1 + $0x40c] ss:$12 sps:$4 sm:$0xff]  }
 0x1ca   :  { %10826 = vst [vmem:[#allocation37_spill] sm:$0xff] %v9259_v14 }
 0x1cb   :  { %3363 = vmatpush1.bf16.msra.mxu0 %v9232_v19  ;;  %v9268_v19 = vld [vmem:[%s10695_s1 + $0xae0] ss:$12 sps:$4 sm:$0xff]  }
 0x1cc   :  { %4051 = vmatpush1.bf16.msra.mxu1 %v7181_v29  ;;  %3364 = vmatprep.subr.bf16.mxu0 %v9241_v11  ;;  %10827 = vst [vmem:[#allocation38_spill] sm:$0xff] %v9268_v19  ;;  %v7183_v29 = vld [vmem:[%s10695_s1 + $0x408] ss:$12 sps:$4 sm:$0xff]  }
 0x1cd   :  { %4052 = vmatprep.subr.bf16.mxu1 %v7182_v47  ;;  %v9277_v11 = vld [vmem:[%s10695_s1 + $0xafc] ss:$12 sps:$4 sm:$0xff]   ;;  %v7184_v47 = vld [vmem:[%s10695_s1 + $0x424] ss:$12 sps:$4 sm:$0xff]  }
 0x1ce   :  { %10828 = vst [vmem:[#allocation39_spill] sm:$0xff] %v9277_v11 }
 0x1cf   :  { %3365 = vmatpush1.bf16.msra.mxu0 %v9250_v26  ;;  %v9286_v26 = vld [vmem:[%s10695_s1 + $0xaf8] ss:$12 sps:$4 sm:$0xff]  }
 0x1d0   :  { %4053 = vmatpush1.bf16.msra.mxu1 %v7183_v29  ;;  %3366 = vmatprep.subr.bf16.mxu0 %v9259_v14  ;;  %10829 = vst [vmem:[#allocation40_spill] sm:$0xff] %v9286_v26  ;;  %v7185_v29 = vld [vmem:[%s10695_s1 + $0x420] ss:$12 sps:$4 sm:$0xff]  }
 0x1d1   :  { %4054 = vmatprep.subr.bf16.mxu1 %v7184_v47  ;;  %v9295_v14 = vld [vmem:[%s10695_s1 + $0xb14] ss:$12 sps:$4 sm:$0xff]   ;;  %v7186_v47 = vld [vmem:[%s10695_s1 + $0x43c] ss:$12 sps:$4 sm:$0xff]  }
 0x1d2   :  { %10830 = vst [vmem:[#allocation41_spill] sm:$0xff] %v9295_v14 }
 0x1d3   :  { %3367 = vmatpush1.bf16.msra.mxu0 %v9268_v19 }
 0x1d4   :  { %4055 = vmatpush1.bf16.msra.mxu1 %v7185_v29  ;;  %3368 = vmatprep.subr.bf16.mxu0 %v9277_v11  ;;  %v9304_v29 = vld [vmem:[%s10695_s1 + $0xb10] ss:$12 sps:$4 sm:$0xff]  }
 0x1d5   :  { %4056 = vmatprep.subr.bf16.mxu1 %v7186_v47  ;;  %v6028_v19 = vpop.f32.mrb[28].mxu1  ;;  %10831 = vst [vmem:[#allocation42_spill] sm:$0xff] %v9304_v29  ;;  %v9313_v47 = vld [vmem:[%s10695_s1 + $0xb2c] ss:$12 sps:$4 sm:$0xff]  }
 0x1d6   :  { %v6029_v15 = vpop.f32.mrb[29].mxu1  ;;  %10832 = vst [vmem:[#allocation43_spill] sm:$0xff] %v9313_v47 }
 0x1d7   :  { %3369 = vmatpush1.bf16.msra.mxu0 %v9286_v26  ;;  %v6030_v11 = vadd.f32 %v6029_v15, %v6028_v19  ;;  %v6031_v21 = vpop.f32.mrb[30].mxu1  ;;  %v7189_v15 = vld [vmem:[%s10695_s1 + $0x450] ss:$12 sps:$4 sm:$0xff]   ;;  %v7191_v19 = vld [vmem:[%s10695_s1 + $0x468] ss:$12 sps:$4 sm:$0xff]  }
 0x1d8   :  { %4057 = vmatpush1.bf16.msra.mxu1 %v7187_v18  ;;  %3370 = vmatprep.subr.bf16.mxu0 %v9295_v14  ;;  %v6032_v26 = vpop.f32.mrb[31].mxu1  ;;  %v9325_v18 = vld [vmem:[%s10695_s1 + $0xb28] ss:$12 sps:$4 sm:$0xff]   ;;  %v7203_v14 = vld [vmem:[%s10695_s1 + $0x4f8] ss:$12 sps:$4 sm:$0xff]  }
 0x1d9   :  { %4058 = vmatprep.subr.bf16.mxu1 %v7188_v6  ;;  %v9319_v21 = vadd.f32 %v6030_v11, %v9170_v62  ;;  %10833 = vst [vmem:[#allocation44_spill] sm:$0xff] %v9325_v18  ;;  %v9334_v6 = vld [vmem:[%s10695_s1 + $0xb44] ss:$12 sps:$4 sm:$0xff]   ;;  %v7190_v62 = vld [vmem:[%s10695_s1 + $0x46c] ss:$12 sps:$4 sm:$0xff]   ;;  %v9347_v26 = vrot.slane %v9009_v25, %v7527_v31  ;;  %v9363_v25 = vcombine.high %v9057_v33, %v9057_v33 }
 0x1da   :  { %10834 = vst [vmem:[#allocation45_spill] sm:$0xff] %v9334_v6  ;;  %v9343_v11 = vld [vmem:[%s10695_s1 + $0xb40] ss:$12 sps:$4 sm:$0xff]  }
 0x1db   :  { %3371 = vmatpush1.bf16.msra.mxu0 %v9304_v29  ;;  %10835 = vst [vmem:[#allocation46_spill] sm:$0xff] %v9343_v11 }
 0x1dc   :  { %4059 = vmatpush1.bf16.msra.mxu1 %v7189_v15  ;;  %3372 = vmatprep.subr.bf16.mxu0 %v9313_v47  ;;  %v9356_v15 = vld [vmem:[%s10695_s1 + $0xb5c] ss:$12 sps:$4 sm:$0xff]  }
 0x1dd   :  { %4060 = vmatprep.subr.bf16.mxu1 %v7190_v62  ;;  %10836 = vst [vmem:[#allocation47_spill] sm:$0xff] %v9356_v15  ;;  %v7192_v62 = vld [vmem:[%s10695_s1 + $0x484] ss:$12 sps:$4 sm:$0xff]  }
 0x1df   :  { %3373 = vmatpush1.bf16.msra.mxu0 %v9325_v18  ;;  %v9407_v18 = vld [vmem:[%s10695_s1 + $0xb88] ss:$12 sps:$4 sm:$0xff]  }
 0x1e0   :  { %4061 = vmatpush1.bf16.msra.mxu1 %v7191_v19  ;;  %3374 = vmatprep.subr.bf16.mxu0 %v9334_v6  ;;  %v9370_v19 = vld [vmem:[%s10695_s1 + $0xb58] ss:$12 sps:$4 sm:$0xff]   ;;  %v7193_v6 = vld [vmem:[%s10695_s1 + $0x480] ss:$12 sps:$4 sm:$0xff]   ;;  %10841 = vst [vmem:[#allocation52_spill] sm:$0xff] %v9407_v18 }
 0x1e1   :  { %4071 = vmatprep.subr.bf16.mxu1 %v7192_v62  ;;  %10837 = vst [vmem:[#allocation48_spill] sm:$0xff] %v9370_v19  ;;  %v9379_v62 = vld [vmem:[%s10695_s1 + $0xb74] ss:$12 sps:$4 sm:$0xff]  }
 0x1e2   :  { %10838 = vst [vmem:[#allocation49_spill] sm:$0xff] %v9379_v62 }
 0x1e3   :  { %3375 = vmatpush1.bf16.msra.mxu0 %v9343_v11  ;;  %4063 = vmatmul.mubr.bf16.vlgmr.msra.gmra.mrb[36].mxu1 %v9347_v26  ;;  %v7194_v11 = vld [vmem:[%s10695_s1 + $0x49c] ss:$12 sps:$4 sm:$0xff]  }
 0x1e4   :  { %4072 = vmatpush1.bf16.msra.mxu1 %v7193_v6  ;;  %3376 = vmatprep.subr.bf16.mxu0 %v9356_v15  ;;  %v9389_v6 = vld [vmem:[%s10695_s1 + $0xb70] ss:$12 sps:$4 sm:$0xff]   ;;  %v7195_v15 = vld [vmem:[%s10695_s1 + $0x498] ss:$12 sps:$4 sm:$0xff]  }
 0x1e5   :  { %4073 = vmatprep.subr.bf16.mxu1 %v7194_v11  ;;  %4103 = vmatprep.mubr.bf16.mxu1 %v9363_v25  ;;  %10839 = vst [vmem:[#allocation50_spill] sm:$0xff] %v9389_v6  ;;  %v9398_v11 = vld [vmem:[%s10695_s1 + $0xb8c] ss:$12 sps:$4 sm:$0xff]  }
 0x1e6   :  { %10840 = vst [vmem:[#allocation51_spill] sm:$0xff] %v9398_v11 }
 0x1e7   :  { %3377 = vmatpush1.bf16.msra.mxu0 %v9370_v19  ;;  %v7196_v19 = vld [vmem:[%s10695_s1 + $0x4b4] ss:$12 sps:$4 sm:$0xff]  }
 0x1e8   :  { %4074 = vmatpush1.bf16.msra.mxu1 %v7195_v15  ;;  %3378 = vmatprep.subr.bf16.mxu0 %v9379_v62  ;;  %v7197_v15 = vld [vmem:[%s10695_s1 + $0x4b0] ss:$12 sps:$4 sm:$0xff]  }
 0x1e9   :  { %4075 = vmatprep.subr.bf16.mxu1 %v7196_v19  ;;  %v9416_v62 = vld [vmem:[%s10695_s1 + $0xba4] ss:$12 sps:$4 sm:$0xff]   ;;  %v7198_v19 = vld [vmem:[%s10695_s1 + $0x4cc] ss:$12 sps:$4 sm:$0xff]  }
 0x1ea   :  { %10842 = vst [vmem:[#allocation53_spill] sm:$0xff] %v9416_v62 }
 0x1eb   :  { %3379 = vmatpush1.bf16.msra.mxu0 %v9389_v6  ;;  %v9425_v6 = vld [vmem:[%s10695_s1 + $0xba0] ss:$12 sps:$4 sm:$0xff]  }
 0x1ec   :  { %4076 = vmatpush1.bf16.msra.mxu1 %v7197_v15  ;;  %3380 = vmatprep.subr.bf16.mxu0 %v9398_v11  ;;  %10843 = vst [vmem:[#allocation54_spill] sm:$0xff] %v9425_v6  ;;  %v7199_v15 = vld [vmem:[%s10695_s1 + $0x4c8] ss:$12 sps:$4 sm:$0xff]  }
 0x1ed   :  { %4077 = vmatprep.subr.bf16.mxu1 %v7198_v19  ;;  %v9434_v11 = vld [vmem:[%s10695_s1 + $0xbbc] ss:$12 sps:$4 sm:$0xff]   ;;  %v7200_v19 = vld [vmem:[%s10695_s1 + $0x4e4] ss:$12 sps:$4 sm:$0xff]  }
 0x1ee   :  { %10844 = vst [vmem:[#allocation55_spill] sm:$0xff] %v9434_v11 }
 0x1ef   :  { %3381 = vmatpush1.bf16.msra.mxu0 %v9407_v18  ;;  %v9443_v18 = vld [vmem:[%s10695_s1 + $0xbb8] ss:$12 sps:$4 sm:$0xff]  }
 0x1f0   :  { %4078 = vmatpush1.bf16.msra.mxu1 %v7199_v15  ;;  %3382 = vmatprep.subr.bf16.mxu0 %v9416_v62  ;;  %10845 = vst [vmem:[#allocation56_spill] sm:$0xff] %v9443_v18  ;;  %v7201_v15 = vld [vmem:[%s10695_s1 + $0x4e0] ss:$12 sps:$4 sm:$0xff]  }
 0x1f1   :  { %4079 = vmatprep.subr.bf16.mxu1 %v7200_v19  ;;  %v9452_v62 = vld [vmem:[%s10695_s1 + $0xbd4] ss:$12 sps:$4 sm:$0xff]   ;;  %v7202_v19 = vld [vmem:[%s10695_s1 + $0x4fc] ss:$12 sps:$4 sm:$0xff]  }
 0x1f3   :  { %3383 = vmatpush1.bf16.msra.mxu0 %v9425_v6 }
 0x1f4   :  { %4080 = vmatpush1.bf16.msra.mxu1 %v7201_v15  ;;  %3384 = vmatprep.subr.bf16.mxu0 %v9434_v11  ;;  %v9461_v15 = vld [vmem:[%s10695_s1 + $0xbd0] ss:$12 sps:$4 sm:$0xff]  }
 0x1f5   :  { %4081 = vmatprep.subr.bf16.mxu1 %v7202_v19  ;;  %v6050_v6 = vpop.f32.mrb[32].mxu1  ;;  %v9470_v19 = vld [vmem:[%s10695_s1 + $0xbec] ss:$12 sps:$4 sm:$0xff]  }
 0x1f6   :  { %v6051_v47 = vpop.f32.mrb[33].mxu1 }
 0x1f7   :  { %3385 = vmatpush1.bf16.msra.mxu0 %v9443_v18  ;;  %v6052_v11 = vadd.f32 %v6051_v47, %v6050_v6  ;;  %v6053_v29 = vpop.f32.mrb[34].mxu1  ;;  %v7205_v47 = vld [vmem:[%s10695_s1 + $0x510] ss:$12 sps:$4 sm:$0xff]   ;;  %v7207_v6 = vld [vmem:[%s10695_s1 + $0x528] ss:$12 sps:$4 sm:$0xff]  }
 0x1f8   :  { %4082 = vmatpush1.bf16.msra.mxu1 %v7203_v14  ;;  %3386 = vmatprep.subr.bf16.mxu0 %v9452_v62  ;;  %v6054_v18 = vpop.f32.mrb[35].mxu1  ;;  %v9482_v14 = vld [vmem:[%s10695_s1 + $0xbe8] ss:$12 sps:$4 sm:$0xff]  }
 0x1f9   :  { %4083 = vmatprep.subr.bf16.mxu1 %v7204_v38  ;;  %v9476_v29 = vadd.f32 %v6052_v11, %v9319_v21  ;;  %10847 = vst [vmem:[#allocation58_spill] sm:$0xff] %v9482_v14  ;;  %v9491_v38 = vld [vmem:[%s10695_s1 + $0xc04] ss:$12 sps:$4 sm:$0xff]   ;;  %v7206_v21 = vld [vmem:[%s10695_s1 + $0x52c] ss:$12 sps:$4 sm:$0xff]  }
 0x1fa   :  { %10848 = vst [vmem:[#allocation59_spill] sm:$0xff] %v9491_v38  ;;  %v9500_v18 = vld [vmem:[%s10695_s1 + $0xc00] ss:$12 sps:$4 sm:$0xff]   ;;  %v9509_v11 = vld [vmem:[%s10695_s1 + $0xc1c] ss:$12 sps:$4 sm:$0xff]  }
 0x1fb   :  { %10846 = vst [vmem:[#allocation57_spill] sm:$0xff] %v9476_v29  ;;  %3387 = vmatpush1.bf16.msra.mxu0 %v9461_v15  ;;  %10849 = vst [vmem:[#allocation60_spill] sm:$0xff] %v9500_v18  ;;  %v9547_v29 = vld [vmem:[%s10695_s1 + $0xc4c] ss:$12 sps:$4 sm:$0xff]  }
 0x1fc   :  { %4084 = vmatpush1.bf16.msra.mxu1 %v7205_v47  ;;  %3388 = vmatprep.subr.bf16.mxu0 %v9470_v19  ;;  %10850 = vst [vmem:[#allocation61_spill] sm:$0xff] %v9509_v11  ;;  %v7208_v47 = vld [vmem:[%s10695_s1 + $0x544] ss:$12 sps:$4 sm:$0xff]   ;;  %10854 = vst [vmem:[#allocation65_spill] sm:$0xff] %v9547_v29 }
 0x1fd   :  { %4085 = vmatprep.subr.bf16.mxu1 %v7206_v21  ;;  %v9519_v21 = vld [vmem:[%s10695_s1 + $0xc18] ss:$12 sps:$4 sm:$0xff]  }
 0x1fe   :  { %10851 = vst [vmem:[#allocation62_spill] sm:$0xff] %v9519_v21 }
 0x1ff   :  { %3389 = vmatpush1.bf16.msra.mxu0 %v9482_v14 }
 0x200   :  { %4086 = vmatpush1.bf16.msra.mxu1 %v7207_v6  ;;  %3399 = vmatprep.subr.bf16.mxu0 %v9491_v38  ;;  %v7209_v6 = vld [vmem:[%s10695_s1 + $0x540] ss:$12 sps:$4 sm:$0xff]   ;;  %v7223_v38 = vld [vmem:[%s10695_s1 + $0x5e8] ss:$12 sps:$4 sm:$0xff]  }
 0x201   :  { %4087 = vmatprep.subr.bf16.mxu1 %v7208_v47  ;;  %v7210_v47 = vld [vmem:[%s10695_s1 + $0x55c] ss:$12 sps:$4 sm:$0xff]  }
 0x202   :  { %3391 = vmatmul.mubr.bf16.vlgmr.msra.gmra.mrb[0].mxu0 %v8337_v61  ;;  %v9529_v61 = vld [vmem:[%s10695_s1 + $0xc34] ss:$12 sps:$4 sm:$0xff]  }
 0x203   :  { %3400 = vmatpush1.bf16.msra.mxu0 %v9500_v18  ;;  %3431 = vmatprep.mubr.bf16.mxu0 %v8349_v2  ;;  %10852 = vst [vmem:[#allocation63_spill] sm:$0xff] %v9529_v61  ;;  %v9538_v2 = vld [vmem:[%s10695_s1 + $0xc30] ss:$12 sps:$4 sm:$0xff]  }
 0x204   :  { %4088 = vmatpush1.bf16.msra.mxu1 %v7209_v6  ;;  %3401 = vmatprep.subr.bf16.mxu0 %v9509_v11  ;;  %10853 = vst [vmem:[#allocation64_spill] sm:$0xff] %v9538_v2  ;;  %v7211_v6 = vld [vmem:[%s10695_s1 + $0x558] ss:$12 sps:$4 sm:$0xff]  }
 0x205   :  { %4089 = vmatprep.subr.bf16.mxu1 %v7210_v47  ;;  %v7212_v47 = vld [vmem:[%s10695_s1 + $0x574] ss:$12 sps:$4 sm:$0xff]  }
 0x207   :  { %3402 = vmatpush1.bf16.msra.mxu0 %v9519_v21  ;;  %v9556_v21 = vld [vmem:[%s10695_s1 + $0xc48] ss:$12 sps:$4 sm:$0xff]  }
 0x208   :  { %4090 = vmatpush1.bf16.msra.mxu1 %v7211_v6  ;;  %3403 = vmatprep.subr.bf16.mxu0 %v9529_v61  ;;  %10855 = vst [vmem:[#allocation66_spill] sm:$0xff] %v9556_v21  ;;  %v7213_v6 = vld [vmem:[%s10695_s1 + $0x570] ss:$12 sps:$4 sm:$0xff]  }
 0x209   :  { %4091 = vmatprep.subr.bf16.mxu1 %v7212_v47  ;;  %v9565_v61 = vld [vmem:[%s10695_s1 + $0xc64] ss:$12 sps:$4 sm:$0xff]   ;;  %v7214_v47 = vld [vmem:[%s10695_s1 + $0x58c] ss:$12 sps:$4 sm:$0xff]  }
 0x20a   :  { %10856 = vst [vmem:[#allocation67_spill] sm:$0xff] %v9565_v61 }
 0x20b   :  { %3404 = vmatpush1.bf16.msra.mxu0 %v9538_v2  ;;  %v9574_v2 = vld [vmem:[%s10695_s1 + $0xc60] ss:$12 sps:$4 sm:$0xff]  }
 0x20c   :  { %4092 = vmatpush1.bf16.msra.mxu1 %v7213_v6  ;;  %3405 = vmatprep.subr.bf16.mxu0 %v9547_v29  ;;  %10857 = vst [vmem:[#allocation68_spill] sm:$0xff] %v9574_v2  ;;  %v7215_v6 = vld [vmem:[%s10695_s1 + $0x588] ss:$12 sps:$4 sm:$0xff]  }
 0x20d   :  { %4093 = vmatprep.subr.bf16.mxu1 %v7214_v47  ;;  %v9583_v29 = vld [vmem:[%s10695_s1 + $0xc7c] ss:$12 sps:$4 sm:$0xff]   ;;  %v7216_v47 = vld [vmem:[%s10695_s1 + $0x5a4] ss:$12 sps:$4 sm:$0xff]  }
 0x20e   :  { %10858 = vst [vmem:[#allocation69_spill] sm:$0xff] %v9583_v29 }
 0x20f   :  { %3406 = vmatpush1.bf16.msra.mxu0 %v9556_v21  ;;  %v9592_v21 = vld [vmem:[%s10695_s1 + $0xc78] ss:$12 sps:$4 sm:$0xff]  }
 0x210   :  { %4094 = vmatpush1.bf16.msra.mxu1 %v7215_v6  ;;  %3407 = vmatprep.subr.bf16.mxu0 %v9565_v61  ;;  %10859 = vst [vmem:[#allocation70_spill] sm:$0xff] %v9592_v21  ;;  %v7217_v6 = vld [vmem:[%s10695_s1 + $0x5a0] ss:$12 sps:$4 sm:$0xff]  }
 0x211   :  { %4095 = vmatprep.subr.bf16.mxu1 %v7216_v47  ;;  %v9601_v61 = vld [vmem:[%s10695_s1 + $0xc94] ss:$12 sps:$4 sm:$0xff]   ;;  %v7218_v47 = vld [vmem:[%s10695_s1 + $0x5bc] ss:$12 sps:$4 sm:$0xff]  }
 0x212   :  { %10860 = vst [vmem:[#allocation71_spill] sm:$0xff] %v9601_v61 }
 0x213   :  { %3408 = vmatpush1.bf16.msra.mxu0 %v9574_v2  ;;  %v9609_v2 = vld [vmem:[%s10696_s0 + $0x1a] sm:$0xff] }
 0x214   :  { %4096 = vmatpush1.bf16.msra.mxu1 %v7217_v6  ;;  %3409 = vmatprep.subr.bf16.mxu0 %v9583_v29  ;;  %v9615_v6 = vld [vmem:[%s10695_s1 + $0xc90] ss:$12 sps:$4 sm:$0xff]   ;;  %v7219_v29 = vld [vmem:[%s10695_s1 + $0x5b8] ss:$12 sps:$4 sm:$0xff]   ;;  %v9631_v11 = vrot.slane %v9609_v2, %v7527_v31 }
 0x215   :  { %4097 = vmatprep.subr.bf16.mxu1 %v7218_v47  ;;  %10861 = vst [vmem:[#allocation72_spill] sm:$0xff] %v9615_v6  ;;  %v9624_v47 = vld [vmem:[%s10695_s1 + $0xcac] ss:$12 sps:$4 sm:$0xff]  }
 0x216   :  { %10862 = vst [vmem:[#allocation73_spill] sm:$0xff] %v9624_v47  ;;  %v3874_v18 = vcombine.high %v9631_v11, %v9631_v11 }
 0x217   :  { %3410 = vmatpush1.bf16.msra.mxu0 %v9592_v21  ;;  %v7220_v21 = vld [vmem:[%s10695_s1 + $0x5d4] ss:$12 sps:$4 sm:$0xff]  }
 0x218   :  { %4098 = vmatpush1.bf16.msra.mxu1 %v7219_v29  ;;  %3411 = vmatprep.subr.bf16.mxu0 %v9601_v61  ;;  %v9637_v29 = vld [vmem:[%s10695_s1 + $0xca8] ss:$12 sps:$4 sm:$0xff]   ;;  %v7221_v61 = vld [vmem:[%s10695_s1 + $0x5d0] ss:$12 sps:$4 sm:$0xff]   ;;  %v9676_v14 = vrot.slane %v3874_v18, %v7527_v31 }
 0x219   :  { %4099 = vmatprep.subr.bf16.mxu1 %v7220_v21  ;;  %10863 = vst [vmem:[#allocation74_spill] sm:$0xff] %v9637_v29  ;;  %v9646_v21 = vld [vmem:[%s10695_s1 + $0xcc4] ss:$12 sps:$4 sm:$0xff]   ;;  %v9692_v18 = vld [vmem:[%s10695_s1 + $0xcf4] ss:$12 sps:$4 sm:$0xff]  }
 0x21a   :  { %10864 = vst [vmem:[#allocation75_spill] sm:$0xff] %v9646_v21  ;;  %10868 = vst [vmem:[#allocation79_spill] sm:$0xff] %v9692_v18 }
 0x21b   :  { %3412 = vmatpush1.bf16.msra.mxu0 %v9615_v6  ;;  %v7222_v6 = vld [vmem:[%s10695_s1 + $0x5ec] ss:$12 sps:$4 sm:$0xff]  }
 0x21c   :  { %4100 = vmatpush1.bf16.msra.mxu1 %v7221_v61  ;;  %3413 = vmatprep.subr.bf16.mxu0 %v9624_v47  ;;  %v9657_v61 = vld [vmem:[%s10695_s1 + $0xcc0] ss:$12 sps:$4 sm:$0xff]   ;;  %v9661_v47 = vcombine.high %v9347_v26, %v9347_v26 }
 0x21d   :  { %4101 = vmatprep.subr.bf16.mxu1 %v7222_v6  ;;  %10865 = vst [vmem:[#allocation76_spill] sm:$0xff] %v9657_v61  ;;  %v9670_v6 = vld [vmem:[%s10695_s1 + $0xcdc] ss:$12 sps:$4 sm:$0xff]  }
 0x21e   :  { %10866 = vst [vmem:[#allocation77_spill] sm:$0xff] %v9670_v6 }
 0x21f   :  { %3414 = vmatpush1.bf16.msra.mxu0 %v9637_v29  ;;  %v7224_v29 = vld [vmem:[%s10695_s1 + $0x604] ss:$12 sps:$4 sm:$0xff]  }
 0x220   :  { %4102 = vmatpush1.bf16.msra.mxu1 %v7223_v38  ;;  %3415 = vmatprep.subr.bf16.mxu0 %v9646_v21  ;;  %v9683_v38 = vld [vmem:[%s10695_s1 + $0xcd8] ss:$12 sps:$4 sm:$0xff]   ;;  %v7225_v21 = vld [vmem:[%s10695_s1 + $0x600] ss:$12 sps:$4 sm:$0xff]  }
 0x221   :  { %4112 = vmatprep.subr.bf16.mxu1 %v7224_v29  ;;  %10867 = vst [vmem:[#allocation78_spill] sm:$0xff] %v9683_v38  ;;  %v7226_v29 = vld [vmem:[%s10695_s1 + $0x61c] ss:$12 sps:$4 sm:$0xff]  }
 0x223   :  { %3416 = vmatpush1.bf16.msra.mxu0 %v9657_v61  ;;  %4104 = vmatmul.mubr.bf16.vlgmr.msra.gmra.mrb[36].mxu1 %v9661_v47  ;;  %v9720_v61 = vld [vmem:[%s10695_s1 + $0xd08] ss:$12 sps:$4 sm:$0xff]  }
 0x224   :  { %4113 = vmatpush1.bf16.msra.mxu1 %v7225_v21  ;;  %3417 = vmatprep.subr.bf16.mxu0 %v9670_v6  ;;  %v9702_v21 = vld [vmem:[%s10695_s1 + $0xcf0] ss:$12 sps:$4 sm:$0xff]   ;;  %v7227_v6 = vld [vmem:[%s10695_s1 + $0x618] ss:$12 sps:$4 sm:$0xff]   ;;  %10871 = vst [vmem:[#allocation82_spill] sm:$0xff] %v9720_v61 }
 0x225   :  { %4114 = vmatprep.subr.bf16.mxu1 %v7226_v29  ;;  %4144 = vmatprep.mubr.bf16.mxu1 %v9676_v14  ;;  %10869 = vst [vmem:[#allocation80_spill] sm:$0xff] %v9702_v21  ;;  %v9711_v29 = vld [vmem:[%s10695_s1 + $0xd0c] ss:$12 sps:$4 sm:$0xff]  }
 0x226   :  { %10870 = vst [vmem:[#allocation81_spill] sm:$0xff] %v9711_v29 }
 0x227   :  { %3418 = vmatpush1.bf16.msra.mxu0 %v9683_v38  ;;  %v7228_v38 = vld [vmem:[%s10695_s1 + $0x634] ss:$12 sps:$4 sm:$0xff]  }
 0x228   :  { %4115 = vmatpush1.bf16.msra.mxu1 %v7227_v6  ;;  %3419 = vmatprep.subr.bf16.mxu0 %v9692_v18  ;;  %v7229_v6 = vld [vmem:[%s10695_s1 + $0x630] ss:$12 sps:$4 sm:$0xff]  }
 0x229   :  { %4116 = vmatprep.subr.bf16.mxu1 %v7228_v38  ;;  %v9729_v18 = vld [vmem:[%s10695_s1 + $0xd24] ss:$12 sps:$4 sm:$0xff]   ;;  %v7230_v38 = vld [vmem:[%s10695_s1 + $0x64c] ss:$12 sps:$4 sm:$0xff]  }
 0x22a   :  { %10872 = vst [vmem:[#allocation83_spill] sm:$0xff] %v9729_v18 }
 0x22b   :  { %3420 = vmatpush1.bf16.msra.mxu0 %v9702_v21  ;;  %v9738_v21 = vld [vmem:[%s10695_s1 + $0xd20] ss:$12 sps:$4 sm:$0xff]  }
 0x22c   :  { %4117 = vmatpush1.bf16.msra.mxu1 %v7229_v6  ;;  %3421 = vmatprep.subr.bf16.mxu0 %v9711_v29  ;;  %10873 = vst [vmem:[#allocation84_spill] sm:$0xff] %v9738_v21  ;;  %v7231_v6 = vld [vmem:[%s10695_s1 + $0x648] ss:$12 sps:$4 sm:$0xff]  }
 0x22d   :  { %4118 = vmatprep.subr.bf16.mxu1 %v7230_v38  ;;  %v9747_v29 = vld [vmem:[%s10695_s1 + $0xd3c] ss:$12 sps:$4 sm:$0xff]   ;;  %v7232_v38 = vld [vmem:[%s10695_s1 + $0x664] ss:$12 sps:$4 sm:$0xff]  }
 0x22e   :  { %10874 = vst [vmem:[#allocation85_spill] sm:$0xff] %v9747_v29 }
 0x22f   :  { %3422 = vmatpush1.bf16.msra.mxu0 %v9720_v61  ;;  %v9756_v61 = vld [vmem:[%s10695_s1 + $0xd38] ss:$12 sps:$4 sm:$0xff]  }
 0x230   :  { %4119 = vmatpush1.bf16.msra.mxu1 %v7231_v6  ;;  %3423 = vmatprep.subr.bf16.mxu0 %v9729_v18  ;;  %10875 = vst [vmem:[#allocation86_spill] sm:$0xff] %v9756_v61  ;;  %v7233_v6 = vld [vmem:[%s10695_s1 + $0x660] ss:$12 sps:$4 sm:$0xff]  }
 0x231   :  { %4120 = vmatprep.subr.bf16.mxu1 %v7232_v38  ;;  %v9765_v18 = vld [vmem:[%s10695_s1 + $0xd54] ss:$12 sps:$4 sm:$0xff]   ;;  %v7234_v38 = vld [vmem:[%s10695_s1 + $0x67c] ss:$12 sps:$4 sm:$0xff]  }
 0x232   :  { %10876 = vst [vmem:[#allocation87_spill] sm:$0xff] %v9765_v18 }
 0x233   :  { %3424 = vmatpush1.bf16.msra.mxu0 %v9738_v21  ;;  %v9774_v21 = vld [vmem:[%s10695_s1 + $0xd50] ss:$12 sps:$4 sm:$0xff]  }
 0x234   :  { %4121 = vmatpush1.bf16.msra.mxu1 %v7233_v6  ;;  %3425 = vmatprep.subr.bf16.mxu0 %v9747_v29  ;;  %10877 = vst [vmem:[#allocation88_spill] sm:$0xff] %v9774_v21  ;;  %v7235_v6 = vld [vmem:[%s10695_s1 + $0x678] ss:$12 sps:$4 sm:$0xff]  }
 0x235   :  { %4122 = vmatprep.subr.bf16.mxu1 %v7234_v38  ;;  %v9783_v29 = vld [vmem:[%s10695_s1 + $0xd6c] ss:$12 sps:$4 sm:$0xff]   ;;  %v7236_v38 = vld [vmem:[%s10695_s1 + $0x694] ss:$12 sps:$4 sm:$0xff]  }
 0x237   :  { %3426 = vmatpush1.bf16.msra.mxu0 %v9756_v61  ;;  %v9792_v61 = vld [vmem:[%s10695_s1 + $0xd68] ss:$12 sps:$4 sm:$0xff]  }
 0x238   :  { %4123 = vmatpush1.bf16.msra.mxu1 %v7235_v6  ;;  %3427 = vmatprep.subr.bf16.mxu0 %v9765_v18  ;;  %v7237_v6 = vld [vmem:[%s10695_s1 + $0x690] ss:$12 sps:$4 sm:$0xff]   ;;  %v7238_v18 = vld [vmem:[%s10695_s1 + $0x6ac] ss:$12 sps:$4 sm:$0xff]  }
 0x239   :  { %4124 = vmatprep.subr.bf16.mxu1 %v7236_v38  ;;  %v7239_v38 = vld [vmem:[%s10695_s1 + $0x6a8] ss:$12 sps:$4 sm:$0xff]  }
 0x23b   :  { %3428 = vmatpush1.bf16.msra.mxu0 %v9774_v21  ;;  %v7240_v21 = vld [vmem:[%s10695_s1 + $0xc8] ss:$12 sps:$4 sm:$0xff]  }
 0x23c   :  { %4125 = vmatpush1.bf16.msra.mxu1 %v7237_v6  ;;  %3429 = vmatprep.subr.bf16.mxu0 %v9783_v29  ;;  %v7241_v6 = vld [vmem:[%s10695_s1 + $0x6c4] ss:$12 sps:$4 sm:$0xff]  }
 0x23d   :  { %4126 = vmatprep.subr.bf16.mxu1 %v7238_v18  ;;  %v7242_v18 = vld [vmem:[%s10695_s1 + $0x8] ss:$12 sps:$4 sm:$0xff]  }
 0x23f   :  { %3430 = vmatpush1.bf16.msra.mxu0 %v9792_v61 }
 0x240   :  { %4127 = vmatpush1.bf16.msra.mxu1 %v7239_v38  ;;  %6056 = vmatprep.subr.bf16.mxu0 %v7240_v21  ;;  %v7243_v38 = vld [vmem:[%s10695_s1 + $0x6c0] ss:$12 sps:$4 sm:$0xff]  }
 0x241   :  { %4128 = vmatprep.subr.bf16.mxu1 %v7241_v6  ;;  %v7244_v21 = vld [vmem:[%s10695_s1 + $0xe0] ss:$12 sps:$4 sm:$0xff]  }
 0x242   :  { %3432 = vmatmul.mubr.bf16.vlgmr.msra.gmra.mrb[0].mxu0 %v8462_v50  ;;  %v7245_v50 = vld [vmem:[%s10695_s1 + $0x6dc] ss:$12 sps:$4 sm:$0xff]   ;;  %v7246_v6 = vld [vmem:[%s10695_s1 + $0x20] ss:$12 sps:$4 sm:$0xff]  }
 0x243   :  { %6057 = vmatpush3.bf16.msra.mxu0 %v7242_v18  ;;  %4349 = vmatprep.mubr.bf16.mxu0 %v8474_v55  ;;  %v7247_v55 = vld [vmem:[%s10695_s1 + $0x6d8] ss:$12 sps:$4 sm:$0xff]  }
 0x244   :  { %4129 = vmatpush1.bf16.msra.mxu1 %v7243_v38  ;;  %6058 = vmatprep.subr.bf16.mxu0 %v7244_v21  ;;  %v7248_v18 = vld [vmem:[%s10695_s1 + $0xf8] ss:$12 sps:$4 sm:$0xff]   ;;  %v7249_v38 = vld [vmem:[%s10695_s1 + $0x6f4] ss:$12 sps:$4 sm:$0xff]  }
 0x245   :  { %4130 = vmatprep.subr.bf16.mxu1 %v7245_v50  ;;  %v7250_v21 = vld [vmem:[%s10695_s1 + $0x38] ss:$12 sps:$4 sm:$0xff]   ;;  %v7251_v50 = vld [vmem:[%s10695_s1 + $0x6f0] ss:$12 sps:$4 sm:$0xff]  }
 0x247   :  { %6059 = vmatpush3.bf16.msra.mxu0 %v7246_v6  ;;  %v7252_v6 = vld [vmem:[%s10695_s1 + $0x110] ss:$12 sps:$4 sm:$0xff]  }
 0x248   :  { %4131 = vmatpush1.bf16.msra.mxu1 %v7247_v55  ;;  %6060 = vmatprep.subr.bf16.mxu0 %v7248_v18  ;;  %v7253_v55 = vld [vmem:[%s10695_s1 + $0x70c] ss:$12 sps:$4 sm:$0xff]   ;;  %v7254_v18 = vld [vmem:[%s10695_s1 + $0x50] ss:$12 sps:$4 sm:$0xff]  }
 0x249   :  { %4132 = vmatprep.subr.bf16.mxu1 %v7249_v38  ;;  %v7255_v38 = vld [vmem:[%s10695_s1 + $0x708] ss:$12 sps:$4 sm:$0xff]  }
 0x24b   :  { %6061 = vmatpush3.bf16.msra.mxu0 %v7250_v21  ;;  %v7256_v21 = vld [vmem:[%s10695_s1 + $0x128] ss:$12 sps:$4 sm:$0xff]  }
 0x24c   :  { %4133 = vmatpush1.bf16.msra.mxu1 %v7251_v50  ;;  %6062 = vmatprep.subr.bf16.mxu0 %v7252_v6  ;;  %v7257_v50 = vld [vmem:[%s10695_s1 + $0x724] ss:$12 sps:$4 sm:$0xff]   ;;  %v7258_v6 = vld [vmem:[%s10695_s1 + $0x68] ss:$12 sps:$4 sm:$0xff]  }
 0x24d   :  { %4134 = vmatprep.subr.bf16.mxu1 %v7253_v55  ;;  %v7259_v55 = vld [vmem:[%s10695_s1 + $0x720] ss:$12 sps:$4 sm:$0xff]  }
 0x24f   :  { %6063 = vmatpush3.bf16.msra.mxu0 %v7254_v18  ;;  %v7260_v18 = vld [vmem:[%s10695_s1 + $0x140] ss:$12 sps:$4 sm:$0xff]  }
 0x250   :  { %4135 = vmatpush1.bf16.msra.mxu1 %v7255_v38  ;;  %6064 = vmatprep.subr.bf16.mxu0 %v7256_v21  ;;  %v7261_v38 = vld [vmem:[%s10695_s1 + $0x73c] ss:$12 sps:$4 sm:$0xff]   ;;  %v7262_v21 = vld [vmem:[%s10695_s1 + $0x80] ss:$12 sps:$4 sm:$0xff]  }
 0x251   :  { %4136 = vmatprep.subr.bf16.mxu1 %v7257_v50  ;;  %v7263_v50 = vld [vmem:[%s10695_s1 + $0x738] ss:$12 sps:$4 sm:$0xff]  }
 0x253   :  { %6065 = vmatpush3.bf16.msra.mxu0 %v7258_v6  ;;  %v7264_v6 = vld [vmem:[%s10695_s1 + $0x158] ss:$12 sps:$4 sm:$0xff]  }
 0x254   :  { %4137 = vmatpush1.bf16.msra.mxu1 %v7259_v55  ;;  %6066 = vmatprep.subr.bf16.mxu0 %v7260_v18  ;;  %v7265_v55 = vld [vmem:[%s10695_s1 + $0x754] ss:$12 sps:$4 sm:$0xff]   ;;  %v7266_v18 = vld [vmem:[%s10695_s1 + $0x98] ss:$12 sps:$4 sm:$0xff]  }
 0x255   :  { %4138 = vmatprep.subr.bf16.mxu1 %v7261_v38  ;;  %v7267_v38 = vld [vmem:[%s10695_s1 + $0x170] ss:$12 sps:$4 sm:$0xff]  }
 0x257   :  { %6067 = vmatpush3.bf16.msra.mxu0 %v7262_v21  ;;  %v7268_v21 = vld [vmem:[%s10695_s1 + $0xb0] ss:$12 sps:$4 sm:$0xff]  }
 0x258   :  { %4139 = vmatpush1.bf16.msra.mxu1 %v7263_v50  ;;  %6068 = vmatprep.subr.bf16.mxu0 %v7264_v6  ;;  %v9898_v50 = vrot.slane %v9631_v11, %v7527_v31  ;;  %v7270_v11 = vld [vmem:[%s10695_s1 + $0x188] ss:$12 sps:$4 sm:$0xff]  }
 0x259   :  { %4140 = vmatprep.subr.bf16.mxu1 %v7265_v55  ;;  %v7309_v6 = vld [vmem:[%s10695_s1 + $0x5a8] ss:$12 sps:$4 sm:$0xff]  }
 0x25a   :  { %v7310_v55 = vld [vmem:[%s10695_s1 + $0x4e8] ss:$12 sps:$4 sm:$0xff]  }
 0x25b   :  { %6069 = vmatpush3.bf16.msra.mxu0 %v7266_v18  ;;  %v10881_v18 = vld [vmem:[#allocation7_spill] sm:$0xff] }
 0x25c   :  { %4141 = vmatpush1.bf16.msra.mxu1 %v8538_v13  ;;  %6070 = vmatprep.subr.bf16.mxu0 %v7267_v38  ;;  %v7269_v13 = vld [vmem:[%s10695_s1 + $0x248] ss:$12 sps:$4 sm:$0xff]   ;;  %v7311_v38 = vld [vmem:[%s10695_s1 + $0x5c0] ss:$12 sps:$4 sm:$0xff]  }
 0x25d   :  { %4142 = vmatprep.subr.bf16.mxu1 %v8543_v16  ;;  %v9908_v16 = vcombine.high %v9676_v14, %v9676_v14 }
 0x25f   :  { %6071 = vmatpush3.bf16.msra.mxu0 %v7268_v21  ;;  %v10882_v21 = vld [vmem:[#allocation8_spill] sm:$0xff] }
 0x260   :  { %4143 = vmatpush1.bf16.msra.mxu1 %v8558_v30  ;;  %6078 = vmatprep.subr.bf16.mxu0 %v7269_v13  ;;  %v7271_v30 = vld [vmem:[%s10695_s1 + $0x260] ss:$12 sps:$4 sm:$0xff]  }
 0x261   :  { %4153 = vmatprep.subr.bf16.mxu1 %v8567_v34  ;;  %v7272_v34 = vld [vmem:[%s10695_s1 + $0x1a0] ss:$12 sps:$4 sm:$0xff]  }
 0x262   :  { %4350 = vmatmul.mubr.bf16.vlgmr.msra.gmra.mrb[4].mxu0 %v8729_v20  ;;  %v7275_v20 = vld [vmem:[%s10695_s1 + $0x290] ss:$12 sps:$4 sm:$0xff]   ;;  %v7312_v13 = vld [vmem:[%s10695_s1 + $0x500] ss:$12 sps:$4 sm:$0xff]  }
 0x263   :  { %4145 = vmatmul.mubr.bf16.vlgmr.msra.gmra.mrb[36].mxu1 %v9898_v50  ;;  %6079 = vmatpush3.bf16.msra.mxu0 %v7270_v11  ;;  %v10883_v11 = vld [vmem:[#allocation9_spill] sm:$0xff] }
 0x264   :  { %4154 = vmatpush1.bf16.msra.mxu1 %v8576_v35  ;;  %6080 = vmatprep.subr.bf16.mxu0 %v7271_v30  ;;  %v7273_v35 = vld [vmem:[%s10695_s1 + $0x278] ss:$12 sps:$4 sm:$0xff]  }
 0x265   :  { %4155 = vmatprep.subr.bf16.mxu1 %v8585_v37  ;;  %4389 = vmatprep.mubr.bf16.mxu0 %v8745_v43  ;;  %v7274_v37 = vld [vmem:[%s10695_s1 + $0x1b8] ss:$12 sps:$4 sm:$0xff]   ;;  %v7292_v43 = vld [vmem:[%s10695_s1 + $0x350] ss:$12 sps:$4 sm:$0xff]  }
 0x266   :  { %4185 = vmatprep.mubr.bf16.mxu1 %v9908_v16  ;;  %v7313_v30 = vld [vmem:[%s10695_s1 + $0x5d8] ss:$12 sps:$4 sm:$0xff]  }
 0x267   :  { %6081 = vmatpush3.bf16.msra.mxu0 %v7272_v34  ;;  %v10884_v34 = vld [vmem:[#allocation10_spill] sm:$0xff] }
 0x268   :  { %4156 = vmatpush1.bf16.msra.mxu1 %v8595_v39  ;;  %6082 = vmatprep.subr.bf16.mxu0 %v7273_v35  ;;  %v7276_v39 = vld [vmem:[%s10695_s1 + $0x1d0] ss:$12 sps:$4 sm:$0xff]   ;;  %v7314_v35 = vld [vmem:[%s10695_s1 + $0x518] ss:$12 sps:$4 sm:$0xff]  }
 0x269   :  { %4157 = vmatprep.subr.bf16.mxu1 %v8605_v1  ;;  %v7277_v1 = vld [vmem:[%s10695_s1 + $0x2a8] ss:$12 sps:$4 sm:$0xff]  }
 0x26b   :  { %6083 = vmatpush3.bf16.msra.mxu0 %v7274_v37  ;;  %v10885_v37 = vld [vmem:[#allocation11_spill] sm:$0xff] }
 0x26c   :  { %4158 = vmatpush1.bf16.msra.mxu1 %v8614_v5  ;;  %6084 = vmatprep.subr.bf16.mxu0 %v7275_v20  ;;  %v7278_v5 = vld [vmem:[%s10695_s1 + $0x1e8] ss:$12 sps:$4 sm:$0xff]   ;;  %v7315_v20 = vld [vmem:[%s10695_s1 + $0x5f0] ss:$12 sps:$4 sm:$0xff]  }
 0x26d   :  { %4159 = vmatprep.subr.bf16.mxu1 %v8623_v45  ;;  %v7279_v45 = vld [vmem:[%s10695_s1 + $0x2c0] ss:$12 sps:$4 sm:$0xff]  }
 0x26f   :  { %6085 = vmatpush3.bf16.msra.mxu0 %v7276_v39  ;;  %v10886_v39 = vld [vmem:[#allocation12_spill] sm:$0xff] }
 0x270   :  { %4160 = vmatpush1.bf16.msra.mxu1 %v8632_v48  ;;  %6086 = vmatprep.subr.bf16.mxu0 %v7277_v1  ;;  %v7280_v48 = vld [vmem:[%s10695_s1 + $0x200] ss:$12 sps:$4 sm:$0xff]   ;;  %v7316_v1 = vld [vmem:[%s10695_s1 + $0x530] ss:$12 sps:$4 sm:$0xff]  }
 0x271   :  { %4161 = vmatprep.subr.bf16.mxu1 %v8641_v54  ;;  %v7281_v54 = vld [vmem:[%s10695_s1 + $0x2d8] ss:$12 sps:$4 sm:$0xff]  }
 0x273   :  { %6087 = vmatpush3.bf16.msra.mxu0 %v7278_v5  ;;  %v10887_v5 = vld [vmem:[#allocation13_spill] sm:$0xff] }
 0x274   :  { %4162 = vmatpush1.bf16.msra.mxu1 %v8650_v52  ;;  %6088 = vmatprep.subr.bf16.mxu0 %v7279_v45  ;;  %v7282_v52 = vld [vmem:[%s10695_s1 + $0x218] ss:$12 sps:$4 sm:$0xff]   ;;  %v7317_v45 = vld [vmem:[%s10695_s1 + $0x6c8] ss:$12 sps:$4 sm:$0xff]  }
 0x275   :  { %4163 = vmatprep.subr.bf16.mxu1 %v8659_v53  ;;  %v7283_v53 = vld [vmem:[%s10695_s1 + $0x2f0] ss:$12 sps:$4 sm:$0xff]  }
 0x277   :  { %6089 = vmatpush3.bf16.msra.mxu0 %v7280_v48  ;;  %v10888_v48 = vld [vmem:[#allocation14_spill] sm:$0xff] }
 0x278   :  { %4164 = vmatpush1.bf16.msra.mxu1 %v8668_v57  ;;  %6090 = vmatprep.subr.bf16.mxu0 %v7281_v54  ;;  %v7284_v57 = vld [vmem:[%s10695_s1 + $0x230] ss:$12 sps:$4 sm:$0xff]   ;;  %v7318_v54 = vld [vmem:[%s10695_s1 + $0x608] ss:$12 sps:$4 sm:$0xff]  }
 0x279   :  { %4165 = vmatprep.subr.bf16.mxu1 %v8677_v60  ;;  %v7285_v60 = vld [vmem:[%s10695_s1 + $0x3c8] ss:$12 sps:$4 sm:$0xff]  }
 0x27b   :  { %6091 = vmatpush3.bf16.msra.mxu0 %v7282_v52  ;;  %v10889_v52 = vld [vmem:[#allocation15_spill] sm:$0xff] }
 0x27c   :  { %4166 = vmatpush1.bf16.msra.mxu1 %v8686_v3  ;;  %6092 = vmatprep.subr.bf16.mxu0 %v7283_v53  ;;  %v7286_v3 = vld [vmem:[%s10695_s1 + $0x308] ss:$12 sps:$4 sm:$0xff]   ;;  %v7319_v53 = vld [vmem:[%s10695_s1 + $0x6e0] ss:$12 sps:$4 sm:$0xff]  }
 0x27d   :  { %4167 = vmatprep.subr.bf16.mxu1 %v8695_v7  ;;  %v7287_v7 = vld [vmem:[%s10695_s1 + $0x3e0] ss:$12 sps:$4 sm:$0xff]  }
 0x27f   :  { %6093 = vmatpush3.bf16.msra.mxu0 %v7284_v57  ;;  %v10890_v57 = vld [vmem:[#allocation16_spill] sm:$0xff] }
 0x280   :  { %4168 = vmatpush1.bf16.msra.mxu1 %v8707_v10  ;;  %6100 = vmatprep.subr.bf16.mxu0 %v7285_v60  ;;  %v7288_v10 = vld [vmem:[%s10695_s1 + $0x320] ss:$12 sps:$4 sm:$0xff]   ;;  %v10891_v60 = vld [vmem:[#allocation17_spill] sm:$0xff] }
 0x281   :  { %4169 = vmatprep.subr.bf16.mxu1 %v8716_v12  ;;  %v7289_v12 = vld [vmem:[%s10695_s1 + $0x3f8] ss:$12 sps:$4 sm:$0xff]  }
 0x282   :  { %4390 = vmatmul.mubr.bf16.vlgmr.msra.gmra.mrb[8].mxu0 %v9042_v8  ;;  %v10047_v8 = vcombine.high %v9898_v50, %v9898_v50 }
 0x283   :  { %6101 = vmatpush3.bf16.msra.mxu0 %v7286_v3  ;;  %4429 = vmatprep.mubr.bf16.mxu0 %v9057_v33  ;;  %v7300_v33 = vld [vmem:[%s10695_s1 + $0x3b0] ss:$12 sps:$4 sm:$0xff]   ;;  %v10892_v3 = vld [vmem:[#allocation18_spill] sm:$0xff] }
 0x284   :  { %4170 = vmatpush1.bf16.msra.mxu1 %v8725_v17  ;;  %6102 = vmatprep.subr.bf16.mxu0 %v7287_v7  ;;  %v7290_v17 = vld [vmem:[%s10695_s1 + $0x338] ss:$12 sps:$4 sm:$0xff]  }
 0x285   :  { %4171 = vmatprep.subr.bf16.mxu1 %v8738_v23  ;;  %v7291_v23 = vld [vmem:[%s10695_s1 + $0x410] ss:$12 sps:$4 sm:$0xff]   ;;  %v7322_v7 = vld [vmem:[%s10695_s1 + $0x638] ss:$12 sps:$4 sm:$0xff]  }
 0x287   :  { %6103 = vmatpush3.bf16.msra.mxu0 %v7288_v10  ;;  %v10893_v10 = vld [vmem:[#allocation19_spill] sm:$0xff] }
 0x288   :  { %4172 = vmatpush1.bf16.msra.mxu1 %v8752_v28  ;;  %6104 = vmatprep.subr.bf16.mxu0 %v7289_v12  ;;  %v7293_v28 = vld [vmem:[%s10695_s1 + $0x428] ss:$12 sps:$4 sm:$0xff]   ;;  %v7323_v12 = vld [vmem:[%s10695_s1 + $0x710] ss:$12 sps:$4 sm:$0xff]  }
 0x289   :  { %4173 = vmatprep.subr.bf16.mxu1 %v8761_v32  ;;  %v7294_v32 = vld [vmem:[%s10695_s1 + $0x368] ss:$12 sps:$4 sm:$0xff]  }
 0x28b   :  { %6105 = vmatpush3.bf16.msra.mxu0 %v7290_v17  ;;  %v10894_v17 = vld [vmem:[#allocation20_spill] sm:$0xff] }
 0x28c   :  { %4174 = vmatpush1.bf16.msra.mxu1 %v8771_v36  ;;  %6106 = vmatprep.subr.bf16.mxu0 %v7291_v23  ;;  %v7295_v36 = vld [vmem:[%s10695_s1 + $0x440] ss:$12 sps:$4 sm:$0xff]   ;;  %v7324_v23 = vld [vmem:[%s10695_s1 + $0x650] ss:$12 sps:$4 sm:$0xff]  }
 0x28d   :  { %4175 = vmatprep.subr.bf16.mxu1 %v8780_v40  ;;  %v3859_v40 = vcombine.high %v9609_v2, %v9609_v2  ;;  %v7302_v2 = vld [vmem:[%s10695_s1 + $0x488] ss:$12 sps:$4 sm:$0xff]  }
 0x28f   :  { %6107 = vmatpush3.bf16.msra.mxu0 %v7292_v43  ;;  %v10895_v43 = vld [vmem:[#allocation21_spill] sm:$0xff] }
 0x290   :  { %4176 = vmatpush1.bf16.msra.mxu1 %v8789_v44  ;;  %6108 = vmatprep.subr.bf16.mxu0 %v7293_v28  ;;  %v7296_v44 = vld [vmem:[%s10695_s1 + $0x380] ss:$12 sps:$4 sm:$0xff]   ;;  %v7325_v28 = vld [vmem:[%s10695_s1 + $0x728] ss:$12 sps:$4 sm:$0xff]  }
 0x291   :  { %4177 = vmatprep.subr.bf16.mxu1 %v8798_v49  ;;  %v7297_v49 = vld [vmem:[%s10695_s1 + $0x458] ss:$12 sps:$4 sm:$0xff]  }
 0x293   :  { %6109 = vmatpush3.bf16.msra.mxu0 %v7294_v32  ;;  %v10896_v32 = vld [vmem:[#allocation22_spill] sm:$0xff] }
 0x294   :  { %4178 = vmatpush1.bf16.msra.mxu1 %v8807_v58  ;;  %6110 = vmatprep.subr.bf16.mxu0 %v7295_v36  ;;  %v10030_v58 = vrot.slane %v3859_v40, %v7527_v31  ;;  %v7326_v36 = vld [vmem:[%s10695_s1 + $0x668] ss:$12 sps:$4 sm:$0xff]  }
 0x295   :  { %4179 = vmatprep.subr.bf16.mxu1 %v8816_v59  ;;  %v7298_v59 = vld [vmem:[%s10695_s1 + $0x398] ss:$12 sps:$4 sm:$0xff]   ;;  %v10897_v40 = vld [vmem:[#allocation23_spill] sm:$0xff] }
 0x297   :  { %6111 = vmatpush3.bf16.msra.mxu0 %v7296_v44  ;;  %v7327_v44 = vld [vmem:[%s10695_s1 + $0x740] ss:$12 sps:$4 sm:$0xff]  }
 0x298   :  { %4180 = vmatpush1.bf16.msra.mxu1 %v8825_v63  ;;  %6112 = vmatprep.subr.bf16.mxu0 %v7297_v49  ;;  %v7299_v63 = vld [vmem:[%s10695_s1 + $0x470] ss:$12 sps:$4 sm:$0xff]  }
 0x299   :  { %4181 = vmatprep.subr.bf16.mxu1 %v8834_v4  ;;  %v3875_v4 = vcombine.high %v10030_v58, %v10030_v58  ;;  %v10898_v49 = vld [vmem:[#allocation24_spill] sm:$0xff] }
 0x29b   :  { %6113 = vmatpush3.bf16.msra.mxu0 %v7298_v59  ;;  %v7328_v59 = vld [vmem:[%s10695_s1 + $0x680] ss:$12 sps:$4 sm:$0xff]  }
 0x29c   :  { %4182 = vmatpush1.bf16.msra.mxu1 %v8843_v9  ;;  %6114 = vmatprep.subr.bf16.mxu0 %v7299_v63  ;;  %v7301_v9 = vld [vmem:[%s10695_s1 + $0x548] ss:$12 sps:$4 sm:$0xff]   ;;  %v10899_v63 = vld [vmem:[#allocation25_spill] sm:$0xff] }
 0x29d   :  { %4183 = vmatprep.subr.bf16.mxu1 %v8852_v24  ;;  %v10056_v24 = vrot.slane %v3875_v4, %v7527_v31  ;;  %v7329_v4 = vld [vmem:[%s10695_s1 + $0x758] ss:$12 sps:$4 sm:$0xff]  }
 0x29f   :  { %6115 = vmatpush3.bf16.msra.mxu0 %v7300_v33  ;;  %v7330_v33 = vld [vmem:[%s10695_s1 + $0x698] ss:$12 sps:$4 sm:$0xff]  }
 0x2a0   :  { %4184 = vmatpush1.bf16.msra.mxu1 %v8864_v22  ;;  %6122 = vmatprep.subr.bf16.mxu0 %v7301_v9  ;;  %v7303_v22 = vld [vmem:[%s10695_s1 + $0x560] ss:$12 sps:$4 sm:$0xff]  }
 0x2a1   :  { %4194 = vmatprep.subr.bf16.mxu1 %v8873_v51  ;;  %v7304_v51 = vld [vmem:[%s10695_s1 + $0x4a0] ss:$12 sps:$4 sm:$0xff]  }
 0x2a2   :  { %4430 = vmatmul.mubr.bf16.vlgmr.msra.gmra.mrb[12].mxu0 %v9347_v26  ;;  %v7307_v26 = vld [vmem:[%s10695_s1 + $0x590] ss:$12 sps:$4 sm:$0xff]   ;;  %v10900_v9 = vld [vmem:[#allocation26_spill] sm:$0xff] }
 0x2a3   :  { %4186 = vmatmul.mubr.bf16.vlgmr.msra.gmra.mrb[36].mxu1 %v10047_v8  ;;  %6123 = vmatpush3.bf16.msra.mxu0 %v7302_v2  ;;  %v7331_v2 = vld [vmem:[%s10695_s1 + $0x770] ss:$12 sps:$4 sm:$0xff]  }
 0x2a4   :  { %4195 = vmatpush1.bf16.msra.mxu1 %v8882_v56  ;;  %6124 = vmatprep.subr.bf16.mxu0 %v7303_v22  ;;  %v7305_v56 = vld [vmem:[%s10695_s1 + $0x578] ss:$12 sps:$4 sm:$0xff]   ;;  %v10901_v22 = vld [vmem:[#allocation27_spill] sm:$0xff] }
 0x2a5   :  { %4196 = vmatprep.subr.bf16.mxu1 %v8891_v0  ;;  %4469 = vmatprep.mubr.bf16.mxu0 %v9363_v25  ;;  %v7306_v0 = vld [vmem:[%s10695_s1 + $0x4b8] ss:$12 sps:$4 sm:$0xff]   ;;  %v7308_v25 = vld [vmem:[%s10695_s1 + $0x4d0] ss:$12 sps:$4 sm:$0xff]  }
 0x2a6   :  { %4226 = vmatprep.mubr.bf16.mxu1 %v10056_v24 }
 0x2a7   :  { %6125 = vmatpush3.bf16.msra.mxu0 %v7304_v51  ;;  %v7332_v51 = vld [vmem:[%s10695_s1 + $0x6b0] ss:$12 sps:$4 sm:$0xff]  }
 0x2a8   :  { %4197 = vmatpush1.bf16.msra.mxu1 %v8901_v27  ;;  %6126 = vmatprep.subr.bf16.mxu0 %v7305_v56  ;;  %v10878_v27 = vld [vmem:[#allocation4_spill] sm:$0xff] }
 0x2a9   :  { %4198 = vmatprep.subr.bf16.mxu1 %v8911_v42  ;;  %v10879_v42 = vld [vmem:[#allocation5_spill] sm:$0xff]  ;;  %v10902_v56 = vld [vmem:[#allocation28_spill] sm:$0xff] }
 0x2ab   :  { %6127 = vmatpush3.bf16.msra.mxu0 %v7306_v0  ;;  %v7333_v0 = vld [vmem:[%s10695_s1 + $0x848] ss:$12 sps:$4 sm:$0xff]  }
 0x2ac   :  { %4199 = vmatpush1.bf16.msra.mxu1 %v8920_v46  ;;  %6128 = vmatprep.subr.bf16.mxu0 %v7307_v26  ;;  %v10880_v46 = vld [vmem:[#allocation6_spill] sm:$0xff]  ;;  %v10903_v26 = vld [vmem:[#allocation29_spill] sm:$0xff] }
 0x2ad   :  { %4200 = vmatprep.subr.bf16.mxu1 %v10878_v27  ;;  %v10198_v27 = vcombine.high %v10056_v24, %v10056_v24 }
 0x2af   :  { %6129 = vmatpush3.bf16.msra.mxu0 %v7308_v25  ;;  %v10904_v25 = vld [vmem:[#allocation30_spill] sm:$0xff] }
 0x2b0   :  { %4201 = vmatpush1.bf16.msra.mxu1 %v10879_v42  ;;  %6130 = vmatprep.subr.bf16.mxu0 %v7309_v6  ;;  %v7335_v42 = vld [vmem:[%s10695_s1 + $0x860] ss:$12 sps:$4 sm:$0xff]  }
 0x2b1   :  { %4202 = vmatprep.subr.bf16.mxu1 %v10880_v46  ;;  %v10905_v6 = vld [vmem:[#allocation31_spill] sm:$0xff]  ;;  %v10906_v46 = vld [vmem:[#allocation32_spill] sm:$0xff] }
 0x2b3   :  { %6131 = vmatpush3.bf16.msra.mxu0 %v7310_v55  ;;  %v7337_v55 = vld [vmem:[%s10695_s1 + $0x878] ss:$12 sps:$4 sm:$0xff]  }
 0x2b4   :  { %4203 = vmatpush1.bf16.msra.mxu1 %v10881_v18  ;;  %6132 = vmatprep.subr.bf16.mxu0 %v7311_v38  ;;  %v10907_v18 = vld [vmem:[#allocation33_spill] sm:$0xff]  ;;  %v10908_v38 = vld [vmem:[#allocation34_spill] sm:$0xff] }
 0x2b5   :  { %4204 = vmatprep.subr.bf16.mxu1 %v10882_v21  ;;  %v7339_v21 = vld [vmem:[%s10695_s1 + $0x890] ss:$12 sps:$4 sm:$0xff]  }
 0x2b7   :  { %6133 = vmatpush3.bf16.msra.mxu0 %v7312_v13  ;;  %v10909_v13 = vld [vmem:[#allocation35_spill] sm:$0xff] }
 0x2b8   :  { %4205 = vmatpush1.bf16.msra.mxu1 %v10883_v11  ;;  %6134 = vmatprep.subr.bf16.mxu0 %v7313_v30  ;;  %v7340_v11 = vld [vmem:[%s10695_s1 + $0x7d0] ss:$12 sps:$4 sm:$0xff]  }
 0x2b9   :  { %4206 = vmatprep.subr.bf16.mxu1 %v10884_v34  ;;  %v10910_v30 = vld [vmem:[#allocation36_spill] sm:$0xff] }
 0x2ba   :  { %v7341_v34 = vld [vmem:[%s10695_s1 + $0x8a8] ss:$12 sps:$4 sm:$0xff]  }
 0x2bb   :  { %6135 = vmatpush3.bf16.msra.mxu0 %v7314_v35  ;;  %v10911_v35 = vld [vmem:[#allocation37_spill] sm:$0xff] }
 0x2bc   :  { %4207 = vmatpush1.bf16.msra.mxu1 %v10885_v37  ;;  %6136 = vmatprep.subr.bf16.mxu0 %v7315_v20  ;;  %v7342_v37 = vld [vmem:[%s10695_s1 + $0x7e8] ss:$12 sps:$4 sm:$0xff]   ;;  %v10912_v20 = vld [vmem:[#allocation38_spill] sm:$0xff] }
 0x2bd   :  { %4208 = vmatprep.subr.bf16.mxu1 %v10886_v39  ;;  %v7343_v39 = vld [vmem:[%s10695_s1 + $0x8c0] ss:$12 sps:$4 sm:$0xff]  }
 0x2bf   :  { %6137 = vmatpush3.bf16.msra.mxu0 %v7316_v1  ;;  %v10913_v1 = vld [vmem:[#allocation39_spill] sm:$0xff] }
 0x2c0   :  { %4209 = vmatpush1.bf16.msra.mxu1 %v10887_v5  ;;  %6144 = vmatprep.subr.bf16.mxu0 %v7317_v45  ;;  %v7344_v5 = vld [vmem:[%s10695_s1 + $0x800] ss:$12 sps:$4 sm:$0xff]   ;;  %v10914_v45 = vld [vmem:[#allocation40_spill] sm:$0xff] }
 0x2c1   :  { %4210 = vmatprep.subr.bf16.mxu1 %v10888_v48  ;;  %v7345_v48 = vld [vmem:[%s10695_s1 + $0x8d8] ss:$12 sps:$4 sm:$0xff]  }
 0x2c2   :  { %4470 = vmatmul.mubr.bf16.vlgmr.msra.gmra.mrb[16].mxu0 %v9661_v47  ;;  %v7320_v47 = vld [vmem:[%s10695_s1 + $0x620] ss:$12 sps:$4 sm:$0xff]  }
 0x2c3   :  { %6145 = vmatpush3.bf16.msra.mxu0 %v7318_v54  ;;  %4509 = vmatprep.mubr.bf16.mxu0 %v9676_v14  ;;  %v7321_v14 = vld [vmem:[%s10695_s1 + $0x6f8] ss:$12 sps:$4 sm:$0xff]  }
 0x2c4   :  { %4211 = vmatpush1.bf16.msra.mxu1 %v10889_v52  ;;  %6146 = vmatprep.subr.bf16.mxu0 %v7319_v53  ;;  %v10915_v54 = vld [vmem:[#allocation41_spill] sm:$0xff]  ;;  %v10916_v53 = vld [vmem:[#allocation42_spill] sm:$0xff] }
 0x2c5   :  { %4212 = vmatprep.subr.bf16.mxu1 %v10890_v57  ;;  %v7346_v52 = vld [vmem:[%s10695_s1 + $0x818] ss:$12 sps:$4 sm:$0xff]   ;;  %v7347_v57 = vld [vmem:[%s10695_s1 + $0x8f0] ss:$12 sps:$4 sm:$0xff]  }
 0x2c7   :  { %6147 = vmatpush3.bf16.msra.mxu0 %v7320_v47  ;;  %v10917_v47 = vld [vmem:[#allocation43_spill] sm:$0xff] }
 0x2c8   :  { %4213 = vmatpush1.bf16.msra.mxu1 %v10891_v60  ;;  %6148 = vmatprep.subr.bf16.mxu0 %v7321_v14  ;;  %v7348_v60 = vld [vmem:[%s10695_s1 + $0x830] ss:$12 sps:$4 sm:$0xff]  }
 0x2c9   :  { %4214 = vmatprep.subr.bf16.mxu1 %v10892_v3  ;;  %v10918_v14 = vld [vmem:[#allocation44_spill] sm:$0xff] }
 0x2ca   :  { %v7349_v3 = vld [vmem:[%s10695_s1 + $0x9c8] ss:$12 sps:$4 sm:$0xff]  }
 0x2cb   :  { %6149 = vmatpush3.bf16.msra.mxu0 %v7322_v7  ;;  %v10919_v7 = vld [vmem:[#allocation45_spill] sm:$0xff] }
 0x2cc   :  { %4215 = vmatpush1.bf16.msra.mxu1 %v10893_v10  ;;  %6150 = vmatprep.subr.bf16.mxu0 %v7323_v12  ;;  %v7350_v10 = vld [vmem:[%s10695_s1 + $0x908] ss:$12 sps:$4 sm:$0xff]   ;;  %v10920_v12 = vld [vmem:[#allocation46_spill] sm:$0xff] }
 0x2cd   :  { %4216 = vmatprep.subr.bf16.mxu1 %v10894_v17  ;;  %v7351_v17 = vld [vmem:[%s10695_s1 + $0x9e0] ss:$12 sps:$4 sm:$0xff]  }
 0x2cf   :  { %6151 = vmatpush3.bf16.msra.mxu0 %v7324_v23  ;;  %v10921_v23 = vld [vmem:[#allocation47_spill] sm:$0xff] }
 0x2d0   :  { %4217 = vmatpush1.bf16.msra.mxu1 %v10895_v43  ;;  %6152 = vmatprep.subr.bf16.mxu0 %v7325_v28  ;;  %v10922_v43 = vld [vmem:[#allocation48_spill] sm:$0xff]  ;;  %v10923_v28 = vld [vmem:[#allocation49_spill] sm:$0xff] }
 0x2d1   :  { %4218 = vmatprep.subr.bf16.mxu1 %v10896_v32  ;;  %v7354_v32 = vld [vmem:[%s10695_s1 + $0x938] ss:$12 sps:$4 sm:$0xff]  }
 0x2d3   :  { %6153 = vmatpush3.bf16.msra.mxu0 %v7326_v36  ;;  %v10924_v36 = vld [vmem:[#allocation50_spill] sm:$0xff] }
 0x2d4   :  { %4219 = vmatpush1.bf16.msra.mxu1 %v10897_v40  ;;  %6154 = vmatprep.subr.bf16.mxu0 %v7327_v44  ;;  %v7355_v40 = vld [vmem:[%s10695_s1 + $0xa10] ss:$12 sps:$4 sm:$0xff]   ;;  %v10925_v44 = vld [vmem:[#allocation51_spill] sm:$0xff] }
 0x2d5   :  { %4220 = vmatprep.subr.bf16.mxu1 %v10898_v49  ;;  %v7356_v49 = vld [vmem:[%s10695_s1 + $0x950] ss:$12 sps:$4 sm:$0xff]  }
 0x2d7   :  { %6155 = vmatpush3.bf16.msra.mxu0 %v7328_v59  ;;  %v10926_v59 = vld [vmem:[#allocation52_spill] sm:$0xff] }
 0x2d8   :  { %4221 = vmatpush1.bf16.msra.mxu1 %v10899_v63  ;;  %6156 = vmatprep.subr.bf16.mxu0 %v7329_v4  ;;  %v7357_v63 = vld [vmem:[%s10695_s1 + $0xa28] ss:$12 sps:$4 sm:$0xff]   ;;  %v10927_v4 = vld [vmem:[#allocation53_spill] sm:$0xff] }
 0x2d9   :  { %4222 = vmatprep.subr.bf16.mxu1 %v9146_v41  ;;  %v10188_v41 = vrot.slane %v10030_v58, %v7527_v31  ;;  %v7334_v58 = vld [vmem:[%s10695_s1 + $0x788] ss:$12 sps:$4 sm:$0xff]  }
 0x2db   :  { %6157 = vmatpush3.bf16.msra.mxu0 %v7330_v33  ;;  %v7358_v33 = vld [vmem:[%s10695_s1 + $0x968] ss:$12 sps:$4 sm:$0xff]  }
 0x2dc   :  { %4223 = vmatpush1.bf16.msra.mxu1 %v10900_v9  ;;  %6158 = vmatprep.subr.bf16.mxu0 %v7331_v2  ;;  %v10928_v9 = vld [vmem:[#allocation54_spill] sm:$0xff] }
 0x2dd   :  { %4224 = vmatprep.subr.bf16.mxu1 %v10901_v22  ;;  %v7359_v2 = vld [vmem:[%s10695_s1 + $0xa40] ss:$12 sps:$4 sm:$0xff]  }
 0x2df   :  { %6159 = vmatpush3.bf16.msra.mxu0 %v7332_v51  ;;  %v10929_v51 = vld [vmem:[#allocation55_spill] sm:$0xff] }
 0x2e0   :  { %4225 = vmatpush1.bf16.msra.mxu1 %v10902_v56  ;;  %6166 = vmatprep.subr.bf16.mxu0 %v7333_v0 }
 0x2e1   :  { %4235 = vmatprep.subr.bf16.mxu1 %v10903_v26  ;;  %v7360_v26 = vld [vmem:[%s10695_s1 + $0x980] ss:$12 sps:$4 sm:$0xff]  }
 0x2e2   :  { %4510 = vmatmul.mubr.bf16.vlgmr.msra.gmra.mrb[20].mxu0 %v9898_v50  ;;  %v7336_v50 = vld [vmem:[%s10695_s1 + $0x7a0] ss:$12 sps:$4 sm:$0xff]  }
 0x2e3   :  { %4227 = vmatmul.mubr.bf16.vlgmr.msra.gmra.mrb[36].mxu1 %v10188_v41  ;;  %6167 = vmatpush3.bf16.msra.mxu0 %v7334_v58  ;;  %v10930_v58 = vld [vmem:[#allocation56_spill] sm:$0xff] }
 0x2e4   :  { %4236 = vmatpush1.bf16.msra.mxu1 %v10904_v25  ;;  %6168 = vmatprep.subr.bf16.mxu0 %v7335_v42  ;;  %v7361_v42 = vld [vmem:[%s10695_s1 + $0xa58] ss:$12 sps:$4 sm:$0xff]  }
 0x2e5   :  { %4237 = vmatprep.subr.bf16.mxu1 %v10905_v6  ;;  %4549 = vmatprep.mubr.bf16.mxu0 %v9908_v16  ;;  %v7338_v16 = vld [vmem:[%s10695_s1 + $0x7b8] ss:$12 sps:$4 sm:$0xff]  }
 0x2e6   :  { %4267 = vmatprep.mubr.bf16.mxu1 %v10198_v27  ;;  %v7362_v6 = vld [vmem:[%s10695_s1 + $0x998] ss:$12 sps:$4 sm:$0xff]  }
 0x2e7   :  { %6169 = vmatpush3.bf16.msra.mxu0 %v7336_v50  ;;  %v10327_v50 = vld.sshfl [vmem:[%s10696_s0 + $0x22] sm:$0x11 pattern:$0x75316420] }
 0x2e8   :  { %4238 = vmatpush1.bf16.msra.mxu1 %v10906_v46  ;;  %6170 = vmatprep.subr.bf16.mxu0 %v7337_v55  ;;  %v7363_v46 = vld [vmem:[%s10695_s1 + $0xa70] ss:$12 sps:$4 sm:$0xff]  }
 0x2e9   :  { %4239 = vmatprep.subr.bf16.mxu1 %v10907_v18  ;;  %v7364_v55 = vld [vmem:[%s10695_s1 + $0x9b0] ss:$12 sps:$4 sm:$0xff]   ;;  %v3905_v18 = vcombine.high %v10188_v41, %v10188_v41 }
 0x2eb   :  { %6171 = vmatpush3.bf16.msra.mxu0 %v7338_v16  ;;  %v10931_v16 = vld [vmem:[#allocation58_spill] sm:$0xff] }
 0x2ec   :  { %4240 = vmatpush1.bf16.msra.mxu1 %v10908_v38  ;;  %6172 = vmatprep.subr.bf16.mxu0 %v7339_v21  ;;  %v10932_v38 = vld [vmem:[#allocation59_spill] sm:$0xff] }
 0x2ed   :  { %4241 = vmatprep.subr.bf16.mxu1 %v10909_v13  ;;  %v7366_v21 = vld [vmem:[%s10695_s1 + $0xa88] ss:$12 sps:$4 sm:$0xff]  }
 0x2ee   :  { %v10933_v13 = vld [vmem:[#allocation60_spill] sm:$0xff] }
 0x2ef   :  { %6173 = vmatpush3.bf16.msra.mxu0 %v7340_v11  ;;  %v7367_v11 = vld [vmem:[%s10695_s1 + $0xb60] ss:$12 sps:$4 sm:$0xff]  }
 0x2f0   :  { %4242 = vmatpush1.bf16.msra.mxu1 %v10910_v30  ;;  %6174 = vmatprep.subr.bf16.mxu0 %v7341_v34  ;;  %v10934_v30 = vld [vmem:[#allocation61_spill] sm:$0xff]  ;;  %v10935_v34 = vld [vmem:[#allocation62_spill] sm:$0xff] }
 0x2f1   :  { %4243 = vmatprep.subr.bf16.mxu1 %v10911_v35  ;;  %v7369_v35 = vld [vmem:[%s10695_s1 + $0xb78] ss:$12 sps:$4 sm:$0xff]  }
 0x2f3   :  { %6175 = vmatpush3.bf16.msra.mxu0 %v7342_v37  ;;  %v10936_v37 = vld [vmem:[#allocation63_spill] sm:$0xff] }
 0x2f4   :  { %4244 = vmatpush1.bf16.msra.mxu1 %v10912_v20  ;;  %6176 = vmatprep.subr.bf16.mxu0 %v7343_v39  ;;  %v7370_v20 = vld [vmem:[%s10695_s1 + $0xab8] ss:$12 sps:$4 sm:$0xff]   ;;  %v7371_v39 = vld [vmem:[%s10695_s1 + $0xb90] ss:$12 sps:$4 sm:$0xff]  }
 0x2f5   :  { %4245 = vmatprep.subr.bf16.mxu1 %v10913_v1  ;;  %v10938_v1 = vld [vmem:[#allocation65_spill] sm:$0xff] }
 0x2f7   :  { %6177 = vmatpush3.bf16.msra.mxu0 %v7344_v5  ;;  %v7372_v5 = vld [vmem:[%s10695_s1 + $0xad0] ss:$12 sps:$4 sm:$0xff]  }
 0x2f8   :  { %4246 = vmatpush1.bf16.msra.mxu1 %v10914_v45  ;;  %6178 = vmatprep.subr.bf16.mxu0 %v7345_v48  ;;  %v10939_v45 = vld [vmem:[#allocation66_spill] sm:$0xff]  ;;  %v7373_v48 = vld [vmem:[%s10695_s1 + $0xba8] ss:$12 sps:$4 sm:$0xff]  }
 0x2f9   :  { %4247 = vmatprep.subr.bf16.mxu1 %v10915_v54  ;;  %v10940_v54 = vld [vmem:[#allocation67_spill] sm:$0xff] }
 0x2fb   :  { %6179 = vmatpush3.bf16.msra.mxu0 %v7346_v52  ;;  %v7374_v52 = vld [vmem:[%s10695_s1 + $0xae8] ss:$12 sps:$4 sm:$0xff]  }
 0x2fc   :  { %4248 = vmatpush1.bf16.msra.mxu1 %v10916_v53  ;;  %6180 = vmatprep.subr.bf16.mxu0 %v7347_v57  ;;  %v10941_v53 = vld [vmem:[#allocation68_spill] sm:$0xff]  ;;  %v7375_v57 = vld [vmem:[%s10695_s1 + $0xbc0] ss:$12 sps:$4 sm:$0xff]  }
 0x2fd   :  { %4249 = vmatprep.subr.bf16.mxu1 %v10917_v47  ;;  %v10942_v47 = vld [vmem:[#allocation69_spill] sm:$0xff] }
 0x2ff   :  { %6181 = vmatpush3.bf16.msra.mxu0 %v7348_v60 }
 0x300   :  { %4250 = vmatpush1.bf16.msra.mxu1 %v10918_v14  ;;  %6188 = vmatprep.subr.bf16.mxu0 %v7349_v3  ;;  %v7376_v3 = vld [vmem:[%s10695_s1 + $0xb00] ss:$12 sps:$4 sm:$0xff]  }
 0x301   :  { %4251 = vmatprep.subr.bf16.mxu1 %v10919_v7 }
 0x302   :  { %4550 = vmatmul.mubr.bf16.vlgmr.msra.gmra.mrb[24].mxu0 %v10047_v8  ;;  %v7352_v8 = vld [vmem:[%s10695_s1 + $0x920] ss:$12 sps:$4 sm:$0xff]  }
 0x303   :  { %6189 = vmatpush3.bf16.msra.mxu0 %v7350_v10  ;;  %4589 = vmatprep.mubr.bf16.mxu0 %v10056_v24  ;;  %v7353_v24 = vld [vmem:[%s10695_s1 + $0x9f8] ss:$12 sps:$4 sm:$0xff]  }
 0x304   :  { %4252 = vmatpush1.bf16.msra.mxu1 %v10920_v12  ;;  %6190 = vmatprep.subr.bf16.mxu0 %v7351_v17  ;;  %v10943_v12 = vld [vmem:[#allocation70_spill] sm:$0xff] }
 0x305   :  { %4253 = vmatprep.subr.bf16.mxu1 %v10921_v23  ;;  %v7377_v23 = vld [vmem:[%s10695_s1 + $0xbd8] ss:$12 sps:$4 sm:$0xff]  }
 0x307   :  { %6191 = vmatpush3.bf16.msra.mxu0 %v7352_v8  ;;  %v10944_v8 = vld [vmem:[#allocation71_spill] sm:$0xff] }
 0x308   :  { %4254 = vmatpush1.bf16.msra.mxu1 %v10922_v43  ;;  %6192 = vmatprep.subr.bf16.mxu0 %v7353_v24  ;;  %v7378_v43 = vld [vmem:[%s10695_s1 + $0xb18] ss:$12 sps:$4 sm:$0xff]   ;;  %v10945_v24 = vld [vmem:[#allocation72_spill] sm:$0xff] }
 0x309   :  { %4255 = vmatprep.subr.bf16.mxu1 %v10923_v28  ;;  %v7379_v28 = vld [vmem:[%s10695_s1 + $0xbf0] ss:$12 sps:$4 sm:$0xff]  }
 0x30b   :  { %6193 = vmatpush3.bf16.msra.mxu0 %v7354_v32  ;;  %v10946_v32 = vld [vmem:[#allocation73_spill] sm:$0xff] }
 0x30c   :  { %4256 = vmatpush1.bf16.msra.mxu1 %v10924_v36  ;;  %6194 = vmatprep.subr.bf16.mxu0 %v7355_v40  ;;  %v7380_v36 = vld [vmem:[%s10695_s1 + $0xb30] ss:$12 sps:$4 sm:$0xff]   ;;  %v10947_v40 = vld [vmem:[#allocation74_spill] sm:$0xff] }
 0x30d   :  { %4257 = vmatprep.subr.bf16.mxu1 %v10925_v44  ;;  %v7381_v44 = vld [vmem:[%s10695_s1 + $0xcc8] ss:$12 sps:$4 sm:$0xff]  }
 0x30f   :  { %6195 = vmatpush3.bf16.msra.mxu0 %v7356_v49  ;;  %v10948_v49 = vld [vmem:[#allocation75_spill] sm:$0xff] }
 0x310   :  { %4258 = vmatpush1.bf16.msra.mxu1 %v10926_v59  ;;  %6196 = vmatprep.subr.bf16.mxu0 %v7357_v63  ;;  %v7382_v59 = vld [vmem:[%s10695_s1 + $0xc08] ss:$12 sps:$4 sm:$0xff]  }
 0x311   :  { %4259 = vmatprep.subr.bf16.mxu1 %v10927_v4  ;;  %v10949_v63 = vld [vmem:[#allocation76_spill] sm:$0xff]  ;;  %v7383_v4 = vld [vmem:[%s10695_s1 + $0xce0] ss:$12 sps:$4 sm:$0xff]  }
 0x313   :  { %6197 = vmatpush3.bf16.msra.mxu0 %v7358_v33  ;;  %v10950_v33 = vld [vmem:[#allocation77_spill] sm:$0xff] }
 0x314   :  { %4260 = vmatpush1.bf16.msra.mxu1 %v10928_v9  ;;  %6198 = vmatprep.subr.bf16.mxu0 %v7359_v2  ;;  %v7384_v9 = vld [vmem:[%s10695_s1 + $0xc20] ss:$12 sps:$4 sm:$0xff]  }
 0x315   :  { %v10308_v22 = vpop.f32.mrb[0].mxu0  ;;  %4261 = vmatprep.subr.bf16.mxu1 %v10929_v51  ;;  %v10951_v2 = vld [vmem:[#allocation78_spill] sm:$0xff] }
 0x316   :  { %v10311_v56 = vpop.f32.mrb[1].mxu0  ;;  %v7385_v51 = vld [vmem:[%s10695_s1 + $0xcf8] ss:$12 sps:$4 sm:$0xff]  }
 0x317   :  { %v3437_v0 = vpop.f32.mrb[2].mxu0  ;;  %6199 = vmatpush3.bf16.msra.mxu0 %v7360_v26  ;;  %v7386_v26 = vld [vmem:[%s10695_s1 + $0xc38] ss:$12 sps:$4 sm:$0xff]  }
 0x318   :  { %4262 = vmatpush1.bf16.msra.mxu1 %v10930_v58  ;;  %v3438_v25 = vpop.f32.mrb[3].mxu0  ;;  %6200 = vmatprep.subr.bf16.mxu0 %v7361_v42  ;;  %v10952_v0 = vld [vmem:[#allocation79_spill] sm:$0xff]  ;;  %v10953_v58 = vld [vmem:[#allocation80_spill] sm:$0xff]  ;;  %v10954_v42 = vld [vmem:[#allocation81_spill] sm:$0xff] }
 0x319   :  { %4263 = vmatprep.subr.bf16.mxu1 %v9452_v62  ;;  %v3915_v62 = vcombine.high %v10327_v50, %v10327_v50  ;;  %v7387_v25 = vld [vmem:[%s10695_s1 + $0xd10] ss:$12 sps:$4 sm:$0xff]  }
 0x31b   :  { %6201 = vmatpush3.bf16.msra.mxu0 %v7362_v6  ;;  %v7388_v6 = vld [vmem:[%s10695_s1 + $0xc50] ss:$12 sps:$4 sm:$0xff]  }
 0x31c   :  { %4264 = vmatpush1.bf16.msra.mxu1 %v9461_v15  ;;  %6202 = vmatprep.subr.bf16.mxu0 %v7363_v46  ;;  %v7365_v15 = vld [vmem:[%s10695_s1 + $0xb48] ss:$12 sps:$4 sm:$0xff]   ;;  %v10955_v46 = vld [vmem:[#allocation82_spill] sm:$0xff] }
 0x31d   :  { %4265 = vmatprep.subr.bf16.mxu1 %v9470_v19  ;;  %v3929_v19 = vrot.slane %v3915_v62, %v7527_v31  ;;  %v7389_v62 = vld [vmem:[%s10695_s1 + $0xd28] ss:$12 sps:$4 sm:$0xff]  }
 0x31f   :  { %6203 = vmatpush3.bf16.msra.mxu0 %v7364_v55  ;;  %v10956_v55 = vld [vmem:[#allocation83_spill] sm:$0xff] }
 0x320   :  { %4266 = vmatpush1.bf16.msra.mxu1 %v10931_v16  ;;  %6210 = vmatprep.subr.bf16.mxu0 %v7365_v15  ;;  %v10957_v16 = vld [vmem:[#allocation84_spill] sm:$0xff]  ;;  %v7391_v15 = vld [vmem:[%s10695_s1 + $0xd40] ss:$12 sps:$4 sm:$0xff]  }
 0x321   :  { %4276 = vmatprep.subr.bf16.mxu1 %v10932_v38 }
 0x322   :  { %4590 = vmatmul.mubr.bf16.vlgmr.msra.gmra.mrb[28].mxu0 %v10188_v41  ;;  %v7368_v41 = vld [vmem:[%s10695_s1 + $0xaa0] ss:$12 sps:$4 sm:$0xff]  }
 0x323   :  { %4268 = vmatmul.mubr.bf16.vlgmr.msra.gmra.mrb[36].mxu1 %v3905_v18  ;;  %6211 = vmatpush3.bf16.msra.mxu0 %v7366_v21 }
 0x324   :  { %4277 = vmatpush1.bf16.msra.mxu1 %v10933_v13  ;;  %6212 = vmatprep.subr.bf16.mxu0 %v7367_v11  ;;  %v10959_v13 = vld [vmem:[#allocation3_spill] sm:$0xff] }
 0x325   :  { %4278 = vmatprep.subr.bf16.mxu1 %v10934_v30  ;;  %4629 = vmatprep.mubr.bf16.mxu0 %v10198_v27  ;;  %v10937_v27 = vld [vmem:[#allocation64_spill] sm:$0xff] }
 0x326   :  { %4308 = vmatprep.mubr.bf16.mxu1 %v3929_v19 }
 0x327   :  { %6213 = vmatpush3.bf16.msra.mxu0 %v7368_v41  ;;  %v7392_v41 = vld [vmem:[%s10695_s1 + $0xc80] ss:$12 sps:$4 sm:$0xff]  }
 0x328   :  { %4279 = vmatpush1.bf16.msra.mxu1 %v10935_v34  ;;  %6214 = vmatprep.subr.bf16.mxu0 %v7369_v35  ;;  %v10960_v35 = vld [vmem:[#allocation86_spill] sm:$0xff] }
 0x329   :  { %4280 = vmatprep.subr.bf16.mxu1 %v10936_v37 }
 0x32b   :  { %6215 = vmatpush3.bf16.msra.mxu0 %v7370_v20  ;;  %v7393_v20 = vld [vmem:[%s10695_s1 + $0xd58] ss:$12 sps:$4 sm:$0xff]  }
 0x32c   :  { %4281 = vmatpush1.bf16.msra.mxu1 %v10937_v27  ;;  %6216 = vmatprep.subr.bf16.mxu0 %v7371_v39  ;;  %v10961_v39 = vld [vmem:[#allocation87_spill] sm:$0xff] }
 0x32d   :  { %4282 = vmatprep.subr.bf16.mxu1 %v10938_v1  ;;  %v7394_v1 = vld [vmem:[%s10695_s1 + $0xc98] ss:$12 sps:$4 sm:$0xff]  }
 0x32f   :  { %6217 = vmatpush3.bf16.msra.mxu0 %v7372_v5  ;;  %v10962_v5 = vld [vmem:[#allocation88_spill] sm:$0xff] }
 0x330   :  { %4283 = vmatpush1.bf16.msra.mxu1 %v10939_v45  ;;  %6218 = vmatprep.subr.bf16.mxu0 %v7373_v48  ;;  %v7395_v45 = vld [vmem:[%s10695_s1 + $0xd70] ss:$12 sps:$4 sm:$0xff]   ;;  %v3922_v48 = vrot.slane %v10327_v50, %v7527_v31 }
 0x331   :  { %4284 = vmatprep.subr.bf16.mxu1 %v10940_v54  ;;  %v7396_v54 = vld [vmem:[%s10695_s1 + $0xcb0] ss:$12 sps:$4 sm:$0xff]  }
 0x333   :  { %6219 = vmatpush3.bf16.msra.mxu0 %v7374_v52 }
 0x334   :  { %4285 = vmatpush1.bf16.msra.mxu1 %v10941_v53  ;;  %6220 = vmatprep.subr.bf16.mxu0 %v7375_v57 }
 0x335   :  { %4286 = vmatprep.subr.bf16.mxu1 %v10942_v47  ;;  %v6072_v60 = vpop.f32.mrb[4].mxu0 }
 0x336   :  { %v6073_v14 = vpop.f32.mrb[5].mxu0 }
 0x337   :  { %6221 = vmatpush3.bf16.msra.mxu0 %v7376_v3  ;;  %v6074_v7 = vadd.f32 %v6073_v14, %v6072_v60  ;;  %v6075_v10 = vpop.f32.mrb[6].mxu0 }
 0x338   :  { %4287 = vmatpush1.bf16.msra.mxu1 %v10943_v12  ;;  %v6076_v17 = vpop.f32.mrb[7].mxu0  ;;  %6222 = vmatprep.subr.bf16.mxu0 %v7377_v23  ;;  %v7036_v12 = vld [vmem:[%s10698_s4 + $0x40] sm:$0xff]  }
 0x339   :  { %4288 = vmatprep.subr.bf16.mxu1 %v10944_v8  ;;  %v4352_v11 = vadd.f32 %v6074_v7, %v10959_v13  ;;  %v7399_v17 = vmov 0.0   ;;  %v7038_v23 = vld [vmem:[%s10698_s4 + $0x80] sm:$0xff]   ;;  %v7039_v8 = vld [vmem:[%s10698_s4 + $0x48] sm:$0xff]  }
 0x33b   :  { %6223 = vmatpush3.bf16.msra.mxu0 %v7378_v43  ;;  %v7040_v43 = vld [vmem:[%s10698_s4 + $0x8] sm:$0xff]  }
 0x33c   :  { %4289 = vmatpush1.bf16.msra.mxu1 %v10945_v24  ;;  %6224 = vmatprep.subr.bf16.mxu0 %v7379_v28  ;;  %v7041_v24 = vld [vmem:[%s10698_s4 + $0x88] sm:$0xff]   ;;  %v7042_v28 = vld [vmem:[%s10698_s4 + $0x50] sm:$0xff]  }
 0x33d   :  { %4290 = vmatprep.subr.bf16.mxu1 %v10946_v32  ;;  %v7043_v32 = vld [vmem:[%s10698_s4 + $0x10] sm:$0xff]  }
 0x33f   :  { %6225 = vmatpush3.bf16.msra.mxu0 %v7380_v36  ;;  %v7044_v36 = vld [vmem:[%s10698_s4 + $0x90] sm:$0xff]  }
 0x340   :  { %4291 = vmatpush1.bf16.msra.mxu1 %v10947_v40  ;;  %6232 = vmatprep.subr.bf16.mxu0 %v7381_v44  ;;  %v7045_v40 = vld [vmem:[%s10698_s4 + $0x58] sm:$0xff]  }
 0x341   :  { %4292 = vmatprep.subr.bf16.mxu1 %v10948_v49  ;;  %v7046_v44 = vld [vmem:[%s10698_s4 + $0x18] sm:$0xff]  }
 0x342   :  { %4630 = vmatmul.mubr.bf16.vlgmr.msra.gmra.mrb[32].mxu0 %v3905_v18  ;;  %v7390_v18 = vld [vmem:[%s10695_s1 + $0xc68] ss:$12 sps:$4 sm:$0xff]   ;;  %v7047_v49 = vld [vmem:[%s10698_s4 + $0x98] sm:$0xff]  }
 0x343   :  { %6233 = vmatpush3.bf16.msra.mxu0 %v7382_v59  ;;  %4669 = vmatprep.mubr.bf16.mxu0 %v3929_v19  ;;  %v10958_v19 = vld [vmem:[#allocation85_spill] sm:$0xff]  ;;  %v7048_v59 = vld [vmem:[%s10698_s4 + $0x60] sm:$0xff]  }
 0x344   :  { %4293 = vmatpush1.bf16.msra.mxu1 %v10949_v63  ;;  %6234 = vmatprep.subr.bf16.mxu0 %v7383_v4  ;;  %v7049_v63 = vld [vmem:[%s10698_s4 + $0x20] sm:$0xff]  }
 0x345   :  { %4294 = vmatprep.subr.bf16.mxu1 %v10950_v33  ;;  %v7050_v4 = vld [vmem:[%s10698_s4 + $0xa0] sm:$0xff]   ;;  %v7051_v33 = vld [vmem:[%s10698_s4 + $0x68] sm:$0xff]  }
 0x347   :  { %6235 = vmatpush3.bf16.msra.mxu0 %v7384_v9  ;;  %v7052_v9 = vld [vmem:[%s10698_s4 + $0x28] sm:$0xff]  }
 0x348   :  { %4295 = vmatpush1.bf16.msra.mxu1 %v10951_v2  ;;  %6236 = vmatprep.subr.bf16.mxu0 %v7385_v51  ;;  %v7053_v2 = vld [vmem:[%s10698_s4 + $0xa8] sm:$0xff]   ;;  %v7054_v51 = vld [vmem:[%s10698_s4 + $0x70] sm:$0xff]  }
 0x349   :  { %4296 = vmatprep.subr.bf16.mxu1 %v10952_v0 }
 0x34b   :  { %6237 = vmatpush3.bf16.msra.mxu0 %v7386_v26  ;;  %v7055_v26 = vld [vmem:[%s10698_s4 + $0x30] sm:$0xff]  }
 0x34c   :  { %4297 = vmatpush1.bf16.msra.mxu1 %v10953_v58  ;;  %6238 = vmatprep.subr.bf16.mxu0 %v7387_v25  ;;  %v7056_v25 = vld [vmem:[%s10698_s4 + $0xb0] sm:$0xff]  }
 0x34d   :  { %4298 = vmatprep.subr.bf16.mxu1 %v10954_v42 }
 0x34f   :  { %6239 = vmatpush3.bf16.msra.mxu0 %v7388_v6 }
 0x350   :  { %4299 = vmatpush1.bf16.msra.mxu1 %v10955_v46  ;;  %6240 = vmatprep.subr.bf16.mxu0 %v7389_v62  ;;  %v7057_v62 = vld [vmem:[%s10698_s4 + $0x78] sm:$0xff]  }
 0x351   :  { %4300 = vmatprep.subr.bf16.mxu1 %v10956_v55 }
 0x353   :  { %6241 = vmatpush3.bf16.msra.mxu0 %v7390_v18  ;;  %v7058_v18 = vld [vmem:[%s10698_s4 + $0x38] sm:$0xff]  }
 0x354   :  { %4301 = vmatpush1.bf16.msra.mxu1 %v10957_v16  ;;  %6242 = vmatprep.subr.bf16.mxu0 %v7391_v15  ;;  %v7059_v16 = vld [vmem:[%s10698_s4 + $0xb8] sm:$0xff]   ;;  %v7060_v15 = vld [vmem:[%s10699_s3 + $0x40] sm:$0xff]  }
 0x355   :  { %v6094_v38 = vpop.f32.mrb[8].mxu0  ;;  %4302 = vmatprep.subr.bf16.mxu1 %v10958_v19 }
 0x356   :  { %v6095_v21 = vpop.f32.mrb[9].mxu0 }
 0x357   :  { %v6096_v30 = vadd.f32 %v6095_v21, %v6094_v38  ;;  %6243 = vmatpush3.bf16.msra.mxu0 %v7392_v41  ;;  %v6097_v34 = vpop.f32.mrb[10].mxu0 }
 0x358   :  { %4303 = vmatpush1.bf16.msra.mxu1 %v10960_v35  ;;  %v6098_v37 = vpop.f32.mrb[11].mxu0  ;;  %6244 = vmatprep.subr.bf16.mxu0 %v7393_v20 }
 0x359   :  { %v4392_v27 = vadd.f32 %v6096_v30, %v4352_v11  ;;  %4304 = vmatprep.subr.bf16.mxu1 %v10961_v39 }
 0x35b   :  { %6245 = vmatpush3.bf16.msra.mxu0 %v7394_v1 }
 0x35c   :  { %4305 = vmatpush1.bf16.msra.mxu1 %v10962_v5  ;;  %6246 = vmatprep.subr.bf16.mxu0 %v7395_v45 }
 0x35d   :  { %4306 = vmatprep.subr.bf16.mxu1 %v9783_v29 }
 0x35f   :  { %6247 = vmatpush3.bf16.msra.mxu0 %v7396_v54 }
 0x360   :  { %4307 = vmatpush1.bf16.msra.mxu1 %v9792_v61  ;;  %v7037_v61 = vld [vmem:[%s10698_s4] sm:$0xff]   ;;  %6254 = vmatprep.subr.bf16.mxu0 %v7036_v12 }
 0x361   :  { %6325 = vmatprep.subr.bf16.mxu1 %v7399_v17 }
 0x362   :  { %4670 = vmatmul.mubr.bf16.vlgmr.msra.gmra.mrb[36].mxu0 %v3922_v48 }
 0x363   :  { %4309 = vmatmul.mubr.bf16.vlgmr.msra.gmra.mrb[36].mxu1 %v3922_v48  ;;  %6255 = vmatpush3.bf16.msra.mxu0 %v7037_v61 }
 0x364   :  { %6326 = vmatpush3.bf16.msra.mxu1 %v7038_v23  ;;  %6256 = vmatprep.subr.bf16.mxu0 %v7039_v8 }
 0x365   :  { %6327 = vmatprep.subr.bf16.mxu1 %v7399_v17  ;;  %6341 = vmatprep.mubr.msk.bf16.mxu1 %vm7400_vm0, %v7399_v17 }
 0x367   :  { %6257 = vmatpush3.bf16.msra.mxu0 %v7040_v43 }
 0x368   :  { %6328 = vmatpush3.bf16.msra.mxu1 %v7041_v24  ;;  %6258 = vmatprep.subr.bf16.mxu0 %v7042_v28 }
 0x369   :  { %6329 = vmatprep.subr.bf16.mxu1 %v7399_v17 }
 0x36b   :  { %6259 = vmatpush3.bf16.msra.mxu0 %v7043_v32 }
 0x36c   :  { %6330 = vmatpush3.bf16.msra.mxu1 %v7044_v36  ;;  %6260 = vmatprep.subr.bf16.mxu0 %v7045_v40 }
 0x36d   :  { %6331 = vmatprep.subr.bf16.mxu1 %v7399_v17 }
 0x36f   :  { %6261 = vmatpush3.bf16.msra.mxu0 %v7046_v44 }
 0x370   :  { %6332 = vmatpush3.bf16.msra.mxu1 %v7047_v49  ;;  %6262 = vmatprep.subr.bf16.mxu0 %v7048_v59 }
 0x371   :  { %6333 = vmatprep.subr.bf16.mxu1 %v7399_v17 }
 0x373   :  { %6263 = vmatpush3.bf16.msra.mxu0 %v7049_v63 }
 0x374   :  { %6334 = vmatpush3.bf16.msra.mxu1 %v7050_v4  ;;  %6264 = vmatprep.subr.bf16.mxu0 %v7051_v33  ;;  %v7062_v4 = vld [vmem:[%s10699_s3 + $0x80] sm:$0xff]   ;;  %v7063_v33 = vld [vmem:[%s10699_s3 + $0x48] sm:$0xff]  }
 0x375   :  { %v6116_v52 = vpop.f32.mrb[12].mxu0  ;;  %6335 = vmatprep.subr.bf16.mxu1 %v7399_v17 }
 0x376   :  { %v6117_v53 = vpop.f32.mrb[13].mxu0 }
 0x377   :  { %v6118_v57 = vadd.f32 %v6117_v53, %v6116_v52  ;;  %v6119_v47 = vpop.f32.mrb[14].mxu0  ;;  %6265 = vmatpush3.bf16.msra.mxu0 %v7052_v9  ;;  %v10963_v52 = vld [vmem:[#allocation2_spill] sm:$0xff] }
 0x378   :  { %v6120_v60 = vpop.f32.mrb[15].mxu0  ;;  %6336 = vmatpush3.bf16.msra.mxu1 %v7053_v2  ;;  %6266 = vmatprep.subr.bf16.mxu0 %v7054_v51  ;;  %v617_v53 = vsub.s32 1, %v10963_v52  ;;  %v7397_v47 = vld [vmem:[%s10697_s2] sm:$0x7]  ;;  %v7064_v2 = vld [vmem:[%s10699_s3 + $0x8] sm:$0xff]  }
 0x379   :  { %v4432_v14 = vadd.f32 %v6118_v57, %v4392_v27  ;;  %6337 = vmatprep.subr.bf16.mxu1 %v7399_v17  ;;  %v613_v57 = vsub.s32 0, %v10963_v52  ;;  %v7065_v51 = vld [vmem:[%s10699_s3 + $0x88] sm:$0xff]   ;;  %v7091_v52 = vld [vmem:[%s10700_s6 + $0x38] sm:$0xff]  }
 0x37a   :  { %v618_v60 = vrot.slane %v7397_v47, %v617_v53 }
 0x37b   :  { %6267 = vmatpush3.bf16.msra.mxu0 %v7055_v26  ;;  %v7067_v26 = vld [vmem:[%s10699_s3 + $0x10] sm:$0xff]  }
 0x37c   :  { %6338 = vmatpush3.bf16.msra.mxu1 %v7056_v25  ;;  %6268 = vmatprep.subr.bf16.mxu0 %v7057_v62  ;;  %v7069_v25 = vld [vmem:[%s10699_s3 + $0x58] sm:$0xff]   ;;  %v7073_v62 = vld [vmem:[%s10699_s3 + $0x20] sm:$0xff]  }
 0x37d   :  { %6339 = vmatprep.subr.bf16.mxu1 %v7399_v17 }
 0x37f   :  { %6269 = vmatpush3.bf16.msra.mxu0 %v7058_v18  ;;  %v7075_v18 = vld [vmem:[%s10699_s3 + $0x68] sm:$0xff]  }
 0x380   :  { %6340 = vmatpush3.bf16.msra.mxu1 %v7059_v16  ;;  %6285 = vmatprep.subr.bf16.mxu0 %v7060_v15  ;;  %v7076_v16 = vld [vmem:[%s10699_s3 + $0x28] sm:$0xff]  }
 0x381   :  { %6345 = vmatprep.subr.bf16.mxu1 %v7399_v17  ;;  %v7077_v15 = vld [vmem:[%s10699_s3 + $0xa8] sm:$0xff]  }
 0x395   :  { %v6138_v3 = vpop.f32.mrb[16].mxu0 }
 0x396   :  { %v6139_v29 = vpop.f32.mrb[17].mxu0 }
 0x397   :  { %v6140_v7 = vadd.f32 %v6139_v29, %v6138_v3  ;;  %v6141_v10 = vpop.f32.mrb[18].mxu0  ;;  %v6386_v29 = vadd.f32 %v10311_v56, %v618_v60  ;;  %v7061_v56 = vld [vmem:[%s10699_s3] sm:$0xff]  }
 0x398   :  { %v6142_v31 = vpop.f32.mrb[19].mxu0 }
 0x399   :  { %v4472_v50 = vadd.f32 %v6140_v7, %v4432_v14  ;;  %v10567_v14 = vrot.slane %v7397_v47, %v613_v57  ;;  %v3801_v36 = vmax.f32 %v6386_v29, 0.0 }
 0x39b   :  { %v4681_v9 = vpack.c.bf16 %v3801_v36, %v3801_v36  ;;  %v5847_v36 = vld [vmem:[%s10701_s5] ss:$0 sm:$0xff] }
 0x3b5   :  { %v6160_v0 = vpop.f32.mrb[20].mxu0 }
 0x3b6   :  { %v6161_v58 = vpop.f32.mrb[21].mxu0 }
 0x3b7   :  { %v6162_v42 = vadd.f32 %v6161_v58, %v6160_v0  ;;  %v6163_v6 = vpop.f32.mrb[22].mxu0  ;;  %v7066_v0 = vld [vmem:[%s10699_s3 + $0x50] sm:$0xff]  }
 0x3b8   :  { %v6164_v46 = vpop.f32.mrb[23].mxu0  ;;  %v7068_v58 = vld [vmem:[%s10699_s3 + $0x90] sm:$0xff]   ;;  %v7071_v6 = vld [vmem:[%s10699_s3 + $0x98] sm:$0xff]  }
 0x3b9   :  { %v4512_v55 = vadd.f32 %v6162_v42, %v4472_v50  ;;  %v7070_v42 = vld [vmem:[%s10699_s3 + $0x18] sm:$0xff]   ;;  %v7072_v46 = vld [vmem:[%s10699_s3 + $0x60] sm:$0xff]  }
 0x3d5   :  { %v6182_v38 = vpop.f32.mrb[24].mxu0 }
 0x3d6   :  { %v6183_v19 = vpop.f32.mrb[25].mxu0 }
 0x3d7   :  { %v6184_v21 = vadd.f32 %v6183_v19, %v6182_v38  ;;  %v6185_v13 = vpop.f32.mrb[26].mxu0  ;;  %v7078_v38 = vld [vmem:[%s10699_s3 + $0x70] sm:$0xff]  }
 0x3d8   :  { %v6186_v11 = vpop.f32.mrb[27].mxu0  ;;  %v7079_v19 = vld [vmem:[%s10699_s3 + $0x30] sm:$0xff]  }
 0x3d9   :  { %v4552_v30 = vadd.f32 %v6184_v21, %v4512_v55  ;;  %v7074_v55 = vld [vmem:[%s10699_s3 + $0xa0] sm:$0xff]   ;;  %v6385_v21 = vadd.f32 %v10308_v22, %v10567_v14  ;;  %v7080_v13 = vld [vmem:[%s10699_s3 + $0xb0] sm:$0xff]   ;;  %v7081_v11 = vld [vmem:[%s10699_s3 + $0x78] sm:$0xff]  }
 0x3da   :  { %v7083_v22 = vld [vmem:[%s10699_s3 + $0xb8] sm:$0xff]  }
 0x3f5   :  { %v6204_v41 = vpop.f32.mrb[28].mxu0 }
 0x3f6   :  { %v6205_v34 = vpop.f32.mrb[29].mxu0 }
 0x3f7   :  { %v6206_v35 = vadd.f32 %v6205_v34, %v6204_v41  ;;  %v6207_v37 = vpop.f32.mrb[30].mxu0  ;;  %v3800_v41 = vmax.f32 %v6385_v21, 0.0  ;;  %v10964_v34 = vld [vmem:[#allocation57_spill] sm:$0xff] }
 0x3f8   :  { %v6208_v20 = vpop.f32.mrb[31].mxu0 }
 0x3f9   :  { %v4592_v27 = vadd.f32 %v6206_v35, %v4552_v30  ;;  %v7082_v30 = vld [vmem:[%s10699_s3 + $0x38] sm:$0xff]   ;;  %v3802_v35 = vmax.f32 %v10964_v34, 0.0  ;;  %v4680_v37 = vpack.c.bf16 %v3800_v41, %v3800_v41 }
 0x3fb   :  { %v4682_v20 = vpack.c.bf16 %v3802_v35, %v3802_v35 }
 0x415   :  { %v6226_v39 = vpop.f32.mrb[32].mxu0 }
 0x416   :  { %v6227_v1 = vpop.f32.mrb[33].mxu0 }
 0x417   :  { %v6228_v5 = vadd.f32 %v6227_v1, %v6226_v39  ;;  %v6229_v45 = vpop.f32.mrb[34].mxu0  ;;  %v7085_v39 = vld [vmem:[%s10700_s6 + $0x8] sm:$0xff]   ;;  %v7086_v1 = vld [vmem:[%s10700_s6 + $0x10] sm:$0xff]  }
 0x418   :  { %v6230_v48 = vpop.f32.mrb[35].mxu0  ;;  %v7088_v45 = vld [vmem:[%s10700_s6 + $0x20] sm:$0xff]  }
 0x419   :  { %v4632_v54 = vadd.f32 %v6228_v5, %v4592_v27  ;;  %v7084_v27 = vld [vmem:[%s10700_s6] sm:$0xff]   ;;  %v7087_v5 = vld [vmem:[%s10700_s6 + $0x18] sm:$0xff]   ;;  %v7089_v48 = vld [vmem:[%s10700_s6 + $0x28] sm:$0xff]  }
 0x435   :  { %v6248_v3 = vpop.f32.mrb[36].mxu0 }
 0x436   :  { %v4310_v7 = vpop.f32.mrb[36].mxu1  ;;  %v6249_v10 = vpop.f32.mrb[37].mxu0 }
 0x437   :  { %v6387_v31 = vadd.f32 %v4310_v7, %v10567_v14  ;;  %v4312_v50 = vpop.f32.mrb[37].mxu1  ;;  %v6250_v12 = vadd.f32 %v6249_v10, %v6248_v3  ;;  %v6251_v61 = vpop.f32.mrb[38].mxu0 }
 0x438   :  { %v6388_v23 = vadd.f32 %v4312_v50, %v618_v60  ;;  %v4314_v8 = vpop.f32.mrb[38].mxu1  ;;  %v6252_v43 = vpop.f32.mrb[39].mxu0 }
 0x439   :  { %v4677_v24 = vmax.f32 %v6387_v31, 0.0  ;;  %v4672_v28 = vadd.f32 %v6250_v12, %v4632_v54  ;;  %v4315_v32 = vpop.f32.mrb[39].mxu1  ;;  %v7090_v54 = vld [vmem:[%s10700_s6 + $0x30] sm:$0xff]  }
 0x43a   :  { %v4678_v40 = vmax.f32 %v6388_v23, 0.0 }
 0x43b   :  { %v4679_v44 = vmax.f32 %v4672_v28, 0.0  ;;  %v4731_v59 = vpack.c.bf16 %v4677_v24, %v4677_v24 }
 0x43c   :  { %v4732_v49 = vpack.c.bf16 %v4678_v40, %v4678_v40 }
 0x43d   :  { %v4733_v63 = vpack.c.bf16 %v4679_v44, %v4679_v44 }
 0x43e   :  { %4958 = vmatprep.mubr.bf16.mxu0 %v4732_v49 }
 0x43f   :  { %4959 = vmatmul.mubr.bf16.vlgmr.msra.gmra.mrb[40].mxu0 %v4731_v59  ;;  %6342 = vmatmul.mubr.bf16.vlgmr.msra.gmra.mrb[40].mxu1 %v4733_v63  ;;  %v5848_v59 = vld [vmem:[%s10702_s7] ss:$0 sm:$0xff] }
 0x440   :  { %6286 = vmatpush3.bf16.msra.mxu0 %v7061_v56  ;;  %5182 = vmatprep.mubr.bf16.mxu0 %v4681_v9 }
 0x441   :  { %6346 = vmatpush3.bf16.msra.mxu1 %v7062_v4  ;;  %6287 = vmatprep.subr.bf16.mxu0 %v7063_v33 }
 0x442   :  { %6347 = vmatprep.subr.bf16.mxu1 %v7399_v17  ;;  %6361 = vmatprep.mubr.msk.bf16.mxu1 %vm7400_vm0, %v7399_v17 }
 0x444   :  { %6288 = vmatpush3.bf16.msra.mxu0 %v7064_v2 }
 0x445   :  { %6348 = vmatpush3.bf16.msra.mxu1 %v7065_v51  ;;  %6289 = vmatprep.subr.bf16.mxu0 %v7066_v0 }
 0x446   :  { %6349 = vmatprep.subr.bf16.mxu1 %v7399_v17 }
 0x448   :  { %6290 = vmatpush3.bf16.msra.mxu0 %v7067_v26 }
 0x449   :  { %6350 = vmatpush3.bf16.msra.mxu1 %v7068_v58  ;;  %6291 = vmatprep.subr.bf16.mxu0 %v7069_v25 }
 0x44a   :  { %6351 = vmatprep.subr.bf16.mxu1 %v7399_v17 }
 0x44c   :  { %6292 = vmatpush3.bf16.msra.mxu0 %v7070_v42 }
 0x44d   :  { %6352 = vmatpush3.bf16.msra.mxu1 %v7071_v6  ;;  %6293 = vmatprep.subr.bf16.mxu0 %v7072_v46 }
 0x44e   :  { %6353 = vmatprep.subr.bf16.mxu1 %v7399_v17 }
 0x450   :  { %6294 = vmatpush3.bf16.msra.mxu0 %v7073_v62 }
 0x451   :  { %6354 = vmatpush3.bf16.msra.mxu1 %v7074_v55  ;;  %6295 = vmatprep.subr.bf16.mxu0 %v7075_v18 }
 0x452   :  { %6355 = vmatprep.subr.bf16.mxu1 %v7399_v17 }
 0x454   :  { %6296 = vmatpush3.bf16.msra.mxu0 %v7076_v16 }
 0x455   :  { %6356 = vmatpush3.bf16.msra.mxu1 %v7077_v15  ;;  %6297 = vmatprep.subr.bf16.mxu0 %v7078_v38 }
 0x456   :  { %6357 = vmatprep.subr.bf16.mxu1 %v7399_v17 }
 0x458   :  { %6298 = vmatpush3.bf16.msra.mxu0 %v7079_v19 }
 0x459   :  { %6358 = vmatpush3.bf16.msra.mxu1 %v7080_v13  ;;  %6299 = vmatprep.subr.bf16.mxu0 %v7081_v11 }
 0x45a   :  { %6359 = vmatprep.subr.bf16.mxu1 %v7399_v17 }
 0x45c   :  { %6300 = vmatpush3.bf16.msra.mxu0 %v7082_v30 }
 0x45d   :  { %6360 = vmatpush3.bf16.msra.mxu1 %v7083_v22  ;;  %6365 = vmatprep.subr.bf16.mxu0 %v7399_v17 }
 0x45f   :  { %5183 = vmatmul.mubr.bf16.vlgmr.msra.gmra.mrb[44].mxu0 %v4680_v37 }
 0x460   :  { %6362 = vmatmul.mubr.bf16.vlgmr.msra.gmra.mrb[44].mxu1 %v4682_v20  ;;  %6381 = vmatprep.mubr.msk.bf16.mxu0 %vm7400_vm0, %v7399_v17 }
 0x461   :  { %6366 = vmatpush3.bf16.msra.mxu0 %v7084_v27 }
 0x462   :  { %6367 = vmatprep.subr.bf16.mxu0 %v7399_v17 }
 0x465   :  { %6368 = vmatpush3.bf16.msra.mxu0 %v7085_v39 }
 0x466   :  { %6369 = vmatprep.subr.bf16.mxu0 %v7399_v17 }
 0x469   :  { %6370 = vmatpush3.bf16.msra.mxu0 %v7086_v1 }
 0x46a   :  { %6371 = vmatprep.subr.bf16.mxu0 %v7399_v17 }
 0x46d   :  { %6372 = vmatpush3.bf16.msra.mxu0 %v7087_v5 }
 0x46e   :  { %6373 = vmatprep.subr.bf16.mxu0 %v7399_v17 }
 0x471   :  { %6374 = vmatpush3.bf16.msra.mxu0 %v7088_v45 }
 0x472   :  { %6375 = vmatprep.subr.bf16.mxu0 %v7399_v17 }
 0x475   :  { %6376 = vmatpush3.bf16.msra.mxu0 %v7089_v48 }
 0x476   :  { %6377 = vmatprep.subr.bf16.mxu0 %v7399_v17 }
 0x479   :  { %6378 = vmatpush3.bf16.msra.mxu0 %v7090_v54 }
 0x47a   :  { %6379 = vmatprep.subr.bf16.mxu0 %v7399_v17 }
 0x47d   :  { %6380 = vmatpush3.bf16.msra.mxu0 %v7091_v52 }
 0x512   :  { %v6270_v53 = vpop.f32.mrb[40].mxu0  ;;  %v5000_v57 = vpop.f32.mrb[40].mxu1 }
 0x513   :  { %v6271_v47 = vpop.f32.mrb[41].mxu0  ;;  %v6343_v60 = vpop.f32.mrb[41].mxu1 }
 0x514   :  { %v6272_v14 = vadd.f32 %v6271_v47, %v6270_v53  ;;  %v6273_v3 = vpop.f32.mrb[42].mxu0  ;;  %v5003_v29 = vpop.f32.mrb[42].mxu1 }
 0x515   :  { %v6274_v7 = vpop.f32.mrb[43].mxu0  ;;  %v6344_v10 = vpop.f32.mrb[43].mxu1 }
 0x516   :  { %v5001_v31 = vadd.f32 %v6272_v14, %v5000_v57 }
 0x532   :  { %v6301_v50 = vpop.f32.mrb[44].mxu0 }
 0x533   :  { %v6302_v12 = vpop.f32.mrb[45].mxu0  ;;  %v5224_v61 = vpop.f32.mrb[44].mxu1 }
 0x534   :  { %v6303_v23 = vadd.f32 %v6302_v12, %v6301_v50  ;;  %v6304_v17 = vpop.f32.mrb[46].mxu0  ;;  %v6363_v8 = vpop.f32.mrb[45].mxu1 }
 0x535   :  { %v6305_v43 = vpop.f32.mrb[47].mxu0  ;;  %v5227_v24 = vpop.f32.mrb[46].mxu1 }
 0x536   :  { %v5185_v28 = vadd.f32 %v6303_v23, %v5001_v31  ;;  %v6364_v32 = vpop.f32.mrb[47].mxu1 }
 0x538   :  { %v5225_v40 = vadd.f32 %v5224_v61, %v5185_v28 }
 0x53a   :  { %v5237_v44 = vadd.f32 %v5847_v36, %v5225_v40 }
 0x53c   :  { %v5238_v49 = vmax.f32 %v5237_v44, 0.0 }
 0x53e   :  { %v5239_v56 = vpack.c.bf16 %v5238_v49, %v5238_v49 }
 0x540   :  { %6382 = vmatmul.mubr.bf16.vlgmr.msra.gmra.mrb[48].mxu0 %v5239_v56 }
 0x613   :  { %v5345_v63 = vpop.f32.mrb[48].mxu0 }
 0x614   :  { %v5346_v4 = vadd.f32 %v5848_v59, %v5345_v63  ;;  %v6383_v33 = vpop.f32.mrb[49].mxu0 }
 0x615   :  { %v5348_v9 = vpop.f32.mrb[50].mxu0 }
 0x616   :  { %v5857_v2 = vmul.f32 -1.442695, %v5346_v4  ;;  %v6384_v51 = vpop.f32.mrb[51].mxu0 }
 0x618   :  { %7092 = vpow2.f32 %v5857_v2 }
 0x622   :  { %v7093_v0 = vpop.eup %7092 }
 0x623   :  { %v5354_v26 = vadd.f32 1.0, %v7093_v0 }
 0x625   :  { %7094 = vrcp.f32 %v5354_v26 }
 0x62f   :  { %v7095_v58 = vpop.eup %7094 }
 0x630   :  { %5357 = vst [vmem:[%s10703_s8] sm:$0x3] %v7095_v58 }

</bundles_post_ra>
